<compile_context>
chip_gen: v6e
topology: v6e:2x2x1
jax: 0.10.0
libtpu: 0.0.40
codegen_flags: <defaults>
</compile_context>

<pallas_src>
import jax
import jax.numpy as jnp
from jax.experimental import pallas as pl
from jax.experimental.pallas import tpu as pltpu

BN_EPS = 1e-5
ROW_TILE_CAP = 1024      # lane-tile cap along flattened output rows
POOL_LANES = 512         # lane width for the elementwise max kernel
POOL_ROW_CAP = 2048      # row-tile cap for the max kernel


# ----------------------------------------------------------------------------
# Small helpers.
# ----------------------------------------------------------------------------
def _cdiv(a, b):
    return (a + b - 1) // b


def _round_up(x, m):
    return _cdiv(x, m) * m


def _row_tile(m):
    """Lane tile (multiple of 128) along the flattened row axis.

    Prefer >= 2 grid tiles so the "parallel" axis shards across both v7x
    TensorCores; cap the tile so double-buffered operands stay inside VMEM.
    """
    m128 = _round_up(max(m, 1), 128)
    if m128 <= 128:
        return 128
    n_tiles = max(2, _cdiv(m128, ROW_TILE_CAP))
    return _round_up(_cdiv(m128, n_tiles), 128)


def _pool_row_tile(r):
    r8 = _round_up(max(r, 1), 8)
    if r8 <= 8:
        return 8
    n_tiles = max(2, _cdiv(r8, POOL_ROW_CAP))
    return _round_up(_cdiv(r8, n_tiles), 8)


def _mish(x):
    # Single-transcendental Mish:
    #   mish(x) = x * tanh(softplus(x)) = x * (1 - 2 / ((1 + e^x)^2 + 1))
    # Clamp before exp: for x >= 20 the true result equals x to f32 precision,
    # and the clamp keeps the approx reciprocal away from inf inputs.
    e = jnp.exp(jnp.minimum(x, 20.0))
    t = 1.0 + e
    return x * (1.0 - 2.0 * pl.reciprocal(t * t + 1.0, approx=True))


def _bn_scale_shift(gamma, beta):
    # inference BN, running_mean=0 / running_var=1 -> y = gamma*x/sqrt(1+eps)+beta
    scale = gamma.astype(jnp.float32) * jax.lax.rsqrt(jnp.float32(1.0) + BN_EPS)
    return scale, beta.astype(jnp.float32)


# ----------------------------------------------------------------------------
# Pallas kernels.
# ----------------------------------------------------------------------------
def conv_mish_bn_kernel(x_ref, w_ref, bn_ref, o_ref):
    # x_ref: (Kp, TM) bf16   w_ref: (Cout, Kp) bf16
    # bn_ref: (Cout, 2) f32  [:, 0] = BN scale, [:, 1] = BN shift
    # o_ref: (Cout, TM) bf16 (lane-dense block -> unmasked stores)
    acc = jnp.dot(w_ref[...], x_ref[...], preferred_element_type=jnp.float32)
    y = _mish(acc)
    o_ref[...] = (y * bn_ref[:, 0:1] + bn_ref[:, 1:2]).astype(o_ref.dtype)


def max3_kernel(a_ref, b_ref, c_ref, o_ref):
    # Elementwise 3-tap max on lane-dense (TR, 512) tiles (pure VPU).
    o_ref[...] = jnp.maximum(jnp.maximum(a_ref[...], b_ref[...]), c_ref[...])


def final_conv_kernel(x_ref, w1_ref, p_ref, o_ref):
    # x_ref: (Kp1, TM) bf16    w1_ref: (Cmid, Kp1) bf16
    # p_ref: (Cmid, 3) f32: [:,0]=conv bias, [:,1]=BN-folded 1x1 weight,
    #                        [:,2]=BN-folded output bias (only row 0 nonzero)
    # o_ref: (1, TM) f32 (lane-dense)
    acc = jnp.dot(w1_ref[...], x_ref[...], preferred_element_type=jnp.float32)
    y = _mish(acc + p_ref[:, 0:1])
    out = jnp.sum(p_ref[:, 1:2] * y + p_ref[:, 2:3], axis=0, keepdims=True)
    o_ref[...] = out.astype(o_ref.dtype)


# ----------------------------------------------------------------------------
# Wrappers (tap extraction / reshapes stay in plain JAX; allow_input_fusion
# lets XLA fold them into the kernel operand DMA where possible).
# ----------------------------------------------------------------------------
def _out_dim(s, k, stride, pad, dil):
    return (s + 2 * pad - dil * (k - 1) - 1) // stride + 1


def _tap_slices_cm(x, ksize, stride, padding, dilation=1, pad_value=0.0):
    """x: (C, N, D, H, W) -> list of ksize**3 shifted views, each (C, N, Do, Ho, Wo)."""
    C, N, D, H, W = x.shape
    p = padding
    xp = jnp.pad(x, ((0, 0), (0, 0), (p, p), (p, p), (p, p)),
                 constant_values=pad_value)
    Do = _out_dim(D, ksize, stride, p, dilation)
    Ho = _out_dim(H, ksize, stride, p, dilation)
    Wo = _out_dim(W, ksize, stride, p, dilation)
    slices = []
    for kd in range(ksize):
        for kh in range(ksize):
            for kw in range(ksize):
                d0, h0, w0 = kd * dilation, kh * dilation, kw * dilation
                slices.append(
                    xp[:, :,
                       d0:d0 + (Do - 1) * stride + 1:stride,
                       h0:h0 + (Ho - 1) * stride + 1:stride,
                       w0:w0 + (Wo - 1) * stride + 1:stride])
    return slices, (N, Do, Ho, Wo)


def conv3d_mish_bn(x_cm, w, gamma, beta, *, stride=1, padding=1):
    """conv_layer(ni, nf): Conv3d(k=3, bias=False) -> Mish -> BatchNorm3d (inference).

    Channel-major in/out: x_cm (Cin, N, D, H, W) -> (Cout, N, Do, Ho, Wo), bf16.
    """
    x = x_cm.astype(jnp.bfloat16)
    slices, (N, Do, Ho, Wo) = _tap_slices_cm(x, 3, stride, padding)
    Cin = x.shape[0]
    T = len(slices)
    Cout = w.shape[-1]
    M = N * Do * Ho * Wo
    K = T * Cin
    Kp = _round_up(K, 16)          # bf16 sublane packing; do NOT pad to MXU width
    TM = _row_tile(M)
    Mp = _round_up(M, TM)

    # im2col, channel-major: row k = tap*Cin + c, column = flattened output pos.
    taps = jnp.stack([s.reshape(Cin, M) for s in slices], axis=0).reshape(K, M)
    taps = jnp.pad(taps, ((0, Kp - K), (0, Mp - M)))
    wk = jnp.pad(jnp.transpose(w.reshape(K, Cout)).astype(jnp.bfloat16),
                 ((0, 0), (0, Kp - K)))                              # (Cout, Kp)
    scale, shift = _bn_scale_shift(gamma, beta)
    bn = jnp.stack([scale, shift], axis=1)                           # (Cout, 2)

    out = pl.pallas_call(
        conv_mish_bn_kernel,
        out_shape=jax.ShapeDtypeStruct((Cout, Mp), jnp.bfloat16),
        grid=(Mp // TM,),
        in_specs=[
            pl.BlockSpec((Kp, TM), lambda i: (0, i)),
            pl.BlockSpec((Cout, Kp), lambda i: (0, 0)),
            pl.BlockSpec((Cout, 2), lambda i: (0, 0)),
        ],
        out_specs=pl.BlockSpec((Cout, TM), lambda i: (0, i)),
        compiler_params=pltpu.CompilerParams(
            dimension_semantics=("parallel",),
            allow_input_fusion=[True, False, False]),
    )(taps, wk, bn)
    return out[:, :M].reshape(Cout, N, Do, Ho, Wo)


def _max3_lane_dense(a, b, c, pad_value):
    """Elementwise max of three same-shaped arrays, lane-dense (R, 512) tiling."""
    S = a.size
    R = _cdiv(S, POOL_LANES)
    TR = _pool_row_tile(R)
    Rp = _round_up(R, TR)
    Sp = Rp * POOL_LANES

    def prep(v):
        v = jnp.pad(v.reshape(-1), (0, Sp - S), constant_values=pad_value)
        return v.reshape(Rp, POOL_LANES)

    out = pl.pallas_call(
        max3_kernel,
        out_shape=jax.ShapeDtypeStruct((Rp, POOL_LANES), a.dtype),
        grid=(Rp // TR,),
        in_specs=[pl.BlockSpec((TR, POOL_LANES), lambda i: (i, 0))] * 3,
        out_specs=pl.BlockSpec((TR, POOL_LANES), lambda i: (i, 0)),
        compiler_params=pltpu.CompilerParams(
            dimension_semantics=("parallel",),
            allow_input_fusion=[True, True, True]),
    )(prep(a), prep(b), prep(c))
    return out.reshape(-1)[:S].reshape(a.shape)


def maxpool3d_cm(x_cm, *, ksize=3, stride=2, padding=1):
    """MaxPool3d(k=3, s=2, p=1) as three separable 1-D 3-tap max passes (D, H, W).

    x_cm: (C, N, D, H, W) -> (C, N, Do, Ho, Wo); max is elementwise per pass so
    layout is irrelevant and we can run lane-dense flat tiles.
    """
    assert ksize == 3
    neg = -jnp.inf
    x = x_cm
    for axis in (2, 3, 4):
        size = x.shape[axis]
        so = _out_dim(size, ksize, stride, padding, 1)
        pad_cfg = [(0, 0)] * x.ndim
        pad_cfg[axis] = (padding, padding)
        xp = jnp.pad(x, pad_cfg, constant_values=neg)
        taps = []
        for k in range(ksize):
            idx = [slice(None)] * x.ndim
            idx[axis] = slice(k, k + (so - 1) * stride + 1, stride)
            taps.append(xp[tuple(idx)])
        x = _max3_lane_dense(taps[0], taps[1], taps[2], neg)
    return x


def final_conv_cm(x_cm, w1, b1, gamma, beta, w2, b2):
    """Conv3d(8,8,3,pad=2,dil=2,bias) -> Mish -> BN(8) -> Conv3d(8,1,1,bias).

    BN scale/shift and the final bias are folded into the 1x1 conv (exact);
    per-channel operands are packed into one (Cmid, 3) f32 array.
    x_cm: (8, N, D, H, W) -> (1, N, D, H, W) f32.
    """
    x = x_cm.astype(jnp.bfloat16)
    slices, (N, Do, Ho, Wo) = _tap_slices_cm(x, 3, 1, 2, dilation=2)
    Cin = x.shape[0]
    T = len(slices)
    Cmid = w1.shape[2]
    M = N * Do * Ho * Wo
    K1 = T * Cin
    Kp1 = _round_up(K1, 16)
    TM = _row_tile(M)
    Mp = _round_up(M, TM)

    # Channel-major taps (no HBM transpose needed: upstream is already (C, M)).
    taps = jnp.stack([s.reshape(Cin, M) for s in slices], axis=0).reshape(K1, M)
    taps = jnp.pad(taps, ((0, Kp1 - K1), (0, Mp - M)))
    w1t = jnp.pad(jnp.transpose(w1.reshape(K1, Cmid)).astype(jnp.bfloat16),
                  ((0, 0), (0, Kp1 - K1)))                          # (Cmid, Kp1)

    scale, shift = _bn_scale_shift(gamma, beta)
    w2r = w2.reshape(Cmid).astype(jnp.float32)
    w2f = w2r * scale                                               # folded 1x1 weight
    b2f = jnp.sum(w2r * shift) + b2.reshape(()).astype(jnp.float32)  # folded bias
    b2col = jnp.zeros((Cmid,), jnp.float32).at[0].set(b2f)
    packed = jnp.stack([b1.astype(jnp.float32), w2f, b2col], axis=1)  # (Cmid, 3)

    out = pl.pallas_call(
        final_conv_kernel,
        out_shape=jax.ShapeDtypeStruct((1, Mp), jnp.float32),
        grid=(Mp // TM,),
        in_specs=[
            pl.BlockSpec((Kp1, TM), lambda i: (0, i)),
            pl.BlockSpec((Cmid, Kp1), lambda i: (0, 0)),
            pl.BlockSpec((Cmid, 3), lambda i: (0, 0)),
        ],
        out_specs=pl.BlockSpec((1, TM), lambda i: (0, i)),
        compiler_params=pltpu.CompilerParams(
            dimension_semantics=("parallel",),
            allow_input_fusion=[True, False, False]),
    )(taps, w1t, packed)
    return out[:, :M].reshape(1, N, Do, Ho, Wo)


# ----------------------------------------------------------------------------
# Deterministic parameter construction (shapes from Res2Net3D.__init__).
# ----------------------------------------------------------------------------
def _conv_w(key, cin, cout, k=3):
    # weights stored as (T=k^3, Cin, Cout), tap-major (kd, kh, kw)
    fan_in = cin * k * k * k
    std = (2.0 / fan_in) ** 0.5
    return std * jax.random.normal(key, (k * k * k, cin, cout), jnp.float32)


def make_params(key, c_in):
    keys = jax.random.split(key, 16)
    p = {}
    # conv1/2/3 = conv_layer(ni, nf): Conv3d(bias=False) + Mish + BN(gamma=1)
    sizes = [c_in, 32, 64, 64]
    for idx, (ni, nf) in enumerate(zip(sizes[:-1], sizes[1:]), start=1):
        p[f"conv{idx}_w"] = _conv_w(keys[idx], ni, nf)
        p[f"conv{idx}_gamma"] = jnp.ones((nf,), jnp.float32)
        p[f"conv{idx}_beta"] = jnp.zeros((nf,), jnp.float32)
    # final_conv: Conv3d(8,8,3,pad=2,dil=2,bias), Mish, BN(8), Conv3d(8,1,1,bias)
    p["fc_w1"] = _conv_w(keys[8], 8, 8)
    p["fc_b1"] = 0.01 * jax.random.normal(keys[9], (8,), jnp.float32)
    p["fc_gamma"] = jnp.ones((8,), jnp.float32)
    p["fc_beta"] = jnp.zeros((8,), jnp.float32)
    p["fc_w2"] = (1.0 / 8.0) ** 0.5 * jax.random.normal(keys[10], (8, 1), jnp.float32)
    p["fc_b2"] = 0.01 * jax.random.normal(keys[11], (1,), jnp.float32)
    return p


@jax.jit
def res2net3d_forward(x_ncdhw, params):
    # NCDHW (PyTorch) -> channel-major (C, N, D, H, W); all stages stay in this
    # layout (lane-dense (C, M) kernel blocks), so no inter-stage transposes.
    x = jnp.transpose(x_ncdhw, (1, 0, 2, 3, 4))
    x = conv3d_mish_bn(x, params["conv1_w"], params["conv1_gamma"],
                       params["conv1_beta"], stride=2, padding=1)
    x = conv3d_mish_bn(x, params["conv2_w"], params["conv2_gamma"],
                       params["conv2_beta"], stride=1, padding=1)
    x = conv3d_mish_bn(x, params["conv3_w"], params["conv3_gamma"],
                       params["conv3_beta"], stride=1, padding=1)
    # TODO(synk): layer1..layer4 and layerup1..layerup5 require the `block`
    # (Bottle2neck) class, which is not defined in the reference module.
    # Placeholder: feed the first 8 channels into maxpool + final_conv.
    x = x[:8]
    x = maxpool3d_cm(x, ksize=3, stride=2, padding=1)
    y = final_conv_cm(x, params["fc_w1"], params["fc_b1"], params["fc_gamma"],
                      params["fc_beta"], params["fc_w2"], params["fc_b2"])
    # channel-major -> NCDHW
    return jnp.transpose(y, (1, 0, 2, 3, 4))


if __name__ == "__main__":
    key = jax.random.PRNGKey(0)
    k_x, k_p = jax.random.split(key)
    N, C_IN, D, H, W = 2, 3, 16, 16, 16
    x = jax.random.normal(k_x, (N, C_IN, D, H, W), jnp.float32)   # NCDHW
    params = make_params(k_p, C_IN)
    out = res2net3d_forward(x, params)
    out = jax.block_until_ready(out)
    assert out.shape == (N, 1, 4, 4, 4), out.shape
    assert bool(jnp.all(jnp.isfinite(out)))
    print("KERNEL_OK")
</pallas_src>

<mosaic_0001>
module attributes {stable_mosaic.version = 11 : i64} {
  func.func @conv_mish_bn_kernel(%arg0: i32, %arg1: memref<96x512xbf16, #tpu.memory_space<vmem>>, %arg2: memref<32x96xbf16, #tpu.memory_space<vmem>>, %arg3: memref<32x2xf32, #tpu.memory_space<vmem>>, %arg4: memref<32x512xbf16, #tpu.memory_space<vmem>>) attributes {dimension_semantics = [#tpu.dimension_semantics<parallel>], iteration_bounds = array<i64: 2>, scalar_prefetch = 0 : i64, scratch_operands = 0 : i64, tpu.core_type = #tpu.core_type<tc>, window_params = [{transform_indices = @transform_0, window_bounds = array<i64: 96, 512>}, {pipeline_mode = #tpu.pipeline_mode<synchronous>, transform_indices = @transform_1, window_bounds = array<i64: 32, 96>}, {pipeline_mode = #tpu.pipeline_mode<synchronous>, transform_indices = @transform_2, window_bounds = array<i64: 32, 2>}, {transform_indices = @transform_3, window_bounds = array<i64: 32, 512>}]} {
    %c0 = arith.constant 0 : index
    %c0_0 = arith.constant 0 : index
    %0 = vector.load %arg2[%c0, %c0_0] : memref<32x96xbf16, #tpu.memory_space<vmem>>, vector<32x96xbf16>
    %c0_1 = arith.constant 0 : index
    %c0_2 = arith.constant 0 : index
    %1 = vector.load %arg1[%c0_1, %c0_2] : memref<96x512xbf16, #tpu.memory_space<vmem>>, vector<96x512xbf16>
    %cst = arith.constant dense<0.000000e+00> : vector<32x512xf32>
    %2 = tpu.matmul %0, %1, %cst {dimension_numbers = #tpu.dot_dimension_numbers<[1], [0], [0], [1], [0, 0, 1, 1], [], []>} : vector<32x96xbf16>, vector<96x512xbf16>, vector<32x512xf32> -> vector<32x512xf32>
    %cst_3 = arith.constant 2.000000e+01 : f32
    %3 = vector.broadcast %cst_3 : f32 to vector<32x512xf32>
    %4 = arith.minimumf %2, %3 : vector<32x512xf32>
    %5 = math.exp %4 : vector<32x512xf32>
    %cst_4 = arith.constant 1.000000e+00 : f32
    %6 = vector.broadcast %cst_4 : f32 to vector<32x512xf32>
    %7 = arith.addf %6, %5 : vector<32x512xf32>
    %8 = arith.mulf %7, %7 : vector<32x512xf32>
    %cst_5 = arith.constant 1.000000e+00 : f32
    %9 = vector.broadcast %cst_5 : f32 to vector<32x512xf32>
    %10 = arith.addf %8, %9 : vector<32x512xf32>
    %11 = tpu.reciprocal %10 {approx = true} : vector<32x512xf32> -> vector<32x512xf32>
    %cst_6 = arith.constant 2.000000e+00 : f32
    %12 = vector.broadcast %cst_6 : f32 to vector<32x512xf32>
    %13 = arith.mulf %12, %11 : vector<32x512xf32>
    %cst_7 = arith.constant 1.000000e+00 : f32
    %14 = vector.broadcast %cst_7 : f32 to vector<32x512xf32>
    %15 = arith.subf %14, %13 : vector<32x512xf32>
    %16 = arith.mulf %2, %15 : vector<32x512xf32>
    %c0_8 = arith.constant 0 : index
    %c0_9 = arith.constant 0 : index
    %17 = vector.load %arg3[%c0_8, %c0_9] : memref<32x2xf32, #tpu.memory_space<vmem>>, vector<32x1xf32>
    %18 = vector.broadcast %17 : vector<32x1xf32> to vector<32x512xf32>
    %19 = arith.mulf %16, %18 : vector<32x512xf32>
    %c0_10 = arith.constant 0 : index
    %c1 = arith.constant 1 : index
    %20 = vector.load %arg3[%c0_10, %c1] : memref<32x2xf32, #tpu.memory_space<vmem>>, vector<32x1xf32>
    %21 = vector.broadcast %20 : vector<32x1xf32> to vector<32x512xf32>
    %22 = arith.addf %19, %21 : vector<32x512xf32>
    %23 = arith.truncf %22 : vector<32x512xf32> to vector<32x512xbf16>
    %c0_11 = arith.constant 0 : index
    %c0_12 = arith.constant 0 : index
    %24 = vector.load %arg4[%c0_11, %c0_12] : memref<32x512xbf16, #tpu.memory_space<vmem>>, vector<32x512xbf16>
    tpu.vector_store %arg4[%c0_11, %c0_12], %23 {strides = array<i32>} : memref<32x512xbf16, #tpu.memory_space<vmem>>, vector<32x512xbf16>,
    return
  }
  func.func @transform_0(%arg0: i32) -> (i32, i32) {
    %c0_i32 = arith.constant 0 : i32
    %c0_i32_0 = arith.constant 0 : i32
    return %c0_i32, %arg0 : i32, i32
  }
  func.func @transform_1(%arg0: i32) -> (i32, i32) {
    %c0_i32 = arith.constant 0 : i32
    %c0_i32_0 = arith.constant 0 : i32
    %c0_i32_1 = arith.constant 0 : i32
    return %c0_i32, %c0_i32_0 : i32, i32
  }
  func.func @transform_2(%arg0: i32) -> (i32, i32) {
    %c0_i32 = arith.constant 0 : i32
    %c0_i32_0 = arith.constant 0 : i32
    %c0_i32_1 = arith.constant 0 : i32
    return %c0_i32, %c0_i32_0 : i32, i32
  }
  func.func @transform_3(%arg0: i32) -> (i32, i32) {
    %c0_i32 = arith.constant 0 : i32
    %c0_i32_0 = arith.constant 0 : i32
    return %c0_i32, %arg0 : i32, i32
  }
}

module attributes {stable_mosaic.version = 11 : i64} {
  func.func @conv_mish_bn_kernel(%arg0: i32, %arg1: memref<864x512xbf16, #tpu.memory_space<vmem>>, %arg2: memref<64x864xbf16, #tpu.memory_space<vmem>>, %arg3: memref<64x2xf32, #tpu.memory_space<vmem>>, %arg4: memref<64x512xbf16, #tpu.memory_space<vmem>>) attributes {dimension_semantics = [#tpu.dimension_semantics<parallel>], iteration_bounds = array<i64: 2>, scalar_prefetch = 0 : i64, scratch_operands = 0 : i64, tpu.core_type = #tpu.core_type<tc>, window_params = [{transform_indices = @transform_0, window_bounds = array<i64: 864, 512>}, {pipeline_mode = #tpu.pipeline_mode<synchronous>, transform_indices = @transform_1, window_bounds = array<i64: 64, 864>}, {pipeline_mode = #tpu.pipeline_mode<synchronous>, transform_indices = @transform_2, window_bounds = array<i64: 64, 2>}, {transform_indices = @transform_3, window_bounds = array<i64: 64, 512>}]} {
    %c0 = arith.constant 0 : index
    %c0_0 = arith.constant 0 : index
    %0 = vector.load %arg2[%c0, %c0_0] : memref<64x864xbf16, #tpu.memory_space<vmem>>, vector<64x864xbf16>
    %c0_1 = arith.constant 0 : index
    %c0_2 = arith.constant 0 : index
    %1 = vector.load %arg1[%c0_1, %c0_2] : memref<864x512xbf16, #tpu.memory_space<vmem>>, vector<864x512xbf16>
    %cst = arith.constant dense<0.000000e+00> : vector<64x512xf32>
    %2 = tpu.matmul %0, %1, %cst {dimension_numbers = #tpu.dot_dimension_numbers<[1], [0], [0], [1], [0, 0, 1, 1], [], []>} : vector<64x864xbf16>, vector<864x512xbf16>, vector<64x512xf32> -> vector<64x512xf32>
    %cst_3 = arith.constant 2.000000e+01 : f32
    %3 = vector.broadcast %cst_3 : f32 to vector<64x512xf32>
    %4 = arith.minimumf %2, %3 : vector<64x512xf32>
    %5 = math.exp %4 : vector<64x512xf32>
    %cst_4 = arith.constant 1.000000e+00 : f32
    %6 = vector.broadcast %cst_4 : f32 to vector<64x512xf32>
    %7 = arith.addf %6, %5 : vector<64x512xf32>
    %8 = arith.mulf %7, %7 : vector<64x512xf32>
    %cst_5 = arith.constant 1.000000e+00 : f32
    %9 = vector.broadcast %cst_5 : f32 to vector<64x512xf32>
    %10 = arith.addf %8, %9 : vector<64x512xf32>
    %11 = tpu.reciprocal %10 {approx = true} : vector<64x512xf32> -> vector<64x512xf32>
    %cst_6 = arith.constant 2.000000e+00 : f32
    %12 = vector.broadcast %cst_6 : f32 to vector<64x512xf32>
    %13 = arith.mulf %12, %11 : vector<64x512xf32>
    %cst_7 = arith.constant 1.000000e+00 : f32
    %14 = vector.broadcast %cst_7 : f32 to vector<64x512xf32>
    %15 = arith.subf %14, %13 : vector<64x512xf32>
    %16 = arith.mulf %2, %15 : vector<64x512xf32>
    %c0_8 = arith.constant 0 : index
    %c0_9 = arith.constant 0 : index
    %17 = vector.load %arg3[%c0_8, %c0_9] : memref<64x2xf32, #tpu.memory_space<vmem>>, vector<64x1xf32>
    %18 = vector.broadcast %17 : vector<64x1xf32> to vector<64x512xf32>
    %19 = arith.mulf %16, %18 : vector<64x512xf32>
    %c0_10 = arith.constant 0 : index
    %c1 = arith.constant 1 : index
    %20 = vector.load %arg3[%c0_10, %c1] : memref<64x2xf32, #tpu.memory_space<vmem>>, vector<64x1xf32>
    %21 = vector.broadcast %20 : vector<64x1xf32> to vector<64x512xf32>
    %22 = arith.addf %19, %21 : vector<64x512xf32>
    %23 = arith.truncf %22 : vector<64x512xf32> to vector<64x512xbf16>
    %c0_11 = arith.constant 0 : index
    %c0_12 = arith.constant 0 : index
    %24 = vector.load %arg4[%c0_11, %c0_12] : memref<64x512xbf16, #tpu.memory_space<vmem>>, vector<64x512xbf16>
    tpu.vector_store %arg4[%c0_11, %c0_12], %23 {strides = array<i32>} : memref<64x512xbf16, #tpu.memory_space<vmem>>, vector<64x512xbf16>,
    return
  }
  func.func @transform_0(%arg0: i32) -> (i32, i32) {
    %c0_i32 = arith.constant 0 : i32
    %c0_i32_0 = arith.constant 0 : i32
    return %c0_i32, %arg0 : i32, i32
  }
  func.func @transform_1(%arg0: i32) -> (i32, i32) {
    %c0_i32 = arith.constant 0 : i32
    %c0_i32_0 = arith.constant 0 : i32
    %c0_i32_1 = arith.constant 0 : i32
    return %c0_i32, %c0_i32_0 : i32, i32
  }
  func.func @transform_2(%arg0: i32) -> (i32, i32) {
    %c0_i32 = arith.constant 0 : i32
    %c0_i32_0 = arith.constant 0 : i32
    %c0_i32_1 = arith.constant 0 : i32
    return %c0_i32, %c0_i32_0 : i32, i32
  }
  func.func @transform_3(%arg0: i32) -> (i32, i32) {
    %c0_i32 = arith.constant 0 : i32
    %c0_i32_0 = arith.constant 0 : i32
    return %c0_i32, %arg0 : i32, i32
  }
}

module attributes {stable_mosaic.version = 11 : i64} {
  func.func @conv_mish_bn_kernel(%arg0: i32, %arg1: memref<1728x512xbf16, #tpu.memory_space<vmem>>, %arg2: memref<64x1728xbf16, #tpu.memory_space<vmem>>, %arg3: memref<64x2xf32, #tpu.memory_space<vmem>>, %arg4: memref<64x512xbf16, #tpu.memory_space<vmem>>) attributes {dimension_semantics = [#tpu.dimension_semantics<parallel>], iteration_bounds = array<i64: 2>, scalar_prefetch = 0 : i64, scratch_operands = 0 : i64, tpu.core_type = #tpu.core_type<tc>, window_params = [{transform_indices = @transform_0, window_bounds = array<i64: 1728, 512>}, {pipeline_mode = #tpu.pipeline_mode<synchronous>, transform_indices = @transform_1, window_bounds = array<i64: 64, 1728>}, {pipeline_mode = #tpu.pipeline_mode<synchronous>, transform_indices = @transform_2, window_bounds = array<i64: 64, 2>}, {transform_indices = @transform_3, window_bounds = array<i64: 64, 512>}]} {
    %c0 = arith.constant 0 : index
    %c0_0 = arith.constant 0 : index
    %0 = vector.load %arg2[%c0, %c0_0] : memref<64x1728xbf16, #tpu.memory_space<vmem>>, vector<64x1728xbf16>
    %c0_1 = arith.constant 0 : index
    %c0_2 = arith.constant 0 : index
    %1 = vector.load %arg1[%c0_1, %c0_2] : memref<1728x512xbf16, #tpu.memory_space<vmem>>, vector<1728x512xbf16>
    %cst = arith.constant dense<0.000000e+00> : vector<64x512xf32>
    %2 = tpu.matmul %0, %1, %cst {dimension_numbers = #tpu.dot_dimension_numbers<[1], [0], [0], [1], [0, 0, 1, 1], [], []>} : vector<64x1728xbf16>, vector<1728x512xbf16>, vector<64x512xf32> -> vector<64x512xf32>
    %cst_3 = arith.constant 2.000000e+01 : f32
    %3 = vector.broadcast %cst_3 : f32 to vector<64x512xf32>
    %4 = arith.minimumf %2, %3 : vector<64x512xf32>
    %5 = math.exp %4 : vector<64x512xf32>
    %cst_4 = arith.constant 1.000000e+00 : f32
    %6 = vector.broadcast %cst_4 : f32 to vector<64x512xf32>
    %7 = arith.addf %6, %5 : vector<64x512xf32>
    %8 = arith.mulf %7, %7 : vector<64x512xf32>
    %cst_5 = arith.constant 1.000000e+00 : f32
    %9 = vector.broadcast %cst_5 : f32 to vector<64x512xf32>
    %10 = arith.addf %8, %9 : vector<64x512xf32>
    %11 = tpu.reciprocal %10 {approx = true} : vector<64x512xf32> -> vector<64x512xf32>
    %cst_6 = arith.constant 2.000000e+00 : f32
    %12 = vector.broadcast %cst_6 : f32 to vector<64x512xf32>
    %13 = arith.mulf %12, %11 : vector<64x512xf32>
    %cst_7 = arith.constant 1.000000e+00 : f32
    %14 = vector.broadcast %cst_7 : f32 to vector<64x512xf32>
    %15 = arith.subf %14, %13 : vector<64x512xf32>
    %16 = arith.mulf %2, %15 : vector<64x512xf32>
    %c0_8 = arith.constant 0 : index
    %c0_9 = arith.constant 0 : index
    %17 = vector.load %arg3[%c0_8, %c0_9] : memref<64x2xf32, #tpu.memory_space<vmem>>, vector<64x1xf32>
    %18 = vector.broadcast %17 : vector<64x1xf32> to vector<64x512xf32>
    %19 = arith.mulf %16, %18 : vector<64x512xf32>
    %c0_10 = arith.constant 0 : index
    %c1 = arith.constant 1 : index
    %20 = vector.load %arg3[%c0_10, %c1] : memref<64x2xf32, #tpu.memory_space<vmem>>, vector<64x1xf32>
    %21 = vector.broadcast %20 : vector<64x1xf32> to vector<64x512xf32>
    %22 = arith.addf %19, %21 : vector<64x512xf32>
    %23 = arith.truncf %22 : vector<64x512xf32> to vector<64x512xbf16>
    %c0_11 = arith.constant 0 : index
    %c0_12 = arith.constant 0 : index
    %24 = vector.load %arg4[%c0_11, %c0_12] : memref<64x512xbf16, #tpu.memory_space<vmem>>, vector<64x512xbf16>
    tpu.vector_store %arg4[%c0_11, %c0_12], %23 {strides = array<i32>} : memref<64x512xbf16, #tpu.memory_space<vmem>>, vector<64x512xbf16>,
    return
  }
  func.func @transform_0(%arg0: i32) -> (i32, i32) {
    %c0_i32 = arith.constant 0 : i32
    %c0_i32_0 = arith.constant 0 : i32
    return %c0_i32, %arg0 : i32, i32
  }
  func.func @transform_1(%arg0: i32) -> (i32, i32) {
    %c0_i32 = arith.constant 0 : i32
    %c0_i32_0 = arith.constant 0 : i32
    %c0_i32_1 = arith.constant 0 : i32
    return %c0_i32, %c0_i32_0 : i32, i32
  }
  func.func @transform_2(%arg0: i32) -> (i32, i32) {
    %c0_i32 = arith.constant 0 : i32
    %c0_i32_0 = arith.constant 0 : i32
    %c0_i32_1 = arith.constant 0 : i32
    return %c0_i32, %c0_i32_0 : i32, i32
  }
  func.func @transform_3(%arg0: i32) -> (i32, i32) {
    %c0_i32 = arith.constant 0 : i32
    %c0_i32_0 = arith.constant 0 : i32
    return %c0_i32, %arg0 : i32, i32
  }
}

module attributes {stable_mosaic.version = 11 : i64} {
  func.func @max3_kernel(%arg0: i32, %arg1: memref<8x512xbf16, #tpu.memory_space<vmem>>, %arg2: memref<8x512xbf16, #tpu.memory_space<vmem>>, %arg3: memref<8x512xbf16, #tpu.memory_space<vmem>>, %arg4: memref<8x512xbf16, #tpu.memory_space<vmem>>) attributes {dimension_semantics = [#tpu.dimension_semantics<parallel>], iteration_bounds = array<i64: 1>, scalar_prefetch = 0 : i64, scratch_operands = 0 : i64, tpu.core_type = #tpu.core_type<tc>, window_params = [{transform_indices = @transform_0, window_bounds = array<i64: 8, 512>}, {transform_indices = @transform_1, window_bounds = array<i64: 8, 512>}, {transform_indices = @transform_2, window_bounds = array<i64: 8, 512>}, {transform_indices = @transform_3, window_bounds = array<i64: 8, 512>}]} {
    %c0 = arith.constant 0 : index
    %c0_0 = arith.constant 0 : index
    %0 = vector.load %arg1[%c0, %c0_0] : memref<8x512xbf16, #tpu.memory_space<vmem>>, vector<8x512xbf16>
    %c0_1 = arith.constant 0 : index
    %c0_2 = arith.constant 0 : index
    %1 = vector.load %arg2[%c0_1, %c0_2] : memref<8x512xbf16, #tpu.memory_space<vmem>>, vector<8x512xbf16>
    %2 = arith.maximumf %0, %1 : vector<8x512xbf16>
    %c0_3 = arith.constant 0 : index
    %c0_4 = arith.constant 0 : index
    %3 = vector.load %arg3[%c0_3, %c0_4] : memref<8x512xbf16, #tpu.memory_space<vmem>>, vector<8x512xbf16>
    %4 = arith.maximumf %2, %3 : vector<8x512xbf16>
    %c0_5 = arith.constant 0 : index
    %c0_6 = arith.constant 0 : index
    %5 = vector.load %arg4[%c0_5, %c0_6] : memref<8x512xbf16, #tpu.memory_space<vmem>>, vector<8x512xbf16>
    tpu.vector_store %arg4[%c0_5, %c0_6], %4 {strides = array<i32>} : memref<8x512xbf16, #tpu.memory_space<vmem>>, vector<8x512xbf16>,
    return
  }
  func.func @transform_0(%arg0: i32) -> (i32, i32) {
    %c0_i32 = arith.constant 0 : i32
    %c0_i32_0 = arith.constant 0 : i32
    return %arg0, %c0_i32 : i32, i32
  }
  func.func @transform_1(%arg0: i32) -> (i32, i32) {
    %c0_i32 = arith.constant 0 : i32
    %c0_i32_0 = arith.constant 0 : i32
    return %arg0, %c0_i32 : i32, i32
  }
  func.func @transform_2(%arg0: i32) -> (i32, i32) {
    %c0_i32 = arith.constant 0 : i32
    %c0_i32_0 = arith.constant 0 : i32
    return %arg0, %c0_i32 : i32, i32
  }
  func.func @transform_3(%arg0: i32) -> (i32, i32) {
    %c0_i32 = arith.constant 0 : i32
    %c0_i32_0 = arith.constant 0 : i32
    return %arg0, %c0_i32 : i32, i32
  }
}

module attributes {stable_mosaic.version = 11 : i64} {
  func.func @final_conv_kernel(%arg0: i32, %arg1: memref<224x128xbf16, #tpu.memory_space<vmem>>, %arg2: memref<8x224xbf16, #tpu.memory_space<vmem>>, %arg3: memref<8x3xf32, #tpu.memory_space<vmem>>, %arg4: memref<1x128xf32, #tpu.memory_space<vmem>>) attributes {dimension_semantics = [#tpu.dimension_semantics<parallel>], iteration_bounds = array<i64: 1>, scalar_prefetch = 0 : i64, scratch_operands = 0 : i64, tpu.core_type = #tpu.core_type<tc>, window_params = [{transform_indices = @transform_0, window_bounds = array<i64: 224, 128>}, {pipeline_mode = #tpu.pipeline_mode<synchronous>, transform_indices = @transform_1, window_bounds = array<i64: 8, 224>}, {pipeline_mode = #tpu.pipeline_mode<synchronous>, transform_indices = @transform_2, window_bounds = array<i64: 8, 3>}, {transform_indices = @transform_3, window_bounds = array<i64: 1, 128>}]} {
    %c0 = arith.constant 0 : index
    %c0_0 = arith.constant 0 : index
    %0 = vector.load %arg2[%c0, %c0_0] : memref<8x224xbf16, #tpu.memory_space<vmem>>, vector<8x224xbf16>
    %c0_1 = arith.constant 0 : index
    %c0_2 = arith.constant 0 : index
    %1 = vector.load %arg1[%c0_1, %c0_2] : memref<224x128xbf16, #tpu.memory_space<vmem>>, vector<224x128xbf16>
    %cst = arith.constant dense<0.000000e+00> : vector<8x128xf32>
    %2 = tpu.matmul %0, %1, %cst {dimension_numbers = #tpu.dot_dimension_numbers<[1], [0], [0], [1], [0, 0, 1, 1], [], []>} : vector<8x224xbf16>, vector<224x128xbf16>, vector<8x128xf32> -> vector<8x128xf32>
    %c0_3 = arith.constant 0 : index
    %c0_4 = arith.constant 0 : index
    %3 = vector.load %arg3[%c0_3, %c0_4] : memref<8x3xf32, #tpu.memory_space<vmem>>, vector<8x1xf32>
    %4 = vector.broadcast %3 : vector<8x1xf32> to vector<8x128xf32>
    %5 = arith.addf %2, %4 : vector<8x128xf32>
    %cst_5 = arith.constant 2.000000e+01 : f32
    %6 = vector.broadcast %cst_5 : f32 to vector<8x128xf32>
    %7 = arith.minimumf %5, %6 : vector<8x128xf32>
    %8 = math.exp %7 : vector<8x128xf32>
    %cst_6 = arith.constant 1.000000e+00 : f32
    %9 = vector.broadcast %cst_6 : f32 to vector<8x128xf32>
    %10 = arith.addf %9, %8 : vector<8x128xf32>
    %11 = arith.mulf %10, %10 : vector<8x128xf32>
    %cst_7 = arith.constant 1.000000e+00 : f32
    %12 = vector.broadcast %cst_7 : f32 to vector<8x128xf32>
    %13 = arith.addf %11, %12 : vector<8x128xf32>
    %14 = tpu.reciprocal %13 {approx = true} : vector<8x128xf32> -> vector<8x128xf32>
    %cst_8 = arith.constant 2.000000e+00 : f32
    %15 = vector.broadcast %cst_8 : f32 to vector<8x128xf32>
    %16 = arith.mulf %15, %14 : vector<8x128xf32>
    %cst_9 = arith.constant 1.000000e+00 : f32
    %17 = vector.broadcast %cst_9 : f32 to vector<8x128xf32>
    %18 = arith.subf %17, %16 : vector<8x128xf32>
    %19 = arith.mulf %5, %18 : vector<8x128xf32>
    %c0_10 = arith.constant 0 : index
    %c1 = arith.constant 1 : index
    %20 = vector.load %arg3[%c0_10, %c1] : memref<8x3xf32, #tpu.memory_space<vmem>>, vector<8x1xf32>
    %21 = vector.broadcast %20 : vector<8x1xf32> to vector<8x128xf32>
    %22 = arith.mulf %21, %19 : vector<8x128xf32>
    %c0_11 = arith.constant 0 : index
    %c2 = arith.constant 2 : index
    %23 = vector.load %arg3[%c0_11, %c2] : memref<8x3xf32, #tpu.memory_space<vmem>>, vector<8x1xf32>
    %24 = vector.broadcast %23 : vector<8x1xf32> to vector<8x128xf32>
    %25 = arith.addf %22, %24 : vector<8x128xf32>
    %cst_12 = arith.constant dense<0.000000e+00> : vector<128xf32>
    %26 = vector.multi_reduction <add>, %25, %cst_12 [0] : vector<8x128xf32> to vector<128xf32>
    %27 = vector.shape_cast %26 : vector<128xf32> to vector<1x128xf32>
    %c0_13 = arith.constant 0 : index
    %c0_14 = arith.constant 0 : index
    %28 = vector.load %arg4[%c0_13, %c0_14] : memref<1x128xf32, #tpu.memory_space<vmem>>, vector<1x128xf32>
    tpu.vector_store %arg4[%c0_13, %c0_14], %27 {strides = array<i32>} : memref<1x128xf32, #tpu.memory_space<vmem>>, vector<1x128xf32>,
    return
  }
  func.func @transform_0(%arg0: i32) -> (i32, i32) {
    %c0_i32 = arith.constant 0 : i32
    %c0_i32_0 = arith.constant 0 : i32
    return %c0_i32, %arg0 : i32, i32
  }
  func.func @transform_1(%arg0: i32) -> (i32, i32) {
    %c0_i32 = arith.constant 0 : i32
    %c0_i32_0 = arith.constant 0 : i32
    %c0_i32_1 = arith.constant 0 : i32
    return %c0_i32, %c0_i32_0 : i32, i32
  }
  func.func @transform_2(%arg0: i32) -> (i32, i32) {
    %c0_i32 = arith.constant 0 : i32
    %c0_i32_0 = arith.constant 0 : i32
    %c0_i32_1 = arith.constant 0 : i32
    return %c0_i32, %c0_i32_0 : i32, i32
  }
  func.func @transform_3(%arg0: i32) -> (i32, i32) {
    %c0_i32 = arith.constant 0 : i32
    %c0_i32_0 = arith.constant 0 : i32
    return %c0_i32, %arg0 : i32, i32
  }
}

</mosaic_0001>

<bundles_post_ra>
// kernel: res2net3d_forward.14
= control target key start
LH: loop header
LB: loop body
LE: loop exit
PB: predicated region body
PF: predicated region fallthrough
CT: control target
= control target key end

     0   :  { %s2135_s0 = inlined_call_operand.vmem [shape: bf16[32,96], index: 0, kind: input, shape index: {}]   ;;  %s2136_s1 = inlined_call_operand.vmem [shape: f32[32,2], index: 1, kind: input, shape index: {}]   ;;  %s2137_s2 = inlined_call_operand.vmem [shape: bf16[81,1024], index: 2, kind: input, shape index: {}]   ;;  %s2138_s3 = inlined_call_operand.<no memory space> [shape: bf16[], index: 3, kind: input, shape index: {}]   ;;  %s2139_s4 = inlined_call_operand.vmem [shape: bf16[32,1024], index: 4, kind: output, shape index: {}]  }
   0x1   :  { %v9_v0 = vstv %s2138_s3 }
   0x2   :  { %v1929_v1 = vunpack.i.l.bf16 %v9_v0 }
   0x3   :  { %s1931_s17 = smov 0   ;;  %s1933_s18 = smov 0  }
   0x4   :  { %s1935_s19 = smov 0  }
   0x5 LB: > { %s1944_s3 = sadd.s32 4294967295, %s1896_s19   ;;  %s1946_s20 = sadd.s32 1, %s1896_s19   ;;  %s1896_s19 = sphi %s1935_s19, %s2143_s19   ;;  %s1892_s18 = sphi %s1933_s18, %s2142_s18   ;;  %s1888_s17 = sphi %s1931_s17, %s2141_s17  }
   0x6   : > { %s91_s21 = ssub.s32 %s1896_s19, %s1946_s20  ;;  %s94_s22 = sadd.s32 1, %s1892_s18 }
   0x7   : > { %p92_p0 = scmp.eq.s32.totalorder %s91_s21, 0  ;;  %p104_p1 = scmp.ne.s32.totalorder %s1892_s18, %s1888_s17 }
   0x8   : > { %p105_p2 = scmp.eq.s32.totalorder %s1944_s3, 1  ;;  %p1535_p3 = scmp.ge.s32.totalorder %s1896_s19, 1 }
   0x9   : > { %s1954_s23 = scalar_select %p92_p0, %s1892_s18, %s94_s22  }
   0xa   : > { %p1956_p4 = por %p105_p2, %p104_p1  ;;  %p144_p5 = scmp.lt.s32.totalorder %s1896_s19, 3 }
   0xc   : > { %p145_p6 = pnand %p1535_p3, %p144_p5 }
   0xe   : > { %148 = sbr.rel (%p145_p6) target bundleno = 333 (0x14d), region = 32 }
  0x13   : > { %s1537_s25 = sshll.u32 %s1944_s3, 2  ;;  %v781_v2 = vlaneseq  ;;  %v1963_v3 = vpack.c.bf16 %v1929_v1, %v1929_v1  ;;  %v1898_v4 = vmov 0   ;;  %v1312_v6 = vld [vmem:[%s2136_s1] sm:$0xff]  ;;  %v1314_v7 = vld [vmem:[%s2136_s1 + $0x10] sm:$0xff]  ;;  %v1313_v9 = vld [vmem:[%s2136_s1 + $0x8] sm:$0xff]  ;;  %v1899_v24 = vmov 0.0  }
  0x14   : > { %p168_p7 = scmp.lt.s32.totalorder %s1537_s25, 7  ;;  %1078 = vmatprep.mubr.bf16.mxu0 %v1898_v4  ;;  %1131 = vmatprep.mubr.bf16.mxu1 %v1898_v4  ;;  %v1315_v10 = vld [vmem:[%s2136_s1 + $0x18] sm:$0xff]  ;;  %v1900_v30 = vmov 1   ;;  %vm1039_vm1 = vcmask 785408   ;;  %s164_s16 = sand.u32 1, %s1888_s17  }
  0x15   : > { %v782_v5 = vshrl.u32 %v781_v2, 7  ;;  %1785 = vset.pattern.permute.xlu0 %v1898_v4  ;;  %1786 = vset.pattern.permute.xlu1 %v1898_v4  ;;  %s1536_s17 = sshll.u32 %s164_s16, 6  ;;  %s1633_s21 = sshll.u32 (%p1956_p4), %s1944_s3, 4 }
  0x16   : > { %s2145_s25 = smov (!%p168_p7, %s1537_s25), 7  ;;  %1318 = vperm.xlu0 %1785, %v1312_v6   ;;  %1328 = vperm.xlu1 %1786, %v1314_v7   ;;  %s2093_s19 = scalar_lea.vmem [#allocation7], %s1536_s17 }
  0x17   : > { %v783_v8 = vadd.s32 80, %v782_v5  ;;  %s1538_s6 = sshll.u32 %s2145_s25, 2  ;;  %s1449_s26 = scalar_lea.vmem (%p1956_p4), %s2139_s4, %s1633_s21 }
  0x18   : > { %s1984_s11 = scalar_lea.vmem %s2137_s2, %s1538_s6 }
  0x19   : > { %v1578_v11 = vld [vmem:[%s1984_s11 + $0x140] sm:$0xff]   ;;  %vm784_vm0 = vcmp.lt.s32.totalorder %v783_v8, 81  ;;  %v1580_v12 = vld [vmem:[%s1984_s11 + $0x148] sm:$0xff]  }
  0x1a   : > { %1323 = vperm.xlu0 %1785, %v1313_v9   ;;  %v779_v13 = vunpack.c.l.bf16 %v1578_v11  ;;  %v802_v14 = vunpack.c.h.bf16 %v1578_v11  ;;  %v825_v15 = vunpack.c.l.bf16 %v1580_v12  ;;  %v848_v16 = vunpack.c.h.bf16 %v1580_v12  ;;  %v1789_v17 = vld [vmem:[%s1984_s11 + $0x100] sm:$0xff]   ;;  %1333 = vperm.xlu1 %1786, %v1315_v10   ;;  %v1791_v23 = vld [vmem:[%s1984_s11 + $0x108] sm:$0xff]  }
  0x1b   : > { %v1790_v18 = vld [vmem:[%s1984_s11 + $0x120] sm:$0xff]   ;;  %v1792_v29 = vld [vmem:[%s1984_s11 + $0x128] sm:$0xff]  }
  0x1c   : > { %v785_v19 = vsel %vm784_vm0, %v779_v13, %v1929_v1  ;;  %v808_v20 = vsel %vm784_vm0, %v802_v14, %v1929_v1  ;;  %v831_v21 = vsel %vm784_vm0, %v825_v15, %v1929_v1  ;;  %v854_v22 = vsel %vm784_vm0, %v848_v16, %v1929_v1  ;;  %v1793_v31 = vld [vmem:[%s1984_s11 + $0xc0] sm:$0xff]   ;;  %v1795_v33 = vld [vmem:[%s1984_s11 + $0xc8] sm:$0xff]  }
  0x1d   : > { %v787_v25 = vpack.c.bf16 %v1899_v24, %v785_v19  ;;  %v810_v26 = vpack.c.bf16 %v1899_v24, %v808_v20  ;;  %v833_v27 = vpack.c.bf16 %v1899_v24, %v831_v21  ;;  %v856_v28 = vpack.c.bf16 %v1899_v24, %v854_v22  ;;  %v1794_v32 = vld [vmem:[%s1984_s11 + $0xe0] sm:$0xff]   ;;  %v1796_v34 = vld [vmem:[%s1984_s11 + $0xe8] sm:$0xff]  }
  0x1e   : > { %1787 = vset.pattern.permute.xlu0 %v1900_v30  ;;  %1788 = vset.pattern.permute.xlu1 %v1900_v30  ;;  %v1797_v35 = vld [vmem:[%s1984_s11 + $0x80] sm:$0xff]   ;;  %v1799_v37 = vld [vmem:[%s1984_s11 + $0x88] sm:$0xff]   ;;  %v1601_v41 = vcombine.high %v1789_v17, %v1790_v18  ;;  %v1603_v42 = vcombine.high %v1791_v23, %v1792_v29  ;;  %v1600_v50 = vcombine.low %v1789_v17, %v1790_v18 }
  0x1f   : > { %1353 = vperm.xlu0 %1787, %v1312_v6   ;;  %790 = vst [vmem:[#allocation8 + $0xa0] sm:$0xf] %v787_v25  ;;  %813 = vst [vmem:[#allocation8 + $0xa4] sm:$0xf] %v810_v26  ;;  %1357 = vperm.xlu1 %1788, %v1313_v9   ;;  %v1798_v36 = vld [vmem:[%s1984_s11 + $0xa0] sm:$0xff]   ;;  %v1800_v38 = vld [vmem:[%s1984_s11 + $0xa8] sm:$0xff]   ;;  %v1602_v51 = vcombine.low %v1791_v23, %v1792_v29  ;;  %v1597_v54 = vcombine.high %v1793_v31, %v1794_v32 }
  0x20   : > { %836 = vst [vmem:[#allocation8 + $0xa8] sm:$0xf] %v833_v27  ;;  %859 = vst [vmem:[#allocation8 + $0xac] sm:$0xf] %v856_v28  ;;  %v1801_v47 = vld [vmem:[%s1984_s11 + $0x40] sm:$0xff]   ;;  %v1803_v49 = vld [vmem:[%s1984_s11 + $0x48] sm:$0xff]   ;;  %v1599_v55 = vcombine.high %v1795_v33, %v1796_v34  ;;  %v1596_v59 = vcombine.low %v1793_v31, %v1794_v32  ;;  %v1598_v60 = vcombine.low %v1795_v33, %v1796_v34 }
  0x21   : > { %v1802_v48 = vld [vmem:[%s1984_s11 + $0x60] sm:$0xff]   ;;  %v1804_v52 = vld [vmem:[%s1984_s11 + $0x68] sm:$0xff]   ;;  %v1593_v61 = vcombine.high %v1797_v35, %v1798_v36  ;;  %v1595_v62 = vcombine.high %v1799_v37, %v1800_v38  ;;  %v1592_v63 = vcombine.low %v1797_v35, %v1798_v36  ;;  %v1594_v0 = vcombine.low %v1799_v37, %v1800_v38 }
  0x22   : > { %v174_v53 = vld [vmem:[%s1984_s11] sm:$0xff]   ;;  %v1806_v57 = vld [vmem:[%s1984_s11 + $0x8] sm:$0xff]   ;;  %v1589_v2 = vcombine.high %v1801_v47, %v1802_v48  ;;  %v1588_v6 = vcombine.low %v1801_v47, %v1802_v48 }
  0x23   : > { %1365 = vperm.xlu0 %1787, %v1315_v10   ;;  %1361 = vperm.xlu1 %1788, %v1314_v7   ;;  %185 = vst [vmem:[#allocation8] sm:$0xff] %v174_v53   ;;  %v1805_v56 = vld [vmem:[%s1984_s11 + $0x20] sm:$0xff]   ;;  %v1807_v58 = vld [vmem:[%s1984_s11 + $0x28] sm:$0xff]   ;;  %v1590_v7 = vcombine.low %v1803_v49, %v1804_v52 }
  0x24   : > { %v1587_v9 = vcombine.high %v1806_v57, %v1807_v58  ;;  %v1586_v11 = vcombine.low %v1806_v57, %v1807_v58  ;;  %v1808_v12 = vld [vmem:[%s2135_s0] sm:$0xff]   ;;  %v1809_v13 = vld [vmem:[%s2135_s0 + $0x8] sm:$0xff]  }
  0x26   : > { %v905_v39 = vld [vmem:[#allocation8 + $0xa0] sm:$0xff] }
  0x27   : > { %v906_v40 = vld [vmem:[#allocation8 + $0xa8] sm:$0xff]  ;;  %v1605_v43 = vcombine.high %v905_v39, %v1963_v3  ;;  %v1604_v45 = vcombine.low %v905_v39, %v1963_v3 }
  0x28   : > { %v1607_v44 = vcombine.high %v906_v40, %v1963_v3  ;;  %v1606_v46 = vcombine.low %v906_v40, %v1963_v3  ;;  %v1591_v3 = vcombine.high %v1803_v49, %v1804_v52 }
  0x29   : > { %1050 = vmatprep.subr.bf16.mxu0 %v1605_v43 }
  0x2a   : > { %1103 = vmatprep.subr.bf16.mxu1 %v1607_v44  ;;  %1051 = vmatpush1.bf16.msra.mxu0 %v1604_v45  ;;  %v885_v5 = vld [vmem:[#allocation8] sm:$0xff] }
  0x2b   : > { %1104 = vmatpush1.bf16.msra.mxu1 %v1606_v46  ;;  %1052 = vmatprep.subr.bf16.mxu0 %v1601_v41  ;;  %v1585_v8 = vcombine.high %v885_v5, %v1805_v56  ;;  %v1584_v10 = vcombine.low %v885_v5, %v1805_v56 }
  0x2c   : > { %1105 = vmatprep.subr.bf16.mxu1 %v1603_v42 }
  0x2e   : > { %1053 = vmatpush1.bf16.msra.mxu0 %v1600_v50 }
  0x2f   : > { %1106 = vmatpush1.bf16.msra.mxu1 %v1602_v51  ;;  %1054 = vmatprep.subr.bf16.mxu0 %v1597_v54 }
  0x30   : > { %1107 = vmatprep.subr.bf16.mxu1 %v1599_v55 }
  0x32   : > { %1055 = vmatpush1.bf16.msra.mxu0 %v1596_v59 }
  0x33   : > { %1108 = vmatpush1.bf16.msra.mxu1 %v1598_v60  ;;  %1056 = vmatprep.subr.bf16.mxu0 %v1593_v61 }
  0x34   : > { %1109 = vmatprep.subr.bf16.mxu1 %v1595_v62 }
  0x36   : > { %1057 = vmatpush1.bf16.msra.mxu0 %v1592_v63 }
  0x37   : > { %1110 = vmatpush1.bf16.msra.mxu1 %v1594_v0  ;;  %1058 = vmatprep.subr.bf16.mxu0 %v1589_v2 }
  0x38   : > { %1111 = vmatprep.subr.bf16.mxu1 %v1591_v3 }
  0x3a   : > { %1059 = vmatpush1.bf16.msra.mxu0 %v1588_v6 }
  0x3b   : > { %1112 = vmatpush1.bf16.msra.mxu1 %v1590_v7  ;;  %1060 = vmatprep.subr.bf16.mxu0 %v1585_v8 }
  0x3c   : > { %1113 = vmatprep.subr.bf16.mxu1 %v1587_v9 }
  0x3e   : > { %1061 = vmatpush1.bf16.msra.mxu0 %v1584_v10 }
  0x3f   : > { %1114 = vmatpush1.bf16.msra.mxu1 %v1586_v11 }
  0x41   : > { %1608 = vmatmul.mubr.msk.bf16.vlgmr.msra.gmra.mxu0 %vm1039_vm1, %v1808_v12 }
  0x42   : > { %1610 = vmatmul.mubr.msk.bf16.vlgmr.msra.gmra.mxu1 %vm1039_vm1, %v1808_v12  ;;  %1088 = vmatprep.mubr.bf16.mxu0 %v1898_v4 }
  0x43   : > { %1141 = vmatprep.mubr.bf16.mxu1 %v1898_v4 }
  0x49   : > { %1609 = vmatmul.mubr.msk.bf16.gmra.mxu0 %vm1039_vm1, %v1809_v13 }
  0x4a   : > { %1611 = vmatmul.mubr.msk.bf16.gmra.mxu1 %vm1039_vm1, %v1809_v13 }
 0x101   : > { %v2024_v14 = vpop.f32.mrf.mxu0 }
 0x102   : > { %v2026_v15 = vpop.f32.mrf.mxu1  ;;  %v1152_v16 = vmin.f32 %v2024_v14, 20.0 }
 0x103   : > { %v1154_v17 = vmin.f32 %v2026_v15, 20.0  ;;  %v2030_v18 = vpop.f32.mrf.mxu0 }
 0x104   : > { %v2032_v19 = vpop.f32.mrf.mxu1  ;;  %v1168_v20 = vmul.f32 1.442695, %v1152_v16  ;;  %v1153_v21 = vmin.f32 %v2030_v18, 20.0 }
 0x105   : > { %v1172_v4 = vmul.f32 1.442695, %v1154_v17  ;;  %v1155_v22 = vmin.f32 %v2032_v19, 20.0  ;;  %v2036_v23 = vpop.f32.mrf.mxu0 }
 0x106   : > { %v2038_v24 = vpop.f32.mrf.mxu1  ;;  %1810 = vpow2.f32 %v1168_v20  ;;  %v1170_v25 = vmul.f32 1.442695, %v1153_v21  ;;  %v1156_v27 = vmin.f32 %v2036_v23, 20.0 }
 0x107   : > { %v1174_v26 = vmul.f32 1.442695, %v1155_v22  ;;  %1812 = vpow2.f32 %v1172_v4  ;;  %v1158_v28 = vmin.f32 %v2038_v24, 20.0  ;;  %v2042_v29 = vpop.f32.mrf.mxu0 }
 0x108   : > { %v2044_v30 = vpop.f32.mrf.mxu1  ;;  %1814 = vpow2.f32 %v1170_v25  ;;  %v1176_v31 = vmul.f32 1.442695, %v1156_v27  ;;  %v1157_v32 = vmin.f32 %v2042_v29, 20.0 }
 0x109   : > { %v1159_v33 = vmin.f32 %v2044_v30, 20.0  ;;  %1816 = vpow2.f32 %v1174_v26  ;;  %v1180_v34 = vmul.f32 1.442695, %v1158_v28  ;;  %v2048_v35 = vpop.f32.mrf.mxu0 }
 0x10a   : > { %v2050_v36 = vpop.f32.mrf.mxu1  ;;  %1818 = vpow2.f32 %v1176_v31  ;;  %v1178_v37 = vmul.f32 1.442695, %v1157_v32  ;;  %v1160_v39 = vmin.f32 %v2048_v35, 20.0 }
 0x10b   : > { %v1182_v38 = vmul.f32 1.442695, %v1159_v33  ;;  %1820 = vpow2.f32 %v1180_v34  ;;  %v1162_v40 = vmin.f32 %v2050_v36, 20.0  ;;  %v2054_v41 = vpop.f32.mrf.mxu0 }
 0x10c   : > { %v2056_v42 = vpop.f32.mrf.mxu1  ;;  %1822 = vpow2.f32 %v1178_v37  ;;  %v1184_v43 = vmul.f32 1.442695, %v1160_v39  ;;  %v1161_v44 = vmin.f32 %v2054_v41, 20.0 }
 0x10d   : > { %v1163_v45 = vmin.f32 %v2056_v42, 20.0  ;;  %1824 = vpow2.f32 %v1182_v38  ;;  %v1188_v46 = vmul.f32 1.442695, %v1162_v40  ;;  %v2060_v47 = vpop.f32.mrf.mxu0 }
 0x10e   : > { %v2062_v48 = vpop.f32.mrf.mxu1  ;;  %1826 = vpow2.f32 %v1184_v43  ;;  %v1186_v49 = vmul.f32 1.442695, %v1161_v44  ;;  %v1164_v51 = vmin.f32 %v2060_v47, 20.0 }
 0x10f   : > { %v1190_v50 = vmul.f32 1.442695, %v1163_v45  ;;  %1828 = vpow2.f32 %v1188_v46  ;;  %v1166_v52 = vmin.f32 %v2062_v48, 20.0  ;;  %v2066_v53 = vpop.f32.mrf.mxu0 }
 0x110   : > { %v2068_v54 = vpop.f32.mrf.mxu1  ;;  %1830 = vpow2.f32 %v1186_v49  ;;  %v1192_v55 = vmul.f32 1.442695, %v1164_v51  ;;  %v1165_v56 = vmin.f32 %v2066_v53, 20.0 }
 0x111   : > { %v1167_v57 = vmin.f32 %v2068_v54, 20.0  ;;  %1832 = vpow2.f32 %v1190_v50  ;;  %v1196_v58 = vmul.f32 1.442695, %v1166_v52 }
 0x112   : > { %1834 = vpow2.f32 %v1192_v55  ;;  %v1194_v59 = vmul.f32 1.442695, %v1165_v56 }
 0x113   : > { %v1198_v60 = vmul.f32 1.442695, %v1167_v57  ;;  %v1811_v61 = vpop.eup %1810  ;;  %1836 = vpow2.f32 %v1196_v58 }
 0x114   : > { %v1813_v62 = vpop.eup %1812  ;;  %v1200_v63 = vadd.f32 1.0, %v1811_v61  ;;  %1838 = vpow2.f32 %v1194_v59 }
 0x115   : > { %v1815_v0 = vpop.eup %1814  ;;  %v1202_v2 = vadd.f32 1.0, %v1813_v62  ;;  %1840 = vpow2.f32 %v1198_v60 }
 0x116   : > { %v1817_v3 = vpop.eup %1816  ;;  %v1216_v5 = vmul.f32 %v1200_v63, %v1200_v63  ;;  %v1201_v6 = vadd.f32 1.0, %v1815_v0 }
 0x117   : > { %v1819_v7 = vpop.eup %1818  ;;  %v1218_v8 = vmul.f32 %v1202_v2, %v1202_v2  ;;  %v1203_v9 = vadd.f32 1.0, %v1817_v3 }
 0x118   : > { %v1821_v10 = vpop.eup %1820  ;;  %v1232_v11 = vadd.f32 1.0, %v1216_v5  ;;  %v1217_v12 = vmul.f32 %v1201_v6, %v1201_v6  ;;  %v1204_v13 = vadd.f32 1.0, %v1819_v7 }
 0x119   : > { %v1823_v16 = vpop.eup %1822  ;;  %v1234_v17 = vadd.f32 1.0, %v1218_v8  ;;  %v1219_v20 = vmul.f32 %v1203_v9, %v1203_v9  ;;  %v1206_v4 = vadd.f32 1.0, %v1821_v10 }
 0x11a   : > { %v1825_v21 = vpop.eup %1824  ;;  %1842 = vrcp.f32 %v1232_v11  ;;  %v1233_v22 = vadd.f32 1.0, %v1217_v12  ;;  %v1220_v25 = vmul.f32 %v1204_v13, %v1204_v13  ;;  %v1205_v26 = vadd.f32 1.0, %v1823_v16 }
 0x11b   : > { %v1827_v27 = vpop.eup %1826  ;;  %1844 = vrcp.f32 %v1234_v17  ;;  %v1235_v28 = vadd.f32 1.0, %v1219_v20  ;;  %v1222_v31 = vmul.f32 %v1206_v4, %v1206_v4  ;;  %v1207_v32 = vadd.f32 1.0, %v1825_v21  ;;  %v1319_v4 = vpop.permute.xlu0 %1318 }
 0x11c   : > { %v1829_v33 = vpop.eup %1828  ;;  %1846 = vrcp.f32 %v1233_v22  ;;  %v1236_v34 = vadd.f32 1.0, %v1220_v25  ;;  %v1221_v37 = vmul.f32 %v1205_v26, %v1205_v26  ;;  %v1208_v38 = vadd.f32 1.0, %v1827_v27  ;;  %v2072_v25 = vpop.permute.xlu1 %1328 }
 0x11d   : > { %v1831_v39 = vpop.eup %1830  ;;  %1848 = vrcp.f32 %v1235_v28  ;;  %v1238_v40 = vadd.f32 1.0, %v1222_v31  ;;  %v1223_v43 = vmul.f32 %v1207_v32, %v1207_v32  ;;  %v1210_v44 = vadd.f32 1.0, %v1829_v33 }
 0x11e   : > { %v1833_v45 = vpop.eup %1832  ;;  %1850 = vrcp.f32 %v1236_v34  ;;  %v1237_v46 = vadd.f32 1.0, %v1221_v37  ;;  %v1224_v49 = vmul.f32 %v1208_v38, %v1208_v38  ;;  %v1209_v50 = vadd.f32 1.0, %v1831_v39 }
 0x11f   : > { %v1835_v51 = vpop.eup %1834  ;;  %1852 = vrcp.f32 %v1238_v40  ;;  %v1239_v52 = vadd.f32 1.0, %v1223_v43  ;;  %v1226_v55 = vmul.f32 %v1210_v44, %v1210_v44  ;;  %v1211_v56 = vadd.f32 1.0, %v1833_v45 }
 0x120   : > { %v1837_v57 = vpop.eup %1836  ;;  %1854 = vrcp.f32 %v1237_v46  ;;  %v1240_v58 = vadd.f32 1.0, %v1224_v49  ;;  %v1225_v59 = vmul.f32 %v1209_v50, %v1209_v50  ;;  %v1212_v60 = vadd.f32 1.0, %v1835_v51  ;;  %v1324_v50 = vpop.permute.xlu0 %1323 }
 0x121   : > { %v1839_v61 = vpop.eup %1838  ;;  %1856 = vrcp.f32 %v1239_v52  ;;  %v1242_v62 = vadd.f32 1.0, %v1226_v55  ;;  %v1227_v63 = vmul.f32 %v1211_v56, %v1211_v56  ;;  %v1214_v0 = vadd.f32 1.0, %v1837_v57 }
 0x122   : > { %v1841_v2 = vpop.eup %1840  ;;  %1858 = vrcp.f32 %v1240_v58  ;;  %v1241_v3 = vadd.f32 1.0, %v1225_v59  ;;  %v1228_v5 = vmul.f32 %v1212_v60, %v1212_v60  ;;  %v1213_v6 = vadd.f32 1.0, %v1839_v61  ;;  %v2077_v58 = vpop.permute.xlu1 %1333 }
 0x123   : > { %1860 = vrcp.f32 %v1242_v62  ;;  %v1243_v7 = vadd.f32 1.0, %v1227_v63  ;;  %v1230_v8 = vmul.f32 %v1214_v0, %v1214_v0  ;;  %v1215_v9 = vadd.f32 1.0, %v1841_v2 }
 0x124   : > { %1862 = vrcp.f32 %v1241_v3  ;;  %v1244_v10 = vadd.f32 1.0, %v1228_v5  ;;  %v1229_v11 = vmul.f32 %v1213_v6, %v1213_v6 }
 0x125   : > { %1864 = vrcp.f32 %v1243_v7  ;;  %v1246_v12 = vadd.f32 1.0, %v1230_v8  ;;  %v1231_v13 = vmul.f32 %v1215_v9, %v1215_v9 }
 0x126   : > { %1866 = vrcp.f32 %v1244_v10  ;;  %v1245_v16 = vadd.f32 1.0, %v1229_v11 }
 0x127   : > { %v1843_v17 = vpop.eup %1842  ;;  %1868 = vrcp.f32 %v1246_v12  ;;  %v1247_v20 = vadd.f32 1.0, %v1231_v13 }
 0x128   : > { %v1845_v21 = vpop.eup %1844  ;;  %v1264_v22 = vmul.f32 2.0, %v1843_v17  ;;  %1870 = vrcp.f32 %v1245_v16 }
 0x129   : > { %v1847_v26 = vpop.eup %1846  ;;  %v1266_v27 = vmul.f32 2.0, %v1845_v21  ;;  %1872 = vrcp.f32 %v1247_v20  ;;  %v1354_v21 = vpop.permute.xlu0 %1353 }
 0x12a   : > { %v1849_v28 = vpop.eup %1848  ;;  %v1280_v31 = vsub.f32 1.0, %v1264_v22  ;;  %v1265_v32 = vmul.f32 2.0, %v1847_v26 }
 0x12b   : > { %v1851_v33 = vpop.eup %1850  ;;  %v1282_v34 = vsub.f32 1.0, %v1266_v27  ;;  %v1267_v37 = vmul.f32 2.0, %v1849_v28  ;;  %v1358_v28 = vpop.permute.xlu1 %1357 }
 0x12c   : > { %v1853_v38 = vpop.eup %1852  ;;  %v1296_v39 = vmul.f32 %v1280_v31, %v2024_v14  ;;  %v1281_v40 = vsub.f32 1.0, %v1265_v32  ;;  %v1268_v43 = vmul.f32 2.0, %v1851_v33 }
 0x12d   : > { %v1855_v44 = vpop.eup %1854  ;;  %v1298_v45 = vmul.f32 %v1282_v34, %v2026_v15  ;;  %v1283_v46 = vsub.f32 1.0, %v1267_v37  ;;  %v1270_v49 = vmul.f32 2.0, %v1853_v38 }
 0x12e   : > { %v1857_v51 = vpop.eup %1856  ;;  %v1297_v52 = vmul.f32 %v1281_v40, %v2030_v18  ;;  %v1284_v55 = vsub.f32 1.0, %v1268_v43  ;;  %v1269_v56 = vmul.f32 2.0, %v1855_v44  ;;  %v1336_v57 = vmul.f32 %v1319_v4, %v1296_v39 }
 0x12f   : > { %v1859_v59 = vpop.eup %1858  ;;  %v1299_v60 = vmul.f32 %v1283_v46, %v2032_v19  ;;  %v1286_v14 = vsub.f32 1.0, %v1270_v49  ;;  %v1271_v61 = vmul.f32 2.0, %v1857_v51  ;;  %v1338_v62 = vmul.f32 %v1319_v4, %v1298_v45 }
 0x130   : > { %v1861_v63 = vpop.eup %1860  ;;  %v1300_v15 = vmul.f32 %v1284_v55, %v2036_v23  ;;  %v1285_v0 = vsub.f32 1.0, %v1269_v56  ;;  %v1272_v2 = vmul.f32 2.0, %v1859_v59  ;;  %v1337_v3 = vmul.f32 %v1319_v4, %v1297_v52 }
 0x131   : > { %v1863_v5 = vpop.eup %1862  ;;  %v1302_v18 = vmul.f32 %v1286_v14, %v2038_v24  ;;  %v1287_v6 = vsub.f32 1.0, %v1271_v61  ;;  %v1274_v7 = vmul.f32 2.0, %v1861_v63  ;;  %v1339_v8 = vmul.f32 %v1319_v4, %v1299_v60  ;;  %v1362_v14 = vpop.permute.xlu1 %1361 }
 0x132   : > { %v1865_v9 = vpop.eup %1864  ;;  %v1301_v10 = vmul.f32 %v1285_v0, %v2042_v29  ;;  %v1288_v19 = vsub.f32 1.0, %v1272_v2  ;;  %v1273_v11 = vmul.f32 2.0, %v1863_v5  ;;  %v1340_v12 = vmul.f32 %v1324_v50, %v1300_v15 }
 0x133   : > { %v1867_v13 = vpop.eup %1866  ;;  %v1303_v16 = vmul.f32 %v1287_v6, %v2044_v30  ;;  %v1290_v23 = vsub.f32 1.0, %v1274_v7  ;;  %v1275_v17 = vmul.f32 2.0, %v1865_v9  ;;  %v1342_v20 = vmul.f32 %v1324_v50, %v1302_v18  ;;  %v1366_v6 = vpop.permute.xlu0 %1365 }
 0x134   : > { %v1869_v22 = vpop.eup %1868  ;;  %v1304_v24 = vmul.f32 %v1288_v19, %v2048_v35  ;;  %v1289_v26 = vsub.f32 1.0, %v1273_v11  ;;  %v1276_v27 = vmul.f32 2.0, %v1867_v13  ;;  %v1341_v4 = vmul.f32 %v1324_v50, %v1301_v10 }
 0x135   : > { %v1871_v31 = vpop.eup %1870  ;;  %v1306_v29 = vmul.f32 %v1290_v23, %v2050_v36  ;;  %v1291_v32 = vsub.f32 1.0, %v1275_v17  ;;  %v1278_v33 = vmul.f32 2.0, %v1869_v22  ;;  %v1343_v34 = vmul.f32 %v1324_v50, %v1303_v16 }
 0x136   : > { %v1873_v37 = vpop.eup %1872  ;;  %v1305_v30 = vmul.f32 %v1289_v26, %v2054_v41  ;;  %v1292_v38 = vsub.f32 1.0, %v1276_v27  ;;  %v1277_v39 = vmul.f32 2.0, %v1871_v31  ;;  %v1368_v40 = vadd.f32 %v1354_v21, %v1336_v57 }
 0x137   : > { %v1307_v43 = vmul.f32 %v1291_v32, %v2056_v42  ;;  %v1294_v35 = vsub.f32 1.0, %v1278_v33  ;;  %v1279_v44 = vmul.f32 2.0, %v1873_v37  ;;  %v1369_v45 = vadd.f32 %v1354_v21, %v1337_v3 }
 0x138   : > { %v1308_v46 = vmul.f32 %v1292_v38, %v2060_v47  ;;  %v1293_v49 = vsub.f32 1.0, %v1277_v39  ;;  %v1370_v51 = vadd.f32 %v1354_v21, %v1338_v62  ;;  %v1371_v36 = vadd.f32 %v1354_v21, %v1339_v8 }
 0x139   : > { %v1310_v52 = vmul.f32 %v1294_v35, %v2062_v48  ;;  %v1295_v50 = vsub.f32 1.0, %v1279_v44  ;;  %v1625_v55 = vpack.c.bf16 %v1369_v45, %v1368_v40  ;;  %v1372_v56 = vadd.f32 %v1358_v28, %v1340_v12 }
 0x13a   : > { %v1309_v41 = vmul.f32 %v1293_v49, %v2066_v53  ;;  %v1626_v59 = vpack.c.bf16 %v1371_v36, %v1370_v51  ;;  %v1373_v60 = vadd.f32 %v1358_v28, %v1341_v4  ;;  %v1374_v57 = vadd.f32 %v1358_v28, %v1342_v20 }
 0x13b   : > { %v1311_v42 = vmul.f32 %v1295_v50, %v2068_v54  ;;  %1432 = vst [vmem:[%s2093_s19] sm:$0xff] %v1625_v55  ;;  %v1375_v47 = vadd.f32 %v1358_v28, %v1343_v34  ;;  %v1344_v48 = vmul.f32 %v2072_v25, %v1304_v24  ;;  %v1345_v61 = vmul.f32 %v2072_v25, %v1305_v30 }
 0x13c   : > { %1433 = vst [vmem:[%s2093_s19 + $0x8] sm:$0xff] %v1626_v59  ;;  %v1627_v53 = vpack.c.bf16 %v1373_v60, %v1372_v56  ;;  %v1346_v62 = vmul.f32 %v2072_v25, %v1306_v29  ;;  %v1347_v63 = vmul.f32 %v2072_v25, %v1307_v43  ;;  %v1348_v54 = vmul.f32 %v2077_v58, %v1308_v46 }
 0x13d   : > { %v1628_v15 = vpack.c.bf16 %v1375_v47, %v1374_v57  ;;  %v1376_v0 = vadd.f32 %v1362_v14, %v1344_v48  ;;  %v1377_v2 = vadd.f32 %v1362_v14, %v1345_v61  ;;  %v1349_v3 = vmul.f32 %v2077_v58, %v1309_v41 }
 0x13e   : > { %1434 = vst [vmem:[%s2093_s19 + $0x10] sm:$0xff] %v1627_v53  ;;  %v1378_v5 = vadd.f32 %v1362_v14, %v1346_v62  ;;  %v1379_v18 = vadd.f32 %v1362_v14, %v1347_v63  ;;  %v1350_v7 = vmul.f32 %v2077_v58, %v1310_v52  ;;  %v1351_v8 = vmul.f32 %v2077_v58, %v1311_v42 }
 0x13f   : > { %1435 = vst [vmem:[%s2093_s19 + $0x18] sm:$0xff] %v1628_v15  ;;  %v1629_v25 = vpack.c.bf16 %v1377_v2, %v1376_v0  ;;  %v1380_v9 = vadd.f32 %v1366_v6, %v1348_v54  ;;  %v1381_v10 = vadd.f32 %v1366_v6, %v1349_v3 }
 0x140   : > { %v1630_v19 = vpack.c.bf16 %v1379_v18, %v1378_v5  ;;  %v1382_v11 = vadd.f32 %v1366_v6, %v1350_v7  ;;  %v1383_v12 = vadd.f32 %v1366_v6, %v1351_v8  ;;  %1446 = sbr.rel (!%p1956_p4) target bundleno = 333 (0x14d), region = 36 }
 0x141   : > { %1436 = vst [vmem:[%s2093_s19 + $0x20] sm:$0xff] %v1629_v25  ;;  %v1631_v13 = vpack.c.bf16 %v1381_v10, %v1380_v9 }
 0x142   : > { %1437 = vst [vmem:[%s2093_s19 + $0x28] sm:$0xff] %v1630_v19  ;;  %v1632_v16 = vpack.c.bf16 %v1383_v12, %v1382_v11  ;;  %v1462_v58 = vld [vmem:[%s2093_s19] sm:$0xff] (%p1956_p4) }
 0x143   : > { %1438 = vst [vmem:[%s2093_s19 + $0x30] sm:$0xff] %v1631_v13  ;;  %v1464_v23 = vld [vmem:[%s2093_s19 + $0x8] sm:$0xff] (%p1956_p4)  ;;  %1463 = vst [vmem:[%s1449_s26] sm:$0xff] (%p1956_p4), %v1462_v58 }
 0x144   : > { %1439 = vst [vmem:[%s2093_s19 + $0x38] sm:$0xff] %v1632_v16  ;;  %1465 = vst [vmem:[%s1449_s26 + $0x8] sm:$0xff] (%p1956_p4), %v1464_v23 }
 0x145   : > { %v1466_v17 = vld [vmem:[%s2093_s19 + $0x10] sm:$0xff] }
 0x146   : > { %v1468_v20 = vld [vmem:[%s2093_s19 + $0x18] sm:$0xff]  ;;  %1467 = vst [vmem:[%s1449_s26 + $0x20] sm:$0xff] %v1466_v17 }
 0x147   : > { %1469 = vst [vmem:[%s1449_s26 + $0x28] sm:$0xff] %v1468_v20 }
 0x148   : > { %v1470_v21 = vld [vmem:[%s2093_s19 + $0x20] sm:$0xff] }
 0x149   : > { %v1472_v22 = vld [vmem:[%s2093_s19 + $0x28] sm:$0xff]  ;;  %1471 = vst [vmem:[%s1449_s26 + $0x40] sm:$0xff] %v1470_v21 }
 0x14a   : > { %1473 = vst [vmem:[%s1449_s26 + $0x48] sm:$0xff] %v1472_v22  ;;  %v1474_v24 = vld [vmem:[%s2093_s19 + $0x30] sm:$0xff] }
 0x14b   : > { %v1476_v26 = vld [vmem:[%s2093_s19 + $0x38] sm:$0xff]  ;;  %1475 = vst [vmem:[%s1449_s26 + $0x60] sm:$0xff] %v1474_v24 }
 0x14c   : > { %1477 = vst [vmem:[%s1449_s26 + $0x68] sm:$0xff] %v1476_v26 }
 0x14d PF: > { %p16_p8 = scmp.ge.s32.totalorder %s1946_s20, 4   ;;  %s2141_s17 = smov %s1892_s18 }
 0x14e   : > { %s2142_s18 = smov %s1954_s23  ;;  %s2143_s19 = smov %s1946_s20 }
 0x14f   :  { %18 = sbr.rel (!%p16_p8) target bundleno = 5 (0x5), region = 175 }

// kernel: res2net3d_forward.9
= control target key start
LH: loop header
LB: loop body
LE: loop exit
PB: predicated region body
PF: predicated region fallthrough
CT: control target
= control target key end

     0   :  { %s4242_s12 = smov 0   ;;  %s4244_s13 = smov 0   ;;  %s5609_s0 = inlined_call_operand.vmem [shape: bf16[864,1024], index: 0, kind: input, shape index: {}]   ;;  %s5610_s1 = inlined_call_operand.vmem [shape: bf16[64,864], index: 1, kind: input, shape index: {}]   ;;  %s5611_s2 = inlined_call_operand.vmem [shape: f32[64,2], index: 2, kind: input, shape index: {}]   ;;  %s5612_s3 = inlined_call_operand.vmem [shape: bf16[64,1024], index: 3, kind: output, shape index: {}]  }
   0x1   :  { %s4246_s14 = smov 0  }
   0x2 LB: > { %s3372_s15 = sadd.s32 4294967295, %s4218_s14   ;;  %s4259_s16 = sadd.s32 1, %s4218_s14   ;;  %s4218_s14 = sphi %s4246_s14, %s5616_s14   ;;  %s4214_s13 = sphi %s4244_s13, %s5615_s13   ;;  %s4210_s12 = sphi %s4242_s12, %s5614_s12  }
   0x3   : > { %s17_s17 = ssub.s32 %s4218_s14, %s4259_s16  ;;  %s20_s18 = sadd.s32 1, %s4214_s13 }
   0x4   : > { %p18_p0 = scmp.eq.s32.totalorder %s17_s17, 0  ;;  %p27_p1 = scmp.ne.s32.totalorder %s4214_s13, %s4210_s12 }
   0x5   : > { %p28_p2 = scmp.eq.s32.totalorder %s4218_s14, 0  ;;  %p99_p3 = scmp.eq.s32.totalorder %s3372_s15, 1 }
   0x6   : > { %s4270_s19 = scalar_select %p18_p0, %s4214_s13, %s20_s18  }
   0x7   : > { %p29_p4 = por %p28_p2, %p27_p1  ;;  %p4272_p5 = por %p99_p3, %p27_p1 }
   0x8   : > { %p3375_p6 = scmp.ge.s32.totalorder %s4218_s14, 2 }
   0xa   : > { %127 = sbr.rel (%p3375_p6) target bundleno = 127 (0x7f), region = 24 }
   0xf   : > { %130 = sbr.rel (!%p29_p4) target bundleno = 127 (0x7f), region = 28  ;;  %s132_s21 = sand.u32 (%p29_p4), 1, %s4214_s13  }
  0x10   : > { %s3653_s22 = sshll.u32 (%p29_p4), %s4218_s14, 4  ;;  %s3671_s23 = smul.u32 (%p29_p4), 1728, %s132_s21 }
  0x11   : > { %s4282_s26 = scalar_lea.vmem (%p29_p4), %s5609_s0, %s3653_s22 }
  0x12   : > { %v150_v0 = vld [vmem:[%s4282_s26] sm:$0xff] (%p29_p4)  ;;  %v152_v1 = vld [vmem:[%s4282_s26 + $0x8] sm:$0xff] (%p29_p4)  ;;  %s4290_s27 = scalar_lea.vmem (%p29_p4), [#allocation2], %s3671_s23 }
  0x13   : > { %v154_v2 = vld [vmem:[%s4282_s26 + $0x20] sm:$0xff] (%p29_p4)  ;;  %v156_v3 = vld [vmem:[%s4282_s26 + $0x28] sm:$0xff] (%p29_p4)  ;;  %151 = vst [vmem:[%s4290_s27] sm:$0xff] (%p29_p4), %v150_v0  ;;  %153 = vst [vmem:[%s4290_s27 + $0x8] sm:$0xff] (%p29_p4), %v152_v1 }
  0x14   : > { %v158_v4 = vld [vmem:[%s4282_s26 + $0x40] sm:$0xff]  ;;  %v160_v5 = vld [vmem:[%s4282_s26 + $0x48] sm:$0xff]  ;;  %155 = vst [vmem:[%s4290_s27 + $0x10] sm:$0xff] %v154_v2  ;;  %157 = vst [vmem:[%s4290_s27 + $0x18] sm:$0xff] %v156_v3 }
  0x15   : > { %159 = vst [vmem:[%s4290_s27 + $0x20] sm:$0xff] %v158_v4  ;;  %161 = vst [vmem:[%s4290_s27 + $0x28] sm:$0xff] %v160_v5  ;;  %v162_v6 = vld [vmem:[%s4282_s26 + $0x60] sm:$0xff]  ;;  %v164_v7 = vld [vmem:[%s4282_s26 + $0x68] sm:$0xff] }
  0x16   : > { %v166_v8 = vld [vmem:[%s4282_s26 + $0x80] sm:$0xff]  ;;  %163 = vst [vmem:[%s4290_s27 + $0x30] sm:$0xff] %v162_v6  ;;  %165 = vst [vmem:[%s4290_s27 + $0x38] sm:$0xff] %v164_v7  ;;  %v168_v9 = vld [vmem:[%s4282_s26 + $0x88] sm:$0xff] }
  0x17   : > { %167 = vst [vmem:[%s4290_s27 + $0x40] sm:$0xff] %v166_v8  ;;  %v170_v10 = vld [vmem:[%s4282_s26 + $0xa0] sm:$0xff]  ;;  %v172_v11 = vld [vmem:[%s4282_s26 + $0xa8] sm:$0xff]  ;;  %169 = vst [vmem:[%s4290_s27 + $0x48] sm:$0xff] %v168_v9 }
  0x18   : > { %171 = vst [vmem:[%s4290_s27 + $0x50] sm:$0xff] %v170_v10  ;;  %173 = vst [vmem:[%s4290_s27 + $0x58] sm:$0xff] %v172_v11  ;;  %v174_v12 = vld [vmem:[%s4282_s26 + $0xc0] sm:$0xff]  ;;  %v176_v13 = vld [vmem:[%s4282_s26 + $0xc8] sm:$0xff] }
  0x19   : > { %v178_v14 = vld [vmem:[%s4282_s26 + $0xe0] sm:$0xff]  ;;  %175 = vst [vmem:[%s4290_s27 + $0x60] sm:$0xff] %v174_v12  ;;  %177 = vst [vmem:[%s4290_s27 + $0x68] sm:$0xff] %v176_v13  ;;  %v180_v15 = vld [vmem:[%s4282_s26 + $0xe8] sm:$0xff] }
  0x1a   : > { %179 = vst [vmem:[%s4290_s27 + $0x70] sm:$0xff] %v178_v14  ;;  %v182_v16 = vld [vmem:[%s4282_s26 + $0x100] sm:$0xff]  ;;  %v184_v17 = vld [vmem:[%s4282_s26 + $0x108] sm:$0xff]  ;;  %181 = vst [vmem:[%s4290_s27 + $0x78] sm:$0xff] %v180_v15 }
  0x1b   : > { %183 = vst [vmem:[%s4290_s27 + $0x80] sm:$0xff] %v182_v16  ;;  %185 = vst [vmem:[%s4290_s27 + $0x88] sm:$0xff] %v184_v17  ;;  %v186_v18 = vld [vmem:[%s4282_s26 + $0x120] sm:$0xff]  ;;  %v188_v19 = vld [vmem:[%s4282_s26 + $0x128] sm:$0xff] }
  0x1c   : > { %v190_v20 = vld [vmem:[%s4282_s26 + $0x140] sm:$0xff]  ;;  %187 = vst [vmem:[%s4290_s27 + $0x90] sm:$0xff] %v186_v18  ;;  %189 = vst [vmem:[%s4290_s27 + $0x98] sm:$0xff] %v188_v19  ;;  %v192_v21 = vld [vmem:[%s4282_s26 + $0x148] sm:$0xff] }
  0x1d   : > { %191 = vst [vmem:[%s4290_s27 + $0xa0] sm:$0xff] %v190_v20  ;;  %v194_v22 = vld [vmem:[%s4282_s26 + $0x160] sm:$0xff]  ;;  %v196_v23 = vld [vmem:[%s4282_s26 + $0x168] sm:$0xff]  ;;  %193 = vst [vmem:[%s4290_s27 + $0xa8] sm:$0xff] %v192_v21 }
  0x1e   : > { %195 = vst [vmem:[%s4290_s27 + $0xb0] sm:$0xff] %v194_v22  ;;  %197 = vst [vmem:[%s4290_s27 + $0xb8] sm:$0xff] %v196_v23  ;;  %v198_v24 = vld [vmem:[%s4282_s26 + $0x180] sm:$0xff]  ;;  %v200_v25 = vld [vmem:[%s4282_s26 + $0x188] sm:$0xff] }
  0x1f   : > { %v202_v26 = vld [vmem:[%s4282_s26 + $0x1a0] sm:$0xff]  ;;  %199 = vst [vmem:[%s4290_s27 + $0xc0] sm:$0xff] %v198_v24  ;;  %201 = vst [vmem:[%s4290_s27 + $0xc8] sm:$0xff] %v200_v25  ;;  %v204_v27 = vld [vmem:[%s4282_s26 + $0x1a8] sm:$0xff] }
  0x20   : > { %203 = vst [vmem:[%s4290_s27 + $0xd0] sm:$0xff] %v202_v26  ;;  %v206_v28 = vld [vmem:[%s4282_s26 + $0x1c0] sm:$0xff]  ;;  %v208_v29 = vld [vmem:[%s4282_s26 + $0x1c8] sm:$0xff]  ;;  %205 = vst [vmem:[%s4290_s27 + $0xd8] sm:$0xff] %v204_v27 }
  0x21   : > { %207 = vst [vmem:[%s4290_s27 + $0xe0] sm:$0xff] %v206_v28  ;;  %209 = vst [vmem:[%s4290_s27 + $0xe8] sm:$0xff] %v208_v29  ;;  %v210_v30 = vld [vmem:[%s4282_s26 + $0x1e0] sm:$0xff]  ;;  %v212_v31 = vld [vmem:[%s4282_s26 + $0x1e8] sm:$0xff] }
  0x22   : > { %v214_v32 = vld [vmem:[%s4282_s26 + $0x200] sm:$0xff]  ;;  %211 = vst [vmem:[%s4290_s27 + $0xf0] sm:$0xff] %v210_v30  ;;  %213 = vst [vmem:[%s4290_s27 + $0xf8] sm:$0xff] %v212_v31  ;;  %v216_v33 = vld [vmem:[%s4282_s26 + $0x208] sm:$0xff] }
  0x23   : > { %215 = vst [vmem:[%s4290_s27 + $0x100] sm:$0xff] %v214_v32  ;;  %v218_v34 = vld [vmem:[%s4282_s26 + $0x220] sm:$0xff]  ;;  %v220_v35 = vld [vmem:[%s4282_s26 + $0x228] sm:$0xff]  ;;  %217 = vst [vmem:[%s4290_s27 + $0x108] sm:$0xff] %v216_v33 }
  0x24   : > { %219 = vst [vmem:[%s4290_s27 + $0x110] sm:$0xff] %v218_v34  ;;  %221 = vst [vmem:[%s4290_s27 + $0x118] sm:$0xff] %v220_v35  ;;  %v222_v36 = vld [vmem:[%s4282_s26 + $0x240] sm:$0xff]  ;;  %v224_v37 = vld [vmem:[%s4282_s26 + $0x248] sm:$0xff] }
  0x25   : > { %v226_v38 = vld [vmem:[%s4282_s26 + $0x260] sm:$0xff]  ;;  %223 = vst [vmem:[%s4290_s27 + $0x120] sm:$0xff] %v222_v36  ;;  %225 = vst [vmem:[%s4290_s27 + $0x128] sm:$0xff] %v224_v37  ;;  %v228_v39 = vld [vmem:[%s4282_s26 + $0x268] sm:$0xff] }
  0x26   : > { %227 = vst [vmem:[%s4290_s27 + $0x130] sm:$0xff] %v226_v38  ;;  %v230_v40 = vld [vmem:[%s4282_s26 + $0x280] sm:$0xff]  ;;  %v232_v41 = vld [vmem:[%s4282_s26 + $0x288] sm:$0xff]  ;;  %229 = vst [vmem:[%s4290_s27 + $0x138] sm:$0xff] %v228_v39 }
  0x27   : > { %231 = vst [vmem:[%s4290_s27 + $0x140] sm:$0xff] %v230_v40  ;;  %233 = vst [vmem:[%s4290_s27 + $0x148] sm:$0xff] %v232_v41  ;;  %v234_v42 = vld [vmem:[%s4282_s26 + $0x2a0] sm:$0xff]  ;;  %v236_v43 = vld [vmem:[%s4282_s26 + $0x2a8] sm:$0xff] }
  0x28   : > { %v238_v44 = vld [vmem:[%s4282_s26 + $0x2c0] sm:$0xff]  ;;  %235 = vst [vmem:[%s4290_s27 + $0x150] sm:$0xff] %v234_v42  ;;  %237 = vst [vmem:[%s4290_s27 + $0x158] sm:$0xff] %v236_v43  ;;  %v240_v45 = vld [vmem:[%s4282_s26 + $0x2c8] sm:$0xff] }
  0x29   : > { %239 = vst [vmem:[%s4290_s27 + $0x160] sm:$0xff] %v238_v44  ;;  %v242_v46 = vld [vmem:[%s4282_s26 + $0x2e0] sm:$0xff]  ;;  %v244_v47 = vld [vmem:[%s4282_s26 + $0x2e8] sm:$0xff]  ;;  %241 = vst [vmem:[%s4290_s27 + $0x168] sm:$0xff] %v240_v45 }
  0x2a   : > { %243 = vst [vmem:[%s4290_s27 + $0x170] sm:$0xff] %v242_v46  ;;  %245 = vst [vmem:[%s4290_s27 + $0x178] sm:$0xff] %v244_v47  ;;  %v246_v48 = vld [vmem:[%s4282_s26 + $0x300] sm:$0xff]  ;;  %v248_v49 = vld [vmem:[%s4282_s26 + $0x308] sm:$0xff] }
  0x2b   : > { %v250_v50 = vld [vmem:[%s4282_s26 + $0x320] sm:$0xff]  ;;  %247 = vst [vmem:[%s4290_s27 + $0x180] sm:$0xff] %v246_v48  ;;  %249 = vst [vmem:[%s4290_s27 + $0x188] sm:$0xff] %v248_v49  ;;  %v252_v51 = vld [vmem:[%s4282_s26 + $0x328] sm:$0xff] }
  0x2c   : > { %251 = vst [vmem:[%s4290_s27 + $0x190] sm:$0xff] %v250_v50  ;;  %v254_v52 = vld [vmem:[%s4282_s26 + $0x340] sm:$0xff]  ;;  %v256_v53 = vld [vmem:[%s4282_s26 + $0x348] sm:$0xff]  ;;  %253 = vst [vmem:[%s4290_s27 + $0x198] sm:$0xff] %v252_v51 }
  0x2d   : > { %255 = vst [vmem:[%s4290_s27 + $0x1a0] sm:$0xff] %v254_v52  ;;  %257 = vst [vmem:[%s4290_s27 + $0x1a8] sm:$0xff] %v256_v53  ;;  %v258_v54 = vld [vmem:[%s4282_s26 + $0x360] sm:$0xff]  ;;  %v260_v55 = vld [vmem:[%s4282_s26 + $0x368] sm:$0xff] }
  0x2e   : > { %v262_v56 = vld [vmem:[%s4282_s26 + $0x380] sm:$0xff]  ;;  %259 = vst [vmem:[%s4290_s27 + $0x1b0] sm:$0xff] %v258_v54  ;;  %261 = vst [vmem:[%s4290_s27 + $0x1b8] sm:$0xff] %v260_v55  ;;  %v264_v57 = vld [vmem:[%s4282_s26 + $0x388] sm:$0xff] }
  0x2f   : > { %263 = vst [vmem:[%s4290_s27 + $0x1c0] sm:$0xff] %v262_v56  ;;  %v266_v58 = vld [vmem:[%s4282_s26 + $0x3a0] sm:$0xff]  ;;  %v268_v59 = vld [vmem:[%s4282_s26 + $0x3a8] sm:$0xff]  ;;  %265 = vst [vmem:[%s4290_s27 + $0x1c8] sm:$0xff] %v264_v57 }
  0x30   : > { %267 = vst [vmem:[%s4290_s27 + $0x1d0] sm:$0xff] %v266_v58  ;;  %269 = vst [vmem:[%s4290_s27 + $0x1d8] sm:$0xff] %v268_v59  ;;  %v270_v60 = vld [vmem:[%s4282_s26 + $0x3c0] sm:$0xff]  ;;  %v272_v61 = vld [vmem:[%s4282_s26 + $0x3c8] sm:$0xff] }
  0x31   : > { %v274_v62 = vld [vmem:[%s4282_s26 + $0x3e0] sm:$0xff]  ;;  %271 = vst [vmem:[%s4290_s27 + $0x1e0] sm:$0xff] %v270_v60  ;;  %273 = vst [vmem:[%s4290_s27 + $0x1e8] sm:$0xff] %v272_v61  ;;  %v276_v63 = vld [vmem:[%s4282_s26 + $0x3e8] sm:$0xff] }
  0x32   : > { %275 = vst [vmem:[%s4290_s27 + $0x1f0] sm:$0xff] %v274_v62  ;;  %v278_v0 = vld [vmem:[%s4282_s26 + $0x400] sm:$0xff]  ;;  %v280_v1 = vld [vmem:[%s4282_s26 + $0x408] sm:$0xff]  ;;  %277 = vst [vmem:[%s4290_s27 + $0x1f8] sm:$0xff] %v276_v63 }
  0x33   : > { %279 = vst [vmem:[%s4290_s27 + $0x200] sm:$0xff] %v278_v0  ;;  %281 = vst [vmem:[%s4290_s27 + $0x208] sm:$0xff] %v280_v1  ;;  %v282_v2 = vld [vmem:[%s4282_s26 + $0x420] sm:$0xff]  ;;  %v284_v3 = vld [vmem:[%s4282_s26 + $0x428] sm:$0xff] }
  0x34   : > { %v286_v4 = vld [vmem:[%s4282_s26 + $0x440] sm:$0xff]  ;;  %283 = vst [vmem:[%s4290_s27 + $0x210] sm:$0xff] %v282_v2  ;;  %285 = vst [vmem:[%s4290_s27 + $0x218] sm:$0xff] %v284_v3  ;;  %v288_v5 = vld [vmem:[%s4282_s26 + $0x448] sm:$0xff] }
  0x35   : > { %287 = vst [vmem:[%s4290_s27 + $0x220] sm:$0xff] %v286_v4  ;;  %v290_v6 = vld [vmem:[%s4282_s26 + $0x460] sm:$0xff]  ;;  %v292_v7 = vld [vmem:[%s4282_s26 + $0x468] sm:$0xff]  ;;  %289 = vst [vmem:[%s4290_s27 + $0x228] sm:$0xff] %v288_v5 }
  0x36   : > { %291 = vst [vmem:[%s4290_s27 + $0x230] sm:$0xff] %v290_v6  ;;  %293 = vst [vmem:[%s4290_s27 + $0x238] sm:$0xff] %v292_v7  ;;  %v294_v8 = vld [vmem:[%s4282_s26 + $0x480] sm:$0xff]  ;;  %v296_v9 = vld [vmem:[%s4282_s26 + $0x488] sm:$0xff] }
  0x37   : > { %v298_v10 = vld [vmem:[%s4282_s26 + $0x4a0] sm:$0xff]  ;;  %295 = vst [vmem:[%s4290_s27 + $0x240] sm:$0xff] %v294_v8  ;;  %297 = vst [vmem:[%s4290_s27 + $0x248] sm:$0xff] %v296_v9  ;;  %v300_v11 = vld [vmem:[%s4282_s26 + $0x4a8] sm:$0xff] }
  0x38   : > { %299 = vst [vmem:[%s4290_s27 + $0x250] sm:$0xff] %v298_v10  ;;  %v302_v12 = vld [vmem:[%s4282_s26 + $0x4c0] sm:$0xff]  ;;  %v304_v13 = vld [vmem:[%s4282_s26 + $0x4c8] sm:$0xff]  ;;  %301 = vst [vmem:[%s4290_s27 + $0x258] sm:$0xff] %v300_v11 }
  0x39   : > { %303 = vst [vmem:[%s4290_s27 + $0x260] sm:$0xff] %v302_v12  ;;  %305 = vst [vmem:[%s4290_s27 + $0x268] sm:$0xff] %v304_v13  ;;  %v306_v14 = vld [vmem:[%s4282_s26 + $0x4e0] sm:$0xff]  ;;  %v308_v15 = vld [vmem:[%s4282_s26 + $0x4e8] sm:$0xff] }
  0x3a   : > { %v310_v16 = vld [vmem:[%s4282_s26 + $0x500] sm:$0xff]  ;;  %307 = vst [vmem:[%s4290_s27 + $0x270] sm:$0xff] %v306_v14  ;;  %309 = vst [vmem:[%s4290_s27 + $0x278] sm:$0xff] %v308_v15  ;;  %v312_v17 = vld [vmem:[%s4282_s26 + $0x508] sm:$0xff] }
  0x3b   : > { %311 = vst [vmem:[%s4290_s27 + $0x280] sm:$0xff] %v310_v16  ;;  %v314_v18 = vld [vmem:[%s4282_s26 + $0x520] sm:$0xff]  ;;  %v316_v19 = vld [vmem:[%s4282_s26 + $0x528] sm:$0xff]  ;;  %313 = vst [vmem:[%s4290_s27 + $0x288] sm:$0xff] %v312_v17 }
  0x3c   : > { %315 = vst [vmem:[%s4290_s27 + $0x290] sm:$0xff] %v314_v18  ;;  %317 = vst [vmem:[%s4290_s27 + $0x298] sm:$0xff] %v316_v19  ;;  %v318_v20 = vld [vmem:[%s4282_s26 + $0x540] sm:$0xff]  ;;  %v320_v21 = vld [vmem:[%s4282_s26 + $0x548] sm:$0xff] }
  0x3d   : > { %v322_v22 = vld [vmem:[%s4282_s26 + $0x560] sm:$0xff]  ;;  %319 = vst [vmem:[%s4290_s27 + $0x2a0] sm:$0xff] %v318_v20  ;;  %321 = vst [vmem:[%s4290_s27 + $0x2a8] sm:$0xff] %v320_v21  ;;  %v324_v23 = vld [vmem:[%s4282_s26 + $0x568] sm:$0xff] }
  0x3e   : > { %323 = vst [vmem:[%s4290_s27 + $0x2b0] sm:$0xff] %v322_v22  ;;  %v326_v24 = vld [vmem:[%s4282_s26 + $0x580] sm:$0xff]  ;;  %v328_v25 = vld [vmem:[%s4282_s26 + $0x588] sm:$0xff]  ;;  %325 = vst [vmem:[%s4290_s27 + $0x2b8] sm:$0xff] %v324_v23 }
  0x3f   : > { %327 = vst [vmem:[%s4290_s27 + $0x2c0] sm:$0xff] %v326_v24  ;;  %329 = vst [vmem:[%s4290_s27 + $0x2c8] sm:$0xff] %v328_v25  ;;  %v330_v26 = vld [vmem:[%s4282_s26 + $0x5a0] sm:$0xff]  ;;  %v332_v27 = vld [vmem:[%s4282_s26 + $0x5a8] sm:$0xff] }
  0x40   : > { %v334_v28 = vld [vmem:[%s4282_s26 + $0x5c0] sm:$0xff]  ;;  %331 = vst [vmem:[%s4290_s27 + $0x2d0] sm:$0xff] %v330_v26  ;;  %333 = vst [vmem:[%s4290_s27 + $0x2d8] sm:$0xff] %v332_v27  ;;  %v336_v29 = vld [vmem:[%s4282_s26 + $0x5c8] sm:$0xff] }
  0x41   : > { %335 = vst [vmem:[%s4290_s27 + $0x2e0] sm:$0xff] %v334_v28  ;;  %v338_v30 = vld [vmem:[%s4282_s26 + $0x5e0] sm:$0xff]  ;;  %v340_v31 = vld [vmem:[%s4282_s26 + $0x5e8] sm:$0xff]  ;;  %337 = vst [vmem:[%s4290_s27 + $0x2e8] sm:$0xff] %v336_v29 }
  0x42   : > { %339 = vst [vmem:[%s4290_s27 + $0x2f0] sm:$0xff] %v338_v30  ;;  %341 = vst [vmem:[%s4290_s27 + $0x2f8] sm:$0xff] %v340_v31  ;;  %v342_v32 = vld [vmem:[%s4282_s26 + $0x600] sm:$0xff]  ;;  %v344_v33 = vld [vmem:[%s4282_s26 + $0x608] sm:$0xff] }
  0x43   : > { %v346_v34 = vld [vmem:[%s4282_s26 + $0x620] sm:$0xff]  ;;  %343 = vst [vmem:[%s4290_s27 + $0x300] sm:$0xff] %v342_v32  ;;  %345 = vst [vmem:[%s4290_s27 + $0x308] sm:$0xff] %v344_v33  ;;  %v348_v35 = vld [vmem:[%s4282_s26 + $0x628] sm:$0xff] }
  0x44   : > { %347 = vst [vmem:[%s4290_s27 + $0x310] sm:$0xff] %v346_v34  ;;  %v350_v36 = vld [vmem:[%s4282_s26 + $0x640] sm:$0xff]  ;;  %v352_v37 = vld [vmem:[%s4282_s26 + $0x648] sm:$0xff]  ;;  %349 = vst [vmem:[%s4290_s27 + $0x318] sm:$0xff] %v348_v35 }
  0x45   : > { %351 = vst [vmem:[%s4290_s27 + $0x320] sm:$0xff] %v350_v36  ;;  %353 = vst [vmem:[%s4290_s27 + $0x328] sm:$0xff] %v352_v37  ;;  %v354_v38 = vld [vmem:[%s4282_s26 + $0x660] sm:$0xff]  ;;  %v356_v39 = vld [vmem:[%s4282_s26 + $0x668] sm:$0xff] }
  0x46   : > { %v358_v40 = vld [vmem:[%s4282_s26 + $0x680] sm:$0xff]  ;;  %355 = vst [vmem:[%s4290_s27 + $0x330] sm:$0xff] %v354_v38  ;;  %357 = vst [vmem:[%s4290_s27 + $0x338] sm:$0xff] %v356_v39  ;;  %v360_v41 = vld [vmem:[%s4282_s26 + $0x688] sm:$0xff] }
  0x47   : > { %359 = vst [vmem:[%s4290_s27 + $0x340] sm:$0xff] %v358_v40  ;;  %v362_v42 = vld [vmem:[%s4282_s26 + $0x6a0] sm:$0xff]  ;;  %v364_v43 = vld [vmem:[%s4282_s26 + $0x6a8] sm:$0xff]  ;;  %361 = vst [vmem:[%s4290_s27 + $0x348] sm:$0xff] %v360_v41 }
  0x48   : > { %363 = vst [vmem:[%s4290_s27 + $0x350] sm:$0xff] %v362_v42  ;;  %365 = vst [vmem:[%s4290_s27 + $0x358] sm:$0xff] %v364_v43  ;;  %v366_v44 = vld [vmem:[%s4282_s26 + $0x6c0] sm:$0xff]  ;;  %v368_v45 = vld [vmem:[%s4282_s26 + $0x6c8] sm:$0xff] }
  0x49   : > { %v370_v46 = vld [vmem:[%s4282_s26 + $0x6e0] sm:$0xff]  ;;  %367 = vst [vmem:[%s4290_s27 + $0x360] sm:$0xff] %v366_v44  ;;  %369 = vst [vmem:[%s4290_s27 + $0x368] sm:$0xff] %v368_v45  ;;  %v372_v47 = vld [vmem:[%s4282_s26 + $0x6e8] sm:$0xff] }
  0x4a   : > { %371 = vst [vmem:[%s4290_s27 + $0x370] sm:$0xff] %v370_v46  ;;  %v374_v48 = vld [vmem:[%s4282_s26 + $0x700] sm:$0xff]  ;;  %v376_v49 = vld [vmem:[%s4282_s26 + $0x708] sm:$0xff]  ;;  %373 = vst [vmem:[%s4290_s27 + $0x378] sm:$0xff] %v372_v47 }
  0x4b   : > { %375 = vst [vmem:[%s4290_s27 + $0x380] sm:$0xff] %v374_v48  ;;  %377 = vst [vmem:[%s4290_s27 + $0x388] sm:$0xff] %v376_v49  ;;  %v378_v50 = vld [vmem:[%s4282_s26 + $0x720] sm:$0xff]  ;;  %v380_v51 = vld [vmem:[%s4282_s26 + $0x728] sm:$0xff] }
  0x4c   : > { %v382_v52 = vld [vmem:[%s4282_s26 + $0x740] sm:$0xff]  ;;  %379 = vst [vmem:[%s4290_s27 + $0x390] sm:$0xff] %v378_v50  ;;  %381 = vst [vmem:[%s4290_s27 + $0x398] sm:$0xff] %v380_v51  ;;  %v384_v53 = vld [vmem:[%s4282_s26 + $0x748] sm:$0xff] }
  0x4d   : > { %383 = vst [vmem:[%s4290_s27 + $0x3a0] sm:$0xff] %v382_v52  ;;  %v386_v54 = vld [vmem:[%s4282_s26 + $0x760] sm:$0xff]  ;;  %v388_v55 = vld [vmem:[%s4282_s26 + $0x768] sm:$0xff]  ;;  %385 = vst [vmem:[%s4290_s27 + $0x3a8] sm:$0xff] %v384_v53 }
  0x4e   : > { %387 = vst [vmem:[%s4290_s27 + $0x3b0] sm:$0xff] %v386_v54  ;;  %389 = vst [vmem:[%s4290_s27 + $0x3b8] sm:$0xff] %v388_v55  ;;  %v390_v56 = vld [vmem:[%s4282_s26 + $0x780] sm:$0xff]  ;;  %v392_v57 = vld [vmem:[%s4282_s26 + $0x788] sm:$0xff] }
  0x4f   : > { %v394_v58 = vld [vmem:[%s4282_s26 + $0x7a0] sm:$0xff]  ;;  %391 = vst [vmem:[%s4290_s27 + $0x3c0] sm:$0xff] %v390_v56  ;;  %393 = vst [vmem:[%s4290_s27 + $0x3c8] sm:$0xff] %v392_v57  ;;  %v396_v59 = vld [vmem:[%s4282_s26 + $0x7a8] sm:$0xff] }
  0x50   : > { %395 = vst [vmem:[%s4290_s27 + $0x3d0] sm:$0xff] %v394_v58  ;;  %v398_v60 = vld [vmem:[%s4282_s26 + $0x7c0] sm:$0xff]  ;;  %v400_v61 = vld [vmem:[%s4282_s26 + $0x7c8] sm:$0xff]  ;;  %397 = vst [vmem:[%s4290_s27 + $0x3d8] sm:$0xff] %v396_v59 }
  0x51   : > { %399 = vst [vmem:[%s4290_s27 + $0x3e0] sm:$0xff] %v398_v60  ;;  %401 = vst [vmem:[%s4290_s27 + $0x3e8] sm:$0xff] %v400_v61  ;;  %v402_v62 = vld [vmem:[%s4282_s26 + $0x7e0] sm:$0xff]  ;;  %v404_v63 = vld [vmem:[%s4282_s26 + $0x7e8] sm:$0xff] }
  0x52   : > { %v406_v0 = vld [vmem:[%s4282_s26 + $0x800] sm:$0xff]  ;;  %403 = vst [vmem:[%s4290_s27 + $0x3f0] sm:$0xff] %v402_v62  ;;  %405 = vst [vmem:[%s4290_s27 + $0x3f8] sm:$0xff] %v404_v63  ;;  %v408_v1 = vld [vmem:[%s4282_s26 + $0x808] sm:$0xff] }
  0x53   : > { %407 = vst [vmem:[%s4290_s27 + $0x400] sm:$0xff] %v406_v0  ;;  %v410_v2 = vld [vmem:[%s4282_s26 + $0x820] sm:$0xff]  ;;  %v412_v3 = vld [vmem:[%s4282_s26 + $0x828] sm:$0xff]  ;;  %409 = vst [vmem:[%s4290_s27 + $0x408] sm:$0xff] %v408_v1 }
  0x54   : > { %411 = vst [vmem:[%s4290_s27 + $0x410] sm:$0xff] %v410_v2  ;;  %413 = vst [vmem:[%s4290_s27 + $0x418] sm:$0xff] %v412_v3  ;;  %v414_v4 = vld [vmem:[%s4282_s26 + $0x840] sm:$0xff]  ;;  %v416_v5 = vld [vmem:[%s4282_s26 + $0x848] sm:$0xff] }
  0x55   : > { %v418_v6 = vld [vmem:[%s4282_s26 + $0x860] sm:$0xff]  ;;  %415 = vst [vmem:[%s4290_s27 + $0x420] sm:$0xff] %v414_v4  ;;  %417 = vst [vmem:[%s4290_s27 + $0x428] sm:$0xff] %v416_v5  ;;  %v420_v7 = vld [vmem:[%s4282_s26 + $0x868] sm:$0xff] }
  0x56   : > { %419 = vst [vmem:[%s4290_s27 + $0x430] sm:$0xff] %v418_v6  ;;  %v422_v8 = vld [vmem:[%s4282_s26 + $0x880] sm:$0xff]  ;;  %v424_v9 = vld [vmem:[%s4282_s26 + $0x888] sm:$0xff]  ;;  %421 = vst [vmem:[%s4290_s27 + $0x438] sm:$0xff] %v420_v7 }
  0x57   : > { %423 = vst [vmem:[%s4290_s27 + $0x440] sm:$0xff] %v422_v8  ;;  %425 = vst [vmem:[%s4290_s27 + $0x448] sm:$0xff] %v424_v9  ;;  %v426_v10 = vld [vmem:[%s4282_s26 + $0x8a0] sm:$0xff]  ;;  %v428_v11 = vld [vmem:[%s4282_s26 + $0x8a8] sm:$0xff] }
  0x58   : > { %v430_v12 = vld [vmem:[%s4282_s26 + $0x8c0] sm:$0xff]  ;;  %427 = vst [vmem:[%s4290_s27 + $0x450] sm:$0xff] %v426_v10  ;;  %429 = vst [vmem:[%s4290_s27 + $0x458] sm:$0xff] %v428_v11  ;;  %v432_v13 = vld [vmem:[%s4282_s26 + $0x8c8] sm:$0xff] }
  0x59   : > { %431 = vst [vmem:[%s4290_s27 + $0x460] sm:$0xff] %v430_v12  ;;  %v434_v14 = vld [vmem:[%s4282_s26 + $0x8e0] sm:$0xff]  ;;  %v436_v15 = vld [vmem:[%s4282_s26 + $0x8e8] sm:$0xff]  ;;  %433 = vst [vmem:[%s4290_s27 + $0x468] sm:$0xff] %v432_v13 }
  0x5a   : > { %435 = vst [vmem:[%s4290_s27 + $0x470] sm:$0xff] %v434_v14  ;;  %437 = vst [vmem:[%s4290_s27 + $0x478] sm:$0xff] %v436_v15  ;;  %v438_v16 = vld [vmem:[%s4282_s26 + $0x900] sm:$0xff]  ;;  %v440_v17 = vld [vmem:[%s4282_s26 + $0x908] sm:$0xff] }
  0x5b   : > { %v442_v18 = vld [vmem:[%s4282_s26 + $0x920] sm:$0xff]  ;;  %439 = vst [vmem:[%s4290_s27 + $0x480] sm:$0xff] %v438_v16  ;;  %441 = vst [vmem:[%s4290_s27 + $0x488] sm:$0xff] %v440_v17  ;;  %v444_v19 = vld [vmem:[%s4282_s26 + $0x928] sm:$0xff] }
  0x5c   : > { %443 = vst [vmem:[%s4290_s27 + $0x490] sm:$0xff] %v442_v18  ;;  %v446_v20 = vld [vmem:[%s4282_s26 + $0x940] sm:$0xff]  ;;  %v448_v21 = vld [vmem:[%s4282_s26 + $0x948] sm:$0xff]  ;;  %445 = vst [vmem:[%s4290_s27 + $0x498] sm:$0xff] %v444_v19 }
  0x5d   : > { %447 = vst [vmem:[%s4290_s27 + $0x4a0] sm:$0xff] %v446_v20  ;;  %449 = vst [vmem:[%s4290_s27 + $0x4a8] sm:$0xff] %v448_v21  ;;  %v450_v22 = vld [vmem:[%s4282_s26 + $0x960] sm:$0xff]  ;;  %v452_v23 = vld [vmem:[%s4282_s26 + $0x968] sm:$0xff] }
  0x5e   : > { %v454_v24 = vld [vmem:[%s4282_s26 + $0x980] sm:$0xff]  ;;  %451 = vst [vmem:[%s4290_s27 + $0x4b0] sm:$0xff] %v450_v22  ;;  %453 = vst [vmem:[%s4290_s27 + $0x4b8] sm:$0xff] %v452_v23  ;;  %v456_v25 = vld [vmem:[%s4282_s26 + $0x988] sm:$0xff] }
  0x5f   : > { %455 = vst [vmem:[%s4290_s27 + $0x4c0] sm:$0xff] %v454_v24  ;;  %v458_v26 = vld [vmem:[%s4282_s26 + $0x9a0] sm:$0xff]  ;;  %v460_v27 = vld [vmem:[%s4282_s26 + $0x9a8] sm:$0xff]  ;;  %457 = vst [vmem:[%s4290_s27 + $0x4c8] sm:$0xff] %v456_v25 }
  0x60   : > { %459 = vst [vmem:[%s4290_s27 + $0x4d0] sm:$0xff] %v458_v26  ;;  %461 = vst [vmem:[%s4290_s27 + $0x4d8] sm:$0xff] %v460_v27  ;;  %v462_v28 = vld [vmem:[%s4282_s26 + $0x9c0] sm:$0xff]  ;;  %v464_v29 = vld [vmem:[%s4282_s26 + $0x9c8] sm:$0xff] }
  0x61   : > { %v466_v30 = vld [vmem:[%s4282_s26 + $0x9e0] sm:$0xff]  ;;  %463 = vst [vmem:[%s4290_s27 + $0x4e0] sm:$0xff] %v462_v28  ;;  %465 = vst [vmem:[%s4290_s27 + $0x4e8] sm:$0xff] %v464_v29  ;;  %v468_v31 = vld [vmem:[%s4282_s26 + $0x9e8] sm:$0xff] }
  0x62   : > { %467 = vst [vmem:[%s4290_s27 + $0x4f0] sm:$0xff] %v466_v30  ;;  %v470_v32 = vld [vmem:[%s4282_s26 + $0xa00] sm:$0xff]  ;;  %v472_v33 = vld [vmem:[%s4282_s26 + $0xa08] sm:$0xff]  ;;  %469 = vst [vmem:[%s4290_s27 + $0x4f8] sm:$0xff] %v468_v31 }
  0x63   : > { %471 = vst [vmem:[%s4290_s27 + $0x500] sm:$0xff] %v470_v32  ;;  %473 = vst [vmem:[%s4290_s27 + $0x508] sm:$0xff] %v472_v33  ;;  %v474_v34 = vld [vmem:[%s4282_s26 + $0xa20] sm:$0xff]  ;;  %v476_v35 = vld [vmem:[%s4282_s26 + $0xa28] sm:$0xff] }
  0x64   : > { %v478_v36 = vld [vmem:[%s4282_s26 + $0xa40] sm:$0xff]  ;;  %475 = vst [vmem:[%s4290_s27 + $0x510] sm:$0xff] %v474_v34  ;;  %477 = vst [vmem:[%s4290_s27 + $0x518] sm:$0xff] %v476_v35  ;;  %v480_v37 = vld [vmem:[%s4282_s26 + $0xa48] sm:$0xff] }
  0x65   : > { %479 = vst [vmem:[%s4290_s27 + $0x520] sm:$0xff] %v478_v36  ;;  %v482_v38 = vld [vmem:[%s4282_s26 + $0xa60] sm:$0xff]  ;;  %v484_v39 = vld [vmem:[%s4282_s26 + $0xa68] sm:$0xff]  ;;  %481 = vst [vmem:[%s4290_s27 + $0x528] sm:$0xff] %v480_v37 }
  0x66   : > { %483 = vst [vmem:[%s4290_s27 + $0x530] sm:$0xff] %v482_v38  ;;  %485 = vst [vmem:[%s4290_s27 + $0x538] sm:$0xff] %v484_v39  ;;  %v486_v40 = vld [vmem:[%s4282_s26 + $0xa80] sm:$0xff]  ;;  %v488_v41 = vld [vmem:[%s4282_s26 + $0xa88] sm:$0xff] }
  0x67   : > { %v490_v42 = vld [vmem:[%s4282_s26 + $0xaa0] sm:$0xff]  ;;  %487 = vst [vmem:[%s4290_s27 + $0x540] sm:$0xff] %v486_v40  ;;  %489 = vst [vmem:[%s4290_s27 + $0x548] sm:$0xff] %v488_v41  ;;  %v492_v43 = vld [vmem:[%s4282_s26 + $0xaa8] sm:$0xff] }
  0x68   : > { %491 = vst [vmem:[%s4290_s27 + $0x550] sm:$0xff] %v490_v42  ;;  %v494_v44 = vld [vmem:[%s4282_s26 + $0xac0] sm:$0xff]  ;;  %v496_v45 = vld [vmem:[%s4282_s26 + $0xac8] sm:$0xff]  ;;  %493 = vst [vmem:[%s4290_s27 + $0x558] sm:$0xff] %v492_v43 }
  0x69   : > { %495 = vst [vmem:[%s4290_s27 + $0x560] sm:$0xff] %v494_v44  ;;  %497 = vst [vmem:[%s4290_s27 + $0x568] sm:$0xff] %v496_v45  ;;  %v498_v46 = vld [vmem:[%s4282_s26 + $0xae0] sm:$0xff]  ;;  %v500_v47 = vld [vmem:[%s4282_s26 + $0xae8] sm:$0xff] }
  0x6a   : > { %v502_v48 = vld [vmem:[%s4282_s26 + $0xb00] sm:$0xff]  ;;  %499 = vst [vmem:[%s4290_s27 + $0x570] sm:$0xff] %v498_v46  ;;  %501 = vst [vmem:[%s4290_s27 + $0x578] sm:$0xff] %v500_v47  ;;  %v504_v49 = vld [vmem:[%s4282_s26 + $0xb08] sm:$0xff] }
  0x6b   : > { %503 = vst [vmem:[%s4290_s27 + $0x580] sm:$0xff] %v502_v48  ;;  %v506_v50 = vld [vmem:[%s4282_s26 + $0xb20] sm:$0xff]  ;;  %v508_v51 = vld [vmem:[%s4282_s26 + $0xb28] sm:$0xff]  ;;  %505 = vst [vmem:[%s4290_s27 + $0x588] sm:$0xff] %v504_v49 }
  0x6c   : > { %507 = vst [vmem:[%s4290_s27 + $0x590] sm:$0xff] %v506_v50  ;;  %509 = vst [vmem:[%s4290_s27 + $0x598] sm:$0xff] %v508_v51  ;;  %v510_v52 = vld [vmem:[%s4282_s26 + $0xb40] sm:$0xff]  ;;  %v512_v53 = vld [vmem:[%s4282_s26 + $0xb48] sm:$0xff] }
  0x6d   : > { %v514_v54 = vld [vmem:[%s4282_s26 + $0xb60] sm:$0xff]  ;;  %511 = vst [vmem:[%s4290_s27 + $0x5a0] sm:$0xff] %v510_v52  ;;  %513 = vst [vmem:[%s4290_s27 + $0x5a8] sm:$0xff] %v512_v53  ;;  %v516_v55 = vld [vmem:[%s4282_s26 + $0xb68] sm:$0xff] }
  0x6e   : > { %515 = vst [vmem:[%s4290_s27 + $0x5b0] sm:$0xff] %v514_v54  ;;  %v518_v56 = vld [vmem:[%s4282_s26 + $0xb80] sm:$0xff]  ;;  %v520_v57 = vld [vmem:[%s4282_s26 + $0xb88] sm:$0xff]  ;;  %517 = vst [vmem:[%s4290_s27 + $0x5b8] sm:$0xff] %v516_v55 }
  0x6f   : > { %519 = vst [vmem:[%s4290_s27 + $0x5c0] sm:$0xff] %v518_v56  ;;  %521 = vst [vmem:[%s4290_s27 + $0x5c8] sm:$0xff] %v520_v57  ;;  %v522_v58 = vld [vmem:[%s4282_s26 + $0xba0] sm:$0xff]  ;;  %v524_v59 = vld [vmem:[%s4282_s26 + $0xba8] sm:$0xff] }
  0x70   : > { %v526_v60 = vld [vmem:[%s4282_s26 + $0xbc0] sm:$0xff]  ;;  %523 = vst [vmem:[%s4290_s27 + $0x5d0] sm:$0xff] %v522_v58  ;;  %525 = vst [vmem:[%s4290_s27 + $0x5d8] sm:$0xff] %v524_v59  ;;  %v528_v61 = vld [vmem:[%s4282_s26 + $0xbc8] sm:$0xff] }
  0x71   : > { %527 = vst [vmem:[%s4290_s27 + $0x5e0] sm:$0xff] %v526_v60  ;;  %v530_v62 = vld [vmem:[%s4282_s26 + $0xbe0] sm:$0xff]  ;;  %v532_v63 = vld [vmem:[%s4282_s26 + $0xbe8] sm:$0xff]  ;;  %529 = vst [vmem:[%s4290_s27 + $0x5e8] sm:$0xff] %v528_v61 }
  0x72   : > { %531 = vst [vmem:[%s4290_s27 + $0x5f0] sm:$0xff] %v530_v62  ;;  %533 = vst [vmem:[%s4290_s27 + $0x5f8] sm:$0xff] %v532_v63  ;;  %v534_v0 = vld [vmem:[%s4282_s26 + $0xc00] sm:$0xff]  ;;  %v536_v1 = vld [vmem:[%s4282_s26 + $0xc08] sm:$0xff] }
  0x73   : > { %v538_v2 = vld [vmem:[%s4282_s26 + $0xc20] sm:$0xff]  ;;  %535 = vst [vmem:[%s4290_s27 + $0x600] sm:$0xff] %v534_v0  ;;  %537 = vst [vmem:[%s4290_s27 + $0x608] sm:$0xff] %v536_v1  ;;  %v540_v3 = vld [vmem:[%s4282_s26 + $0xc28] sm:$0xff] }
  0x74   : > { %539 = vst [vmem:[%s4290_s27 + $0x610] sm:$0xff] %v538_v2  ;;  %v542_v4 = vld [vmem:[%s4282_s26 + $0xc40] sm:$0xff]  ;;  %v544_v5 = vld [vmem:[%s4282_s26 + $0xc48] sm:$0xff]  ;;  %541 = vst [vmem:[%s4290_s27 + $0x618] sm:$0xff] %v540_v3 }
  0x75   : > { %543 = vst [vmem:[%s4290_s27 + $0x620] sm:$0xff] %v542_v4  ;;  %545 = vst [vmem:[%s4290_s27 + $0x628] sm:$0xff] %v544_v5  ;;  %v546_v6 = vld [vmem:[%s4282_s26 + $0xc60] sm:$0xff]  ;;  %v548_v7 = vld [vmem:[%s4282_s26 + $0xc68] sm:$0xff] }
  0x76   : > { %v550_v8 = vld [vmem:[%s4282_s26 + $0xc80] sm:$0xff]  ;;  %547 = vst [vmem:[%s4290_s27 + $0x630] sm:$0xff] %v546_v6  ;;  %549 = vst [vmem:[%s4290_s27 + $0x638] sm:$0xff] %v548_v7  ;;  %v552_v9 = vld [vmem:[%s4282_s26 + $0xc88] sm:$0xff] }
  0x77   : > { %551 = vst [vmem:[%s4290_s27 + $0x640] sm:$0xff] %v550_v8  ;;  %v554_v10 = vld [vmem:[%s4282_s26 + $0xca0] sm:$0xff]  ;;  %v556_v11 = vld [vmem:[%s4282_s26 + $0xca8] sm:$0xff]  ;;  %553 = vst [vmem:[%s4290_s27 + $0x648] sm:$0xff] %v552_v9 }
  0x78   : > { %555 = vst [vmem:[%s4290_s27 + $0x650] sm:$0xff] %v554_v10  ;;  %557 = vst [vmem:[%s4290_s27 + $0x658] sm:$0xff] %v556_v11  ;;  %v558_v12 = vld [vmem:[%s4282_s26 + $0xcc0] sm:$0xff]  ;;  %v560_v13 = vld [vmem:[%s4282_s26 + $0xcc8] sm:$0xff] }
  0x79   : > { %v562_v14 = vld [vmem:[%s4282_s26 + $0xce0] sm:$0xff]  ;;  %559 = vst [vmem:[%s4290_s27 + $0x660] sm:$0xff] %v558_v12  ;;  %561 = vst [vmem:[%s4290_s27 + $0x668] sm:$0xff] %v560_v13  ;;  %v564_v15 = vld [vmem:[%s4282_s26 + $0xce8] sm:$0xff] }
  0x7a   : > { %563 = vst [vmem:[%s4290_s27 + $0x670] sm:$0xff] %v562_v14  ;;  %v566_v16 = vld [vmem:[%s4282_s26 + $0xd00] sm:$0xff]  ;;  %v568_v17 = vld [vmem:[%s4282_s26 + $0xd08] sm:$0xff]  ;;  %565 = vst [vmem:[%s4290_s27 + $0x678] sm:$0xff] %v564_v15 }
  0x7b   : > { %567 = vst [vmem:[%s4290_s27 + $0x680] sm:$0xff] %v566_v16  ;;  %569 = vst [vmem:[%s4290_s27 + $0x688] sm:$0xff] %v568_v17  ;;  %v570_v18 = vld [vmem:[%s4282_s26 + $0xd20] sm:$0xff]  ;;  %v572_v19 = vld [vmem:[%s4282_s26 + $0xd28] sm:$0xff] }
  0x7c   : > { %v574_v20 = vld [vmem:[%s4282_s26 + $0xd40] sm:$0xff]  ;;  %571 = vst [vmem:[%s4290_s27 + $0x690] sm:$0xff] %v570_v18  ;;  %573 = vst [vmem:[%s4290_s27 + $0x698] sm:$0xff] %v572_v19  ;;  %v576_v21 = vld [vmem:[%s4282_s26 + $0xd48] sm:$0xff] }
  0x7d   : > { %575 = vst [vmem:[%s4290_s27 + $0x6a0] sm:$0xff] %v574_v20  ;;  %v578_v22 = vld [vmem:[%s4282_s26 + $0xd60] sm:$0xff]  ;;  %v580_v23 = vld [vmem:[%s4282_s26 + $0xd68] sm:$0xff]  ;;  %577 = vst [vmem:[%s4290_s27 + $0x6a8] sm:$0xff] %v576_v21 }
  0x7e   : > { %579 = vst [vmem:[%s4290_s27 + $0x6b0] sm:$0xff] %v578_v22  ;;  %581 = vst [vmem:[%s4290_s27 + $0x6b8] sm:$0xff] %v580_v23 }
  0x7f PF: > { %p3378_p7 = scmp.ge.s32.totalorder %s4218_s14, 1  ;;  %p586_p8 = scmp.lt.s32.totalorder %s4218_s14, 3 }
  0x81   : > { %p587_p9 = pnand %p3378_p7, %p586_p8 }
  0x82   : > { %s593_s28 = sand.u32 (!%p587_p9), 1, %s4210_s12  }
  0x83   : > { %590 = sbr.rel (%p587_p9) target bundleno = 654 (0x28e), region = 51 }
  0x84   : > { %s3672_s29 = smul.u32 (!%p587_p9), 1728, %s593_s28 }
  0x86   : > { %s4734_s7 = scalar_lea.vmem (!%p587_p9), [#allocation2], %s3672_s29 }
  0x88   : > { %v4726_v24 = vld [vmem:[%s5610_s1 + $0x4] ss:$28 sps:$4 sm:$0xff]   ;;  %v4220_v25 = vmov 0   ;;  %v3804_v26 = vld [vmem:[%s5610_s1 + $0xc] ss:$28 sps:$4 sm:$0xff]   ;;  %vm2086_vm0 = vcmask 785408  }
  0x89   : > { %3699 = vset.pattern.permute.xlu0 %v4220_v25  ;;  %3700 = vset.pattern.permute.xlu1 %v4220_v25  ;;  %v3703_v27 = vld [vmem:[%s4734_s7 + $0xe4] ss:$16 sps:$4 sm:$0xff]   ;;  %v3707_v29 = vld [vmem:[%s4734_s7 + $0xe0] ss:$16 sps:$4 sm:$0xff]  }
  0x8a   : > { %2131 = vmatprep.mubr.bf16.mxu0 %v4726_v24  ;;  %2204 = vmatprep.mubr.bf16.mxu1 %v3804_v26  ;;  %v3705_v28 = vld [vmem:[%s4734_s7 + $0x2e4] ss:$16 sps:$4 sm:$0xff]   ;;  %v3708_v30 = vld [vmem:[%s4734_s7 + $0x2e0] ss:$16 sps:$4 sm:$0xff]  }
  0x8b   : > { %2099 = vmatprep.subr.bf16.mxu0 %v3703_v27  ;;  %2172 = vmatprep.subr.bf16.mxu1 %v3705_v28  ;;  %v3709_v31 = vld [vmem:[%s4734_s7 + $0xc4] ss:$16 sps:$4 sm:$0xff]   ;;  %v3713_v33 = vld [vmem:[%s4734_s7 + $0xc0] ss:$16 sps:$4 sm:$0xff]  }
  0x8c   : > { %2100 = vmatpush1.bf16.msra.mxu0 %v3707_v29  ;;  %2173 = vmatpush1.bf16.msra.mxu1 %v3708_v30  ;;  %v3711_v32 = vld [vmem:[%s4734_s7 + $0x2c4] ss:$16 sps:$4 sm:$0xff]   ;;  %v3714_v34 = vld [vmem:[%s4734_s7 + $0x2c0] ss:$16 sps:$4 sm:$0xff]  }
  0x8d   : > { %2101 = vmatprep.subr.bf16.mxu0 %v3709_v31  ;;  %2174 = vmatprep.subr.bf16.mxu1 %v3711_v32  ;;  %v3715_v35 = vld [vmem:[%s4734_s7 + $0xa4] ss:$16 sps:$4 sm:$0xff]   ;;  %v3719_v37 = vld [vmem:[%s4734_s7 + $0xa0] ss:$16 sps:$4 sm:$0xff]  }
  0x8e   : > { %v3717_v36 = vld [vmem:[%s4734_s7 + $0x2a4] ss:$16 sps:$4 sm:$0xff]   ;;  %v3720_v38 = vld [vmem:[%s4734_s7 + $0x2a0] ss:$16 sps:$4 sm:$0xff]  }
  0x8f   : > { %v3721_v39 = vld [vmem:[%s4734_s7 + $0x84] ss:$16 sps:$4 sm:$0xff]   ;;  %v3725_v41 = vld [vmem:[%s4734_s7 + $0x80] ss:$16 sps:$4 sm:$0xff]  }
  0x90   : > { %2102 = vmatpush1.bf16.msra.mxu0 %v3713_v33  ;;  %2175 = vmatpush1.bf16.msra.mxu1 %v3714_v34  ;;  %v3723_v40 = vld [vmem:[%s4734_s7 + $0x284] ss:$16 sps:$4 sm:$0xff]   ;;  %v3726_v42 = vld [vmem:[%s4734_s7 + $0x280] ss:$16 sps:$4 sm:$0xff]  }
  0x91   : > { %2103 = vmatprep.subr.bf16.mxu0 %v3715_v35  ;;  %2176 = vmatprep.subr.bf16.mxu1 %v3717_v36  ;;  %v3727_v43 = vld [vmem:[%s4734_s7 + $0x64] ss:$16 sps:$4 sm:$0xff]   ;;  %v3731_v45 = vld [vmem:[%s4734_s7 + $0x60] ss:$16 sps:$4 sm:$0xff]  }
  0x92   : > { %v3729_v44 = vld [vmem:[%s4734_s7 + $0x264] ss:$16 sps:$4 sm:$0xff]   ;;  %v3732_v46 = vld [vmem:[%s4734_s7 + $0x260] ss:$16 sps:$4 sm:$0xff]  }
  0x93   : > { %v3733_v47 = vld [vmem:[%s4734_s7 + $0x44] ss:$16 sps:$4 sm:$0xff]   ;;  %v3737_v49 = vld [vmem:[%s4734_s7 + $0x40] ss:$16 sps:$4 sm:$0xff]  }
  0x94   : > { %2104 = vmatpush1.bf16.msra.mxu0 %v3719_v37  ;;  %2177 = vmatpush1.bf16.msra.mxu1 %v3720_v38  ;;  %v3735_v48 = vld [vmem:[%s4734_s7 + $0x244] ss:$16 sps:$4 sm:$0xff]   ;;  %v3738_v50 = vld [vmem:[%s4734_s7 + $0x240] ss:$16 sps:$4 sm:$0xff]   ;;  %v4819_v37 = vld [vmem:[%s5610_s1 + $0x3c] ss:$28 sps:$4 sm:$0xff]  }
  0x95   : > { %2105 = vmatprep.subr.bf16.mxu0 %v3721_v39  ;;  %2178 = vmatprep.subr.bf16.mxu1 %v3723_v40  ;;  %v3739_v51 = vld [vmem:[%s4734_s7 + $0x24] ss:$16 sps:$4 sm:$0xff]   ;;  %v3743_v53 = vld [vmem:[%s4734_s7 + $0x20] ss:$16 sps:$4 sm:$0xff]  }
  0x96   : > { %v3741_v52 = vld [vmem:[%s4734_s7 + $0x224] ss:$16 sps:$4 sm:$0xff]   ;;  %v3744_v54 = vld [vmem:[%s4734_s7 + $0x220] ss:$16 sps:$4 sm:$0xff]  }
  0x97   : > { %v3745_v55 = vld [vmem:[%s4734_s7 + $0x4] ss:$16 sps:$4 sm:$0xff]   ;;  %v3749_v57 = vld [vmem:[%s4734_s7] ss:$16 sps:$4 sm:$0xff]  }
  0x98   : > { %2106 = vmatpush1.bf16.msra.mxu0 %v3725_v41  ;;  %2179 = vmatpush1.bf16.msra.mxu1 %v3726_v42  ;;  %v3747_v56 = vld [vmem:[%s4734_s7 + $0x204] ss:$16 sps:$4 sm:$0xff]   ;;  %v3750_v58 = vld [vmem:[%s4734_s7 + $0x200] ss:$16 sps:$4 sm:$0xff]  }
  0x99   : > { %2107 = vmatprep.subr.bf16.mxu0 %v3727_v43  ;;  %2180 = vmatprep.subr.bf16.mxu1 %v3729_v44  ;;  %v3751_v59 = vld [vmem:[%s4734_s7 + $0x1e4] ss:$16 sps:$4 sm:$0xff]   ;;  %v3755_v61 = vld [vmem:[%s4734_s7 + $0x1e0] ss:$16 sps:$4 sm:$0xff]  }
  0x9a   : > { %v3753_v60 = vld [vmem:[%s4734_s7 + $0x3e4] ss:$16 sps:$4 sm:$0xff]   ;;  %v3756_v62 = vld [vmem:[%s4734_s7 + $0x3e0] ss:$16 sps:$4 sm:$0xff]  }
  0x9b   : > { %v3757_v63 = vld [vmem:[%s4734_s7 + $0x1c4] ss:$16 sps:$4 sm:$0xff]   ;;  %v3761_v1 = vld [vmem:[%s4734_s7 + $0x1c0] ss:$16 sps:$4 sm:$0xff]  }
  0x9c   : > { %2108 = vmatpush1.bf16.msra.mxu0 %v3731_v45  ;;  %2181 = vmatpush1.bf16.msra.mxu1 %v3732_v46  ;;  %v3759_v0 = vld [vmem:[%s4734_s7 + $0x3c4] ss:$16 sps:$4 sm:$0xff]   ;;  %v3762_v2 = vld [vmem:[%s4734_s7 + $0x3c0] ss:$16 sps:$4 sm:$0xff]  }
  0x9d   : > { %2109 = vmatprep.subr.bf16.mxu0 %v3733_v47  ;;  %2182 = vmatprep.subr.bf16.mxu1 %v3735_v48  ;;  %v3763_v3 = vld [vmem:[%s4734_s7 + $0x1a4] ss:$16 sps:$4 sm:$0xff]   ;;  %v3767_v5 = vld [vmem:[%s4734_s7 + $0x1a0] ss:$16 sps:$4 sm:$0xff]  }
  0x9e   : > { %v3765_v4 = vld [vmem:[%s4734_s7 + $0x3a4] ss:$16 sps:$4 sm:$0xff]   ;;  %v3768_v6 = vld [vmem:[%s4734_s7 + $0x3a0] ss:$16 sps:$4 sm:$0xff]  }
  0x9f   : > { %v3769_v7 = vld [vmem:[%s4734_s7 + $0x184] ss:$16 sps:$4 sm:$0xff]   ;;  %v3773_v9 = vld [vmem:[%s4734_s7 + $0x180] ss:$16 sps:$4 sm:$0xff]  }
  0xa0   : > { %2110 = vmatpush1.bf16.msra.mxu0 %v3737_v49  ;;  %2183 = vmatpush1.bf16.msra.mxu1 %v3738_v50  ;;  %v3771_v8 = vld [vmem:[%s4734_s7 + $0x384] ss:$16 sps:$4 sm:$0xff]   ;;  %v3774_v10 = vld [vmem:[%s4734_s7 + $0x380] ss:$16 sps:$4 sm:$0xff]   ;;  %v4855_v49 = vld [vmem:[%s5610_s1 + $0x7c] ss:$28 sps:$4 sm:$0xff]  }
  0xa1   : > { %2111 = vmatprep.subr.bf16.mxu0 %v3739_v51  ;;  %2184 = vmatprep.subr.bf16.mxu1 %v3741_v52  ;;  %v3775_v11 = vld [vmem:[%s4734_s7 + $0x164] ss:$16 sps:$4 sm:$0xff]   ;;  %v3779_v13 = vld [vmem:[%s4734_s7 + $0x160] ss:$16 sps:$4 sm:$0xff]  }
  0xa2   : > { %v3777_v12 = vld [vmem:[%s4734_s7 + $0x364] ss:$16 sps:$4 sm:$0xff]   ;;  %v3780_v14 = vld [vmem:[%s4734_s7 + $0x360] ss:$16 sps:$4 sm:$0xff]  }
  0xa3   : > { %v3781_v15 = vld [vmem:[%s4734_s7 + $0x144] ss:$16 sps:$4 sm:$0xff]   ;;  %v3785_v17 = vld [vmem:[%s4734_s7 + $0x140] ss:$16 sps:$4 sm:$0xff]  }
  0xa4   : > { %2112 = vmatpush1.bf16.msra.mxu0 %v3743_v53  ;;  %2185 = vmatpush1.bf16.msra.mxu1 %v3744_v54  ;;  %v3783_v16 = vld [vmem:[%s4734_s7 + $0x344] ss:$16 sps:$4 sm:$0xff]   ;;  %v3786_v18 = vld [vmem:[%s4734_s7 + $0x340] ss:$16 sps:$4 sm:$0xff]  }
  0xa5   : > { %2113 = vmatprep.subr.bf16.mxu0 %v3745_v55  ;;  %2186 = vmatprep.subr.bf16.mxu1 %v3747_v56  ;;  %v3787_v19 = vld [vmem:[%s4734_s7 + $0x124] ss:$16 sps:$4 sm:$0xff]   ;;  %v3791_v21 = vld [vmem:[%s4734_s7 + $0x120] ss:$16 sps:$4 sm:$0xff]  }
  0xa6   : > { %v3789_v20 = vld [vmem:[%s4734_s7 + $0x324] ss:$16 sps:$4 sm:$0xff]   ;;  %v3792_v22 = vld [vmem:[%s4734_s7 + $0x320] ss:$16 sps:$4 sm:$0xff]  }
  0xa7   : > { %v3793_v23 = vld [vmem:[%s4734_s7 + $0x104] ss:$16 sps:$4 sm:$0xff]   ;;  %v3797_v27 = vld [vmem:[%s4734_s7 + $0x100] ss:$16 sps:$4 sm:$0xff]  }
  0xa8   : > { %2114 = vmatpush1.bf16.msra.mxu0 %v3749_v57  ;;  %2187 = vmatpush1.bf16.msra.mxu1 %v3750_v58  ;;  %v3795_v26 = vld [vmem:[%s4734_s7 + $0x304] ss:$16 sps:$4 sm:$0xff]   ;;  %v3798_v28 = vld [vmem:[%s4734_s7 + $0x300] ss:$16 sps:$4 sm:$0xff]  }
  0xa9   : > { %2115 = vmatprep.subr.bf16.mxu0 %v3751_v59  ;;  %2188 = vmatprep.subr.bf16.mxu1 %v3753_v60  ;;  %v3807_v29 = vld [vmem:[%s4734_s7 + $0x4e4] ss:$16 sps:$4 sm:$0xff]   ;;  %v4805_v31 = vld [vmem:[%s5610_s1] ss:$28 sps:$4 sm:$0xff]   ;;  %v4869_v55 = vld [vmem:[%s5610_s1 + $0x70] ss:$28 sps:$4 sm:$0xff]  }
  0xaa   : > { %v3810_v30 = vld [vmem:[%s4734_s7 + $0x6a4] ss:$16 sps:$4 sm:$0xff]   ;;  %v3805_v33 = vld [vmem:[%s4734_s7 + $0x4e0] ss:$16 sps:$4 sm:$0xff]   ;;  %v4881_v59 = vld [vmem:[%s5610_s1 + $0xac] ss:$28 sps:$4 sm:$0xff]  }
  0xab   : > { %v4810_v32 = vld [vmem:[%s5610_s1 + $0x8] ss:$28 sps:$4 sm:$0xff]   ;;  %v3808_v34 = vld [vmem:[%s4734_s7 + $0x6a0] ss:$16 sps:$4 sm:$0xff]   ;;  %v4834_v42 = vld [vmem:[%s5610_s1 + $0x38] ss:$28 sps:$4 sm:$0xff]  }
  0xac   : > { %2116 = vmatpush2.bf16.msra.mxu0 %v3755_v61  ;;  %2189 = vmatpush2.bf16.msra.mxu1 %v3756_v62  ;;  %v3813_v35 = vld [vmem:[%s4734_s7 + $0x4c4] ss:$16 sps:$4 sm:$0xff]   ;;  %v3811_v39 = vld [vmem:[%s4734_s7 + $0x4c0] ss:$16 sps:$4 sm:$0xff]  }
  0xad   : > { %2117 = vmatprep.subr.bf16.mxu0 %v3757_v63  ;;  %2190 = vmatprep.subr.bf16.mxu1 %v3759_v0  ;;  %v3816_v36 = vld [vmem:[%s4734_s7 + $0x684] ss:$16 sps:$4 sm:$0xff]   ;;  %v3814_v40 = vld [vmem:[%s4734_s7 + $0x680] ss:$16 sps:$4 sm:$0xff]  }
  0xae   : > { %v4824_v38 = vld [vmem:[%s5610_s1 + $0x44] ss:$28 sps:$4 sm:$0xff]   ;;  %v4850_v48 = vld [vmem:[%s5610_s1 + $0x74] ss:$28 sps:$4 sm:$0xff]  }
  0xaf   : > { %v3825_v41 = vld [vmem:[%s4734_s7 + $0x4a4] ss:$16 sps:$4 sm:$0xff]   ;;  %v4842_v44 = vld [vmem:[%s5610_s1 + $0x40] ss:$28 sps:$4 sm:$0xff]  }
  0xb0   : > { %2118 = vmatpush2.bf16.msra.mxu0 %v3761_v1  ;;  %2191 = vmatpush2.bf16.msra.mxu1 %v3762_v2  ;;  %v3828_v43 = vld [vmem:[%s4734_s7 + $0x664] ss:$16 sps:$4 sm:$0xff]   ;;  %v3823_v45 = vld [vmem:[%s4734_s7 + $0x4a0] ss:$16 sps:$4 sm:$0xff]  }
  0xb1   : > { %2119 = vmatprep.subr.bf16.mxu0 %v3763_v3  ;;  %2192 = vmatprep.subr.bf16.mxu1 %v3765_v4  ;;  %v3826_v46 = vld [vmem:[%s4734_s7 + $0x660] ss:$16 sps:$4 sm:$0xff]   ;;  %v3831_v47 = vld [vmem:[%s4734_s7 + $0x484] ss:$16 sps:$4 sm:$0xff]  }
  0xb2   : > { %v3843_v50 = vld [vmem:[%s4734_s7 + $0x644] ss:$16 sps:$4 sm:$0xff]   ;;  %v3829_v51 = vld [vmem:[%s4734_s7 + $0x480] ss:$16 sps:$4 sm:$0xff]  }
  0xb3   : > { %v3840_v52 = vld [vmem:[%s4734_s7 + $0x464] ss:$16 sps:$4 sm:$0xff]   ;;  %v3841_v53 = vld [vmem:[%s4734_s7 + $0x640] ss:$16 sps:$4 sm:$0xff]  }
  0xb4   : > { %2120 = vmatpush2.bf16.msra.mxu0 %v3767_v5  ;;  %2193 = vmatpush2.bf16.msra.mxu1 %v3768_v6  ;;  %v3849_v54 = vld [vmem:[%s4734_s7 + $0x624] ss:$16 sps:$4 sm:$0xff]   ;;  %v3838_v57 = vld [vmem:[%s4734_s7 + $0x460] ss:$16 sps:$4 sm:$0xff]   ;;  %v3867_v6 = vld [vmem:[%s4734_s7 + $0xec] ss:$16 sps:$4 sm:$0xff]  }
  0xb5   : > { %2121 = vmatprep.subr.bf16.mxu0 %v3769_v7  ;;  %2194 = vmatprep.subr.bf16.mxu1 %v3771_v8  ;;  %v4874_v56 = vld [vmem:[%s5610_s1 + $0x78] ss:$28 sps:$4 sm:$0xff]   ;;  %v3847_v61 = vld [vmem:[%s4734_s7 + $0x620] ss:$16 sps:$4 sm:$0xff]   ;;  %v4900_v2 = vld [vmem:[%s5610_s1 + $0xa8] ss:$28 sps:$4 sm:$0xff]  }
  0xb6   : > { %v3846_v58 = vld [vmem:[%s4734_s7 + $0x444] ss:$16 sps:$4 sm:$0xff]   ;;  %v3844_v63 = vld [vmem:[%s4734_s7 + $0x440] ss:$16 sps:$4 sm:$0xff]  }
  0xb7   : > { %v4886_v60 = vld [vmem:[%s5610_s1 + $0xb4] ss:$28 sps:$4 sm:$0xff]  }
  0xb8   : > { %2122 = vmatpush2.bf16.msra.mxu0 %v3773_v9  ;;  %2195 = vmatpush2.bf16.msra.mxu1 %v3774_v10  ;;  %v3861_v62 = vld [vmem:[%s4734_s7 + $0x604] ss:$16 sps:$4 sm:$0xff]   ;;  %v3859_v1 = vld [vmem:[%s4734_s7 + $0x600] ss:$16 sps:$4 sm:$0xff]  }
  0xb9   : > { %2123 = vmatprep.subr.bf16.mxu0 %v3775_v11  ;;  %2196 = vmatprep.subr.bf16.mxu1 %v3777_v12  ;;  %v3858_v0 = vld [vmem:[%s4734_s7 + $0x424] ss:$16 sps:$4 sm:$0xff]   ;;  %v4905_v3 = vld [vmem:[%s5610_s1 + $0xb0] ss:$28 sps:$4 sm:$0xff]   ;;  %v3865_v11 = vld [vmem:[%s4734_s7 + $0xe8] ss:$16 sps:$4 sm:$0xff]  }
  0xba   : > { %v3856_v4 = vld [vmem:[%s4734_s7 + $0x420] ss:$16 sps:$4 sm:$0xff]   ;;  %v3864_v5 = vld [vmem:[%s4734_s7 + $0x404] ss:$16 sps:$4 sm:$0xff]  }
  0xbb   : > { %v4915_v7 = vld [vmem:[%s5610_s1 + $0x14] ss:$28 sps:$4 sm:$0xff]  }
  0xbc   : > { %2124 = vmatpush2.bf16.msra.mxu0 %v3779_v13  ;;  %2197 = vmatpush2.bf16.msra.mxu1 %v3780_v14  ;;  %v3862_v8 = vld [vmem:[%s4734_s7 + $0x400] ss:$16 sps:$4 sm:$0xff]   ;;  %v3870_v9 = vld [vmem:[%s4734_s7 + $0x5e4] ss:$16 sps:$4 sm:$0xff]   ;;  %v3874_v13 = vld [vmem:[%s4734_s7 + $0xcc] ss:$16 sps:$4 sm:$0xff]  }
  0xbd   : > { %2125 = vmatprep.subr.bf16.mxu0 %v3781_v15  ;;  %2198 = vmatprep.subr.bf16.mxu1 %v3783_v16  ;;  %v4924_v10 = vld [vmem:[%s5610_s1 + $0x18] ss:$28 sps:$4 sm:$0xff]   ;;  %v3868_v12 = vld [vmem:[%s4734_s7 + $0x5e0] ss:$16 sps:$4 sm:$0xff]  }
  0xbe   : > { %v3877_v14 = vld [vmem:[%s4734_s7 + $0x5c4] ss:$16 sps:$4 sm:$0xff]   ;;  %v3872_v15 = vld [vmem:[%s4734_s7 + $0xc8] ss:$16 sps:$4 sm:$0xff]   ;;  %v3875_v16 = vld [vmem:[%s4734_s7 + $0x5c0] ss:$16 sps:$4 sm:$0xff]  }
  0xc0   : > { %2126 = vmatpush2.bf16.msra.mxu0 %v3785_v17  ;;  %2199 = vmatpush2.bf16.msra.mxu1 %v3786_v18  ;;  %v3880_v17 = vld [vmem:[%s4734_s7 + $0xac] ss:$16 sps:$4 sm:$0xff]   ;;  %v3883_v18 = vld [vmem:[%s4734_s7 + $0x5a4] ss:$16 sps:$4 sm:$0xff]  }
  0xc1   : > { %2127 = vmatprep.subr.bf16.mxu0 %v3787_v19  ;;  %2200 = vmatprep.subr.bf16.mxu1 %v3789_v20  ;;  %v3878_v19 = vld [vmem:[%s4734_s7 + $0xa8] ss:$16 sps:$4 sm:$0xff]   ;;  %v4941_v20 = vld [vmem:[%s5610_s1 + $0x50] ss:$28 sps:$4 sm:$0xff]  }
  0xc4   : > { %2128 = vmatpush2.bf16.msra.mxu0 %v3791_v21  ;;  %2201 = vmatpush2.bf16.msra.mxu1 %v3792_v22  ;;  %v3881_v21 = vld [vmem:[%s4734_s7 + $0x5a0] ss:$16 sps:$4 sm:$0xff]   ;;  %v3886_v22 = vld [vmem:[%s4734_s7 + $0x8c] ss:$16 sps:$4 sm:$0xff]  }
  0xc5   : > { %2129 = vmatprep.subr.bf16.mxu0 %v3793_v23  ;;  %2202 = vmatprep.subr.bf16.mxu1 %v3795_v26  ;;  %v3889_v23 = vld [vmem:[%s4734_s7 + $0x584] ss:$16 sps:$4 sm:$0xff]   ;;  %v3884_v26 = vld [vmem:[%s4734_s7 + $0x88] ss:$16 sps:$4 sm:$0xff]  }
  0xc8   : > { %2130 = vmatpush2.bf16.msra.mxu0 %v3797_v27  ;;  %2203 = vmatpush2.bf16.msra.mxu1 %v3798_v28  ;;  %v3887_v27 = vld [vmem:[%s4734_s7 + $0x580] ss:$16 sps:$4 sm:$0xff]   ;;  %v3892_v28 = vld [vmem:[%s4734_s7 + $0x6c] ss:$16 sps:$4 sm:$0xff]  }
  0xc9   : > { %2245 = vmatprep.subr.bf16.mxu0 %v3807_v29  ;;  %2322 = vmatprep.subr.bf16.mxu1 %v3810_v30  ;;  %v3895_v29 = vld [vmem:[%s4734_s7 + $0x564] ss:$16 sps:$4 sm:$0xff]   ;;  %v3890_v30 = vld [vmem:[%s4734_s7 + $0x68] ss:$16 sps:$4 sm:$0xff]  }
  0xcb   : > { %2132 = vmatmul.mubr.bf16.vlgmr.msra.gmra.mxu0 %v4805_v31  ;;  %2205 = vmatmul.mubr.bf16.vlgmr.msra.gmra.mxu1 %v4810_v32 }
  0xcc   : > { %2246 = vmatpush1.bf16.msra.mxu0 %v3805_v33  ;;  %2323 = vmatpush1.bf16.msra.mxu1 %v3808_v34  ;;  %v3893_v33 = vld [vmem:[%s4734_s7 + $0x560] ss:$16 sps:$4 sm:$0xff]   ;;  %v4958_v34 = vld [vmem:[%s5610_s1 + $0x88] ss:$28 sps:$4 sm:$0xff]  }
  0xcd   : > { %2247 = vmatprep.subr.bf16.mxu0 %v3813_v35  ;;  %2324 = vmatprep.subr.bf16.mxu1 %v3816_v36  ;;  %v3898_v35 = vld [vmem:[%s4734_s7 + $0x4c] ss:$16 sps:$4 sm:$0xff]   ;;  %v3901_v36 = vld [vmem:[%s4734_s7 + $0x544] ss:$16 sps:$4 sm:$0xff]  }
  0xce   : > { %2141 = vmatprep.mubr.bf16.mxu0 %v4819_v37  ;;  %2214 = vmatprep.mubr.bf16.mxu1 %v4824_v38 }
  0xd0   : > { %2248 = vmatpush1.bf16.msra.mxu0 %v3811_v39  ;;  %2325 = vmatpush1.bf16.msra.mxu1 %v3814_v40  ;;  %v3896_v39 = vld [vmem:[%s4734_s7 + $0x48] ss:$16 sps:$4 sm:$0xff]   ;;  %v3899_v40 = vld [vmem:[%s4734_s7 + $0x540] ss:$16 sps:$4 sm:$0xff]  }
  0xd1   : > { %2249 = vmatprep.subr.bf16.mxu0 %v3825_v41  ;;  %2326 = vmatprep.subr.bf16.mxu1 %v3828_v43  ;;  %v3904_v41 = vld [vmem:[%s4734_s7 + $0x2c] ss:$16 sps:$4 sm:$0xff]   ;;  %v3907_v43 = vld [vmem:[%s4734_s7 + $0x524] ss:$16 sps:$4 sm:$0xff]  }
  0xd3   : > { %2142 = vmatmul.mubr.bf16.gmra.mxu0 %v4834_v42  ;;  %2215 = vmatmul.mubr.bf16.gmra.mxu1 %v4842_v44 }
  0xd4   : > { %2250 = vmatpush1.bf16.msra.mxu0 %v3823_v45  ;;  %2327 = vmatpush1.bf16.msra.mxu1 %v3826_v46  ;;  %v3902_v45 = vld [vmem:[%s4734_s7 + $0x28] ss:$16 sps:$4 sm:$0xff]   ;;  %v3905_v46 = vld [vmem:[%s4734_s7 + $0x520] ss:$16 sps:$4 sm:$0xff]  }
  0xd5   : > { %2251 = vmatprep.subr.bf16.mxu0 %v3831_v47  ;;  %2151 = vmatprep.mubr.bf16.mxu0 %v4850_v48  ;;  %v4974_v47 = vld [vmem:[%s5610_s1 + $0xc0] ss:$28 sps:$4 sm:$0xff]  }
  0xd6   : > { %2224 = vmatprep.mubr.bf16.mxu1 %v4855_v49  ;;  %2328 = vmatprep.subr.bf16.mxu1 %v3843_v50  ;;  %v3910_v50 = vld [vmem:[%s4734_s7 + $0xc] ss:$16 sps:$4 sm:$0xff]  }
  0xd8   : > { %2252 = vmatpush1.bf16.msra.mxu0 %v3829_v51  ;;  %2329 = vmatpush1.bf16.msra.mxu1 %v3841_v53  ;;  %v3913_v51 = vld [vmem:[%s4734_s7 + $0x504] ss:$16 sps:$4 sm:$0xff]   ;;  %v3911_v53 = vld [vmem:[%s4734_s7 + $0x500] ss:$16 sps:$4 sm:$0xff]  }
  0xd9   : > { %2253 = vmatprep.subr.bf16.mxu0 %v3840_v52  ;;  %2330 = vmatprep.subr.bf16.mxu1 %v3849_v54  ;;  %v3908_v52 = vld [vmem:[%s4734_s7 + $0x8] ss:$16 sps:$4 sm:$0xff]   ;;  %v3919_v54 = vld [vmem:[%s4734_s7 + $0x1ec] ss:$16 sps:$4 sm:$0xff]  }
  0xdb   : > { %2152 = vmatmul.mubr.bf16.gmra.mxu0 %v4869_v55  ;;  %2225 = vmatmul.mubr.bf16.gmra.mxu1 %v4874_v56 }
  0xdc   : > { %2254 = vmatpush1.bf16.msra.mxu0 %v3838_v57  ;;  %2161 = vmatprep.mubr.bf16.mxu0 %v4881_v59  ;;  %v3922_v57 = vld [vmem:[%s4734_s7 + $0x2ec] ss:$16 sps:$4 sm:$0xff]  }
  0xdd   : > { %2255 = vmatprep.subr.bf16.mxu0 %v3846_v58  ;;  %2234 = vmatprep.mubr.bf16.mxu1 %v4886_v60  ;;  %v4987_v58 = vld [vmem:[%s5610_s1 + $0x10] ss:$28 sps:$4 sm:$0xff]  }
  0xde   : > { %2331 = vmatpush1.bf16.msra.mxu1 %v3847_v61  ;;  %v3917_v61 = vld [vmem:[%s4734_s7 + $0x1e8] ss:$16 sps:$4 sm:$0xff]  }
  0xdf   : > { %2332 = vmatprep.subr.bf16.mxu1 %v3861_v62  ;;  %v3920_v62 = vld [vmem:[%s4734_s7 + $0x2e8] ss:$16 sps:$4 sm:$0xff]  }
  0xe0   : > { %2256 = vmatpush1.bf16.msra.mxu0 %v3844_v63  ;;  %v3926_v63 = vld [vmem:[%s4734_s7 + $0x1cc] ss:$16 sps:$4 sm:$0xff]  }
  0xe1   : > { %2257 = vmatprep.subr.bf16.mxu0 %v3858_v0  ;;  %v3929_v0 = vld [vmem:[%s4734_s7 + $0x2cc] ss:$16 sps:$4 sm:$0xff]  }
  0xe2   : > { %2333 = vmatpush1.bf16.msra.mxu1 %v3859_v1  ;;  %v4997_v1 = vld [vmem:[%s5610_s1 + $0x4c] ss:$28 sps:$4 sm:$0xff]  }
  0xe3   : > { %2162 = vmatmul.mubr.bf16.gmra.mxu0 %v4900_v2  ;;  %2235 = vmatmul.mubr.bf16.gmra.mxu1 %v4905_v3 }
  0xe4   : > { %2258 = vmatpush1.bf16.msra.mxu0 %v3856_v4  ;;  %2350 = vmatprep.mubr.bf16.mxu1 %v4220_v25  ;;  %v3927_v4 = vld [vmem:[%s4734_s7 + $0x2c8] ss:$16 sps:$4 sm:$0xff]  }
  0xe5   : > { %2259 = vmatprep.subr.bf16.mxu0 %v3864_v5  ;;  %2391 = vmatprep.subr.bf16.mxu1 %v3867_v6  ;;  %v3934_v5 = vld [vmem:[%s4734_s7 + $0x1ac] ss:$16 sps:$4 sm:$0xff]  }
  0xe6   : > { %2277 = vmatprep.mubr.bf16.mxu0 %v4915_v7  ;;  %v3938_v6 = vld [vmem:[%s4734_s7 + $0x2ac] ss:$16 sps:$4 sm:$0xff]  }
  0xe8   : > { %2260 = vmatpush1.bf16.msra.mxu0 %v3862_v8  ;;  %v3932_v8 = vld [vmem:[%s4734_s7 + $0x1a8] ss:$16 sps:$4 sm:$0xff]  }
  0xe9   : > { %2261 = vmatprep.subr.bf16.mxu0 %v3870_v9  ;;  %v5009_v9 = vld [vmem:[%s5610_s1 + $0x48] ss:$28 sps:$4 sm:$0xff]  }
  0xeb   : > { %3624 = vmatmul.mubr.msk.bf16.vlgmr.msra.gmra.mxu1 %vm2086_vm0, %v4924_v10 }
  0xec   : > { %2392 = vmatpush1.bf16.msra.mxu1 %v3865_v11  ;;  %2262 = vmatpush2.bf16.msra.mxu0 %v3868_v12  ;;  %v3936_v11 = vld [vmem:[%s4734_s7 + $0x2a8] ss:$16 sps:$4 sm:$0xff]   ;;  %v3942_v12 = vld [vmem:[%s4734_s7 + $0x18c] ss:$16 sps:$4 sm:$0xff]  }
  0xed   : > { %2393 = vmatprep.subr.bf16.mxu1 %v3874_v13  ;;  %2263 = vmatprep.subr.bf16.mxu0 %v3877_v14  ;;  %v3945_v13 = vld [vmem:[%s4734_s7 + $0x28c] ss:$16 sps:$4 sm:$0xff]   ;;  %v5017_v14 = vld [vmem:[%s5610_s1 + $0x84] ss:$28 sps:$4 sm:$0xff]  }
  0xee   : > { %2360 = vmatprep.mubr.bf16.mxu1 %v4220_v25 }
  0xf0   : > { %2394 = vmatpush1.bf16.msra.mxu1 %v3872_v15  ;;  %2264 = vmatpush2.bf16.msra.mxu0 %v3875_v16  ;;  %v3940_v15 = vld [vmem:[%s4734_s7 + $0x188] ss:$16 sps:$4 sm:$0xff]  }
  0xf1   : > { %2395 = vmatprep.subr.bf16.mxu1 %v3880_v17  ;;  %2265 = vmatprep.subr.bf16.mxu0 %v3883_v18  ;;  %v3943_v16 = vld [vmem:[%s4734_s7 + $0x288] ss:$16 sps:$4 sm:$0xff]   ;;  %v3950_v17 = vld [vmem:[%s4734_s7 + $0x16c] ss:$16 sps:$4 sm:$0xff]  }
  0xf2   : > { %v3954_v18 = vld [vmem:[%s4734_s7 + $0x26c] ss:$16 sps:$4 sm:$0xff]  }
  0xf3   : > { %3625 = vmatmul.mubr.msk.bf16.gmra.mxu1 %vm2086_vm0, %v4941_v20 }
  0xf4   : > { %2396 = vmatpush1.bf16.msra.mxu1 %v3878_v19  ;;  %2266 = vmatpush2.bf16.msra.mxu0 %v3881_v21  ;;  %v3948_v19 = vld [vmem:[%s4734_s7 + $0x168] ss:$16 sps:$4 sm:$0xff]   ;;  %v5029_v21 = vld [vmem:[%s5610_s1 + $0x80] ss:$28 sps:$4 sm:$0xff]  }
  0xf5   : > { %2397 = vmatprep.subr.bf16.mxu1 %v3886_v22  ;;  %2267 = vmatprep.subr.bf16.mxu0 %v3889_v23  ;;  %v3952_v22 = vld [vmem:[%s4734_s7 + $0x268] ss:$16 sps:$4 sm:$0xff]   ;;  %v3958_v23 = vld [vmem:[%s4734_s7 + $0x14c] ss:$16 sps:$4 sm:$0xff]  }
  0xf6   : > { %2370 = vmatprep.mubr.bf16.mxu1 %v4220_v25 }
  0xf8   : > { %2398 = vmatpush1.bf16.msra.mxu1 %v3884_v26  ;;  %2268 = vmatpush2.bf16.msra.mxu0 %v3887_v27  ;;  %v3961_v26 = vld [vmem:[%s4734_s7 + $0x24c] ss:$16 sps:$4 sm:$0xff]  }
  0xf9   : > { %2399 = vmatprep.subr.bf16.mxu1 %v3892_v28  ;;  %2269 = vmatprep.subr.bf16.mxu0 %v3895_v29  ;;  %v5037_v27 = vld [vmem:[%s5610_s1 + $0xbc] ss:$28 sps:$4 sm:$0xff]  }
  0xfa   : > { %v3956_v28 = vld [vmem:[%s4734_s7 + $0x148] ss:$16 sps:$4 sm:$0xff]  }
  0xfb   : > { %3626 = vmatmul.mubr.msk.bf16.gmra.mxu1 %vm2086_vm0, %v4958_v34  ;;  %v3959_v29 = vld [vmem:[%s4734_s7 + $0x248] ss:$16 sps:$4 sm:$0xff]  }
  0xfc   : > { %2400 = vmatpush1.bf16.msra.mxu1 %v3890_v30  ;;  %2270 = vmatpush2.bf16.msra.mxu0 %v3893_v33  ;;  %v3966_v30 = vld [vmem:[%s4734_s7 + $0x12c] ss:$16 sps:$4 sm:$0xff]  }
  0xfd   : > { %2401 = vmatprep.subr.bf16.mxu1 %v3898_v35  ;;  %2271 = vmatprep.subr.bf16.mxu0 %v3901_v36  ;;  %v3970_v33 = vld [vmem:[%s4734_s7 + $0x22c] ss:$16 sps:$4 sm:$0xff]   ;;  %v3964_v35 = vld [vmem:[%s4734_s7 + $0x128] ss:$16 sps:$4 sm:$0xff]  }
  0xfe   : > { %2380 = vmatprep.mubr.bf16.mxu1 %v4220_v25  ;;  %v5049_v36 = vld [vmem:[%s5610_s1 + $0xb8] ss:$28 sps:$4 sm:$0xff]  }
 0x100   : > { %2402 = vmatpush1.bf16.msra.mxu1 %v3896_v39  ;;  %2272 = vmatpush2.bf16.msra.mxu0 %v3899_v40  ;;  %v3968_v39 = vld [vmem:[%s4734_s7 + $0x228] ss:$16 sps:$4 sm:$0xff]   ;;  %v3973_v40 = vld [vmem:[%s4734_s7 + $0x10c] ss:$16 sps:$4 sm:$0xff]  }
 0x101   : > { %2403 = vmatprep.subr.bf16.mxu1 %v3904_v41  ;;  %2273 = vmatprep.subr.bf16.mxu0 %v3907_v43  ;;  %v3976_v41 = vld [vmem:[%s4734_s7 + $0x20c] ss:$16 sps:$4 sm:$0xff]   ;;  %v3971_v43 = vld [vmem:[%s4734_s7 + $0x108] ss:$16 sps:$4 sm:$0xff]  }
 0x103   : > { %3627 = vmatmul.mubr.msk.bf16.gmra.mxu1 %vm2086_vm0, %v4974_v47 }
 0x104   : > { %2404 = vmatpush1.bf16.msra.mxu1 %v3902_v45  ;;  %2274 = vmatpush2.bf16.msra.mxu0 %v3905_v46  ;;  %v3974_v45 = vld [vmem:[%s4734_s7 + $0x208] ss:$16 sps:$4 sm:$0xff]   ;;  %v3979_v46 = vld [vmem:[%s4734_s7 + $0x4ec] ss:$16 sps:$4 sm:$0xff]  }
 0x105   : > { %2405 = vmatprep.subr.bf16.mxu1 %v3910_v50  ;;  %2275 = vmatprep.subr.bf16.mxu0 %v3913_v51  ;;  %v3982_v50 = vld [vmem:[%s4734_s7 + $0x3ec] ss:$16 sps:$4 sm:$0xff]  }
 0x106   : > { %2423 = vmatprep.mubr.bf16.mxu1 %v4726_v24  ;;  %v3924_v24 = vld [vmem:[%s4734_s7 + $0x1c8] ss:$16 sps:$4 sm:$0xff]  }
 0x107   : > { %v4195_v51 = vld [vmem:[%s5610_s1 + $0xc] ss:$28 sps:$4 sm:$0xff]  }
 0x108   : > { %2406 = vmatpush1.bf16.msra.mxu1 %v3908_v52  ;;  %2276 = vmatpush2.bf16.msra.mxu0 %v3911_v53  ;;  %v3977_v52 = vld [vmem:[%s4734_s7 + $0x4e8] ss:$16 sps:$4 sm:$0xff]  }
 0x109   : > { %2407 = vmatprep.subr.bf16.mxu1 %v3919_v54  ;;  %2464 = vmatprep.subr.bf16.mxu0 %v3922_v57  ;;  %v3980_v53 = vld [vmem:[%s4734_s7 + $0x3e8] ss:$16 sps:$4 sm:$0xff]   ;;  %v3003_v54 = vld [vmem:[%s5611_s2] sm:$0xff]  ;;  %v5070_v57 = vld [vmem:[%s5611_s2 + $0x10] sm:$0xff] }
 0x10a   : > { %3013 = vperm.xlu0 %3699, %v3003_v54   ;;  %3023 = vperm.xlu1 %3700, %v5070_v57  }
 0x10b   : > { %2278 = vmatmul.mubr.bf16.vlgmr.msra.gmra.mxu0 %v4987_v58 }
 0x10c   : > { %2408 = vmatpush2.bf16.msra.mxu1 %v3917_v61  ;;  %2465 = vmatpush1.bf16.msra.mxu0 %v3920_v62  ;;  %v3985_v61 = vld [vmem:[%s4734_s7 + $0x4cc] ss:$16 sps:$4 sm:$0xff]  }
 0x10d   : > { %2409 = vmatprep.subr.bf16.mxu1 %v3926_v63  ;;  %2466 = vmatprep.subr.bf16.mxu0 %v3929_v0  ;;  %v3988_v62 = vld [vmem:[%s4734_s7 + $0x3cc] ss:$16 sps:$4 sm:$0xff]   ;;  %v3983_v0 = vld [vmem:[%s4734_s7 + $0x4c8] ss:$16 sps:$4 sm:$0xff]  }
 0x10e   : > { %2287 = vmatprep.mubr.bf16.mxu0 %v4997_v1  ;;  %v3004_v63 = vld [vmem:[%s5611_s2 + $0x8] sm:$0xff] }
 0x10f   : > { %3018 = vperm.xlu0 %3699, %v3004_v63  }
 0x110   : > { %2410 = vmatpush2.bf16.msra.mxu1 %v3924_v24  ;;  %2467 = vmatpush1.bf16.msra.mxu0 %v3927_v4  ;;  %v3986_v24 = vld [vmem:[%s4734_s7 + $0x3c8] ss:$16 sps:$4 sm:$0xff]  }
 0x111   : > { %2411 = vmatprep.subr.bf16.mxu1 %v3934_v5  ;;  %2468 = vmatprep.subr.bf16.mxu0 %v3938_v6  ;;  %v3006_v4 = vld [vmem:[%s5611_s2 + $0x18] sm:$0xff]  ;;  %v5090_v6 = vld [vmem:[%s5611_s2 + $0x20] sm:$0xff] }
 0x112   : > { %v3991_v5 = vld [vmem:[%s4734_s7 + $0x4ac] ss:$16 sps:$4 sm:$0xff]   ;;  %3028 = vperm.xlu1 %3700, %v3006_v4  }
 0x113   : > { %2288 = vmatmul.mubr.bf16.gmra.mxu0 %v5009_v9  ;;  %3033 = vperm.xlu0 %3699, %v5090_v6  }
 0x114   : > { %2412 = vmatpush2.bf16.msra.mxu1 %v3932_v8  ;;  %2469 = vmatpush1.bf16.msra.mxu0 %v3936_v11  ;;  %v3989_v8 = vld [vmem:[%s4734_s7 + $0x4a8] ss:$16 sps:$4 sm:$0xff]  }
 0x115   : > { %2413 = vmatprep.subr.bf16.mxu1 %v3942_v12  ;;  %2470 = vmatprep.subr.bf16.mxu0 %v3945_v13  ;;  %v3992_v11 = vld [vmem:[%s4734_s7 + $0x3a8] ss:$16 sps:$4 sm:$0xff]   ;;  %v4000_v13 = vld [vmem:[%s4734_s7 + $0x38c] ss:$16 sps:$4 sm:$0xff]  }
 0x116   : > { %2297 = vmatprep.mubr.bf16.mxu0 %v5017_v14  ;;  %v5097_v12 = vld [vmem:[%s5611_s2 + $0x28] sm:$0xff] }
 0x117   : > { %3038 = vperm.xlu1 %3700, %v5097_v12  }
 0x118   : > { %2414 = vmatpush2.bf16.msra.mxu1 %v3940_v15  ;;  %2471 = vmatpush1.bf16.msra.mxu0 %v3943_v16  ;;  %v5107_v15 = vld [vmem:[%s5611_s2 + $0x30] sm:$0xff]  ;;  %v3995_v16 = vld [vmem:[%s4734_s7 + $0x488] ss:$16 sps:$4 sm:$0xff]  }
 0x119   : > { %2415 = vmatprep.subr.bf16.mxu1 %v3950_v17  ;;  %2472 = vmatprep.subr.bf16.mxu0 %v3954_v18  ;;  %v3998_v17 = vld [vmem:[%s4734_s7 + $0x388] ss:$16 sps:$4 sm:$0xff]  }
 0x11a   : > { %v3010_v18 = vld [vmem:[%s5611_s2 + $0x38] sm:$0xff]  ;;  %3043 = vperm.xlu0 %3699, %v5107_v15  }
 0x11b   : > { %2298 = vmatmul.mubr.bf16.gmra.mxu0 %v5029_v21  ;;  %3048 = vperm.xlu1 %3700, %v3010_v18  }
 0x11c   : > { %2416 = vmatpush2.bf16.msra.mxu1 %v3948_v19  ;;  %2473 = vmatpush1.bf16.msra.mxu0 %v3952_v22  ;;  %v4006_v19 = vld [vmem:[%s4734_s7 + $0x36c] ss:$16 sps:$4 sm:$0xff]   ;;  %v4001_v22 = vld [vmem:[%s4734_s7 + $0x468] ss:$16 sps:$4 sm:$0xff]  }
 0x11d   : > { %2417 = vmatprep.subr.bf16.mxu1 %v3958_v23  ;;  %2474 = vmatprep.subr.bf16.mxu0 %v3961_v26  ;;  %v4004_v23 = vld [vmem:[%s4734_s7 + $0x368] ss:$16 sps:$4 sm:$0xff]   ;;  %v4009_v26 = vld [vmem:[%s4734_s7 + $0x44c] ss:$16 sps:$4 sm:$0xff]  }
 0x11e   : > { %2307 = vmatprep.mubr.bf16.mxu0 %v5037_v27 }
 0x120   : > { %2418 = vmatpush2.bf16.msra.mxu1 %v3956_v28  ;;  %2475 = vmatpush1.bf16.msra.mxu0 %v3959_v29  ;;  %v4012_v28 = vld [vmem:[%s4734_s7 + $0x34c] ss:$16 sps:$4 sm:$0xff]   ;;  %v4221_v29 = vmov 1  }
 0x121   : > { %2419 = vmatprep.subr.bf16.mxu1 %v3966_v30  ;;  %2476 = vmatprep.subr.bf16.mxu0 %v3970_v33  ;;  %v4010_v30 = vld [vmem:[%s4734_s7 + $0x348] ss:$16 sps:$4 sm:$0xff]   ;;  %v4015_v33 = vld [vmem:[%s4734_s7 + $0x42c] ss:$16 sps:$4 sm:$0xff]  }
 0x122   : > { %3701 = vset.pattern.permute.xlu0 %v4221_v29  ;;  %3702 = vset.pattern.permute.xlu1 %v4221_v29 }
 0x123   : > { %2308 = vmatmul.mubr.bf16.gmra.mxu0 %v5049_v36  ;;  %3084 = vperm.xlu0 %3701, %v3003_v54   ;;  %v4036_v54 = vld [vmem:[%s4734_s7 + $0x5ac] ss:$16 sps:$4 sm:$0xff]  }
 0x124   : > { %2420 = vmatpush2.bf16.msra.mxu1 %v3964_v35  ;;  %2477 = vmatpush1.bf16.msra.mxu0 %v3968_v39  ;;  %v4018_v35 = vld [vmem:[%s4734_s7 + $0x32c] ss:$16 sps:$4 sm:$0xff]   ;;  %v4016_v39 = vld [vmem:[%s4734_s7 + $0x328] ss:$16 sps:$4 sm:$0xff]  }
 0x125   : > { %2421 = vmatprep.subr.bf16.mxu1 %v3973_v40  ;;  %2478 = vmatprep.subr.bf16.mxu0 %v3976_v41  ;;  %v4021_v40 = vld [vmem:[%s4734_s7 + $0x40c] ss:$16 sps:$4 sm:$0xff]  }
 0x126   : > { %2496 = vmatprep.mubr.bf16.mxu0 %v4195_v51  ;;  %3088 = vperm.xlu1 %3702, %v3004_v63   ;;  %v4024_v41 = vld [vmem:[%s4734_s7 + $0x30c] ss:$16 sps:$4 sm:$0xff]  }
 0x127   : > { %3096 = vperm.xlu0 %3701, %v3006_v4   ;;  %v4033_v51 = vld [vmem:[%s4734_s7 + $0x5cc] ss:$16 sps:$4 sm:$0xff]  }
 0x128   : > { %2422 = vmatpush2.bf16.msra.mxu1 %v3971_v43  ;;  %2479 = vmatpush1.bf16.msra.mxu0 %v3974_v45  ;;  %v4022_v43 = vld [vmem:[%s4734_s7 + $0x308] ss:$16 sps:$4 sm:$0xff]   ;;  %v4027_v45 = vld [vmem:[%s4734_s7 + $0x5ec] ss:$16 sps:$4 sm:$0xff]  }
 0x129   : > { %2537 = vmatprep.subr.bf16.mxu1 %v3979_v46  ;;  %2480 = vmatprep.subr.bf16.mxu0 %v3982_v50  ;;  %v4030_v46 = vld [vmem:[%s4734_s7 + $0x6ac] ss:$16 sps:$4 sm:$0xff]   ;;  %v4028_v50 = vld [vmem:[%s4734_s7 + $0x6a8] ss:$16 sps:$4 sm:$0xff]  }
 0x12a   : > { %3092 = vperm.xlu1 %3702, %v5070_v57   ;;  %v4045_v57 = vld [vmem:[%s4734_s7 + $0x66c] ss:$16 sps:$4 sm:$0xff]  }
 0x12b   : > { %2424 = vmatmul.mubr.bf16.vlgmr.msra.gmra.mxu1 %v4805_v31  ;;  %v3994_v31 = vld [vmem:[%s4734_s7 + $0x3ac] ss:$16 sps:$4 sm:$0xff]   ;;  %3104 = vperm.xlu0 %3701, %v5097_v12   ;;  %v4055_v12 = vld [vmem:[%s4734_s7 + $0x528] ss:$16 sps:$4 sm:$0xff]  }
 0x12c   : > { %2538 = vmatpush1.bf16.msra.mxu1 %v3977_v52  ;;  %2481 = vmatpush2.bf16.msra.mxu0 %v3980_v53  ;;  %v4039_v52 = vld [vmem:[%s4734_s7 + $0x68c] ss:$16 sps:$4 sm:$0xff]   ;;  %v4037_v53 = vld [vmem:[%s4734_s7 + $0x688] ss:$16 sps:$4 sm:$0xff]  }
 0x12d   : > { %2539 = vmatprep.subr.bf16.mxu1 %v3985_v61  ;;  %2482 = vmatprep.subr.bf16.mxu0 %v3988_v62  ;;  %v4043_v61 = vld [vmem:[%s4734_s7 + $0x668] ss:$16 sps:$4 sm:$0xff]   ;;  %v4042_v62 = vld [vmem:[%s4734_s7 + $0x58c] ss:$16 sps:$4 sm:$0xff]  }
 0x12e   : > { %2433 = vmatprep.mubr.bf16.mxu1 %v4819_v37  ;;  %v3997_v37 = vld [vmem:[%s4734_s7 + $0x48c] ss:$16 sps:$4 sm:$0xff]   ;;  %3100 = vperm.xlu1 %3702, %v5090_v6  }
 0x12f   : > { %3112 = vperm.xlu0 %3701, %v3010_v18   ;;  %v4051_v63 = vld [vmem:[%s4734_s7 + $0x64c] ss:$16 sps:$4 sm:$0xff]  }
 0x130   : > { %2540 = vmatpush1.bf16.msra.mxu1 %v3983_v0  ;;  %2483 = vmatpush2.bf16.msra.mxu0 %v3986_v24  ;;  %v4049_v0 = vld [vmem:[%s4734_s7 + $0x648] ss:$16 sps:$4 sm:$0xff]   ;;  %v4048_v24 = vld [vmem:[%s4734_s7 + $0x56c] ss:$16 sps:$4 sm:$0xff]  }
 0x131   : > { %2541 = vmatprep.subr.bf16.mxu1 %v3991_v5  ;;  %2484 = vmatprep.subr.bf16.mxu0 %v3994_v31  ;;  %v4060_v4 = vld [vmem:[%s4734_s7 + $0x62c] ss:$16 sps:$4 sm:$0xff]   ;;  %v4046_v5 = vld [vmem:[%s4734_s7 + $0x568] ss:$16 sps:$4 sm:$0xff]  }
 0x132   : > { %3108 = vperm.xlu1 %3702, %v5107_v15   ;;  %v4058_v31 = vld [vmem:[%s4734_s7 + $0x628] ss:$16 sps:$4 sm:$0xff]   ;;  %v4066_v6 = vld [vmem:[%s4734_s7 + $0x60c] ss:$16 sps:$4 sm:$0xff]  }
 0x133   : > { %2434 = vmatmul.mubr.bf16.gmra.mxu1 %v4834_v42  ;;  %v4003_v42 = vld [vmem:[%s4734_s7 + $0x46c] ss:$16 sps:$4 sm:$0xff]  }
 0x134   : > { %2542 = vmatpush1.bf16.msra.mxu1 %v3989_v8  ;;  %2485 = vmatpush2.bf16.msra.mxu0 %v3992_v11  ;;  %v4057_v8 = vld [vmem:[%s4734_s7 + $0x52c] ss:$16 sps:$4 sm:$0xff]   ;;  %v4064_v11 = vld [vmem:[%s4734_s7 + $0x608] ss:$16 sps:$4 sm:$0xff]  }
 0x135   : > { %2543 = vmatprep.subr.bf16.mxu1 %v3997_v37  ;;  %2486 = vmatprep.subr.bf16.mxu0 %v4000_v13  ;;  %v4063_v37 = vld [vmem:[%s4734_s7 + $0x50c] ss:$16 sps:$4 sm:$0xff]   ;;  %v4061_v13 = vld [vmem:[%s4734_s7 + $0x508] ss:$16 sps:$4 sm:$0xff]  }
 0x136   : > { %2443 = vmatprep.mubr.bf16.mxu1 %v4850_v48  ;;  %v4007_v48 = vld [vmem:[%s4734_s7 + $0x448] ss:$16 sps:$4 sm:$0xff]  }
 0x138   : > { %2544 = vmatpush1.bf16.msra.mxu1 %v3995_v16  ;;  %2487 = vmatpush2.bf16.msra.mxu0 %v3998_v17 }
 0x139   : > { %2545 = vmatprep.subr.bf16.mxu1 %v4003_v42  ;;  %2488 = vmatprep.subr.bf16.mxu0 %v4006_v19 }
 0x13b   : > { %2444 = vmatmul.mubr.bf16.gmra.mxu1 %v4869_v55  ;;  %v4013_v55 = vld [vmem:[%s4734_s7 + $0x428] ss:$16 sps:$4 sm:$0xff]  }
 0x13c   : > { %2546 = vmatpush1.bf16.msra.mxu1 %v4001_v22  ;;  %2489 = vmatpush2.bf16.msra.mxu0 %v4004_v23 }
 0x13d   : > { %2547 = vmatprep.subr.bf16.mxu1 %v4009_v26  ;;  %2490 = vmatprep.subr.bf16.mxu0 %v4012_v28 }
 0x13e   : > { %2453 = vmatprep.mubr.bf16.mxu1 %v4881_v59  ;;  %v4019_v59 = vld [vmem:[%s4734_s7 + $0x408] ss:$16 sps:$4 sm:$0xff]  }
 0x140   : > { %2548 = vmatpush1.bf16.msra.mxu1 %v4007_v48  ;;  %2491 = vmatpush2.bf16.msra.mxu0 %v4010_v30 }
 0x141   : > { %2549 = vmatprep.subr.bf16.mxu1 %v4015_v33  ;;  %2492 = vmatprep.subr.bf16.mxu0 %v4018_v35 }
 0x143   : > { %2454 = vmatmul.mubr.bf16.gmra.mxu1 %v4900_v2  ;;  %v4025_v2 = vld [vmem:[%s4734_s7 + $0x5e8] ss:$16 sps:$4 sm:$0xff]  }
 0x144   : > { %2550 = vmatpush1.bf16.msra.mxu1 %v4013_v55  ;;  %2493 = vmatpush2.bf16.msra.mxu0 %v4016_v39 }
 0x145   : > { %2551 = vmatprep.subr.bf16.mxu1 %v4021_v40  ;;  %2494 = vmatprep.subr.bf16.mxu0 %v4024_v41 }
 0x146   : > { %2569 = vmatprep.mubr.bf16.mxu1 %v4915_v7  ;;  %v4031_v7 = vld [vmem:[%s4734_s7 + $0x5c8] ss:$16 sps:$4 sm:$0xff]  }
 0x148   : > { %2552 = vmatpush1.bf16.msra.mxu1 %v4019_v59  ;;  %2495 = vmatpush2.bf16.msra.mxu0 %v4022_v43 }
 0x149   : > { %2553 = vmatprep.subr.bf16.mxu1 %v4027_v45  ;;  %2614 = vmatprep.subr.bf16.mxu0 %v4030_v46 }
 0x14b   : > { %2497 = vmatmul.mubr.bf16.vlgmr.msra.gmra.mxu0 %v4810_v32  ;;  %v4034_v32 = vld [vmem:[%s4734_s7 + $0x5a8] ss:$16 sps:$4 sm:$0xff]  }
 0x14c   : > { %2554 = vmatpush2.bf16.msra.mxu1 %v4025_v2  ;;  %2615 = vmatpush1.bf16.msra.mxu0 %v4028_v50 }
 0x14d   : > { %2555 = vmatprep.subr.bf16.mxu1 %v4033_v51  ;;  %2506 = vmatprep.mubr.bf16.mxu0 %v4824_v38  ;;  %v4040_v38 = vld [vmem:[%s4734_s7 + $0x588] ss:$16 sps:$4 sm:$0xff]  }
 0x14e   : > { %2616 = vmatprep.subr.bf16.mxu0 %v4039_v52 }
 0x150   : > { %2556 = vmatpush2.bf16.msra.mxu1 %v4031_v7  ;;  %2617 = vmatpush1.bf16.msra.mxu0 %v4037_v53 }
 0x151   : > { %2557 = vmatprep.subr.bf16.mxu1 %v4036_v54  ;;  %2618 = vmatprep.subr.bf16.mxu0 %v4045_v57 }
 0x153   : > { %2507 = vmatmul.mubr.bf16.gmra.mxu0 %v4842_v44  ;;  %v4054_v44 = vld [vmem:[%s4734_s7 + $0x54c] ss:$16 sps:$4 sm:$0xff]  }
 0x154   : > { %2558 = vmatpush2.bf16.msra.mxu1 %v4034_v32  ;;  %2619 = vmatpush1.bf16.msra.mxu0 %v4043_v61 }
 0x155   : > { %2559 = vmatprep.subr.bf16.mxu1 %v4042_v62  ;;  %2516 = vmatprep.mubr.bf16.mxu0 %v4855_v49  ;;  %v4052_v49 = vld [vmem:[%s4734_s7 + $0x548] ss:$16 sps:$4 sm:$0xff]   ;;  %s5325_s7 = sshll.u32 %s593_s28, 7  ;;  %s3670_s28 = sshll.u32 (%p4272_p5), %s3372_s15, 4 }
 0x156   : > { %2620 = vmatprep.subr.bf16.mxu0 %v4051_v63  ;;  %s5339_s12 = scalar_lea.vmem [#allocation3], %s5325_s7  ;;  %s3268_s20 = scalar_lea.vmem (%p4272_p5), %s5612_s3, %s3670_s28 }
 0x158   : > { %2560 = vmatpush2.bf16.msra.mxu1 %v4040_v38  ;;  %2621 = vmatpush1.bf16.msra.mxu0 %v4049_v0 }
 0x159   : > { %2561 = vmatprep.subr.bf16.mxu1 %v4048_v24  ;;  %2622 = vmatprep.subr.bf16.mxu0 %v4060_v4 }
 0x15b   : > { %2517 = vmatmul.mubr.bf16.gmra.mxu0 %v4874_v56 }
 0x15c   : > { %2562 = vmatpush2.bf16.msra.mxu1 %v4046_v5  ;;  %2526 = vmatprep.mubr.bf16.mxu0 %v4886_v60 }
 0x15d   : > { %2563 = vmatprep.subr.bf16.mxu1 %v4054_v44  ;;  %2623 = vmatpush1.bf16.msra.mxu0 %v4058_v31 }
 0x15e   : > { %2624 = vmatprep.subr.bf16.mxu0 %v4066_v6 }
 0x160   : > { %2564 = vmatpush2.bf16.msra.mxu1 %v4052_v49 }
 0x161   : > { %2565 = vmatprep.subr.bf16.mxu1 %v4057_v8  ;;  %2625 = vmatpush1.bf16.msra.mxu0 %v4064_v11 }
 0x163   : > { %2527 = vmatmul.mubr.bf16.gmra.mxu0 %v4905_v3 }
 0x164   : > { %2566 = vmatpush2.bf16.msra.mxu1 %v4055_v12  ;;  %2642 = vmatprep.mubr.bf16.mxu0 %v4220_v25 }
 0x165   : > { %2567 = vmatprep.subr.bf16.mxu1 %v4063_v37 }
 0x168   : > { %2568 = vmatpush2.bf16.msra.mxu1 %v4061_v13 }
 0x16b   : > { %2570 = vmatmul.mubr.bf16.vlgmr.msra.gmra.mxu1 %v4987_v58  ;;  %3628 = vmatmul.mubr.msk.bf16.vlgmr.msra.gmra.mxu0 %vm2086_vm0, %v4924_v10 }
 0x16c   : > { %2579 = vmatprep.mubr.bf16.mxu1 %v4997_v1  ;;  %2652 = vmatprep.mubr.bf16.mxu0 %v4220_v25 }
 0x173   : > { %2580 = vmatmul.mubr.bf16.gmra.mxu1 %v5009_v9  ;;  %3629 = vmatmul.mubr.msk.bf16.gmra.mxu0 %vm2086_vm0, %v4941_v20 }
 0x174   : > { %2589 = vmatprep.mubr.bf16.mxu1 %v5017_v14  ;;  %2662 = vmatprep.mubr.bf16.mxu0 %v4220_v25 }
 0x17b   : > { %2590 = vmatmul.mubr.bf16.gmra.mxu1 %v5029_v21  ;;  %3630 = vmatmul.mubr.msk.bf16.gmra.mxu0 %vm2086_vm0, %v4958_v34 }
 0x17c   : > { %2599 = vmatprep.mubr.bf16.mxu1 %v5037_v27  ;;  %2672 = vmatprep.mubr.bf16.mxu0 %v4220_v25 }
 0x183   : > { %2600 = vmatmul.mubr.bf16.gmra.mxu1 %v5049_v36  ;;  %3631 = vmatmul.mubr.msk.bf16.gmra.mxu0 %vm2086_vm0, %v4974_v47 }
 0x18b   : > { %v2206_v56 = vpop.f32.mrf.mxu1  ;;  %v2133_v60 = vpop.f32.mrf.mxu0 }
 0x18c   : > { %v2207_v50 = vadd.f32 %v2206_v56, %v2133_v60 }
 0x18d   : > { %v2208_v3 = vpop.f32.mrf.mxu1  ;;  %v2135_v20 = vpop.f32.mrf.mxu0 }
 0x18e   : > { %v2209_v52 = vadd.f32 %v2208_v3, %v2135_v20 }
 0x18f   : > { %v2210_v10 = vpop.f32.mrf.mxu1  ;;  %v2137_v9 = vpop.f32.mrf.mxu0 }
 0x190   : > { %v2211_v57 = vadd.f32 %v2210_v10, %v2137_v9 }
 0x191   : > { %v2212_v58 = vpop.f32.mrf.mxu1  ;;  %v2139_v34 = vpop.f32.mrf.mxu0 }
 0x192   : > { %v2213_v63 = vadd.f32 %v2212_v58, %v2139_v34 }
 0x193   : > { %v2216_v1 = vpop.f32.mrf.mxu1  ;;  %v2143_v25 = vpop.f32.mrf.mxu0 }
 0x194   : > { %v2217_v8 = vadd.f32 %v2216_v1, %v2143_v25 }
 0x195   : > { %v2218_v14 = vpop.f32.mrf.mxu1  ;;  %v2145_v47 = vpop.f32.mrf.mxu0 }
 0x196   : > { %v2219_v11 = vadd.f32 %v2218_v14, %v2145_v47 }
 0x197   : > { %v2220_v21 = vpop.f32.mrf.mxu1  ;;  %v2147_v42 = vpop.f32.mrf.mxu0 }
 0x198   : > { %v2221_v60 = vadd.f32 %v2220_v21, %v2147_v42 }
 0x199   : > { %v5194_v15 = vpop.f32.mrf.mxu1  ;;  %v2149_v22 = vpop.f32.mrf.mxu0 }
 0x19b   : > { %v5196_v27 = vpop.f32.mrf.mxu1  ;;  %v2153_v26 = vpop.f32.mrf.mxu0 }
 0x19c   : > { %v2227_v21 = vadd.f32 %v5196_v27, %v2153_v26 }
 0x19d   : > { %v5198_v36 = vpop.f32.mrf.mxu1  ;;  %v5212_v29 = vpop.f32.mrf.mxu0 }
 0x19e   : > { %v2229_v27 = vadd.f32 %v5198_v36, %v5212_v29 }
 0x19f   : > { %v5200_v16 = vpop.f32.mrf.mxu1  ;;  %v5214_v30 = vpop.f32.mrf.mxu0 }
 0x1a0   : > { %v2231_v26 = vadd.f32 %v5200_v16, %v5214_v30 }
 0x1a1   : > { %v5202_v17 = vpop.f32.mrf.mxu1  ;;  %v5216_v35 = vpop.f32.mrf.mxu0 }
 0x1a2   : > { %v2233_v16 = vadd.f32 %v5202_v17, %v5216_v35 }
 0x1a3   : > { %v5204_v18 = vpop.f32.mrf.mxu1  ;;  %v5218_v39 = vpop.f32.mrf.mxu0 }
 0x1a4   : > { %v2237_v29 = vadd.f32 %v5204_v18, %v5218_v39  ;;  %v5272_v39 = vpop.permute.xlu0 %3013 }
 0x1a5   : > { %v5206_v19 = vpop.f32.mrf.mxu1  ;;  %v5220_v41 = vpop.f32.mrf.mxu0 }
 0x1a7   : > { %v5208_v23 = vpop.f32.mrf.mxu1  ;;  %v5222_v43 = vpop.f32.mrf.mxu0 }
 0x1a9   : > { %v5210_v28 = vpop.f32.mrf.mxu1  ;;  %v5224_v46 = vpop.f32.mrf.mxu0 }
 0x1ab   : > { %v2352_v48 = vpop.f32.mrf.mxu1 }
 0x1ad   : > { %v2354_v33 = vpop.f32.mrf.mxu1 }
 0x1af   : > { %v2356_v55 = vpop.f32.mrf.mxu1 }
 0x1b1   : > { %v2358_v40 = vpop.f32.mrf.mxu1 }
 0x1b3   : > { %v2362_v59 = vpop.f32.mrf.mxu1 }
 0x1b5   : > { %v2364_v45 = vpop.f32.mrf.mxu1 }
 0x1b7   : > { %v2366_v2 = vpop.f32.mrf.mxu1 }
 0x1b9   : > { %v2368_v54 = vpop.f32.mrf.mxu1 }
 0x1bb   : > { %v2372_v5 = vpop.f32.mrf.mxu1 }
 0x1bd   : > { %v2374_v20 = vpop.f32.mrf.mxu1 }
 0x1cb   : > { %v2279_v51 = vpop.f32.mrf.mxu0 }
 0x1cc   : > { %v2280_v7 = vadd.f32 %v2279_v51, %v2207_v50 }
 0x1cd   : > { %v2281_v53 = vpop.f32.mrf.mxu0 }
 0x1ce   : > { %v5226_v32 = vadd.f32 %v2352_v48, %v2280_v7  ;;  %v2282_v61 = vadd.f32 %v2281_v53, %v2209_v52  ;;  %v2223_v48 = vadd.f32 %v5194_v15, %v2149_v22 }
 0x1cf   : > { %v2283_v62 = vpop.f32.mrf.mxu0 }
 0x1d0   : > { %v2683_v38 = vmin.f32 %v5226_v32, 20.0  ;;  %v5229_v0 = vadd.f32 %v2354_v33, %v2282_v61  ;;  %v2284_v24 = vadd.f32 %v2283_v62, %v2211_v57 }
 0x1d1   : > { %v2285_v4 = vpop.f32.mrf.mxu0 }
 0x1d2   : > { %v2715_v44 = vmul.f32 1.442695, %v2683_v38  ;;  %v2684_v31 = vmin.f32 %v5229_v0, 20.0  ;;  %v5232_v6 = vadd.f32 %v2356_v55, %v2284_v24  ;;  %v2286_v49 = vadd.f32 %v2285_v4, %v2213_v63 }
 0x1d3   : > { %v2289_v12 = vpop.f32.mrf.mxu0 }
 0x1d4   : > { %4067 = vpow2.f32 %v2715_v44  ;;  %v2717_v37 = vmul.f32 1.442695, %v2684_v31  ;;  %v2687_v13 = vmin.f32 %v5232_v6, 20.0  ;;  %v5235_v56 = vadd.f32 %v2358_v40, %v2286_v49  ;;  %v2376_v40 = vpop.f32.mrf.mxu1 }
 0x1d5   : > { %v2290_v3 = vadd.f32 %v2289_v12, %v2217_v8  ;;  %v2291_v10 = vpop.f32.mrf.mxu0 }
 0x1d6   : > { %4069 = vpow2.f32 %v2717_v37  ;;  %v2723_v58 = vmul.f32 1.442695, %v2687_v13  ;;  %v2688_v9 = vmin.f32 %v5235_v56, 20.0  ;;  %v2292_v34 = vadd.f32 %v2291_v10, %v2219_v11  ;;  %v2378_v57 = vpop.f32.mrf.mxu1 }
 0x1d7   : > { %v5239_v1 = vadd.f32 %v2362_v59, %v2290_v3  ;;  %v2293_v14 = vpop.f32.mrf.mxu0  ;;  %v2239_v37 = vadd.f32 %v5206_v19, %v5220_v41  ;;  %v2241_v13 = vadd.f32 %v5208_v23, %v5222_v43 }
 0x1d8   : > { %4071 = vpow2.f32 %v2723_v58  ;;  %v2725_v25 = vmul.f32 1.442695, %v2688_v9  ;;  %v5241_v47 = vadd.f32 %v2364_v45, %v2292_v34  ;;  %v2294_v33 = vadd.f32 %v2293_v14, %v2221_v60  ;;  %v2382_v31 = vpop.f32.mrf.mxu1 }
 0x1d9   : > { %v2691_v42 = vmin.f32 %v5239_v1, 20.0  ;;  %v2295_v55 = vpop.f32.mrf.mxu0  ;;  %v2243_v58 = vadd.f32 %v5210_v28, %v5224_v46 }
 0x1da   : > { %4073 = vpow2.f32 %v2725_v25  ;;  %v2692_v50 = vmin.f32 %v5241_v47, 20.0  ;;  %v5246_v51 = vadd.f32 %v2366_v2, %v2294_v33  ;;  %v2296_v15 = vadd.f32 %v2295_v55, %v2223_v48  ;;  %v2384_v19 = vpop.f32.mrf.mxu1  ;;  %v5279_v33 = vpop.permute.xlu1 %3023 }
 0x1db   : > { %v2731_v22 = vmul.f32 1.442695, %v2691_v42  ;;  %v2299_v59 = vpop.f32.mrf.mxu0 }
 0x1dc   : > { %v2733_v52 = vmul.f32 1.442695, %v2692_v50  ;;  %v2695_v7 = vmin.f32 %v5246_v51, 20.0  ;;  %v5249_v45 = vadd.f32 %v2368_v54, %v2296_v15  ;;  %v2300_v53 = vadd.f32 %v2299_v59, %v2227_v21  ;;  %v2386_v59 = vpop.f32.mrf.mxu1 }
 0x1dd   : > { %4075 = vpow2.f32 %v2731_v22  ;;  %v2301_v61 = vpop.f32.mrf.mxu0 }
 0x1de   : > { %4077 = vpow2.f32 %v2733_v52  ;;  %v2739_v2 = vmul.f32 1.442695, %v2695_v7  ;;  %v2696_v62 = vmin.f32 %v5249_v45, 20.0  ;;  %v5256_v63 = vadd.f32 %v2372_v5, %v2300_v53  ;;  %v5287_v53 = vpop.permute.xlu0 %3018 }
 0x1df   : > { %v2302_v38 = vadd.f32 %v2301_v61, %v2229_v27  ;;  %v2303_v24 = vpop.f32.mrf.mxu0 }
 0x1e0   : > { %4079 = vpow2.f32 %v2739_v2  ;;  %v2741_v54 = vmul.f32 1.442695, %v2696_v62  ;;  %v2699_v4 = vmin.f32 %v5256_v63, 20.0  ;;  %v2304_v44 = vadd.f32 %v2303_v24, %v2231_v26 }
 0x1e1   : > { %v4068_v36 = vpop.eup %4067  ;;  %v5263_v30 = vadd.f32 %v2374_v20, %v2302_v38  ;;  %v2305_v49 = vpop.f32.mrf.mxu0 }
 0x1e2   : > { %v2779_v5 = vadd.f32 1.0, %v4068_v36  ;;  %4081 = vpow2.f32 %v2741_v54  ;;  %v2747_v8 = vmul.f32 1.442695, %v2699_v4  ;;  %v5265_v11 = vadd.f32 %v2376_v40, %v2304_v44 }
 0x1e3   : > { %v4070_v12 = vpop.eup %4069  ;;  %v2700_v17 = vmin.f32 %v5263_v30, 20.0  ;;  %v2306_v35 = vadd.f32 %v2305_v49, %v2233_v16  ;;  %v2309_v18 = vpop.f32.mrf.mxu0 }
 0x1e4   : > { %v2811_v60 = vmul.f32 %v2779_v5, %v2779_v5  ;;  %v2780_v3 = vadd.f32 1.0, %v4070_v12  ;;  %4083 = vpow2.f32 %v2747_v8  ;;  %v2703_v10 = vmin.f32 %v5265_v11, 20.0  ;;  %v5292_v16 = vpop.permute.xlu1 %3028  ;;  %v2388_v49 = vpop.f32.mrf.mxu1 }
 0x1e5   : > { %v4072_v20 = vpop.eup %4071  ;;  %v2749_v9 = vmul.f32 1.442695, %v2700_v17  ;;  %v5277_v41 = vadd.f32 %v2378_v57, %v2306_v35  ;;  %v2310_v23 = vadd.f32 %v2309_v18, %v2237_v29  ;;  %v2311_v43 = vpop.f32.mrf.mxu0 }
 0x1e6   : > { %v2843_v34 = vadd.f32 1.0, %v2811_v60  ;;  %v2812_v48 = vmul.f32 %v2780_v3, %v2780_v3  ;;  %v2783_v14 = vadd.f32 1.0, %v4072_v20  ;;  %v2755_v25 = vmul.f32 1.442695, %v2703_v10  ;;  %v5299_v3 = vpop.permute.xlu0 %3033 }
 0x1e7   : > { %v4074_v21 = vpop.eup %4073  ;;  %4085 = vpow2.f32 %v2749_v9  ;;  %v2704_v42 = vmin.f32 %v5277_v41, 20.0  ;;  %v5282_v55 = vadd.f32 %v2382_v31, %v2310_v23  ;;  %v2312_v40 = vadd.f32 %v2311_v43, %v2239_v37  ;;  %v2313_v28 = vpop.f32.mrf.mxu0 }
 0x1e8   : > { %4087 = vrcp.f32 %v2843_v34  ;;  %v2844_v46 = vadd.f32 1.0, %v2812_v48  ;;  %v2815_v50 = vmul.f32 %v2783_v14, %v2783_v14  ;;  %v2784_v15 = vadd.f32 1.0, %v4074_v21  ;;  %v5302_v14 = vpop.permute.xlu1 %3038 }
 0x1e9   : > { %4089 = vpow2.f32 %v2755_v25  ;;  %v2757_v22 = vmul.f32 1.442695, %v2704_v42  ;;  %v2707_v52 = vmin.f32 %v5282_v55, 20.0  ;;  %v5285_v7 = vadd.f32 %v2384_v19, %v2312_v40  ;;  %v2315_v2 = vpop.f32.mrf.mxu0 }
 0x1ea   : > { %v4076_v27 = vpop.eup %4075  ;;  %4091 = vrcp.f32 %v2844_v46  ;;  %v2847_v26 = vadd.f32 1.0, %v2815_v50  ;;  %v2816_v57 = vmul.f32 %v2784_v15, %v2784_v15  ;;  %v2314_v61 = vadd.f32 %v2313_v28, %v2241_v13  ;;  %v5306_v15 = vpop.permute.xlu0 %3043 }
 0x1eb   : > { %v4078_v62 = vpop.eup %4077  ;;  %v2787_v38 = vadd.f32 1.0, %v4076_v27  ;;  %4093 = vpow2.f32 %v2757_v22  ;;  %v2763_v24 = vmul.f32 1.442695, %v2707_v52  ;;  %v2708_v54 = vmin.f32 %v5285_v7, 20.0  ;;  %v5297_v60 = vpop.f32.mrf.mxu1 }
 0x1ec   : > { %4095 = vrcp.f32 %v2847_v26  ;;  %v2848_v4 = vadd.f32 1.0, %v2816_v57  ;;  %v2788_v44 = vadd.f32 1.0, %v4078_v62  ;;  %v5290_v36 = vadd.f32 %v2386_v59, %v2314_v61 }
 0x1ed   : > { %v4080_v29 = vpop.eup %4079  ;;  %v2819_v31 = vmul.f32 %v2787_v38, %v2787_v38  ;;  %4097 = vpow2.f32 %v2763_v24  ;;  %v2765_v5 = vmul.f32 1.442695, %v2708_v54  ;;  %v2316_v8 = vadd.f32 %v2315_v2, %v2243_v58  ;;  %v5304_v21 = vpop.f32.mrf.mxu1 }
 0x1ee   : > { %4099 = vrcp.f32 %v2848_v4  ;;  %v2820_v12 = vmul.f32 %v2788_v44, %v2788_v44  ;;  %v2791_v37 = vadd.f32 1.0, %v4080_v29  ;;  %v2711_v13 = vmin.f32 %v5290_v36, 20.0  ;;  %v5310_v24 = vpop.permute.xlu1 %3048 }
 0x1ef   : > { %v4082_v17 = vpop.eup %4081  ;;  %v2851_v35 = vadd.f32 1.0, %v2819_v31  ;;  %4101 = vpow2.f32 %v2765_v5  ;;  %v5295_v18 = vadd.f32 %v2388_v49, %v2316_v8  ;;  %v5308_v61 = vpop.f32.mrf.mxu1 }
 0x1f0   : > { %v2852_v10 = vadd.f32 1.0, %v2820_v12  ;;  %v2823_v20 = vmul.f32 %v2791_v37, %v2791_v37  ;;  %v2792_v9 = vadd.f32 1.0, %v4082_v17  ;;  %v2771_v19 = vmul.f32 1.442695, %v2711_v13 }
 0x1f1   : > { %v4084_v23 = vpop.eup %4083  ;;  %4103 = vrcp.f32 %v2851_v35  ;;  %v2712_v58 = vmin.f32 %v5295_v18, 20.0  ;;  %v5313_v35 = vpop.f32.mrf.mxu1 }
 0x1f2   : > { %4105 = vrcp.f32 %v2852_v10  ;;  %v2855_v43 = vadd.f32 1.0, %v2823_v20  ;;  %v2824_v34 = vmul.f32 %v2792_v9, %v2792_v9  ;;  %v2795_v48 = vadd.f32 1.0, %v4084_v23  ;;  %v5315_v10 = vpop.permute.xlu0 %3084 }
 0x1f3   : > { %4107 = vpow2.f32 %v2771_v19  ;;  %v2773_v25 = vmul.f32 1.442695, %v2712_v58 }
 0x1f4   : > { %v4086_v42 = vpop.eup %4085  ;;  %4109 = vrcp.f32 %v2855_v43  ;;  %v2856_v40 = vadd.f32 1.0, %v2824_v34  ;;  %v2827_v28 = vmul.f32 %v2795_v48, %v2795_v48  ;;  %v5319_v48 = vpop.f32.mrf.mxu1 }
 0x1f5   : > { %v4088_v46 = vpop.eup %4087  ;;  %v2796_v50 = vadd.f32 1.0, %v4086_v42  ;;  %4111 = vpow2.f32 %v2773_v25 }
 0x1f6   : > { %v4090_v22 = vpop.eup %4089  ;;  %v2907_v59 = vmul.f32 2.0, %v4088_v46  ;;  %4113 = vrcp.f32 %v2856_v40  ;;  %v2859_v52 = vadd.f32 1.0, %v2827_v28  ;;  %v5328_v46 = vpop.permute.xlu1 %3088 }
 0x1f7   : > { %v4092_v27 = vpop.eup %4091  ;;  %v2828_v26 = vmul.f32 %v2796_v50, %v2796_v50  ;;  %v2799_v57 = vadd.f32 1.0, %v4090_v22 }
 0x1f8   : > { %v4094_v2 = vpop.eup %4093  ;;  %v2939_v62 = vsub.f32 1.0, %v2907_v59  ;;  %v2908_v38 = vmul.f32 2.0, %v4092_v27  ;;  %4115 = vrcp.f32 %v2859_v52 }
 0x1f9   : > { %v4096_v54 = vpop.eup %4095  ;;  %v2860_v4 = vadd.f32 1.0, %v2828_v26  ;;  %v2831_v44 = vmul.f32 %v2799_v57, %v2799_v57  ;;  %v2800_v29 = vadd.f32 1.0, %v4094_v2 }
 0x1fa   : > { %v4098_v31 = vpop.eup %4097  ;;  %v2971_v49 = vmul.f32 %v2939_v62, %v5226_v32  ;;  %v2940_v5 = vsub.f32 1.0, %v2908_v38  ;;  %v2911_v8 = vmul.f32 2.0, %v4096_v54 }
 0x1fb   : > { %v4100_v12 = vpop.eup %4099  ;;  %4117 = vrcp.f32 %v2860_v4  ;;  %v2863_v37 = vadd.f32 1.0, %v2831_v44  ;;  %v2832_v13 = vmul.f32 %v2800_v29, %v2800_v29  ;;  %v2803_v17 = vadd.f32 1.0, %v4098_v31  ;;  %v5333_v44 = vpop.f32.mrf.mxu1 }
 0x1fc   : > { %v4102_v20 = vpop.eup %4101  ;;  %v2972_v9 = vmul.f32 %v2940_v5, %v5229_v0  ;;  %v2943_v19 = vsub.f32 1.0, %v2911_v8  ;;  %v2912_v23 = vmul.f32 2.0, %v4100_v12  ;;  %v3051_v58 = vmul.f32 %v5272_v39, %v2971_v49 }
 0x1fd   : > { %4119 = vrcp.f32 %v2863_v37  ;;  %v2864_v32 = vadd.f32 1.0, %v2832_v13  ;;  %v2835_v43 = vmul.f32 %v2803_v17, %v2803_v17  ;;  %v2804_v34 = vadd.f32 1.0, %v4102_v20 }
 0x1fe   : > { %v4104_v25 = vpop.eup %4103  ;;  %v2975_v42 = vmul.f32 %v2943_v19, %v5232_v6  ;;  %v2944_v40 = vsub.f32 1.0, %v2912_v23  ;;  %v3052_v28 = vmul.f32 %v5272_v39, %v2972_v9  ;;  %v3115_v0 = vadd.f32 %v5315_v10, %v3051_v58  ;;  %v5343_v23 = vpop.permute.xlu1 %3092 }
 0x1ff   : > { %v4106_v50 = vpop.eup %4105  ;;  %v2915_v22 = vmul.f32 2.0, %v4104_v25  ;;  %4121 = vrcp.f32 %v2864_v32  ;;  %v2867_v59 = vadd.f32 1.0, %v2835_v43  ;;  %v2836_v52 = vmul.f32 %v2804_v34, %v2804_v34  ;;  %v5347_v25 = vpop.f32.mrf.mxu1 }
 0x200   : > { %v4108_v27 = vpop.eup %4107  ;;  %v2976_v26 = vmul.f32 %v2944_v40, %v5235_v56  ;;  %v2916_v57 = vmul.f32 2.0, %v4106_v50  ;;  %v3055_v6 = vmul.f32 %v5287_v53, %v2975_v42  ;;  %v3116_v2 = vadd.f32 %v5315_v10, %v3052_v28 }
 0x201   : > { %v4110_v62 = vpop.eup %4109  ;;  %v2947_v38 = vsub.f32 1.0, %v2915_v22  ;;  %4123 = vrcp.f32 %v2867_v59  ;;  %v2868_v54 = vadd.f32 1.0, %v2836_v52  ;;  %v2807_v4 = vadd.f32 1.0, %v4108_v27 }
 0x202   : > { %v4112_v29 = vpop.eup %4111  ;;  %v2948_v31 = vsub.f32 1.0, %v2916_v57  ;;  %v2919_v49 = vmul.f32 2.0, %v4110_v62  ;;  %v3056_v5 = vmul.f32 %v5287_v53, %v2976_v26  ;;  %v3654_v8 = vpack.c.bf16 %v3116_v2, %v3115_v0  ;;  %v5358_v2 = vpop.f32.mrf.mxu1 }
 0x203   : > { %v4114_v56 = vpop.eup %4113  ;;  %v2979_v12 = vmul.f32 %v2947_v38, %v5239_v1  ;;  %4125 = vrcp.f32 %v2868_v54  ;;  %v2839_v37 = vmul.f32 %v2807_v4, %v2807_v4  ;;  %v2808_v13 = vadd.f32 1.0, %v4112_v29 }
 0x204   : > { %v2980_v17 = vmul.f32 %v2948_v31, %v5241_v47  ;;  %v2951_v20 = vsub.f32 1.0, %v2919_v49  ;;  %v2920_v9 = vmul.f32 2.0, %v4114_v56  ;;  %3243 = vst [vmem:[%s5339_s12] sm:$0xff] %v3654_v8  ;;  %v3119_v19 = vadd.f32 %v5328_v46, %v3055_v6 }
 0x205   : > { %v4116_v58 = vpop.eup %4115  ;;  %v2871_v32 = vadd.f32 1.0, %v2839_v37  ;;  %v2840_v43 = vmul.f32 %v2808_v13, %v2808_v13  ;;  %v3059_v1 = vmul.f32 %v5279_v33, %v2979_v12  ;;  %v3120_v34 = vadd.f32 %v5328_v46, %v3056_v5 }
 0x206   : > { %v2983_v47 = vmul.f32 %v2951_v20, %v5246_v51  ;;  %v2952_v42 = vsub.f32 1.0, %v2920_v9  ;;  %v2923_v40 = vmul.f32 2.0, %v4116_v58  ;;  %v3060_v28 = vmul.f32 %v5279_v33, %v2980_v17  ;;  %v5356_v51 = vpop.permute.xlu0 %3096 }
 0x207   : > { %4127 = vrcp.f32 %v2871_v32  ;;  %v2872_v0 = vadd.f32 1.0, %v2840_v43  ;;  %v3656_v50 = vpack.c.bf16 %v3120_v34, %v3119_v19  ;;  %v3123_v22 = vadd.f32 %v5343_v23, %v3059_v1  ;;  %v5375_v1 = vpop.permute.xlu1 %3100 }
 0x208   : > { %v4118_v59 = vpop.eup %4117  ;;  %v2984_v52 = vmul.f32 %v2952_v42, %v5249_v45  ;;  %v2955_v27 = vsub.f32 1.0, %v2923_v40  ;;  %v3063_v26 = vmul.f32 %v5292_v16, %v2983_v47  ;;  %v3124_v57 = vadd.f32 %v5343_v23, %v3060_v28 }
 0x209   : > { %v2924_v6 = vmul.f32 2.0, %v4118_v59  ;;  %4129 = vrcp.f32 %v2872_v0  ;;  %3245 = vst [vmem:[%s5339_s12 + $0x10] sm:$0xff] %v3656_v50 }
 0x20a   : > { %v4120_v62 = vpop.eup %4119  ;;  %v2987_v38 = vmul.f32 %v2955_v27, %v5256_v63  ;;  %v3064_v54 = vmul.f32 %v5292_v16, %v2984_v52  ;;  %v3658_v4 = vpack.c.bf16 %v3124_v57, %v3123_v22  ;;  %v3127_v5 = vadd.f32 %v5356_v51, %v3063_v26  ;;  %v5370_v63 = vpop.f32.mrf.mxu1 }
 0x20b   : > { %v2956_v45 = vsub.f32 1.0, %v2924_v6  ;;  %v2927_v29 = vmul.f32 2.0, %v4120_v62  ;;  %v5362_v31 = vpop.f32.mrf.mxu0  ;;  %v5380_v47 = vpop.permute.xlu0 %3104 }
 0x20c   : > { %v4122_v49 = vpop.eup %4121  ;;  %3247 = vst [vmem:[%s5339_s12 + $0x20] sm:$0xff] %v3658_v4  ;;  %v3128_v8 = vadd.f32 %v5356_v51, %v3064_v54  ;;  %v3067_v20 = vmul.f32 %v5299_v3, %v2987_v38 }
 0x20d   : > { %v2988_v56 = vmul.f32 %v2956_v45, %v5263_v30  ;;  %v2959_v12 = vsub.f32 1.0, %v2927_v29  ;;  %v2928_v37 = vmul.f32 2.0, %v4122_v49  ;;  %v5368_v13 = vpop.f32.mrf.mxu0 }
 0x20e   : > { %v4124_v17 = vpop.eup %4123  ;;  %v3660_v9 = vpack.c.bf16 %v3128_v8, %v3127_v5  ;;  %v3131_v22 = vadd.f32 %v5375_v1, %v3067_v20  ;;  %v5401_v5 = vpop.permute.xlu1 %3108 }
 0x20f   : > { %v2991_v19 = vmul.f32 %v2959_v12, %v5265_v11  ;;  %v2960_v58 = vsub.f32 1.0, %v2928_v37  ;;  %v2931_v32 = vmul.f32 2.0, %v4124_v17  ;;  %v3068_v43 = vmul.f32 %v5299_v3, %v2988_v56  ;;  %v5377_v34 = vpop.f32.mrf.mxu0  ;;  %v5386_v11 = vpop.f32.mrf.mxu1 }
 0x210   : > { %v4126_v30 = vpop.eup %4125  ;;  %3249 = vst [vmem:[%s5339_s12 + $0x30] sm:$0xff] %v3660_v9 }
 0x211   : > { %v2992_v42 = vmul.f32 %v2960_v58, %v5277_v41  ;;  %v2963_v40 = vsub.f32 1.0, %v2931_v32  ;;  %v2932_v28 = vmul.f32 2.0, %v4126_v30  ;;  %v3071_v0 = vmul.f32 %v5302_v14, %v2991_v19  ;;  %v5384_v50 = vpop.f32.mrf.mxu0  ;;  %v5398_v49 = vpop.f32.mrf.mxu1 }
 0x212   : > { %v3132_v59 = vadd.f32 %v5375_v1, %v3068_v43 }
 0x213   : > { %v2995_v52 = vmul.f32 %v2963_v40, %v5282_v55  ;;  %v2964_v27 = vsub.f32 1.0, %v2932_v28  ;;  %v3072_v26 = vmul.f32 %v5302_v14, %v2992_v42  ;;  %v5392_v57 = vpop.f32.mrf.mxu0  ;;  %v3135_v62 = vadd.f32 %v5380_v47, %v3071_v0  ;;  %v5408_v32 = vpop.f32.mrf.mxu1 }
 0x214   : > { %v4128_v41 = vpop.eup %4127  ;;  %v3662_v6 = vpack.c.bf16 %v3132_v59, %v3131_v22  ;;  %v5414_v28 = vpop.permute.xlu0 %3112 }
 0x215   : > { %v2996_v38 = vmul.f32 %v2964_v27, %v5285_v7  ;;  %v2935_v54 = vmul.f32 2.0, %v4128_v41  ;;  %v3136_v4 = vadd.f32 %v5380_v47, %v3072_v26  ;;  %v3075_v45 = vmul.f32 %v5306_v15, %v2995_v52  ;;  %v2510_v29 = vpop.f32.mrf.mxu0  ;;  %v5418_v0 = vpop.f32.mrf.mxu1 }
 0x216   : > { %v4130_v55 = vpop.eup %4129  ;;  %3251 = vst [vmem:[%s5339_s12 + $0x40] sm:$0xff] %v3662_v6 }
 0x217   : > { %v2967_v8 = vsub.f32 1.0, %v2935_v54  ;;  %v2936_v56 = vmul.f32 2.0, %v4130_v55  ;;  %v3664_v12 = vpack.c.bf16 %v3136_v4, %v3135_v62  ;;  %v3076_v37 = vmul.f32 %v5306_v15, %v2996_v38  ;;  %v2512_v7 = vpop.f32.mrf.mxu0  ;;  %v5426_v26 = vpop.f32.mrf.mxu1 }
 0x218   : > { %v3139_v9 = vadd.f32 %v5401_v5, %v3075_v45  ;;  %v2499_v55 = vadd.f32 %v5362_v31, %v5297_v60 }
 0x219   : > { %v2999_v17 = vmul.f32 %v2967_v8, %v5290_v36  ;;  %v2968_v20 = vsub.f32 1.0, %v2936_v56  ;;  %3253 = vst [vmem:[%s5339_s12 + $0x50] sm:$0xff] %v3664_v12  ;;  %v3140_v19 = vadd.f32 %v5401_v5, %v3076_v37  ;;  %v2514_v58 = vpop.f32.mrf.mxu0  ;;  %v5433_v62 = vpop.f32.mrf.mxu1  ;;  %v2501_v12 = vadd.f32 %v5368_v13, %v5304_v21 }
 0x21b   : > { %v3000_v43 = vmul.f32 %v2968_v20, %v5295_v18  ;;  %v3666_v30 = vpack.c.bf16 %v3140_v19, %v3139_v9  ;;  %v3079_v42 = vmul.f32 %v5310_v24, %v2999_v17  ;;  %v5412_v40 = vpop.f32.mrf.mxu0  ;;  %v5439_v4 = vpop.f32.mrf.mxu1  ;;  %v2503_v9 = vadd.f32 %v5377_v34, %v5308_v61 }
 0x21c   : > { %v2509_v34 = vadd.f32 %v5392_v57, %v5319_v48 }
 0x21d   : > { %3255 = vst [vmem:[%s5339_s12 + $0x60] sm:$0xff] %v3666_v30  ;;  %v3080_v36 = vmul.f32 %v5310_v24, %v3000_v43  ;;  %v5420_v22 = vpop.f32.mrf.mxu0  ;;  %v3143_v59 = vadd.f32 %v5414_v28, %v3079_v42 }
 0x21f   : > { %v3144_v52 = vadd.f32 %v5414_v28, %v3080_v36  ;;  %v5424_v27 = vpop.f32.mrf.mxu0  ;;  %v2505_v36 = vadd.f32 %v5384_v50, %v5313_v35 }
 0x221   : > { %v3668_v18 = vpack.c.bf16 %v3144_v52, %v3143_v59  ;;  %v5428_v41 = vpop.f32.mrf.mxu0 }
 0x223   : > { %3257 = vst [vmem:[%s5339_s12 + $0x70] sm:$0xff] %v3668_v18  ;;  %v5431_v6 = vpop.f32.mrf.mxu0 }
 0x225   : > { %v5435_v38 = vpop.f32.mrf.mxu0 }
 0x227   : > { %v5437_v54 = vpop.f32.mrf.mxu0 }
 0x229   : > { %v5441_v45 = vpop.f32.mrf.mxu0 }
 0x22b   : > { %v2571_v8 = vpop.f32.mrf.mxu1  ;;  %v2644_v56 = vpop.f32.mrf.mxu0 }
 0x22c   : > { %v2572_v37 = vadd.f32 %v2571_v8, %v2499_v55  ;;  %v2511_v8 = vadd.f32 %v2510_v29, %v5333_v44  ;;  %v2515_v44 = vadd.f32 %v2514_v58, %v5358_v2 }
 0x22d   : > { %v2573_v17 = vpop.f32.mrf.mxu1  ;;  %v2646_v20 = vpop.f32.mrf.mxu0 }
 0x22e   : > { %v5449_v19 = vadd.f32 %v2644_v56, %v2572_v37  ;;  %v2574_v43 = vadd.f32 %v2573_v17, %v2501_v12  ;;  %v2513_v17 = vadd.f32 %v2512_v7, %v5347_v25  ;;  %v2519_v25 = vadd.f32 %v5412_v40, %v5370_v63 }
 0x22f   : > { %v2575_v30 = vpop.f32.mrf.mxu1  ;;  %v2648_v42 = vpop.f32.mrf.mxu0  ;;  %v2521_v63 = vadd.f32 %v5420_v22, %v5386_v11  ;;  %v2523_v40 = vadd.f32 %v5424_v27, %v5398_v49  ;;  %v2525_v49 = vadd.f32 %v5428_v41, %v5408_v32  ;;  %v2529_v27 = vadd.f32 %v5431_v6, %v5418_v0 }
 0x230   : > { %v2685_v60 = vmin.f32 %v5449_v19, 20.0  ;;  %v5454_v31 = vadd.f32 %v2646_v20, %v2574_v43  ;;  %v2576_v59 = vadd.f32 %v2575_v30, %v2503_v9 }
 0x231   : > { %v2577_v21 = vpop.f32.mrf.mxu1  ;;  %v2650_v13 = vpop.f32.mrf.mxu0 }
 0x232   : > { %v2719_v52 = vmul.f32 1.442695, %v2685_v60  ;;  %v2686_v18 = vmin.f32 %v5454_v31, 20.0  ;;  %v5457_v55 = vadd.f32 %v2648_v42, %v2576_v59  ;;  %v2578_v61 = vadd.f32 %v2577_v21, %v2505_v36 }
 0x233   : > { %v2581_v56 = vpop.f32.mrf.mxu1  ;;  %v2654_v35 = vpop.f32.mrf.mxu0 }
 0x234   : > { %4131 = vpow2.f32 %v2719_v52  ;;  %v2721_v50 = vmul.f32 1.442695, %v2686_v18  ;;  %v2689_v12 = vmin.f32 %v5457_v55, 20.0  ;;  %v5463_v37 = vadd.f32 %v2650_v13, %v2578_v61 }
 0x235   : > { %v2582_v20 = vadd.f32 %v2581_v56, %v2509_v34  ;;  %v2583_v9 = vpop.f32.mrf.mxu1  ;;  %v2656_v43 = vpop.f32.mrf.mxu0 }
 0x236   : > { %4133 = vpow2.f32 %v2721_v50  ;;  %v2727_v30 = vmul.f32 1.442695, %v2689_v12  ;;  %v2690_v42 = vmin.f32 %v5463_v37, 20.0  ;;  %v2584_v48 = vadd.f32 %v2583_v9, %v2511_v8 }
 0x237   : > { %v5468_v57 = vadd.f32 %v2654_v35, %v2582_v20  ;;  %v2585_v29 = vpop.f32.mrf.mxu1  ;;  %v2658_v36 = vpop.f32.mrf.mxu0 }
 0x238   : > { %4135 = vpow2.f32 %v2727_v30  ;;  %v2729_v60 = vmul.f32 1.442695, %v2690_v42  ;;  %v5470_v59 = vadd.f32 %v2656_v43, %v2584_v48  ;;  %v2586_v21 = vadd.f32 %v2585_v29, %v2513_v17 }
 0x239   : > { %v2693_v7 = vmin.f32 %v5468_v57, 20.0  ;;  %v2587_v13 = vpop.f32.mrf.mxu1  ;;  %v2660_v52 = vpop.f32.mrf.mxu0 }
 0x23a   : > { %4137 = vpow2.f32 %v2729_v60  ;;  %v2694_v18 = vmin.f32 %v5470_v59, 20.0  ;;  %v5476_v2 = vadd.f32 %v2658_v36, %v2586_v21  ;;  %v2588_v58 = vadd.f32 %v2587_v13, %v2515_v44 }
 0x23b   : > { %v2735_v61 = vmul.f32 1.442695, %v2693_v7  ;;  %v2591_v34 = vpop.f32.mrf.mxu1  ;;  %v2664_v8 = vpop.f32.mrf.mxu0 }
 0x23c   : > { %v2737_v56 = vmul.f32 1.442695, %v2694_v18  ;;  %v2697_v35 = vmin.f32 %v5476_v2, 20.0  ;;  %v5479_v50 = vadd.f32 %v2660_v52, %v2588_v58  ;;  %v2592_v12 = vadd.f32 %v2591_v34, %v2519_v25 }
 0x23d   : > { %4139 = vpow2.f32 %v2735_v61  ;;  %v2593_v17 = vpop.f32.mrf.mxu1  ;;  %v2666_v20 = vpop.f32.mrf.mxu0  ;;  %v2531_v58 = vadd.f32 %v5435_v38, %v5426_v26  ;;  %v2533_v61 = vadd.f32 %v5437_v54, %v5433_v62 }
 0x23e   : > { %4141 = vpow2.f32 %v2737_v56  ;;  %v2743_v9 = vmul.f32 1.442695, %v2697_v35  ;;  %v2698_v43 = vmin.f32 %v5479_v50, 20.0  ;;  %v5486_v30 = vadd.f32 %v2664_v8, %v2592_v12 }
 0x23f   : > { %v2594_v42 = vadd.f32 %v2593_v17, %v2521_v63  ;;  %v2595_v48 = vpop.f32.mrf.mxu1  ;;  %v2668_v44 = vpop.f32.mrf.mxu0  ;;  %v2535_v12 = vadd.f32 %v5441_v45, %v5439_v4 }
 0x240   : > { %4143 = vpow2.f32 %v2743_v9  ;;  %v2745_v29 = vmul.f32 1.442695, %v2698_v43  ;;  %v2701_v36 = vmin.f32 %v5486_v30, 20.0  ;;  %v2596_v11 = vadd.f32 %v2595_v48, %v2523_v40 }
 0x241   : > { %v4132_v22 = vpop.eup %4131  ;;  %v5493_v60 = vadd.f32 %v2666_v20, %v2594_v42  ;;  %v2597_v21 = vpop.f32.mrf.mxu1 }
 0x242   : > { %v2670_v25 = vpop.f32.mrf.mxu0  ;;  %v2781_v7 = vadd.f32 1.0, %v4132_v22  ;;  %4145 = vpow2.f32 %v2745_v29  ;;  %v2751_v13 = vmul.f32 1.442695, %v2701_v36  ;;  %v5495_v52 = vadd.f32 %v2668_v44, %v2596_v11 }
 0x243   : > { %v4134_v18 = vpop.eup %4133  ;;  %v2702_v32 = vmin.f32 %v5493_v60, 20.0  ;;  %v2598_v41 = vadd.f32 %v2597_v21, %v2525_v49  ;;  %v2601_v0 = vpop.f32.mrf.mxu1 }
 0x244   : > { %v2674_v6 = vpop.f32.mrf.mxu0  ;;  %v2813_v34 = vmul.f32 %v2781_v7, %v2781_v7  ;;  %v2782_v8 = vadd.f32 1.0, %v4134_v18  ;;  %4147 = vpow2.f32 %v2751_v13  ;;  %v2705_v56 = vmin.f32 %v5495_v52, 20.0 }
 0x245   : > { %v4136_v35 = vpop.eup %4135  ;;  %v2753_v63 = vmul.f32 1.442695, %v2702_v32  ;;  %v5505_v40 = vadd.f32 %v2670_v25, %v2598_v41  ;;  %v2602_v26 = vadd.f32 %v2601_v0, %v2529_v27  ;;  %v2603_v38 = vpop.f32.mrf.mxu1 }
 0x246   : > { %v2676_v62 = vpop.f32.mrf.mxu0  ;;  %v2845_v54 = vadd.f32 1.0, %v2813_v34  ;;  %v2814_v17 = vmul.f32 %v2782_v8, %v2782_v8  ;;  %v2785_v20 = vadd.f32 1.0, %v4136_v35  ;;  %v2759_v9 = vmul.f32 1.442695, %v2705_v56 }
 0x247   : > { %v4138_v43 = vpop.eup %4137  ;;  %4149 = vpow2.f32 %v2753_v63  ;;  %v2706_v42 = vmin.f32 %v5505_v40, 20.0  ;;  %v5508_v48 = vadd.f32 %v2674_v6, %v2602_v26  ;;  %v2604_v44 = vadd.f32 %v2603_v38, %v2531_v58  ;;  %v2605_v29 = vpop.f32.mrf.mxu1 }
 0x248   : > { %4151 = vrcp.f32 %v2845_v54  ;;  %v2846_v4 = vadd.f32 1.0, %v2814_v17  ;;  %v2817_v45 = vmul.f32 %v2785_v20, %v2785_v20  ;;  %v2786_v36 = vadd.f32 1.0, %v4138_v43  ;;  %v2678_v11 = vpop.f32.mrf.mxu0 }
 0x249   : > { %4153 = vpow2.f32 %v2759_v9  ;;  %v2761_v22 = vmul.f32 1.442695, %v2706_v42  ;;  %v2709_v49 = vmin.f32 %v5508_v48, 20.0  ;;  %v5511_v27 = vadd.f32 %v2676_v62, %v2604_v44  ;;  %v2607_v18 = vpop.f32.mrf.mxu1 }
 0x24a   : > { %v4140_v21 = vpop.eup %4139  ;;  %4155 = vrcp.f32 %v2846_v4  ;;  %v2849_v25 = vadd.f32 1.0, %v2817_v45  ;;  %v2818_v7 = vmul.f32 %v2786_v36, %v2786_v36  ;;  %v2606_v13 = vadd.f32 %v2605_v29, %v2533_v61  ;;  %v2680_v56 = vpop.f32.mrf.mxu0 }
 0x24b   : > { %v4142_v32 = vpop.eup %4141  ;;  %v2789_v58 = vadd.f32 1.0, %v4140_v21  ;;  %4157 = vpow2.f32 %v2761_v22  ;;  %v2767_v41 = vmul.f32 1.442695, %v2709_v49  ;;  %v2710_v0 = vmin.f32 %v5511_v27, 20.0 }
 0x24c   : > { %4159 = vrcp.f32 %v2849_v25  ;;  %v2850_v6 = vadd.f32 1.0, %v2818_v7  ;;  %v2790_v34 = vadd.f32 1.0, %v4142_v32  ;;  %v5514_v8 = vadd.f32 %v2678_v11, %v2606_v13 }
 0x24d   : > { %v4144_v35 = vpop.eup %4143  ;;  %v2821_v63 = vmul.f32 %v2789_v58, %v2789_v58  ;;  %4161 = vpow2.f32 %v2767_v41  ;;  %v2769_v26 = vmul.f32 1.442695, %v2710_v0  ;;  %v2608_v38 = vadd.f32 %v2607_v18, %v2535_v12 }
 0x24e   : > { %4163 = vrcp.f32 %v2850_v6  ;;  %v2822_v61 = vmul.f32 %v2790_v34, %v2790_v34  ;;  %v2793_v62 = vadd.f32 1.0, %v4144_v35  ;;  %v2713_v54 = vmin.f32 %v5514_v8, 20.0 }
 0x24f   : > { %v4146_v17 = vpop.eup %4145  ;;  %v2853_v20 = vadd.f32 1.0, %v2821_v63  ;;  %4165 = vpow2.f32 %v2769_v26  ;;  %v5517_v9 = vadd.f32 %v2680_v56, %v2608_v38 }
 0x250   : > { %v2854_v43 = vadd.f32 1.0, %v2822_v61  ;;  %v2825_v42 = vmul.f32 %v2793_v62, %v2793_v62  ;;  %v2794_v44 = vadd.f32 1.0, %v4146_v17  ;;  %v2775_v29 = vmul.f32 1.442695, %v2713_v54 }
 0x251   : > { %v4148_v4 = vpop.eup %4147  ;;  %4167 = vrcp.f32 %v2853_v20  ;;  %v2714_v45 = vmin.f32 %v5517_v9, 20.0 }
 0x252   : > { %4169 = vrcp.f32 %v2854_v43  ;;  %v2857_v12 = vadd.f32 1.0, %v2825_v42  ;;  %v2826_v36 = vmul.f32 %v2794_v44, %v2794_v44  ;;  %v2797_v11 = vadd.f32 1.0, %v4148_v4 }
 0x253   : > { %4171 = vpow2.f32 %v2775_v29  ;;  %v2777_v22 = vmul.f32 1.442695, %v2714_v45 }
 0x254   : > { %v4150_v49 = vpop.eup %4149  ;;  %4173 = vrcp.f32 %v2857_v12  ;;  %v2858_v21 = vadd.f32 1.0, %v2826_v36  ;;  %v2829_v25 = vmul.f32 %v2797_v11, %v2797_v11 }
 0x255   : > { %v4152_v7 = vpop.eup %4151  ;;  %v2798_v13 = vadd.f32 1.0, %v4150_v49  ;;  %4175 = vpow2.f32 %v2777_v22 }
 0x256   : > { %v4154_v18 = vpop.eup %4153  ;;  %v2909_v32 = vmul.f32 2.0, %v4152_v7  ;;  %4177 = vrcp.f32 %v2858_v21  ;;  %v2861_v58 = vadd.f32 1.0, %v2829_v25 }
 0x257   : > { %v4156_v41 = vpop.eup %4155  ;;  %v2830_v0 = vmul.f32 %v2798_v13, %v2798_v13  ;;  %v2801_v6 = vadd.f32 1.0, %v4154_v18 }
 0x258   : > { %v4158_v34 = vpop.eup %4157  ;;  %v2941_v56 = vsub.f32 1.0, %v2909_v32  ;;  %v2910_v35 = vmul.f32 2.0, %v4156_v41  ;;  %4179 = vrcp.f32 %v2861_v58 }
 0x259   : > { %v4160_v63 = vpop.eup %4159  ;;  %v2862_v26 = vadd.f32 1.0, %v2830_v0  ;;  %v2833_v38 = vmul.f32 %v2801_v6, %v2801_v6  ;;  %v2802_v61 = vadd.f32 1.0, %v4158_v34 }
 0x25a   : > { %v4162_v62 = vpop.eup %4161  ;;  %v2973_v54 = vmul.f32 %v2941_v56, %v5449_v19  ;;  %v2942_v17 = vsub.f32 1.0, %v2910_v35  ;;  %v2913_v20 = vmul.f32 2.0, %v4160_v63 }
 0x25b   : > { %v4164_v43 = vpop.eup %4163  ;;  %4181 = vrcp.f32 %v2862_v26  ;;  %v2865_v42 = vadd.f32 1.0, %v2833_v38  ;;  %v2834_v44 = vmul.f32 %v2802_v61, %v2802_v61  ;;  %v2805_v29 = vadd.f32 1.0, %v4162_v62 }
 0x25c   : > { %v4166_v4 = vpop.eup %4165  ;;  %v3053_v45 = vmul.f32 %v5272_v39, %v2973_v54  ;;  %v2974_v12 = vmul.f32 %v2942_v17, %v5454_v31  ;;  %v2945_v36 = vsub.f32 1.0, %v2913_v20  ;;  %v2914_v11 = vmul.f32 2.0, %v4164_v43 }
 0x25d   : > { %4183 = vrcp.f32 %v2865_v42  ;;  %v2866_v22 = vadd.f32 1.0, %v2834_v44  ;;  %v2837_v49 = vmul.f32 %v2805_v29, %v2805_v29  ;;  %v2806_v21 = vadd.f32 1.0, %v4166_v4 }
 0x25e   : > { %v4168_v25 = vpop.eup %4167  ;;  %v3117_v19 = vadd.f32 %v5315_v10, %v3053_v45  ;;  %v3054_v7 = vmul.f32 %v5272_v39, %v2974_v12  ;;  %v2977_v13 = vmul.f32 %v2945_v36, %v5457_v55  ;;  %v2946_v18 = vsub.f32 1.0, %v2914_v11 }
 0x25f   : > { %v4170_v32 = vpop.eup %4169  ;;  %v2917_v58 = vmul.f32 2.0, %v4168_v25  ;;  %4185 = vrcp.f32 %v2866_v22  ;;  %v2869_v41 = vadd.f32 1.0, %v2837_v49  ;;  %v2838_v0 = vmul.f32 %v2806_v21, %v2806_v21 }
 0x260   : > { %v4172_v31 = vpop.eup %4171  ;;  %v3118_v6 = vadd.f32 %v5315_v10, %v3054_v7  ;;  %v3057_v34 = vmul.f32 %v5287_v53, %v2977_v13  ;;  %v2978_v56 = vmul.f32 %v2946_v18, %v5463_v37  ;;  %v2918_v35 = vmul.f32 2.0, %v4170_v32 }
 0x261   : > { %v4174_v63 = vpop.eup %4173  ;;  %v2949_v26 = vsub.f32 1.0, %v2917_v58  ;;  %4187 = vrcp.f32 %v2869_v41  ;;  %v2870_v39 = vadd.f32 1.0, %v2838_v0  ;;  %v2809_v55 = vadd.f32 1.0, %v4172_v31 }
 0x262   : > { %v4176_v38 = vpop.eup %4175  ;;  %v3655_v61 = vpack.c.bf16 %v3118_v6, %v3117_v19  ;;  %v3121_v62 = vadd.f32 %v5328_v46, %v3057_v34  ;;  %v3058_v54 = vmul.f32 %v5287_v53, %v2978_v56  ;;  %v2950_v17 = vsub.f32 1.0, %v2918_v35 }
 0x263   : > { %v4178_v20 = vpop.eup %4177  ;;  %v2981_v10 = vmul.f32 %v2949_v26, %v5468_v57  ;;  %v2921_v43 = vmul.f32 2.0, %v4174_v63  ;;  %4189 = vrcp.f32 %v2870_v39  ;;  %v2841_v37 = vmul.f32 %v2809_v55, %v2809_v55 }
 0x264   : > { %3244 = vst [vmem:[%s5339_s12 + $0x8] sm:$0xff] %v3655_v61  ;;  %v3122_v42 = vadd.f32 %v5328_v46, %v3058_v54  ;;  %v2982_v44 = vmul.f32 %v2950_v17, %v5470_v59  ;;  %v2922_v29 = vmul.f32 2.0, %v4178_v20  ;;  %v2810_v4 = vadd.f32 1.0, %v4176_v38 }
 0x265   : > { %v4180_v45 = vpop.eup %4179  ;;  %v3061_v12 = vmul.f32 %v5279_v33, %v2981_v10  ;;  %v2953_v36 = vsub.f32 1.0, %v2921_v43  ;;  %v2873_v53 = vadd.f32 1.0, %v2841_v37 }
 0x266   : > { %v3657_v11 = vpack.c.bf16 %v3122_v42, %v3121_v62  ;;  %v3062_v22 = vmul.f32 %v5279_v33, %v2982_v44  ;;  %v2954_v57 = vsub.f32 1.0, %v2922_v29  ;;  %v2925_v49 = vmul.f32 2.0, %v4180_v45 }
 0x267   : > { %v2985_v21 = vmul.f32 %v2953_v36, %v5476_v2  ;;  %4191 = vrcp.f32 %v2873_v53  ;;  %v2842_v25 = vmul.f32 %v2810_v4, %v2810_v4  ;;  %v3125_v59 = vadd.f32 %v5343_v23, %v3061_v12 }
 0x268   : > { %v4182_v46 = vpop.eup %4181  ;;  %3246 = vst [vmem:[%s5339_s12 + $0x18] sm:$0xff] %v3657_v11  ;;  %v3126_v19 = vadd.f32 %v5343_v23, %v3062_v22  ;;  %v2986_v7 = vmul.f32 %v2954_v57, %v5479_v50  ;;  %v2957_v13 = vsub.f32 1.0, %v2925_v49 }
 0x269   : > { %v3065_v18 = vmul.f32 %v5292_v16, %v2985_v21  ;;  %v2926_v32 = vmul.f32 2.0, %v4182_v46  ;;  %v2874_v33 = vadd.f32 1.0, %v2842_v25 }
 0x26a   : > { %v4184_v58 = vpop.eup %4183  ;;  %v3659_v41 = vpack.c.bf16 %v3126_v19, %v3125_v59  ;;  %v3066_v2 = vmul.f32 %v5292_v16, %v2986_v7  ;;  %v2989_v0 = vmul.f32 %v2957_v13, %v5486_v30  ;;  %v3293_v19 = vld [vmem:[%s5339_s12 + $0x30] sm:$0xff] (%p4272_p5)  ;;  %v3297_v13 = vld [vmem:[%s5339_s12 + $0x40] sm:$0xff] (%p4272_p5) }
 0x26b   : > { %v2958_v31 = vsub.f32 1.0, %v2926_v32  ;;  %v2929_v6 = vmul.f32 2.0, %v4184_v58  ;;  %4193 = vrcp.f32 %v2874_v33  ;;  %v3129_v23 = vadd.f32 %v5356_v51, %v3065_v18  ;;  %3294 = vst [vmem:[%s3268_s20 + $0x60] sm:$0xff] (%p4272_p5), %v3293_v19  ;;  %3298 = vst [vmem:[%s3268_s20 + $0x80] sm:$0xff] (%p4272_p5), %v3297_v13  ;;  %v3301_v32 = vld [vmem:[%s5339_s12 + $0x50] sm:$0xff] (%p4272_p5)  ;;  %v3305_v58 = vld [vmem:[%s5339_s12 + $0x60] sm:$0xff] (%p4272_p5) }
 0x26c   : > { %v4186_v34 = vpop.eup %4185  ;;  %3248 = vst [vmem:[%s5339_s12 + $0x28] sm:$0xff] %v3659_v41  ;;  %v3130_v50 = vadd.f32 %v5356_v51, %v3066_v2  ;;  %v3069_v56 = vmul.f32 %v5299_v3, %v2989_v0  ;;  %3302 = vst [vmem:[%s3268_s20 + $0xa0] sm:$0xff] (%p4272_p5), %v3301_v32  ;;  %v3309_v2 = vld [vmem:[%s5339_s12 + $0x70] sm:$0xff] (%p4272_p5) }
 0x26d   : > { %v2990_v35 = vmul.f32 %v2958_v31, %v5493_v60  ;;  %v2961_v63 = vsub.f32 1.0, %v2929_v6  ;;  %v2930_v26 = vmul.f32 2.0, %v4186_v34  ;;  %3306 = vst [vmem:[%s3268_s20 + $0xc0] sm:$0xff] (%p4272_p5), %v3305_v58  ;;  %3310 = vst [vmem:[%s3268_s20 + $0xe0] sm:$0xff] (%p4272_p5), %v3309_v2 }
 0x26e   : > { %v4188_v39 = vpop.eup %4187  ;;  %v3661_v16 = vpack.c.bf16 %v3130_v50, %v3129_v23  ;;  %v3133_v54 = vadd.f32 %v5375_v1, %v3069_v56 }
 0x26f   : > { %v3070_v30 = vmul.f32 %v5299_v3, %v2990_v35  ;;  %v2993_v55 = vmul.f32 %v2961_v63, %v5495_v52  ;;  %v2962_v38 = vsub.f32 1.0, %v2930_v26  ;;  %v2933_v61 = vmul.f32 2.0, %v4188_v39 }
 0x270   : > { %v4190_v62 = vpop.eup %4189  ;;  %3250 = vst [vmem:[%s5339_s12 + $0x38] sm:$0xff] %v3661_v16 }
 0x271   : > { %v3134_v51 = vadd.f32 %v5375_v1, %v3070_v30  ;;  %v3073_v17 = vmul.f32 %v5302_v14, %v2993_v55  ;;  %v2994_v60 = vmul.f32 %v2962_v38, %v5505_v40  ;;  %v2965_v20 = vsub.f32 1.0, %v2933_v61 }
 0x272   : > { %v2934_v10 = vmul.f32 2.0, %v4190_v62 }
 0x273   : > { %v3663_v43 = vpack.c.bf16 %v3134_v51, %v3133_v54  ;;  %v3074_v3 = vmul.f32 %v5302_v14, %v2994_v60  ;;  %v2997_v52 = vmul.f32 %v2965_v20, %v5508_v48  ;;  %v3137_v44 = vadd.f32 %v5380_v47, %v3073_v17  ;;  %v3291_v59 = vld [vmem:[%s5339_s12 + $0x28] sm:$0xff] (%p4272_p5) }
 0x274   : > { %v4192_v37 = vpop.eup %4191  ;;  %v2966_v42 = vsub.f32 1.0, %v2934_v10  ;;  %3292 = vst [vmem:[%s3268_s20 + $0x48] sm:$0xff] (%p4272_p5), %v3291_v59 }
 0x275   : > { %3252 = vst [vmem:[%s5339_s12 + $0x48] sm:$0xff] %v3663_v43  ;;  %v3138_v29 = vadd.f32 %v5380_v47, %v3074_v3  ;;  %v2937_v1 = vmul.f32 2.0, %v4192_v37  ;;  %v3077_v4 = vmul.f32 %v5306_v15, %v2997_v52 }
 0x276   : > { %v2998_v40 = vmul.f32 %v2966_v42, %v5511_v27 }
 0x277   : > { %v3665_v45 = vpack.c.bf16 %v3138_v29, %v3137_v44  ;;  %v2969_v12 = vsub.f32 1.0, %v2937_v1  ;;  %v3141_v11 = vadd.f32 %v5401_v5, %v3077_v4  ;;  %v3295_v7 = vld [vmem:[%s5339_s12 + $0x38] sm:$0xff] (%p4272_p5) }
 0x278   : > { %v4194_v36 = vpop.eup %4193  ;;  %v3078_v14 = vmul.f32 %v5306_v15, %v2998_v40  ;;  %3296 = vst [vmem:[%s3268_s20 + $0x68] sm:$0xff] (%p4272_p5), %v3295_v7 }
 0x279   : > { %3254 = vst [vmem:[%s5339_s12 + $0x58] sm:$0xff] %v3665_v45  ;;  %v3001_v48 = vmul.f32 %v2969_v12, %v5514_v8  ;;  %v2938_v53 = vmul.f32 2.0, %v4194_v36  ;;  %v3287_v8 = vld [vmem:[%s5339_s12 + $0x18] sm:$0xff] (%p4272_p5) }
 0x27a   : > { %v3142_v47 = vadd.f32 %v5401_v5, %v3078_v14  ;;  %v3283_v5 = vld [vmem:[%s5339_s12 + $0x8] sm:$0xff] (%p4272_p5)  ;;  %3288 = vst [vmem:[%s3268_s20 + $0x28] sm:$0xff] (%p4272_p5), %v3287_v8 }
 0x27b   : > { %v2970_v22 = vsub.f32 1.0, %v2938_v53  ;;  %v3081_v49 = vmul.f32 %v5310_v24, %v3001_v48  ;;  %3284 = vst [vmem:[%s3268_s20 + $0x8] sm:$0xff] (%p4272_p5), %v3283_v5 }
 0x27c   : > { %v3667_v57 = vpack.c.bf16 %v3142_v47, %v3141_v11  ;;  %v3299_v18 = vld [vmem:[%s5339_s12 + $0x48] sm:$0xff] (%p4272_p5) }
 0x27d   : > { %v3002_v27 = vmul.f32 %v2970_v22, %v5517_v9  ;;  %v3145_v25 = vadd.f32 %v5414_v28, %v3081_v49  ;;  %v3289_v9 = vld [vmem:[%s5339_s12 + $0x20] sm:$0xff] (%p4272_p5)  ;;  %3300 = vst [vmem:[%s3268_s20 + $0x88] sm:$0xff] (%p4272_p5), %v3299_v18 }
 0x27e   : > { %3256 = vst [vmem:[%s5339_s12 + $0x68] sm:$0xff] %v3667_v57  ;;  %3290 = vst [vmem:[%s3268_s20 + $0x40] sm:$0xff] (%p4272_p5), %v3289_v9 }
 0x27f   : > { %v3082_v21 = vmul.f32 %v5310_v24, %v3002_v27  ;;  %v3281_v24 = vld [vmem:[%s5339_s12] sm:$0xff] (%p4272_p5) }
 0x280   : > { %3282 = vst [vmem:[%s3268_s20] sm:$0xff] (%p4272_p5), %v3281_v24  ;;  %v3303_v33 = vld [vmem:[%s5339_s12 + $0x58] sm:$0xff] (%p4272_p5) }
 0x281   : > { %v3146_v15 = vadd.f32 %v5414_v28, %v3082_v21  ;;  %3265 = sbr.rel (!%p4272_p5) target bundleno = 654 (0x28e), region = 59  ;;  %v3285_v28 = vld [vmem:[%s5339_s12 + $0x10] sm:$0xff] (%p4272_p5)  ;;  %3304 = vst [vmem:[%s3268_s20 + $0xa8] sm:$0xff] (%p4272_p5), %v3303_v33 }
 0x282   : > { %3286 = vst [vmem:[%s3268_s20 + $0x20] sm:$0xff] (%p4272_p5), %v3285_v28 }
 0x283   : > { %v3669_v46 = vpack.c.bf16 %v3146_v15, %v3145_v25 }
 0x285   : > { %3258 = vst [vmem:[%s5339_s12 + $0x78] sm:$0xff] %v3669_v46  ;;  %v3307_v41 = vld [vmem:[%s5339_s12 + $0x68] sm:$0xff] (%p4272_p5) }
 0x286   : > { %3308 = vst [vmem:[%s3268_s20 + $0xc8] sm:$0xff] %v3307_v41 }
 0x28c   : > { %v3311_v0 = vld [vmem:[%s5339_s12 + $0x78] sm:$0xff] }
 0x28d   : > { %3312 = vst [vmem:[%s3268_s20 + $0xe8] sm:$0xff] %v3311_v0 }
 0x28e PF: > { %p10_p10 = scmp.ge.s32.totalorder %s4259_s16, 4   ;;  %s5614_s12 = smov %s4214_s13 }
 0x28f   : > { %s5615_s13 = smov %s4270_s19  ;;  %s5616_s14 = smov %s4259_s16 }
 0x290   :  { %12 = sbr.rel (!%p10_p10) target bundleno = 2 (0x2), region = 113 }

// kernel: res2net3d_forward.11
= control target key start
LH: loop header
LB: loop body
LE: loop exit
PB: predicated region body
PF: predicated region fallthrough
CT: control target
= control target key end

     0   :  { %s74_s0 = inlined_call_operand.vmem [shape: bf16[8,512], index: 0, kind: input, shape index: {}]   ;;  %s75_s1 = inlined_call_operand.vmem [shape: bf16[8,512], index: 1, kind: input, shape index: {}]   ;;  %s76_s2 = inlined_call_operand.vmem [shape: bf16[8,512], index: 2, kind: input, shape index: {}]   ;;  %s77_s3 = inlined_call_operand.vmem [shape: bf16[8,512], index: 3, kind: output, shape index: {}]  }
   0x1   :  { %v14_v0 = vld [vmem:[%s74_s0] sm:$0xff]  ;;  %v15_v4 = vld [vmem:[%s74_s0 + $0x8] sm:$0xff] }
   0x2   :  { %v16_v1 = vld [vmem:[%s75_s1] sm:$0xff]  ;;  %v17_v5 = vld [vmem:[%s75_s1 + $0x8] sm:$0xff] }
   0x3   :  { %v20_v2 = vld [vmem:[%s76_s2] sm:$0xff]  ;;  %v18_v3 = vmax.bf16 %v16_v1, %v14_v0  ;;  %v21_v6 = vld [vmem:[%s76_s2 + $0x8] sm:$0xff]  ;;  %v19_v7 = vmax.bf16 %v17_v5, %v15_v4 }
   0x5   :  { %v22_v8 = vmax.bf16 %v20_v2, %v18_v3  ;;  %v23_v9 = vmax.bf16 %v21_v6, %v19_v7 }
   0x7   :  { %24 = vst [vmem:[%s77_s3] sm:$0xff] %v22_v8  ;;  %25 = vst [vmem:[%s77_s3 + $0x8] sm:$0xff] %v23_v9 }

// kernel: res2net3d_forward.10
= control target key start
LH: loop header
LB: loop body
LE: loop exit
PB: predicated region body
PF: predicated region fallthrough
CT: control target
= control target key end

     0   :  { %s7235_s12 = smov 0   ;;  %s7237_s13 = smov 0   ;;  %s9756_s0 = inlined_call_operand.vmem [shape: bf16[1728,1024], index: 0, kind: input, shape index: {}]   ;;  %s9757_s1 = inlined_call_operand.vmem [shape: bf16[64,1728], index: 1, kind: input, shape index: {}]   ;;  %s9758_s2 = inlined_call_operand.vmem [shape: f32[64,2], index: 2, kind: input, shape index: {}]   ;;  %s9759_s3 = inlined_call_operand.vmem [shape: bf16[64,1024], index: 3, kind: output, shape index: {}]  }
   0x1   :  { %s7239_s14 = smov 0  }
   0x2 LB: > { %s5698_s15 = sadd.s32 4294967295, %s7211_s14   ;;  %s7252_s16 = sadd.s32 1, %s7211_s14   ;;  %s7211_s14 = sphi %s7239_s14, %s9939_s14   ;;  %s7207_s13 = sphi %s7237_s13, %s9938_s13   ;;  %s7203_s12 = sphi %s7235_s12, %s9937_s12  }
   0x3   : > { %s17_s17 = ssub.s32 %s7211_s14, %s7252_s16  ;;  %s20_s18 = sadd.s32 1, %s7207_s13 }
   0x4   : > { %p18_p0 = scmp.eq.s32.totalorder %s17_s17, 0  ;;  %p27_p1 = scmp.ne.s32.totalorder %s7207_s13, %s7203_s12 }
   0x5   : > { %p28_p2 = scmp.eq.s32.totalorder %s7211_s14, 0  ;;  %p99_p3 = scmp.eq.s32.totalorder %s5698_s15, 1 }
   0x6   : > { %s7263_s19 = scalar_select %p18_p0, %s7207_s13, %s20_s18  }
   0x7   : > { %p29_p4 = por %p28_p2, %p27_p1  ;;  %p7265_p5 = por %p99_p3, %p27_p1 }
   0x8   : > { %p5701_p6 = scmp.ge.s32.totalorder %s7211_s14, 2 }
   0xa   : > { %127 = sbr.rel (%p5701_p6) target bundleno = 235 (0xeb), region = 24 }
   0xf   : > { %130 = sbr.rel (!%p29_p4) target bundleno = 235 (0xeb), region = 28  ;;  %s132_s21 = sand.u32 (%p29_p4), 1, %s7207_s13  }
  0x10   : > { %s6223_s22 = sshll.u32 (%p29_p4), %s7211_s14, 4  ;;  %s6241_s23 = smul.u32 (%p29_p4), 3456, %s132_s21 }
  0x11   : > { %s7275_s26 = scalar_lea.vmem (%p29_p4), %s9756_s0, %s6223_s22 }
  0x12   : > { %v150_v0 = vld [vmem:[%s7275_s26] sm:$0xff] (%p29_p4)  ;;  %v152_v1 = vld [vmem:[%s7275_s26 + $0x8] sm:$0xff] (%p29_p4)  ;;  %s7283_s27 = scalar_lea.vmem (%p29_p4), [#allocation2], %s6241_s23 }
  0x13   : > { %v154_v2 = vld [vmem:[%s7275_s26 + $0x20] sm:$0xff] (%p29_p4)  ;;  %v156_v3 = vld [vmem:[%s7275_s26 + $0x28] sm:$0xff] (%p29_p4)  ;;  %151 = vst [vmem:[%s7283_s27] sm:$0xff] (%p29_p4), %v150_v0  ;;  %153 = vst [vmem:[%s7283_s27 + $0x8] sm:$0xff] (%p29_p4), %v152_v1 }
  0x14   : > { %v158_v4 = vld [vmem:[%s7275_s26 + $0x40] sm:$0xff]  ;;  %v160_v5 = vld [vmem:[%s7275_s26 + $0x48] sm:$0xff]  ;;  %155 = vst [vmem:[%s7283_s27 + $0x10] sm:$0xff] %v154_v2  ;;  %157 = vst [vmem:[%s7283_s27 + $0x18] sm:$0xff] %v156_v3 }
  0x15   : > { %159 = vst [vmem:[%s7283_s27 + $0x20] sm:$0xff] %v158_v4  ;;  %161 = vst [vmem:[%s7283_s27 + $0x28] sm:$0xff] %v160_v5  ;;  %v162_v6 = vld [vmem:[%s7275_s26 + $0x60] sm:$0xff]  ;;  %v164_v7 = vld [vmem:[%s7275_s26 + $0x68] sm:$0xff] }
  0x16   : > { %v166_v8 = vld [vmem:[%s7275_s26 + $0x80] sm:$0xff]  ;;  %163 = vst [vmem:[%s7283_s27 + $0x30] sm:$0xff] %v162_v6  ;;  %165 = vst [vmem:[%s7283_s27 + $0x38] sm:$0xff] %v164_v7  ;;  %v168_v9 = vld [vmem:[%s7275_s26 + $0x88] sm:$0xff] }
  0x17   : > { %167 = vst [vmem:[%s7283_s27 + $0x40] sm:$0xff] %v166_v8  ;;  %v170_v10 = vld [vmem:[%s7275_s26 + $0xa0] sm:$0xff]  ;;  %v172_v11 = vld [vmem:[%s7275_s26 + $0xa8] sm:$0xff]  ;;  %169 = vst [vmem:[%s7283_s27 + $0x48] sm:$0xff] %v168_v9 }
  0x18   : > { %171 = vst [vmem:[%s7283_s27 + $0x50] sm:$0xff] %v170_v10  ;;  %173 = vst [vmem:[%s7283_s27 + $0x58] sm:$0xff] %v172_v11  ;;  %v174_v12 = vld [vmem:[%s7275_s26 + $0xc0] sm:$0xff]  ;;  %v176_v13 = vld [vmem:[%s7275_s26 + $0xc8] sm:$0xff] }
  0x19   : > { %v178_v14 = vld [vmem:[%s7275_s26 + $0xe0] sm:$0xff]  ;;  %175 = vst [vmem:[%s7283_s27 + $0x60] sm:$0xff] %v174_v12  ;;  %177 = vst [vmem:[%s7283_s27 + $0x68] sm:$0xff] %v176_v13  ;;  %v180_v15 = vld [vmem:[%s7275_s26 + $0xe8] sm:$0xff] }
  0x1a   : > { %179 = vst [vmem:[%s7283_s27 + $0x70] sm:$0xff] %v178_v14  ;;  %v182_v16 = vld [vmem:[%s7275_s26 + $0x100] sm:$0xff]  ;;  %v184_v17 = vld [vmem:[%s7275_s26 + $0x108] sm:$0xff]  ;;  %181 = vst [vmem:[%s7283_s27 + $0x78] sm:$0xff] %v180_v15 }
  0x1b   : > { %183 = vst [vmem:[%s7283_s27 + $0x80] sm:$0xff] %v182_v16  ;;  %185 = vst [vmem:[%s7283_s27 + $0x88] sm:$0xff] %v184_v17  ;;  %v186_v18 = vld [vmem:[%s7275_s26 + $0x120] sm:$0xff]  ;;  %v188_v19 = vld [vmem:[%s7275_s26 + $0x128] sm:$0xff] }
  0x1c   : > { %v190_v20 = vld [vmem:[%s7275_s26 + $0x140] sm:$0xff]  ;;  %187 = vst [vmem:[%s7283_s27 + $0x90] sm:$0xff] %v186_v18  ;;  %189 = vst [vmem:[%s7283_s27 + $0x98] sm:$0xff] %v188_v19  ;;  %v192_v21 = vld [vmem:[%s7275_s26 + $0x148] sm:$0xff] }
  0x1d   : > { %191 = vst [vmem:[%s7283_s27 + $0xa0] sm:$0xff] %v190_v20  ;;  %v194_v22 = vld [vmem:[%s7275_s26 + $0x160] sm:$0xff]  ;;  %v196_v23 = vld [vmem:[%s7275_s26 + $0x168] sm:$0xff]  ;;  %193 = vst [vmem:[%s7283_s27 + $0xa8] sm:$0xff] %v192_v21 }
  0x1e   : > { %195 = vst [vmem:[%s7283_s27 + $0xb0] sm:$0xff] %v194_v22  ;;  %197 = vst [vmem:[%s7283_s27 + $0xb8] sm:$0xff] %v196_v23  ;;  %v198_v24 = vld [vmem:[%s7275_s26 + $0x180] sm:$0xff]  ;;  %v200_v25 = vld [vmem:[%s7275_s26 + $0x188] sm:$0xff] }
  0x1f   : > { %v202_v26 = vld [vmem:[%s7275_s26 + $0x1a0] sm:$0xff]  ;;  %199 = vst [vmem:[%s7283_s27 + $0xc0] sm:$0xff] %v198_v24  ;;  %201 = vst [vmem:[%s7283_s27 + $0xc8] sm:$0xff] %v200_v25  ;;  %v204_v27 = vld [vmem:[%s7275_s26 + $0x1a8] sm:$0xff] }
  0x20   : > { %203 = vst [vmem:[%s7283_s27 + $0xd0] sm:$0xff] %v202_v26  ;;  %v206_v28 = vld [vmem:[%s7275_s26 + $0x1c0] sm:$0xff]  ;;  %v208_v29 = vld [vmem:[%s7275_s26 + $0x1c8] sm:$0xff]  ;;  %205 = vst [vmem:[%s7283_s27 + $0xd8] sm:$0xff] %v204_v27 }
  0x21   : > { %207 = vst [vmem:[%s7283_s27 + $0xe0] sm:$0xff] %v206_v28  ;;  %209 = vst [vmem:[%s7283_s27 + $0xe8] sm:$0xff] %v208_v29  ;;  %v210_v30 = vld [vmem:[%s7275_s26 + $0x1e0] sm:$0xff]  ;;  %v212_v31 = vld [vmem:[%s7275_s26 + $0x1e8] sm:$0xff] }
  0x22   : > { %v214_v32 = vld [vmem:[%s7275_s26 + $0x200] sm:$0xff]  ;;  %211 = vst [vmem:[%s7283_s27 + $0xf0] sm:$0xff] %v210_v30  ;;  %213 = vst [vmem:[%s7283_s27 + $0xf8] sm:$0xff] %v212_v31  ;;  %v216_v33 = vld [vmem:[%s7275_s26 + $0x208] sm:$0xff] }
  0x23   : > { %215 = vst [vmem:[%s7283_s27 + $0x100] sm:$0xff] %v214_v32  ;;  %v218_v34 = vld [vmem:[%s7275_s26 + $0x220] sm:$0xff]  ;;  %v220_v35 = vld [vmem:[%s7275_s26 + $0x228] sm:$0xff]  ;;  %217 = vst [vmem:[%s7283_s27 + $0x108] sm:$0xff] %v216_v33 }
  0x24   : > { %219 = vst [vmem:[%s7283_s27 + $0x110] sm:$0xff] %v218_v34  ;;  %221 = vst [vmem:[%s7283_s27 + $0x118] sm:$0xff] %v220_v35  ;;  %v222_v36 = vld [vmem:[%s7275_s26 + $0x240] sm:$0xff]  ;;  %v224_v37 = vld [vmem:[%s7275_s26 + $0x248] sm:$0xff] }
  0x25   : > { %v226_v38 = vld [vmem:[%s7275_s26 + $0x260] sm:$0xff]  ;;  %223 = vst [vmem:[%s7283_s27 + $0x120] sm:$0xff] %v222_v36  ;;  %225 = vst [vmem:[%s7283_s27 + $0x128] sm:$0xff] %v224_v37  ;;  %v228_v39 = vld [vmem:[%s7275_s26 + $0x268] sm:$0xff] }
  0x26   : > { %227 = vst [vmem:[%s7283_s27 + $0x130] sm:$0xff] %v226_v38  ;;  %v230_v40 = vld [vmem:[%s7275_s26 + $0x280] sm:$0xff]  ;;  %v232_v41 = vld [vmem:[%s7275_s26 + $0x288] sm:$0xff]  ;;  %229 = vst [vmem:[%s7283_s27 + $0x138] sm:$0xff] %v228_v39 }
  0x27   : > { %231 = vst [vmem:[%s7283_s27 + $0x140] sm:$0xff] %v230_v40  ;;  %233 = vst [vmem:[%s7283_s27 + $0x148] sm:$0xff] %v232_v41  ;;  %v234_v42 = vld [vmem:[%s7275_s26 + $0x2a0] sm:$0xff]  ;;  %v236_v43 = vld [vmem:[%s7275_s26 + $0x2a8] sm:$0xff] }
  0x28   : > { %v238_v44 = vld [vmem:[%s7275_s26 + $0x2c0] sm:$0xff]  ;;  %235 = vst [vmem:[%s7283_s27 + $0x150] sm:$0xff] %v234_v42  ;;  %237 = vst [vmem:[%s7283_s27 + $0x158] sm:$0xff] %v236_v43  ;;  %v240_v45 = vld [vmem:[%s7275_s26 + $0x2c8] sm:$0xff] }
  0x29   : > { %239 = vst [vmem:[%s7283_s27 + $0x160] sm:$0xff] %v238_v44  ;;  %v242_v46 = vld [vmem:[%s7275_s26 + $0x2e0] sm:$0xff]  ;;  %v244_v47 = vld [vmem:[%s7275_s26 + $0x2e8] sm:$0xff]  ;;  %241 = vst [vmem:[%s7283_s27 + $0x168] sm:$0xff] %v240_v45 }
  0x2a   : > { %243 = vst [vmem:[%s7283_s27 + $0x170] sm:$0xff] %v242_v46  ;;  %245 = vst [vmem:[%s7283_s27 + $0x178] sm:$0xff] %v244_v47  ;;  %v246_v48 = vld [vmem:[%s7275_s26 + $0x300] sm:$0xff]  ;;  %v248_v49 = vld [vmem:[%s7275_s26 + $0x308] sm:$0xff] }
  0x2b   : > { %v250_v50 = vld [vmem:[%s7275_s26 + $0x320] sm:$0xff]  ;;  %247 = vst [vmem:[%s7283_s27 + $0x180] sm:$0xff] %v246_v48  ;;  %249 = vst [vmem:[%s7283_s27 + $0x188] sm:$0xff] %v248_v49  ;;  %v252_v51 = vld [vmem:[%s7275_s26 + $0x328] sm:$0xff] }
  0x2c   : > { %251 = vst [vmem:[%s7283_s27 + $0x190] sm:$0xff] %v250_v50  ;;  %v254_v52 = vld [vmem:[%s7275_s26 + $0x340] sm:$0xff]  ;;  %v256_v53 = vld [vmem:[%s7275_s26 + $0x348] sm:$0xff]  ;;  %253 = vst [vmem:[%s7283_s27 + $0x198] sm:$0xff] %v252_v51 }
  0x2d   : > { %255 = vst [vmem:[%s7283_s27 + $0x1a0] sm:$0xff] %v254_v52  ;;  %257 = vst [vmem:[%s7283_s27 + $0x1a8] sm:$0xff] %v256_v53  ;;  %v258_v54 = vld [vmem:[%s7275_s26 + $0x360] sm:$0xff]  ;;  %v260_v55 = vld [vmem:[%s7275_s26 + $0x368] sm:$0xff] }
  0x2e   : > { %v262_v56 = vld [vmem:[%s7275_s26 + $0x380] sm:$0xff]  ;;  %259 = vst [vmem:[%s7283_s27 + $0x1b0] sm:$0xff] %v258_v54  ;;  %261 = vst [vmem:[%s7283_s27 + $0x1b8] sm:$0xff] %v260_v55  ;;  %v264_v57 = vld [vmem:[%s7275_s26 + $0x388] sm:$0xff] }
  0x2f   : > { %263 = vst [vmem:[%s7283_s27 + $0x1c0] sm:$0xff] %v262_v56  ;;  %v266_v58 = vld [vmem:[%s7275_s26 + $0x3a0] sm:$0xff]  ;;  %v268_v59 = vld [vmem:[%s7275_s26 + $0x3a8] sm:$0xff]  ;;  %265 = vst [vmem:[%s7283_s27 + $0x1c8] sm:$0xff] %v264_v57 }
  0x30   : > { %267 = vst [vmem:[%s7283_s27 + $0x1d0] sm:$0xff] %v266_v58  ;;  %269 = vst [vmem:[%s7283_s27 + $0x1d8] sm:$0xff] %v268_v59  ;;  %v270_v60 = vld [vmem:[%s7275_s26 + $0x3c0] sm:$0xff]  ;;  %v272_v61 = vld [vmem:[%s7275_s26 + $0x3c8] sm:$0xff] }
  0x31   : > { %v274_v62 = vld [vmem:[%s7275_s26 + $0x3e0] sm:$0xff]  ;;  %271 = vst [vmem:[%s7283_s27 + $0x1e0] sm:$0xff] %v270_v60  ;;  %273 = vst [vmem:[%s7283_s27 + $0x1e8] sm:$0xff] %v272_v61  ;;  %v276_v63 = vld [vmem:[%s7275_s26 + $0x3e8] sm:$0xff] }
  0x32   : > { %275 = vst [vmem:[%s7283_s27 + $0x1f0] sm:$0xff] %v274_v62  ;;  %v278_v0 = vld [vmem:[%s7275_s26 + $0x400] sm:$0xff]  ;;  %v280_v1 = vld [vmem:[%s7275_s26 + $0x408] sm:$0xff]  ;;  %277 = vst [vmem:[%s7283_s27 + $0x1f8] sm:$0xff] %v276_v63 }
  0x33   : > { %279 = vst [vmem:[%s7283_s27 + $0x200] sm:$0xff] %v278_v0  ;;  %281 = vst [vmem:[%s7283_s27 + $0x208] sm:$0xff] %v280_v1  ;;  %v282_v2 = vld [vmem:[%s7275_s26 + $0x420] sm:$0xff]  ;;  %v284_v3 = vld [vmem:[%s7275_s26 + $0x428] sm:$0xff] }
  0x34   : > { %v286_v4 = vld [vmem:[%s7275_s26 + $0x440] sm:$0xff]  ;;  %283 = vst [vmem:[%s7283_s27 + $0x210] sm:$0xff] %v282_v2  ;;  %285 = vst [vmem:[%s7283_s27 + $0x218] sm:$0xff] %v284_v3  ;;  %v288_v5 = vld [vmem:[%s7275_s26 + $0x448] sm:$0xff] }
  0x35   : > { %287 = vst [vmem:[%s7283_s27 + $0x220] sm:$0xff] %v286_v4  ;;  %v290_v6 = vld [vmem:[%s7275_s26 + $0x460] sm:$0xff]  ;;  %v292_v7 = vld [vmem:[%s7275_s26 + $0x468] sm:$0xff]  ;;  %289 = vst [vmem:[%s7283_s27 + $0x228] sm:$0xff] %v288_v5 }
  0x36   : > { %291 = vst [vmem:[%s7283_s27 + $0x230] sm:$0xff] %v290_v6  ;;  %293 = vst [vmem:[%s7283_s27 + $0x238] sm:$0xff] %v292_v7  ;;  %v294_v8 = vld [vmem:[%s7275_s26 + $0x480] sm:$0xff]  ;;  %v296_v9 = vld [vmem:[%s7275_s26 + $0x488] sm:$0xff] }
  0x37   : > { %v298_v10 = vld [vmem:[%s7275_s26 + $0x4a0] sm:$0xff]  ;;  %295 = vst [vmem:[%s7283_s27 + $0x240] sm:$0xff] %v294_v8  ;;  %297 = vst [vmem:[%s7283_s27 + $0x248] sm:$0xff] %v296_v9  ;;  %v300_v11 = vld [vmem:[%s7275_s26 + $0x4a8] sm:$0xff] }
  0x38   : > { %299 = vst [vmem:[%s7283_s27 + $0x250] sm:$0xff] %v298_v10  ;;  %v302_v12 = vld [vmem:[%s7275_s26 + $0x4c0] sm:$0xff]  ;;  %v304_v13 = vld [vmem:[%s7275_s26 + $0x4c8] sm:$0xff]  ;;  %301 = vst [vmem:[%s7283_s27 + $0x258] sm:$0xff] %v300_v11 }
  0x39   : > { %303 = vst [vmem:[%s7283_s27 + $0x260] sm:$0xff] %v302_v12  ;;  %305 = vst [vmem:[%s7283_s27 + $0x268] sm:$0xff] %v304_v13  ;;  %v306_v14 = vld [vmem:[%s7275_s26 + $0x4e0] sm:$0xff]  ;;  %v308_v15 = vld [vmem:[%s7275_s26 + $0x4e8] sm:$0xff] }
  0x3a   : > { %v310_v16 = vld [vmem:[%s7275_s26 + $0x500] sm:$0xff]  ;;  %307 = vst [vmem:[%s7283_s27 + $0x270] sm:$0xff] %v306_v14  ;;  %309 = vst [vmem:[%s7283_s27 + $0x278] sm:$0xff] %v308_v15  ;;  %v312_v17 = vld [vmem:[%s7275_s26 + $0x508] sm:$0xff] }
  0x3b   : > { %311 = vst [vmem:[%s7283_s27 + $0x280] sm:$0xff] %v310_v16  ;;  %v314_v18 = vld [vmem:[%s7275_s26 + $0x520] sm:$0xff]  ;;  %v316_v19 = vld [vmem:[%s7275_s26 + $0x528] sm:$0xff]  ;;  %313 = vst [vmem:[%s7283_s27 + $0x288] sm:$0xff] %v312_v17 }
  0x3c   : > { %315 = vst [vmem:[%s7283_s27 + $0x290] sm:$0xff] %v314_v18  ;;  %317 = vst [vmem:[%s7283_s27 + $0x298] sm:$0xff] %v316_v19  ;;  %v318_v20 = vld [vmem:[%s7275_s26 + $0x540] sm:$0xff]  ;;  %v320_v21 = vld [vmem:[%s7275_s26 + $0x548] sm:$0xff] }
  0x3d   : > { %v322_v22 = vld [vmem:[%s7275_s26 + $0x560] sm:$0xff]  ;;  %319 = vst [vmem:[%s7283_s27 + $0x2a0] sm:$0xff] %v318_v20  ;;  %321 = vst [vmem:[%s7283_s27 + $0x2a8] sm:$0xff] %v320_v21  ;;  %v324_v23 = vld [vmem:[%s7275_s26 + $0x568] sm:$0xff] }
  0x3e   : > { %323 = vst [vmem:[%s7283_s27 + $0x2b0] sm:$0xff] %v322_v22  ;;  %v326_v24 = vld [vmem:[%s7275_s26 + $0x580] sm:$0xff]  ;;  %v328_v25 = vld [vmem:[%s7275_s26 + $0x588] sm:$0xff]  ;;  %325 = vst [vmem:[%s7283_s27 + $0x2b8] sm:$0xff] %v324_v23 }
  0x3f   : > { %327 = vst [vmem:[%s7283_s27 + $0x2c0] sm:$0xff] %v326_v24  ;;  %329 = vst [vmem:[%s7283_s27 + $0x2c8] sm:$0xff] %v328_v25  ;;  %v330_v26 = vld [vmem:[%s7275_s26 + $0x5a0] sm:$0xff]  ;;  %v332_v27 = vld [vmem:[%s7275_s26 + $0x5a8] sm:$0xff] }
  0x40   : > { %v334_v28 = vld [vmem:[%s7275_s26 + $0x5c0] sm:$0xff]  ;;  %331 = vst [vmem:[%s7283_s27 + $0x2d0] sm:$0xff] %v330_v26  ;;  %333 = vst [vmem:[%s7283_s27 + $0x2d8] sm:$0xff] %v332_v27  ;;  %v336_v29 = vld [vmem:[%s7275_s26 + $0x5c8] sm:$0xff] }
  0x41   : > { %335 = vst [vmem:[%s7283_s27 + $0x2e0] sm:$0xff] %v334_v28  ;;  %v338_v30 = vld [vmem:[%s7275_s26 + $0x5e0] sm:$0xff]  ;;  %v340_v31 = vld [vmem:[%s7275_s26 + $0x5e8] sm:$0xff]  ;;  %337 = vst [vmem:[%s7283_s27 + $0x2e8] sm:$0xff] %v336_v29 }
  0x42   : > { %339 = vst [vmem:[%s7283_s27 + $0x2f0] sm:$0xff] %v338_v30  ;;  %341 = vst [vmem:[%s7283_s27 + $0x2f8] sm:$0xff] %v340_v31  ;;  %v342_v32 = vld [vmem:[%s7275_s26 + $0x600] sm:$0xff]  ;;  %v344_v33 = vld [vmem:[%s7275_s26 + $0x608] sm:$0xff] }
  0x43   : > { %v346_v34 = vld [vmem:[%s7275_s26 + $0x620] sm:$0xff]  ;;  %343 = vst [vmem:[%s7283_s27 + $0x300] sm:$0xff] %v342_v32  ;;  %345 = vst [vmem:[%s7283_s27 + $0x308] sm:$0xff] %v344_v33  ;;  %v348_v35 = vld [vmem:[%s7275_s26 + $0x628] sm:$0xff] }
  0x44   : > { %347 = vst [vmem:[%s7283_s27 + $0x310] sm:$0xff] %v346_v34  ;;  %v350_v36 = vld [vmem:[%s7275_s26 + $0x640] sm:$0xff]  ;;  %v352_v37 = vld [vmem:[%s7275_s26 + $0x648] sm:$0xff]  ;;  %349 = vst [vmem:[%s7283_s27 + $0x318] sm:$0xff] %v348_v35 }
  0x45   : > { %351 = vst [vmem:[%s7283_s27 + $0x320] sm:$0xff] %v350_v36  ;;  %353 = vst [vmem:[%s7283_s27 + $0x328] sm:$0xff] %v352_v37  ;;  %v354_v38 = vld [vmem:[%s7275_s26 + $0x660] sm:$0xff]  ;;  %v356_v39 = vld [vmem:[%s7275_s26 + $0x668] sm:$0xff] }
  0x46   : > { %v358_v40 = vld [vmem:[%s7275_s26 + $0x680] sm:$0xff]  ;;  %355 = vst [vmem:[%s7283_s27 + $0x330] sm:$0xff] %v354_v38  ;;  %357 = vst [vmem:[%s7283_s27 + $0x338] sm:$0xff] %v356_v39  ;;  %v360_v41 = vld [vmem:[%s7275_s26 + $0x688] sm:$0xff] }
  0x47   : > { %359 = vst [vmem:[%s7283_s27 + $0x340] sm:$0xff] %v358_v40  ;;  %v362_v42 = vld [vmem:[%s7275_s26 + $0x6a0] sm:$0xff]  ;;  %v364_v43 = vld [vmem:[%s7275_s26 + $0x6a8] sm:$0xff]  ;;  %361 = vst [vmem:[%s7283_s27 + $0x348] sm:$0xff] %v360_v41 }
  0x48   : > { %363 = vst [vmem:[%s7283_s27 + $0x350] sm:$0xff] %v362_v42  ;;  %365 = vst [vmem:[%s7283_s27 + $0x358] sm:$0xff] %v364_v43  ;;  %v366_v44 = vld [vmem:[%s7275_s26 + $0x6c0] sm:$0xff]  ;;  %v368_v45 = vld [vmem:[%s7275_s26 + $0x6c8] sm:$0xff] }
  0x49   : > { %v370_v46 = vld [vmem:[%s7275_s26 + $0x6e0] sm:$0xff]  ;;  %367 = vst [vmem:[%s7283_s27 + $0x360] sm:$0xff] %v366_v44  ;;  %369 = vst [vmem:[%s7283_s27 + $0x368] sm:$0xff] %v368_v45  ;;  %v372_v47 = vld [vmem:[%s7275_s26 + $0x6e8] sm:$0xff] }
  0x4a   : > { %371 = vst [vmem:[%s7283_s27 + $0x370] sm:$0xff] %v370_v46  ;;  %v374_v48 = vld [vmem:[%s7275_s26 + $0x700] sm:$0xff]  ;;  %v376_v49 = vld [vmem:[%s7275_s26 + $0x708] sm:$0xff]  ;;  %373 = vst [vmem:[%s7283_s27 + $0x378] sm:$0xff] %v372_v47 }
  0x4b   : > { %375 = vst [vmem:[%s7283_s27 + $0x380] sm:$0xff] %v374_v48  ;;  %377 = vst [vmem:[%s7283_s27 + $0x388] sm:$0xff] %v376_v49  ;;  %v378_v50 = vld [vmem:[%s7275_s26 + $0x720] sm:$0xff]  ;;  %v380_v51 = vld [vmem:[%s7275_s26 + $0x728] sm:$0xff] }
  0x4c   : > { %v382_v52 = vld [vmem:[%s7275_s26 + $0x740] sm:$0xff]  ;;  %379 = vst [vmem:[%s7283_s27 + $0x390] sm:$0xff] %v378_v50  ;;  %381 = vst [vmem:[%s7283_s27 + $0x398] sm:$0xff] %v380_v51  ;;  %v384_v53 = vld [vmem:[%s7275_s26 + $0x748] sm:$0xff] }
  0x4d   : > { %383 = vst [vmem:[%s7283_s27 + $0x3a0] sm:$0xff] %v382_v52  ;;  %v386_v54 = vld [vmem:[%s7275_s26 + $0x760] sm:$0xff]  ;;  %v388_v55 = vld [vmem:[%s7275_s26 + $0x768] sm:$0xff]  ;;  %385 = vst [vmem:[%s7283_s27 + $0x3a8] sm:$0xff] %v384_v53 }
  0x4e   : > { %387 = vst [vmem:[%s7283_s27 + $0x3b0] sm:$0xff] %v386_v54  ;;  %389 = vst [vmem:[%s7283_s27 + $0x3b8] sm:$0xff] %v388_v55  ;;  %v390_v56 = vld [vmem:[%s7275_s26 + $0x780] sm:$0xff]  ;;  %v392_v57 = vld [vmem:[%s7275_s26 + $0x788] sm:$0xff] }
  0x4f   : > { %v394_v58 = vld [vmem:[%s7275_s26 + $0x7a0] sm:$0xff]  ;;  %391 = vst [vmem:[%s7283_s27 + $0x3c0] sm:$0xff] %v390_v56  ;;  %393 = vst [vmem:[%s7283_s27 + $0x3c8] sm:$0xff] %v392_v57  ;;  %v396_v59 = vld [vmem:[%s7275_s26 + $0x7a8] sm:$0xff] }
  0x50   : > { %395 = vst [vmem:[%s7283_s27 + $0x3d0] sm:$0xff] %v394_v58  ;;  %v398_v60 = vld [vmem:[%s7275_s26 + $0x7c0] sm:$0xff]  ;;  %v400_v61 = vld [vmem:[%s7275_s26 + $0x7c8] sm:$0xff]  ;;  %397 = vst [vmem:[%s7283_s27 + $0x3d8] sm:$0xff] %v396_v59 }
  0x51   : > { %399 = vst [vmem:[%s7283_s27 + $0x3e0] sm:$0xff] %v398_v60  ;;  %401 = vst [vmem:[%s7283_s27 + $0x3e8] sm:$0xff] %v400_v61  ;;  %v402_v62 = vld [vmem:[%s7275_s26 + $0x7e0] sm:$0xff]  ;;  %v404_v63 = vld [vmem:[%s7275_s26 + $0x7e8] sm:$0xff] }
  0x52   : > { %v406_v0 = vld [vmem:[%s7275_s26 + $0x800] sm:$0xff]  ;;  %403 = vst [vmem:[%s7283_s27 + $0x3f0] sm:$0xff] %v402_v62  ;;  %405 = vst [vmem:[%s7283_s27 + $0x3f8] sm:$0xff] %v404_v63  ;;  %v408_v1 = vld [vmem:[%s7275_s26 + $0x808] sm:$0xff] }
  0x53   : > { %407 = vst [vmem:[%s7283_s27 + $0x400] sm:$0xff] %v406_v0  ;;  %v410_v2 = vld [vmem:[%s7275_s26 + $0x820] sm:$0xff]  ;;  %v412_v3 = vld [vmem:[%s7275_s26 + $0x828] sm:$0xff]  ;;  %409 = vst [vmem:[%s7283_s27 + $0x408] sm:$0xff] %v408_v1 }
  0x54   : > { %411 = vst [vmem:[%s7283_s27 + $0x410] sm:$0xff] %v410_v2  ;;  %413 = vst [vmem:[%s7283_s27 + $0x418] sm:$0xff] %v412_v3  ;;  %v414_v4 = vld [vmem:[%s7275_s26 + $0x840] sm:$0xff]  ;;  %v416_v5 = vld [vmem:[%s7275_s26 + $0x848] sm:$0xff] }
  0x55   : > { %v418_v6 = vld [vmem:[%s7275_s26 + $0x860] sm:$0xff]  ;;  %415 = vst [vmem:[%s7283_s27 + $0x420] sm:$0xff] %v414_v4  ;;  %417 = vst [vmem:[%s7283_s27 + $0x428] sm:$0xff] %v416_v5  ;;  %v420_v7 = vld [vmem:[%s7275_s26 + $0x868] sm:$0xff] }
  0x56   : > { %419 = vst [vmem:[%s7283_s27 + $0x430] sm:$0xff] %v418_v6  ;;  %v422_v8 = vld [vmem:[%s7275_s26 + $0x880] sm:$0xff]  ;;  %v424_v9 = vld [vmem:[%s7275_s26 + $0x888] sm:$0xff]  ;;  %421 = vst [vmem:[%s7283_s27 + $0x438] sm:$0xff] %v420_v7 }
  0x57   : > { %423 = vst [vmem:[%s7283_s27 + $0x440] sm:$0xff] %v422_v8  ;;  %425 = vst [vmem:[%s7283_s27 + $0x448] sm:$0xff] %v424_v9  ;;  %v426_v10 = vld [vmem:[%s7275_s26 + $0x8a0] sm:$0xff]  ;;  %v428_v11 = vld [vmem:[%s7275_s26 + $0x8a8] sm:$0xff] }
  0x58   : > { %v430_v12 = vld [vmem:[%s7275_s26 + $0x8c0] sm:$0xff]  ;;  %427 = vst [vmem:[%s7283_s27 + $0x450] sm:$0xff] %v426_v10  ;;  %429 = vst [vmem:[%s7283_s27 + $0x458] sm:$0xff] %v428_v11  ;;  %v432_v13 = vld [vmem:[%s7275_s26 + $0x8c8] sm:$0xff] }
  0x59   : > { %431 = vst [vmem:[%s7283_s27 + $0x460] sm:$0xff] %v430_v12  ;;  %v434_v14 = vld [vmem:[%s7275_s26 + $0x8e0] sm:$0xff]  ;;  %v436_v15 = vld [vmem:[%s7275_s26 + $0x8e8] sm:$0xff]  ;;  %433 = vst [vmem:[%s7283_s27 + $0x468] sm:$0xff] %v432_v13 }
  0x5a   : > { %435 = vst [vmem:[%s7283_s27 + $0x470] sm:$0xff] %v434_v14  ;;  %437 = vst [vmem:[%s7283_s27 + $0x478] sm:$0xff] %v436_v15  ;;  %v438_v16 = vld [vmem:[%s7275_s26 + $0x900] sm:$0xff]  ;;  %v440_v17 = vld [vmem:[%s7275_s26 + $0x908] sm:$0xff] }
  0x5b   : > { %v442_v18 = vld [vmem:[%s7275_s26 + $0x920] sm:$0xff]  ;;  %439 = vst [vmem:[%s7283_s27 + $0x480] sm:$0xff] %v438_v16  ;;  %441 = vst [vmem:[%s7283_s27 + $0x488] sm:$0xff] %v440_v17  ;;  %v444_v19 = vld [vmem:[%s7275_s26 + $0x928] sm:$0xff] }
  0x5c   : > { %443 = vst [vmem:[%s7283_s27 + $0x490] sm:$0xff] %v442_v18  ;;  %v446_v20 = vld [vmem:[%s7275_s26 + $0x940] sm:$0xff]  ;;  %v448_v21 = vld [vmem:[%s7275_s26 + $0x948] sm:$0xff]  ;;  %445 = vst [vmem:[%s7283_s27 + $0x498] sm:$0xff] %v444_v19 }
  0x5d   : > { %447 = vst [vmem:[%s7283_s27 + $0x4a0] sm:$0xff] %v446_v20  ;;  %449 = vst [vmem:[%s7283_s27 + $0x4a8] sm:$0xff] %v448_v21  ;;  %v450_v22 = vld [vmem:[%s7275_s26 + $0x960] sm:$0xff]  ;;  %v452_v23 = vld [vmem:[%s7275_s26 + $0x968] sm:$0xff] }
  0x5e   : > { %v454_v24 = vld [vmem:[%s7275_s26 + $0x980] sm:$0xff]  ;;  %451 = vst [vmem:[%s7283_s27 + $0x4b0] sm:$0xff] %v450_v22  ;;  %453 = vst [vmem:[%s7283_s27 + $0x4b8] sm:$0xff] %v452_v23  ;;  %v456_v25 = vld [vmem:[%s7275_s26 + $0x988] sm:$0xff] }
  0x5f   : > { %455 = vst [vmem:[%s7283_s27 + $0x4c0] sm:$0xff] %v454_v24  ;;  %v458_v26 = vld [vmem:[%s7275_s26 + $0x9a0] sm:$0xff]  ;;  %v460_v27 = vld [vmem:[%s7275_s26 + $0x9a8] sm:$0xff]  ;;  %457 = vst [vmem:[%s7283_s27 + $0x4c8] sm:$0xff] %v456_v25 }
  0x60   : > { %459 = vst [vmem:[%s7283_s27 + $0x4d0] sm:$0xff] %v458_v26  ;;  %461 = vst [vmem:[%s7283_s27 + $0x4d8] sm:$0xff] %v460_v27  ;;  %v462_v28 = vld [vmem:[%s7275_s26 + $0x9c0] sm:$0xff]  ;;  %v464_v29 = vld [vmem:[%s7275_s26 + $0x9c8] sm:$0xff] }
  0x61   : > { %v466_v30 = vld [vmem:[%s7275_s26 + $0x9e0] sm:$0xff]  ;;  %463 = vst [vmem:[%s7283_s27 + $0x4e0] sm:$0xff] %v462_v28  ;;  %465 = vst [vmem:[%s7283_s27 + $0x4e8] sm:$0xff] %v464_v29  ;;  %v468_v31 = vld [vmem:[%s7275_s26 + $0x9e8] sm:$0xff] }
  0x62   : > { %467 = vst [vmem:[%s7283_s27 + $0x4f0] sm:$0xff] %v466_v30  ;;  %v470_v32 = vld [vmem:[%s7275_s26 + $0xa00] sm:$0xff]  ;;  %v472_v33 = vld [vmem:[%s7275_s26 + $0xa08] sm:$0xff]  ;;  %469 = vst [vmem:[%s7283_s27 + $0x4f8] sm:$0xff] %v468_v31 }
  0x63   : > { %471 = vst [vmem:[%s7283_s27 + $0x500] sm:$0xff] %v470_v32  ;;  %473 = vst [vmem:[%s7283_s27 + $0x508] sm:$0xff] %v472_v33  ;;  %v474_v34 = vld [vmem:[%s7275_s26 + $0xa20] sm:$0xff]  ;;  %v476_v35 = vld [vmem:[%s7275_s26 + $0xa28] sm:$0xff] }
  0x64   : > { %v478_v36 = vld [vmem:[%s7275_s26 + $0xa40] sm:$0xff]  ;;  %475 = vst [vmem:[%s7283_s27 + $0x510] sm:$0xff] %v474_v34  ;;  %477 = vst [vmem:[%s7283_s27 + $0x518] sm:$0xff] %v476_v35  ;;  %v480_v37 = vld [vmem:[%s7275_s26 + $0xa48] sm:$0xff] }
  0x65   : > { %479 = vst [vmem:[%s7283_s27 + $0x520] sm:$0xff] %v478_v36  ;;  %v482_v38 = vld [vmem:[%s7275_s26 + $0xa60] sm:$0xff]  ;;  %v484_v39 = vld [vmem:[%s7275_s26 + $0xa68] sm:$0xff]  ;;  %481 = vst [vmem:[%s7283_s27 + $0x528] sm:$0xff] %v480_v37 }
  0x66   : > { %483 = vst [vmem:[%s7283_s27 + $0x530] sm:$0xff] %v482_v38  ;;  %485 = vst [vmem:[%s7283_s27 + $0x538] sm:$0xff] %v484_v39  ;;  %v486_v40 = vld [vmem:[%s7275_s26 + $0xa80] sm:$0xff]  ;;  %v488_v41 = vld [vmem:[%s7275_s26 + $0xa88] sm:$0xff] }
  0x67   : > { %v490_v42 = vld [vmem:[%s7275_s26 + $0xaa0] sm:$0xff]  ;;  %487 = vst [vmem:[%s7283_s27 + $0x540] sm:$0xff] %v486_v40  ;;  %489 = vst [vmem:[%s7283_s27 + $0x548] sm:$0xff] %v488_v41  ;;  %v492_v43 = vld [vmem:[%s7275_s26 + $0xaa8] sm:$0xff] }
  0x68   : > { %491 = vst [vmem:[%s7283_s27 + $0x550] sm:$0xff] %v490_v42  ;;  %v494_v44 = vld [vmem:[%s7275_s26 + $0xac0] sm:$0xff]  ;;  %v496_v45 = vld [vmem:[%s7275_s26 + $0xac8] sm:$0xff]  ;;  %493 = vst [vmem:[%s7283_s27 + $0x558] sm:$0xff] %v492_v43 }
  0x69   : > { %495 = vst [vmem:[%s7283_s27 + $0x560] sm:$0xff] %v494_v44  ;;  %497 = vst [vmem:[%s7283_s27 + $0x568] sm:$0xff] %v496_v45  ;;  %v498_v46 = vld [vmem:[%s7275_s26 + $0xae0] sm:$0xff]  ;;  %v500_v47 = vld [vmem:[%s7275_s26 + $0xae8] sm:$0xff] }
  0x6a   : > { %v502_v48 = vld [vmem:[%s7275_s26 + $0xb00] sm:$0xff]  ;;  %499 = vst [vmem:[%s7283_s27 + $0x570] sm:$0xff] %v498_v46  ;;  %501 = vst [vmem:[%s7283_s27 + $0x578] sm:$0xff] %v500_v47  ;;  %v504_v49 = vld [vmem:[%s7275_s26 + $0xb08] sm:$0xff] }
  0x6b   : > { %503 = vst [vmem:[%s7283_s27 + $0x580] sm:$0xff] %v502_v48  ;;  %v506_v50 = vld [vmem:[%s7275_s26 + $0xb20] sm:$0xff]  ;;  %v508_v51 = vld [vmem:[%s7275_s26 + $0xb28] sm:$0xff]  ;;  %505 = vst [vmem:[%s7283_s27 + $0x588] sm:$0xff] %v504_v49 }
  0x6c   : > { %507 = vst [vmem:[%s7283_s27 + $0x590] sm:$0xff] %v506_v50  ;;  %509 = vst [vmem:[%s7283_s27 + $0x598] sm:$0xff] %v508_v51  ;;  %v510_v52 = vld [vmem:[%s7275_s26 + $0xb40] sm:$0xff]  ;;  %v512_v53 = vld [vmem:[%s7275_s26 + $0xb48] sm:$0xff] }
  0x6d   : > { %v514_v54 = vld [vmem:[%s7275_s26 + $0xb60] sm:$0xff]  ;;  %511 = vst [vmem:[%s7283_s27 + $0x5a0] sm:$0xff] %v510_v52  ;;  %513 = vst [vmem:[%s7283_s27 + $0x5a8] sm:$0xff] %v512_v53  ;;  %v516_v55 = vld [vmem:[%s7275_s26 + $0xb68] sm:$0xff] }
  0x6e   : > { %515 = vst [vmem:[%s7283_s27 + $0x5b0] sm:$0xff] %v514_v54  ;;  %v518_v56 = vld [vmem:[%s7275_s26 + $0xb80] sm:$0xff]  ;;  %v520_v57 = vld [vmem:[%s7275_s26 + $0xb88] sm:$0xff]  ;;  %517 = vst [vmem:[%s7283_s27 + $0x5b8] sm:$0xff] %v516_v55 }
  0x6f   : > { %519 = vst [vmem:[%s7283_s27 + $0x5c0] sm:$0xff] %v518_v56  ;;  %521 = vst [vmem:[%s7283_s27 + $0x5c8] sm:$0xff] %v520_v57  ;;  %v522_v58 = vld [vmem:[%s7275_s26 + $0xba0] sm:$0xff]  ;;  %v524_v59 = vld [vmem:[%s7275_s26 + $0xba8] sm:$0xff] }
  0x70   : > { %v526_v60 = vld [vmem:[%s7275_s26 + $0xbc0] sm:$0xff]  ;;  %523 = vst [vmem:[%s7283_s27 + $0x5d0] sm:$0xff] %v522_v58  ;;  %525 = vst [vmem:[%s7283_s27 + $0x5d8] sm:$0xff] %v524_v59  ;;  %v528_v61 = vld [vmem:[%s7275_s26 + $0xbc8] sm:$0xff] }
  0x71   : > { %527 = vst [vmem:[%s7283_s27 + $0x5e0] sm:$0xff] %v526_v60  ;;  %v530_v62 = vld [vmem:[%s7275_s26 + $0xbe0] sm:$0xff]  ;;  %v532_v63 = vld [vmem:[%s7275_s26 + $0xbe8] sm:$0xff]  ;;  %529 = vst [vmem:[%s7283_s27 + $0x5e8] sm:$0xff] %v528_v61 }
  0x72   : > { %531 = vst [vmem:[%s7283_s27 + $0x5f0] sm:$0xff] %v530_v62  ;;  %533 = vst [vmem:[%s7283_s27 + $0x5f8] sm:$0xff] %v532_v63  ;;  %v534_v0 = vld [vmem:[%s7275_s26 + $0xc00] sm:$0xff]  ;;  %v536_v1 = vld [vmem:[%s7275_s26 + $0xc08] sm:$0xff] }
  0x73   : > { %v538_v2 = vld [vmem:[%s7275_s26 + $0xc20] sm:$0xff]  ;;  %535 = vst [vmem:[%s7283_s27 + $0x600] sm:$0xff] %v534_v0  ;;  %537 = vst [vmem:[%s7283_s27 + $0x608] sm:$0xff] %v536_v1  ;;  %v540_v3 = vld [vmem:[%s7275_s26 + $0xc28] sm:$0xff] }
  0x74   : > { %539 = vst [vmem:[%s7283_s27 + $0x610] sm:$0xff] %v538_v2  ;;  %v542_v4 = vld [vmem:[%s7275_s26 + $0xc40] sm:$0xff]  ;;  %v544_v5 = vld [vmem:[%s7275_s26 + $0xc48] sm:$0xff]  ;;  %541 = vst [vmem:[%s7283_s27 + $0x618] sm:$0xff] %v540_v3 }
  0x75   : > { %543 = vst [vmem:[%s7283_s27 + $0x620] sm:$0xff] %v542_v4  ;;  %545 = vst [vmem:[%s7283_s27 + $0x628] sm:$0xff] %v544_v5  ;;  %v546_v6 = vld [vmem:[%s7275_s26 + $0xc60] sm:$0xff]  ;;  %v548_v7 = vld [vmem:[%s7275_s26 + $0xc68] sm:$0xff] }
  0x76   : > { %v550_v8 = vld [vmem:[%s7275_s26 + $0xc80] sm:$0xff]  ;;  %547 = vst [vmem:[%s7283_s27 + $0x630] sm:$0xff] %v546_v6  ;;  %549 = vst [vmem:[%s7283_s27 + $0x638] sm:$0xff] %v548_v7  ;;  %v552_v9 = vld [vmem:[%s7275_s26 + $0xc88] sm:$0xff] }
  0x77   : > { %551 = vst [vmem:[%s7283_s27 + $0x640] sm:$0xff] %v550_v8  ;;  %v554_v10 = vld [vmem:[%s7275_s26 + $0xca0] sm:$0xff]  ;;  %v556_v11 = vld [vmem:[%s7275_s26 + $0xca8] sm:$0xff]  ;;  %553 = vst [vmem:[%s7283_s27 + $0x648] sm:$0xff] %v552_v9 }
  0x78   : > { %555 = vst [vmem:[%s7283_s27 + $0x650] sm:$0xff] %v554_v10  ;;  %557 = vst [vmem:[%s7283_s27 + $0x658] sm:$0xff] %v556_v11  ;;  %v558_v12 = vld [vmem:[%s7275_s26 + $0xcc0] sm:$0xff]  ;;  %v560_v13 = vld [vmem:[%s7275_s26 + $0xcc8] sm:$0xff] }
  0x79   : > { %v562_v14 = vld [vmem:[%s7275_s26 + $0xce0] sm:$0xff]  ;;  %559 = vst [vmem:[%s7283_s27 + $0x660] sm:$0xff] %v558_v12  ;;  %561 = vst [vmem:[%s7283_s27 + $0x668] sm:$0xff] %v560_v13  ;;  %v564_v15 = vld [vmem:[%s7275_s26 + $0xce8] sm:$0xff] }
  0x7a   : > { %563 = vst [vmem:[%s7283_s27 + $0x670] sm:$0xff] %v562_v14  ;;  %v566_v16 = vld [vmem:[%s7275_s26 + $0xd00] sm:$0xff]  ;;  %v568_v17 = vld [vmem:[%s7275_s26 + $0xd08] sm:$0xff]  ;;  %565 = vst [vmem:[%s7283_s27 + $0x678] sm:$0xff] %v564_v15 }
  0x7b   : > { %567 = vst [vmem:[%s7283_s27 + $0x680] sm:$0xff] %v566_v16  ;;  %569 = vst [vmem:[%s7283_s27 + $0x688] sm:$0xff] %v568_v17  ;;  %v570_v18 = vld [vmem:[%s7275_s26 + $0xd20] sm:$0xff]  ;;  %v572_v19 = vld [vmem:[%s7275_s26 + $0xd28] sm:$0xff] }
  0x7c   : > { %v574_v20 = vld [vmem:[%s7275_s26 + $0xd40] sm:$0xff]  ;;  %571 = vst [vmem:[%s7283_s27 + $0x690] sm:$0xff] %v570_v18  ;;  %573 = vst [vmem:[%s7283_s27 + $0x698] sm:$0xff] %v572_v19  ;;  %v576_v21 = vld [vmem:[%s7275_s26 + $0xd48] sm:$0xff] }
  0x7d   : > { %575 = vst [vmem:[%s7283_s27 + $0x6a0] sm:$0xff] %v574_v20  ;;  %v578_v22 = vld [vmem:[%s7275_s26 + $0xd60] sm:$0xff]  ;;  %v580_v23 = vld [vmem:[%s7275_s26 + $0xd68] sm:$0xff]  ;;  %577 = vst [vmem:[%s7283_s27 + $0x6a8] sm:$0xff] %v576_v21 }
  0x7e   : > { %579 = vst [vmem:[%s7283_s27 + $0x6b0] sm:$0xff] %v578_v22  ;;  %581 = vst [vmem:[%s7283_s27 + $0x6b8] sm:$0xff] %v580_v23  ;;  %v582_v24 = vld [vmem:[%s7275_s26 + $0xd80] sm:$0xff]  ;;  %v584_v25 = vld [vmem:[%s7275_s26 + $0xd88] sm:$0xff] }
  0x7f   : > { %v586_v26 = vld [vmem:[%s7275_s26 + $0xda0] sm:$0xff]  ;;  %583 = vst [vmem:[%s7283_s27 + $0x6c0] sm:$0xff] %v582_v24  ;;  %585 = vst [vmem:[%s7283_s27 + $0x6c8] sm:$0xff] %v584_v25  ;;  %v588_v27 = vld [vmem:[%s7275_s26 + $0xda8] sm:$0xff] }
  0x80   : > { %587 = vst [vmem:[%s7283_s27 + $0x6d0] sm:$0xff] %v586_v26  ;;  %v590_v28 = vld [vmem:[%s7275_s26 + $0xdc0] sm:$0xff]  ;;  %v592_v29 = vld [vmem:[%s7275_s26 + $0xdc8] sm:$0xff]  ;;  %589 = vst [vmem:[%s7283_s27 + $0x6d8] sm:$0xff] %v588_v27 }
  0x81   : > { %591 = vst [vmem:[%s7283_s27 + $0x6e0] sm:$0xff] %v590_v28  ;;  %593 = vst [vmem:[%s7283_s27 + $0x6e8] sm:$0xff] %v592_v29  ;;  %v594_v30 = vld [vmem:[%s7275_s26 + $0xde0] sm:$0xff]  ;;  %v596_v31 = vld [vmem:[%s7275_s26 + $0xde8] sm:$0xff] }
  0x82   : > { %v598_v32 = vld [vmem:[%s7275_s26 + $0xe00] sm:$0xff]  ;;  %595 = vst [vmem:[%s7283_s27 + $0x6f0] sm:$0xff] %v594_v30  ;;  %597 = vst [vmem:[%s7283_s27 + $0x6f8] sm:$0xff] %v596_v31  ;;  %v600_v33 = vld [vmem:[%s7275_s26 + $0xe08] sm:$0xff] }
  0x83   : > { %599 = vst [vmem:[%s7283_s27 + $0x700] sm:$0xff] %v598_v32  ;;  %v602_v34 = vld [vmem:[%s7275_s26 + $0xe20] sm:$0xff]  ;;  %v604_v35 = vld [vmem:[%s7275_s26 + $0xe28] sm:$0xff]  ;;  %601 = vst [vmem:[%s7283_s27 + $0x708] sm:$0xff] %v600_v33 }
  0x84   : > { %603 = vst [vmem:[%s7283_s27 + $0x710] sm:$0xff] %v602_v34  ;;  %605 = vst [vmem:[%s7283_s27 + $0x718] sm:$0xff] %v604_v35  ;;  %v606_v36 = vld [vmem:[%s7275_s26 + $0xe40] sm:$0xff]  ;;  %v608_v37 = vld [vmem:[%s7275_s26 + $0xe48] sm:$0xff] }
  0x85   : > { %v610_v38 = vld [vmem:[%s7275_s26 + $0xe60] sm:$0xff]  ;;  %607 = vst [vmem:[%s7283_s27 + $0x720] sm:$0xff] %v606_v36  ;;  %609 = vst [vmem:[%s7283_s27 + $0x728] sm:$0xff] %v608_v37  ;;  %v612_v39 = vld [vmem:[%s7275_s26 + $0xe68] sm:$0xff] }
  0x86   : > { %611 = vst [vmem:[%s7283_s27 + $0x730] sm:$0xff] %v610_v38  ;;  %v614_v40 = vld [vmem:[%s7275_s26 + $0xe80] sm:$0xff]  ;;  %v616_v41 = vld [vmem:[%s7275_s26 + $0xe88] sm:$0xff]  ;;  %613 = vst [vmem:[%s7283_s27 + $0x738] sm:$0xff] %v612_v39 }
  0x87   : > { %615 = vst [vmem:[%s7283_s27 + $0x740] sm:$0xff] %v614_v40  ;;  %617 = vst [vmem:[%s7283_s27 + $0x748] sm:$0xff] %v616_v41  ;;  %v618_v42 = vld [vmem:[%s7275_s26 + $0xea0] sm:$0xff]  ;;  %v620_v43 = vld [vmem:[%s7275_s26 + $0xea8] sm:$0xff] }
  0x88   : > { %v622_v44 = vld [vmem:[%s7275_s26 + $0xec0] sm:$0xff]  ;;  %619 = vst [vmem:[%s7283_s27 + $0x750] sm:$0xff] %v618_v42  ;;  %621 = vst [vmem:[%s7283_s27 + $0x758] sm:$0xff] %v620_v43  ;;  %v624_v45 = vld [vmem:[%s7275_s26 + $0xec8] sm:$0xff] }
  0x89   : > { %623 = vst [vmem:[%s7283_s27 + $0x760] sm:$0xff] %v622_v44  ;;  %v626_v46 = vld [vmem:[%s7275_s26 + $0xee0] sm:$0xff]  ;;  %v628_v47 = vld [vmem:[%s7275_s26 + $0xee8] sm:$0xff]  ;;  %625 = vst [vmem:[%s7283_s27 + $0x768] sm:$0xff] %v624_v45 }
  0x8a   : > { %627 = vst [vmem:[%s7283_s27 + $0x770] sm:$0xff] %v626_v46  ;;  %629 = vst [vmem:[%s7283_s27 + $0x778] sm:$0xff] %v628_v47  ;;  %v630_v48 = vld [vmem:[%s7275_s26 + $0xf00] sm:$0xff]  ;;  %v632_v49 = vld [vmem:[%s7275_s26 + $0xf08] sm:$0xff] }
  0x8b   : > { %v634_v50 = vld [vmem:[%s7275_s26 + $0xf20] sm:$0xff]  ;;  %631 = vst [vmem:[%s7283_s27 + $0x780] sm:$0xff] %v630_v48  ;;  %633 = vst [vmem:[%s7283_s27 + $0x788] sm:$0xff] %v632_v49  ;;  %v636_v51 = vld [vmem:[%s7275_s26 + $0xf28] sm:$0xff] }
  0x8c   : > { %635 = vst [vmem:[%s7283_s27 + $0x790] sm:$0xff] %v634_v50  ;;  %v638_v52 = vld [vmem:[%s7275_s26 + $0xf40] sm:$0xff]  ;;  %v640_v53 = vld [vmem:[%s7275_s26 + $0xf48] sm:$0xff]  ;;  %637 = vst [vmem:[%s7283_s27 + $0x798] sm:$0xff] %v636_v51 }
  0x8d   : > { %639 = vst [vmem:[%s7283_s27 + $0x7a0] sm:$0xff] %v638_v52  ;;  %641 = vst [vmem:[%s7283_s27 + $0x7a8] sm:$0xff] %v640_v53  ;;  %v642_v54 = vld [vmem:[%s7275_s26 + $0xf60] sm:$0xff]  ;;  %v644_v55 = vld [vmem:[%s7275_s26 + $0xf68] sm:$0xff] }
  0x8e   : > { %v646_v56 = vld [vmem:[%s7275_s26 + $0xf80] sm:$0xff]  ;;  %643 = vst [vmem:[%s7283_s27 + $0x7b0] sm:$0xff] %v642_v54  ;;  %645 = vst [vmem:[%s7283_s27 + $0x7b8] sm:$0xff] %v644_v55  ;;  %v648_v57 = vld [vmem:[%s7275_s26 + $0xf88] sm:$0xff] }
  0x8f   : > { %647 = vst [vmem:[%s7283_s27 + $0x7c0] sm:$0xff] %v646_v56  ;;  %v650_v58 = vld [vmem:[%s7275_s26 + $0xfa0] sm:$0xff]  ;;  %v652_v59 = vld [vmem:[%s7275_s26 + $0xfa8] sm:$0xff]  ;;  %649 = vst [vmem:[%s7283_s27 + $0x7c8] sm:$0xff] %v648_v57 }
  0x90   : > { %651 = vst [vmem:[%s7283_s27 + $0x7d0] sm:$0xff] %v650_v58  ;;  %653 = vst [vmem:[%s7283_s27 + $0x7d8] sm:$0xff] %v652_v59  ;;  %v654_v60 = vld [vmem:[%s7275_s26 + $0xfc0] sm:$0xff]  ;;  %v656_v61 = vld [vmem:[%s7275_s26 + $0xfc8] sm:$0xff] }
  0x91   : > { %v658_v62 = vld [vmem:[%s7275_s26 + $0xfe0] sm:$0xff]  ;;  %655 = vst [vmem:[%s7283_s27 + $0x7e0] sm:$0xff] %v654_v60  ;;  %657 = vst [vmem:[%s7283_s27 + $0x7e8] sm:$0xff] %v656_v61  ;;  %v660_v63 = vld [vmem:[%s7275_s26 + $0xfe8] sm:$0xff] }
  0x92   : > { %659 = vst [vmem:[%s7283_s27 + $0x7f0] sm:$0xff] %v658_v62  ;;  %v662_v0 = vld [vmem:[%s7275_s26 + $0x1000] sm:$0xff]  ;;  %v664_v1 = vld [vmem:[%s7275_s26 + $0x1008] sm:$0xff]  ;;  %661 = vst [vmem:[%s7283_s27 + $0x7f8] sm:$0xff] %v660_v63 }
  0x93   : > { %663 = vst [vmem:[%s7283_s27 + $0x800] sm:$0xff] %v662_v0  ;;  %665 = vst [vmem:[%s7283_s27 + $0x808] sm:$0xff] %v664_v1  ;;  %v666_v2 = vld [vmem:[%s7275_s26 + $0x1020] sm:$0xff]  ;;  %v668_v3 = vld [vmem:[%s7275_s26 + $0x1028] sm:$0xff] }
  0x94   : > { %v670_v4 = vld [vmem:[%s7275_s26 + $0x1040] sm:$0xff]  ;;  %667 = vst [vmem:[%s7283_s27 + $0x810] sm:$0xff] %v666_v2  ;;  %669 = vst [vmem:[%s7283_s27 + $0x818] sm:$0xff] %v668_v3  ;;  %v672_v5 = vld [vmem:[%s7275_s26 + $0x1048] sm:$0xff] }
  0x95   : > { %671 = vst [vmem:[%s7283_s27 + $0x820] sm:$0xff] %v670_v4  ;;  %v674_v6 = vld [vmem:[%s7275_s26 + $0x1060] sm:$0xff]  ;;  %v676_v7 = vld [vmem:[%s7275_s26 + $0x1068] sm:$0xff]  ;;  %673 = vst [vmem:[%s7283_s27 + $0x828] sm:$0xff] %v672_v5 }
  0x96   : > { %675 = vst [vmem:[%s7283_s27 + $0x830] sm:$0xff] %v674_v6  ;;  %677 = vst [vmem:[%s7283_s27 + $0x838] sm:$0xff] %v676_v7  ;;  %v678_v8 = vld [vmem:[%s7275_s26 + $0x1080] sm:$0xff]  ;;  %v680_v9 = vld [vmem:[%s7275_s26 + $0x1088] sm:$0xff] }
  0x97   : > { %v682_v10 = vld [vmem:[%s7275_s26 + $0x10a0] sm:$0xff]  ;;  %679 = vst [vmem:[%s7283_s27 + $0x840] sm:$0xff] %v678_v8  ;;  %681 = vst [vmem:[%s7283_s27 + $0x848] sm:$0xff] %v680_v9  ;;  %v684_v11 = vld [vmem:[%s7275_s26 + $0x10a8] sm:$0xff] }
  0x98   : > { %683 = vst [vmem:[%s7283_s27 + $0x850] sm:$0xff] %v682_v10  ;;  %v686_v12 = vld [vmem:[%s7275_s26 + $0x10c0] sm:$0xff]  ;;  %v688_v13 = vld [vmem:[%s7275_s26 + $0x10c8] sm:$0xff]  ;;  %685 = vst [vmem:[%s7283_s27 + $0x858] sm:$0xff] %v684_v11 }
  0x99   : > { %687 = vst [vmem:[%s7283_s27 + $0x860] sm:$0xff] %v686_v12  ;;  %689 = vst [vmem:[%s7283_s27 + $0x868] sm:$0xff] %v688_v13  ;;  %v690_v14 = vld [vmem:[%s7275_s26 + $0x10e0] sm:$0xff]  ;;  %v692_v15 = vld [vmem:[%s7275_s26 + $0x10e8] sm:$0xff] }
  0x9a   : > { %v694_v16 = vld [vmem:[%s7275_s26 + $0x1100] sm:$0xff]  ;;  %691 = vst [vmem:[%s7283_s27 + $0x870] sm:$0xff] %v690_v14  ;;  %693 = vst [vmem:[%s7283_s27 + $0x878] sm:$0xff] %v692_v15  ;;  %v696_v17 = vld [vmem:[%s7275_s26 + $0x1108] sm:$0xff] }
  0x9b   : > { %695 = vst [vmem:[%s7283_s27 + $0x880] sm:$0xff] %v694_v16  ;;  %v698_v18 = vld [vmem:[%s7275_s26 + $0x1120] sm:$0xff]  ;;  %v700_v19 = vld [vmem:[%s7275_s26 + $0x1128] sm:$0xff]  ;;  %697 = vst [vmem:[%s7283_s27 + $0x888] sm:$0xff] %v696_v17 }
  0x9c   : > { %699 = vst [vmem:[%s7283_s27 + $0x890] sm:$0xff] %v698_v18  ;;  %701 = vst [vmem:[%s7283_s27 + $0x898] sm:$0xff] %v700_v19  ;;  %v702_v20 = vld [vmem:[%s7275_s26 + $0x1140] sm:$0xff]  ;;  %v704_v21 = vld [vmem:[%s7275_s26 + $0x1148] sm:$0xff] }
  0x9d   : > { %v706_v22 = vld [vmem:[%s7275_s26 + $0x1160] sm:$0xff]  ;;  %703 = vst [vmem:[%s7283_s27 + $0x8a0] sm:$0xff] %v702_v20  ;;  %705 = vst [vmem:[%s7283_s27 + $0x8a8] sm:$0xff] %v704_v21  ;;  %v708_v23 = vld [vmem:[%s7275_s26 + $0x1168] sm:$0xff] }
  0x9e   : > { %707 = vst [vmem:[%s7283_s27 + $0x8b0] sm:$0xff] %v706_v22  ;;  %v710_v24 = vld [vmem:[%s7275_s26 + $0x1180] sm:$0xff]  ;;  %v712_v25 = vld [vmem:[%s7275_s26 + $0x1188] sm:$0xff]  ;;  %709 = vst [vmem:[%s7283_s27 + $0x8b8] sm:$0xff] %v708_v23 }
  0x9f   : > { %711 = vst [vmem:[%s7283_s27 + $0x8c0] sm:$0xff] %v710_v24  ;;  %713 = vst [vmem:[%s7283_s27 + $0x8c8] sm:$0xff] %v712_v25  ;;  %v714_v26 = vld [vmem:[%s7275_s26 + $0x11a0] sm:$0xff]  ;;  %v716_v27 = vld [vmem:[%s7275_s26 + $0x11a8] sm:$0xff] }
  0xa0   : > { %v718_v28 = vld [vmem:[%s7275_s26 + $0x11c0] sm:$0xff]  ;;  %715 = vst [vmem:[%s7283_s27 + $0x8d0] sm:$0xff] %v714_v26  ;;  %717 = vst [vmem:[%s7283_s27 + $0x8d8] sm:$0xff] %v716_v27  ;;  %v720_v29 = vld [vmem:[%s7275_s26 + $0x11c8] sm:$0xff] }
  0xa1   : > { %719 = vst [vmem:[%s7283_s27 + $0x8e0] sm:$0xff] %v718_v28  ;;  %v722_v30 = vld [vmem:[%s7275_s26 + $0x11e0] sm:$0xff]  ;;  %v724_v31 = vld [vmem:[%s7275_s26 + $0x11e8] sm:$0xff]  ;;  %721 = vst [vmem:[%s7283_s27 + $0x8e8] sm:$0xff] %v720_v29 }
  0xa2   : > { %723 = vst [vmem:[%s7283_s27 + $0x8f0] sm:$0xff] %v722_v30  ;;  %725 = vst [vmem:[%s7283_s27 + $0x8f8] sm:$0xff] %v724_v31  ;;  %v726_v32 = vld [vmem:[%s7275_s26 + $0x1200] sm:$0xff]  ;;  %v728_v33 = vld [vmem:[%s7275_s26 + $0x1208] sm:$0xff] }
  0xa3   : > { %v730_v34 = vld [vmem:[%s7275_s26 + $0x1220] sm:$0xff]  ;;  %727 = vst [vmem:[%s7283_s27 + $0x900] sm:$0xff] %v726_v32  ;;  %729 = vst [vmem:[%s7283_s27 + $0x908] sm:$0xff] %v728_v33  ;;  %v732_v35 = vld [vmem:[%s7275_s26 + $0x1228] sm:$0xff] }
  0xa4   : > { %731 = vst [vmem:[%s7283_s27 + $0x910] sm:$0xff] %v730_v34  ;;  %v734_v36 = vld [vmem:[%s7275_s26 + $0x1240] sm:$0xff]  ;;  %v736_v37 = vld [vmem:[%s7275_s26 + $0x1248] sm:$0xff]  ;;  %733 = vst [vmem:[%s7283_s27 + $0x918] sm:$0xff] %v732_v35 }
  0xa5   : > { %735 = vst [vmem:[%s7283_s27 + $0x920] sm:$0xff] %v734_v36  ;;  %737 = vst [vmem:[%s7283_s27 + $0x928] sm:$0xff] %v736_v37  ;;  %v738_v38 = vld [vmem:[%s7275_s26 + $0x1260] sm:$0xff]  ;;  %v740_v39 = vld [vmem:[%s7275_s26 + $0x1268] sm:$0xff] }
  0xa6   : > { %v742_v40 = vld [vmem:[%s7275_s26 + $0x1280] sm:$0xff]  ;;  %739 = vst [vmem:[%s7283_s27 + $0x930] sm:$0xff] %v738_v38  ;;  %741 = vst [vmem:[%s7283_s27 + $0x938] sm:$0xff] %v740_v39  ;;  %v744_v41 = vld [vmem:[%s7275_s26 + $0x1288] sm:$0xff] }
  0xa7   : > { %743 = vst [vmem:[%s7283_s27 + $0x940] sm:$0xff] %v742_v40  ;;  %v746_v42 = vld [vmem:[%s7275_s26 + $0x12a0] sm:$0xff]  ;;  %v748_v43 = vld [vmem:[%s7275_s26 + $0x12a8] sm:$0xff]  ;;  %745 = vst [vmem:[%s7283_s27 + $0x948] sm:$0xff] %v744_v41 }
  0xa8   : > { %747 = vst [vmem:[%s7283_s27 + $0x950] sm:$0xff] %v746_v42  ;;  %749 = vst [vmem:[%s7283_s27 + $0x958] sm:$0xff] %v748_v43  ;;  %v750_v44 = vld [vmem:[%s7275_s26 + $0x12c0] sm:$0xff]  ;;  %v752_v45 = vld [vmem:[%s7275_s26 + $0x12c8] sm:$0xff] }
  0xa9   : > { %v754_v46 = vld [vmem:[%s7275_s26 + $0x12e0] sm:$0xff]  ;;  %751 = vst [vmem:[%s7283_s27 + $0x960] sm:$0xff] %v750_v44  ;;  %753 = vst [vmem:[%s7283_s27 + $0x968] sm:$0xff] %v752_v45  ;;  %v756_v47 = vld [vmem:[%s7275_s26 + $0x12e8] sm:$0xff] }
  0xaa   : > { %755 = vst [vmem:[%s7283_s27 + $0x970] sm:$0xff] %v754_v46  ;;  %v758_v48 = vld [vmem:[%s7275_s26 + $0x1300] sm:$0xff]  ;;  %v760_v49 = vld [vmem:[%s7275_s26 + $0x1308] sm:$0xff]  ;;  %757 = vst [vmem:[%s7283_s27 + $0x978] sm:$0xff] %v756_v47 }
  0xab   : > { %759 = vst [vmem:[%s7283_s27 + $0x980] sm:$0xff] %v758_v48  ;;  %761 = vst [vmem:[%s7283_s27 + $0x988] sm:$0xff] %v760_v49  ;;  %v762_v50 = vld [vmem:[%s7275_s26 + $0x1320] sm:$0xff]  ;;  %v764_v51 = vld [vmem:[%s7275_s26 + $0x1328] sm:$0xff] }
  0xac   : > { %v766_v52 = vld [vmem:[%s7275_s26 + $0x1340] sm:$0xff]  ;;  %763 = vst [vmem:[%s7283_s27 + $0x990] sm:$0xff] %v762_v50  ;;  %765 = vst [vmem:[%s7283_s27 + $0x998] sm:$0xff] %v764_v51  ;;  %v768_v53 = vld [vmem:[%s7275_s26 + $0x1348] sm:$0xff] }
  0xad   : > { %767 = vst [vmem:[%s7283_s27 + $0x9a0] sm:$0xff] %v766_v52  ;;  %v770_v54 = vld [vmem:[%s7275_s26 + $0x1360] sm:$0xff]  ;;  %v772_v55 = vld [vmem:[%s7275_s26 + $0x1368] sm:$0xff]  ;;  %769 = vst [vmem:[%s7283_s27 + $0x9a8] sm:$0xff] %v768_v53 }
  0xae   : > { %771 = vst [vmem:[%s7283_s27 + $0x9b0] sm:$0xff] %v770_v54  ;;  %773 = vst [vmem:[%s7283_s27 + $0x9b8] sm:$0xff] %v772_v55  ;;  %v774_v56 = vld [vmem:[%s7275_s26 + $0x1380] sm:$0xff]  ;;  %v776_v57 = vld [vmem:[%s7275_s26 + $0x1388] sm:$0xff] }
  0xaf   : > { %v778_v58 = vld [vmem:[%s7275_s26 + $0x13a0] sm:$0xff]  ;;  %775 = vst [vmem:[%s7283_s27 + $0x9c0] sm:$0xff] %v774_v56  ;;  %777 = vst [vmem:[%s7283_s27 + $0x9c8] sm:$0xff] %v776_v57  ;;  %v780_v59 = vld [vmem:[%s7275_s26 + $0x13a8] sm:$0xff] }
  0xb0   : > { %779 = vst [vmem:[%s7283_s27 + $0x9d0] sm:$0xff] %v778_v58  ;;  %v782_v60 = vld [vmem:[%s7275_s26 + $0x13c0] sm:$0xff]  ;;  %v784_v61 = vld [vmem:[%s7275_s26 + $0x13c8] sm:$0xff]  ;;  %781 = vst [vmem:[%s7283_s27 + $0x9d8] sm:$0xff] %v780_v59 }
  0xb1   : > { %783 = vst [vmem:[%s7283_s27 + $0x9e0] sm:$0xff] %v782_v60  ;;  %785 = vst [vmem:[%s7283_s27 + $0x9e8] sm:$0xff] %v784_v61  ;;  %v786_v62 = vld [vmem:[%s7275_s26 + $0x13e0] sm:$0xff]  ;;  %v788_v63 = vld [vmem:[%s7275_s26 + $0x13e8] sm:$0xff] }
  0xb2   : > { %v790_v0 = vld [vmem:[%s7275_s26 + $0x1400] sm:$0xff]  ;;  %787 = vst [vmem:[%s7283_s27 + $0x9f0] sm:$0xff] %v786_v62  ;;  %789 = vst [vmem:[%s7283_s27 + $0x9f8] sm:$0xff] %v788_v63  ;;  %v792_v1 = vld [vmem:[%s7275_s26 + $0x1408] sm:$0xff] }
  0xb3   : > { %791 = vst [vmem:[%s7283_s27 + $0xa00] sm:$0xff] %v790_v0  ;;  %v794_v2 = vld [vmem:[%s7275_s26 + $0x1420] sm:$0xff]  ;;  %v796_v3 = vld [vmem:[%s7275_s26 + $0x1428] sm:$0xff]  ;;  %793 = vst [vmem:[%s7283_s27 + $0xa08] sm:$0xff] %v792_v1 }
  0xb4   : > { %795 = vst [vmem:[%s7283_s27 + $0xa10] sm:$0xff] %v794_v2  ;;  %797 = vst [vmem:[%s7283_s27 + $0xa18] sm:$0xff] %v796_v3  ;;  %v798_v4 = vld [vmem:[%s7275_s26 + $0x1440] sm:$0xff]  ;;  %v800_v5 = vld [vmem:[%s7275_s26 + $0x1448] sm:$0xff] }
  0xb5   : > { %v802_v6 = vld [vmem:[%s7275_s26 + $0x1460] sm:$0xff]  ;;  %799 = vst [vmem:[%s7283_s27 + $0xa20] sm:$0xff] %v798_v4  ;;  %801 = vst [vmem:[%s7283_s27 + $0xa28] sm:$0xff] %v800_v5  ;;  %v804_v7 = vld [vmem:[%s7275_s26 + $0x1468] sm:$0xff] }
  0xb6   : > { %803 = vst [vmem:[%s7283_s27 + $0xa30] sm:$0xff] %v802_v6  ;;  %v806_v8 = vld [vmem:[%s7275_s26 + $0x1480] sm:$0xff]  ;;  %v808_v9 = vld [vmem:[%s7275_s26 + $0x1488] sm:$0xff]  ;;  %805 = vst [vmem:[%s7283_s27 + $0xa38] sm:$0xff] %v804_v7 }
  0xb7   : > { %807 = vst [vmem:[%s7283_s27 + $0xa40] sm:$0xff] %v806_v8  ;;  %809 = vst [vmem:[%s7283_s27 + $0xa48] sm:$0xff] %v808_v9  ;;  %v810_v10 = vld [vmem:[%s7275_s26 + $0x14a0] sm:$0xff]  ;;  %v812_v11 = vld [vmem:[%s7275_s26 + $0x14a8] sm:$0xff] }
  0xb8   : > { %v814_v12 = vld [vmem:[%s7275_s26 + $0x14c0] sm:$0xff]  ;;  %811 = vst [vmem:[%s7283_s27 + $0xa50] sm:$0xff] %v810_v10  ;;  %813 = vst [vmem:[%s7283_s27 + $0xa58] sm:$0xff] %v812_v11  ;;  %v816_v13 = vld [vmem:[%s7275_s26 + $0x14c8] sm:$0xff] }
  0xb9   : > { %815 = vst [vmem:[%s7283_s27 + $0xa60] sm:$0xff] %v814_v12  ;;  %v818_v14 = vld [vmem:[%s7275_s26 + $0x14e0] sm:$0xff]  ;;  %v820_v15 = vld [vmem:[%s7275_s26 + $0x14e8] sm:$0xff]  ;;  %817 = vst [vmem:[%s7283_s27 + $0xa68] sm:$0xff] %v816_v13 }
  0xba   : > { %819 = vst [vmem:[%s7283_s27 + $0xa70] sm:$0xff] %v818_v14  ;;  %821 = vst [vmem:[%s7283_s27 + $0xa78] sm:$0xff] %v820_v15  ;;  %v822_v16 = vld [vmem:[%s7275_s26 + $0x1500] sm:$0xff]  ;;  %v824_v17 = vld [vmem:[%s7275_s26 + $0x1508] sm:$0xff] }
  0xbb   : > { %v826_v18 = vld [vmem:[%s7275_s26 + $0x1520] sm:$0xff]  ;;  %823 = vst [vmem:[%s7283_s27 + $0xa80] sm:$0xff] %v822_v16  ;;  %825 = vst [vmem:[%s7283_s27 + $0xa88] sm:$0xff] %v824_v17  ;;  %v828_v19 = vld [vmem:[%s7275_s26 + $0x1528] sm:$0xff] }
  0xbc   : > { %827 = vst [vmem:[%s7283_s27 + $0xa90] sm:$0xff] %v826_v18  ;;  %v830_v20 = vld [vmem:[%s7275_s26 + $0x1540] sm:$0xff]  ;;  %v832_v21 = vld [vmem:[%s7275_s26 + $0x1548] sm:$0xff]  ;;  %829 = vst [vmem:[%s7283_s27 + $0xa98] sm:$0xff] %v828_v19 }
  0xbd   : > { %831 = vst [vmem:[%s7283_s27 + $0xaa0] sm:$0xff] %v830_v20  ;;  %833 = vst [vmem:[%s7283_s27 + $0xaa8] sm:$0xff] %v832_v21  ;;  %v834_v22 = vld [vmem:[%s7275_s26 + $0x1560] sm:$0xff]  ;;  %v836_v23 = vld [vmem:[%s7275_s26 + $0x1568] sm:$0xff] }
  0xbe   : > { %v838_v24 = vld [vmem:[%s7275_s26 + $0x1580] sm:$0xff]  ;;  %835 = vst [vmem:[%s7283_s27 + $0xab0] sm:$0xff] %v834_v22  ;;  %837 = vst [vmem:[%s7283_s27 + $0xab8] sm:$0xff] %v836_v23  ;;  %v840_v25 = vld [vmem:[%s7275_s26 + $0x1588] sm:$0xff] }
  0xbf   : > { %839 = vst [vmem:[%s7283_s27 + $0xac0] sm:$0xff] %v838_v24  ;;  %v842_v26 = vld [vmem:[%s7275_s26 + $0x15a0] sm:$0xff]  ;;  %v844_v27 = vld [vmem:[%s7275_s26 + $0x15a8] sm:$0xff]  ;;  %841 = vst [vmem:[%s7283_s27 + $0xac8] sm:$0xff] %v840_v25 }
  0xc0   : > { %843 = vst [vmem:[%s7283_s27 + $0xad0] sm:$0xff] %v842_v26  ;;  %845 = vst [vmem:[%s7283_s27 + $0xad8] sm:$0xff] %v844_v27  ;;  %v846_v28 = vld [vmem:[%s7275_s26 + $0x15c0] sm:$0xff]  ;;  %v848_v29 = vld [vmem:[%s7275_s26 + $0x15c8] sm:$0xff] }
  0xc1   : > { %v850_v30 = vld [vmem:[%s7275_s26 + $0x15e0] sm:$0xff]  ;;  %847 = vst [vmem:[%s7283_s27 + $0xae0] sm:$0xff] %v846_v28  ;;  %849 = vst [vmem:[%s7283_s27 + $0xae8] sm:$0xff] %v848_v29  ;;  %v852_v31 = vld [vmem:[%s7275_s26 + $0x15e8] sm:$0xff] }
  0xc2   : > { %851 = vst [vmem:[%s7283_s27 + $0xaf0] sm:$0xff] %v850_v30  ;;  %v854_v32 = vld [vmem:[%s7275_s26 + $0x1600] sm:$0xff]  ;;  %v856_v33 = vld [vmem:[%s7275_s26 + $0x1608] sm:$0xff]  ;;  %853 = vst [vmem:[%s7283_s27 + $0xaf8] sm:$0xff] %v852_v31 }
  0xc3   : > { %855 = vst [vmem:[%s7283_s27 + $0xb00] sm:$0xff] %v854_v32  ;;  %857 = vst [vmem:[%s7283_s27 + $0xb08] sm:$0xff] %v856_v33  ;;  %v858_v34 = vld [vmem:[%s7275_s26 + $0x1620] sm:$0xff]  ;;  %v860_v35 = vld [vmem:[%s7275_s26 + $0x1628] sm:$0xff] }
  0xc4   : > { %v862_v36 = vld [vmem:[%s7275_s26 + $0x1640] sm:$0xff]  ;;  %859 = vst [vmem:[%s7283_s27 + $0xb10] sm:$0xff] %v858_v34  ;;  %861 = vst [vmem:[%s7283_s27 + $0xb18] sm:$0xff] %v860_v35  ;;  %v864_v37 = vld [vmem:[%s7275_s26 + $0x1648] sm:$0xff] }
  0xc5   : > { %863 = vst [vmem:[%s7283_s27 + $0xb20] sm:$0xff] %v862_v36  ;;  %v866_v38 = vld [vmem:[%s7275_s26 + $0x1660] sm:$0xff]  ;;  %v868_v39 = vld [vmem:[%s7275_s26 + $0x1668] sm:$0xff]  ;;  %865 = vst [vmem:[%s7283_s27 + $0xb28] sm:$0xff] %v864_v37 }
  0xc6   : > { %867 = vst [vmem:[%s7283_s27 + $0xb30] sm:$0xff] %v866_v38  ;;  %869 = vst [vmem:[%s7283_s27 + $0xb38] sm:$0xff] %v868_v39  ;;  %v870_v40 = vld [vmem:[%s7275_s26 + $0x1680] sm:$0xff]  ;;  %v872_v41 = vld [vmem:[%s7275_s26 + $0x1688] sm:$0xff] }
  0xc7   : > { %v874_v42 = vld [vmem:[%s7275_s26 + $0x16a0] sm:$0xff]  ;;  %871 = vst [vmem:[%s7283_s27 + $0xb40] sm:$0xff] %v870_v40  ;;  %873 = vst [vmem:[%s7283_s27 + $0xb48] sm:$0xff] %v872_v41  ;;  %v876_v43 = vld [vmem:[%s7275_s26 + $0x16a8] sm:$0xff] }
  0xc8   : > { %875 = vst [vmem:[%s7283_s27 + $0xb50] sm:$0xff] %v874_v42  ;;  %v878_v44 = vld [vmem:[%s7275_s26 + $0x16c0] sm:$0xff]  ;;  %v880_v45 = vld [vmem:[%s7275_s26 + $0x16c8] sm:$0xff]  ;;  %877 = vst [vmem:[%s7283_s27 + $0xb58] sm:$0xff] %v876_v43 }
  0xc9   : > { %879 = vst [vmem:[%s7283_s27 + $0xb60] sm:$0xff] %v878_v44  ;;  %881 = vst [vmem:[%s7283_s27 + $0xb68] sm:$0xff] %v880_v45  ;;  %v882_v46 = vld [vmem:[%s7275_s26 + $0x16e0] sm:$0xff]  ;;  %v884_v47 = vld [vmem:[%s7275_s26 + $0x16e8] sm:$0xff] }
  0xca   : > { %v886_v48 = vld [vmem:[%s7275_s26 + $0x1700] sm:$0xff]  ;;  %883 = vst [vmem:[%s7283_s27 + $0xb70] sm:$0xff] %v882_v46  ;;  %885 = vst [vmem:[%s7283_s27 + $0xb78] sm:$0xff] %v884_v47  ;;  %v888_v49 = vld [vmem:[%s7275_s26 + $0x1708] sm:$0xff] }
  0xcb   : > { %887 = vst [vmem:[%s7283_s27 + $0xb80] sm:$0xff] %v886_v48  ;;  %v890_v50 = vld [vmem:[%s7275_s26 + $0x1720] sm:$0xff]  ;;  %v892_v51 = vld [vmem:[%s7275_s26 + $0x1728] sm:$0xff]  ;;  %889 = vst [vmem:[%s7283_s27 + $0xb88] sm:$0xff] %v888_v49 }
  0xcc   : > { %891 = vst [vmem:[%s7283_s27 + $0xb90] sm:$0xff] %v890_v50  ;;  %893 = vst [vmem:[%s7283_s27 + $0xb98] sm:$0xff] %v892_v51  ;;  %v894_v52 = vld [vmem:[%s7275_s26 + $0x1740] sm:$0xff]  ;;  %v896_v53 = vld [vmem:[%s7275_s26 + $0x1748] sm:$0xff] }
  0xcd   : > { %v898_v54 = vld [vmem:[%s7275_s26 + $0x1760] sm:$0xff]  ;;  %895 = vst [vmem:[%s7283_s27 + $0xba0] sm:$0xff] %v894_v52  ;;  %897 = vst [vmem:[%s7283_s27 + $0xba8] sm:$0xff] %v896_v53  ;;  %v900_v55 = vld [vmem:[%s7275_s26 + $0x1768] sm:$0xff] }
  0xce   : > { %899 = vst [vmem:[%s7283_s27 + $0xbb0] sm:$0xff] %v898_v54  ;;  %v902_v56 = vld [vmem:[%s7275_s26 + $0x1780] sm:$0xff]  ;;  %v904_v57 = vld [vmem:[%s7275_s26 + $0x1788] sm:$0xff]  ;;  %901 = vst [vmem:[%s7283_s27 + $0xbb8] sm:$0xff] %v900_v55 }
  0xcf   : > { %903 = vst [vmem:[%s7283_s27 + $0xbc0] sm:$0xff] %v902_v56  ;;  %905 = vst [vmem:[%s7283_s27 + $0xbc8] sm:$0xff] %v904_v57  ;;  %v906_v58 = vld [vmem:[%s7275_s26 + $0x17a0] sm:$0xff]  ;;  %v908_v59 = vld [vmem:[%s7275_s26 + $0x17a8] sm:$0xff] }
  0xd0   : > { %v910_v60 = vld [vmem:[%s7275_s26 + $0x17c0] sm:$0xff]  ;;  %907 = vst [vmem:[%s7283_s27 + $0xbd0] sm:$0xff] %v906_v58  ;;  %909 = vst [vmem:[%s7283_s27 + $0xbd8] sm:$0xff] %v908_v59  ;;  %v912_v61 = vld [vmem:[%s7275_s26 + $0x17c8] sm:$0xff] }
  0xd1   : > { %911 = vst [vmem:[%s7283_s27 + $0xbe0] sm:$0xff] %v910_v60  ;;  %v914_v62 = vld [vmem:[%s7275_s26 + $0x17e0] sm:$0xff]  ;;  %v916_v63 = vld [vmem:[%s7275_s26 + $0x17e8] sm:$0xff]  ;;  %913 = vst [vmem:[%s7283_s27 + $0xbe8] sm:$0xff] %v912_v61 }
  0xd2   : > { %915 = vst [vmem:[%s7283_s27 + $0xbf0] sm:$0xff] %v914_v62  ;;  %917 = vst [vmem:[%s7283_s27 + $0xbf8] sm:$0xff] %v916_v63  ;;  %v918_v0 = vld [vmem:[%s7275_s26 + $0x1800] sm:$0xff]  ;;  %v920_v1 = vld [vmem:[%s7275_s26 + $0x1808] sm:$0xff] }
  0xd3   : > { %v922_v2 = vld [vmem:[%s7275_s26 + $0x1820] sm:$0xff]  ;;  %919 = vst [vmem:[%s7283_s27 + $0xc00] sm:$0xff] %v918_v0  ;;  %921 = vst [vmem:[%s7283_s27 + $0xc08] sm:$0xff] %v920_v1  ;;  %v924_v3 = vld [vmem:[%s7275_s26 + $0x1828] sm:$0xff] }
  0xd4   : > { %923 = vst [vmem:[%s7283_s27 + $0xc10] sm:$0xff] %v922_v2  ;;  %v926_v4 = vld [vmem:[%s7275_s26 + $0x1840] sm:$0xff]  ;;  %v928_v5 = vld [vmem:[%s7275_s26 + $0x1848] sm:$0xff]  ;;  %925 = vst [vmem:[%s7283_s27 + $0xc18] sm:$0xff] %v924_v3 }
  0xd5   : > { %927 = vst [vmem:[%s7283_s27 + $0xc20] sm:$0xff] %v926_v4  ;;  %929 = vst [vmem:[%s7283_s27 + $0xc28] sm:$0xff] %v928_v5  ;;  %v930_v6 = vld [vmem:[%s7275_s26 + $0x1860] sm:$0xff]  ;;  %v932_v7 = vld [vmem:[%s7275_s26 + $0x1868] sm:$0xff] }
  0xd6   : > { %v934_v8 = vld [vmem:[%s7275_s26 + $0x1880] sm:$0xff]  ;;  %931 = vst [vmem:[%s7283_s27 + $0xc30] sm:$0xff] %v930_v6  ;;  %933 = vst [vmem:[%s7283_s27 + $0xc38] sm:$0xff] %v932_v7  ;;  %v936_v9 = vld [vmem:[%s7275_s26 + $0x1888] sm:$0xff] }
  0xd7   : > { %935 = vst [vmem:[%s7283_s27 + $0xc40] sm:$0xff] %v934_v8  ;;  %v938_v10 = vld [vmem:[%s7275_s26 + $0x18a0] sm:$0xff]  ;;  %v940_v11 = vld [vmem:[%s7275_s26 + $0x18a8] sm:$0xff]  ;;  %937 = vst [vmem:[%s7283_s27 + $0xc48] sm:$0xff] %v936_v9 }
  0xd8   : > { %939 = vst [vmem:[%s7283_s27 + $0xc50] sm:$0xff] %v938_v10  ;;  %941 = vst [vmem:[%s7283_s27 + $0xc58] sm:$0xff] %v940_v11  ;;  %v942_v12 = vld [vmem:[%s7275_s26 + $0x18c0] sm:$0xff]  ;;  %v944_v13 = vld [vmem:[%s7275_s26 + $0x18c8] sm:$0xff] }
  0xd9   : > { %v946_v14 = vld [vmem:[%s7275_s26 + $0x18e0] sm:$0xff]  ;;  %943 = vst [vmem:[%s7283_s27 + $0xc60] sm:$0xff] %v942_v12  ;;  %945 = vst [vmem:[%s7283_s27 + $0xc68] sm:$0xff] %v944_v13  ;;  %v948_v15 = vld [vmem:[%s7275_s26 + $0x18e8] sm:$0xff] }
  0xda   : > { %947 = vst [vmem:[%s7283_s27 + $0xc70] sm:$0xff] %v946_v14  ;;  %v950_v16 = vld [vmem:[%s7275_s26 + $0x1900] sm:$0xff]  ;;  %v952_v17 = vld [vmem:[%s7275_s26 + $0x1908] sm:$0xff]  ;;  %949 = vst [vmem:[%s7283_s27 + $0xc78] sm:$0xff] %v948_v15 }
  0xdb   : > { %951 = vst [vmem:[%s7283_s27 + $0xc80] sm:$0xff] %v950_v16  ;;  %953 = vst [vmem:[%s7283_s27 + $0xc88] sm:$0xff] %v952_v17  ;;  %v954_v18 = vld [vmem:[%s7275_s26 + $0x1920] sm:$0xff]  ;;  %v956_v19 = vld [vmem:[%s7275_s26 + $0x1928] sm:$0xff] }
  0xdc   : > { %v958_v20 = vld [vmem:[%s7275_s26 + $0x1940] sm:$0xff]  ;;  %955 = vst [vmem:[%s7283_s27 + $0xc90] sm:$0xff] %v954_v18  ;;  %957 = vst [vmem:[%s7283_s27 + $0xc98] sm:$0xff] %v956_v19  ;;  %v960_v21 = vld [vmem:[%s7275_s26 + $0x1948] sm:$0xff] }
  0xdd   : > { %959 = vst [vmem:[%s7283_s27 + $0xca0] sm:$0xff] %v958_v20  ;;  %v962_v22 = vld [vmem:[%s7275_s26 + $0x1960] sm:$0xff]  ;;  %v964_v23 = vld [vmem:[%s7275_s26 + $0x1968] sm:$0xff]  ;;  %961 = vst [vmem:[%s7283_s27 + $0xca8] sm:$0xff] %v960_v21 }
  0xde   : > { %963 = vst [vmem:[%s7283_s27 + $0xcb0] sm:$0xff] %v962_v22  ;;  %965 = vst [vmem:[%s7283_s27 + $0xcb8] sm:$0xff] %v964_v23  ;;  %v966_v24 = vld [vmem:[%s7275_s26 + $0x1980] sm:$0xff]  ;;  %v968_v25 = vld [vmem:[%s7275_s26 + $0x1988] sm:$0xff] }
  0xdf   : > { %v970_v26 = vld [vmem:[%s7275_s26 + $0x19a0] sm:$0xff]  ;;  %967 = vst [vmem:[%s7283_s27 + $0xcc0] sm:$0xff] %v966_v24  ;;  %969 = vst [vmem:[%s7283_s27 + $0xcc8] sm:$0xff] %v968_v25  ;;  %v972_v27 = vld [vmem:[%s7275_s26 + $0x19a8] sm:$0xff] }
  0xe0   : > { %971 = vst [vmem:[%s7283_s27 + $0xcd0] sm:$0xff] %v970_v26  ;;  %v974_v28 = vld [vmem:[%s7275_s26 + $0x19c0] sm:$0xff]  ;;  %v976_v29 = vld [vmem:[%s7275_s26 + $0x19c8] sm:$0xff]  ;;  %973 = vst [vmem:[%s7283_s27 + $0xcd8] sm:$0xff] %v972_v27 }
  0xe1   : > { %975 = vst [vmem:[%s7283_s27 + $0xce0] sm:$0xff] %v974_v28  ;;  %977 = vst [vmem:[%s7283_s27 + $0xce8] sm:$0xff] %v976_v29  ;;  %v978_v30 = vld [vmem:[%s7275_s26 + $0x19e0] sm:$0xff]  ;;  %v980_v31 = vld [vmem:[%s7275_s26 + $0x19e8] sm:$0xff] }
  0xe2   : > { %v982_v32 = vld [vmem:[%s7275_s26 + $0x1a00] sm:$0xff]  ;;  %979 = vst [vmem:[%s7283_s27 + $0xcf0] sm:$0xff] %v978_v30  ;;  %981 = vst [vmem:[%s7283_s27 + $0xcf8] sm:$0xff] %v980_v31  ;;  %v984_v33 = vld [vmem:[%s7275_s26 + $0x1a08] sm:$0xff] }
  0xe3   : > { %983 = vst [vmem:[%s7283_s27 + $0xd00] sm:$0xff] %v982_v32  ;;  %v986_v34 = vld [vmem:[%s7275_s26 + $0x1a20] sm:$0xff]  ;;  %v988_v35 = vld [vmem:[%s7275_s26 + $0x1a28] sm:$0xff]  ;;  %985 = vst [vmem:[%s7283_s27 + $0xd08] sm:$0xff] %v984_v33 }
  0xe4   : > { %987 = vst [vmem:[%s7283_s27 + $0xd10] sm:$0xff] %v986_v34  ;;  %989 = vst [vmem:[%s7283_s27 + $0xd18] sm:$0xff] %v988_v35  ;;  %v990_v36 = vld [vmem:[%s7275_s26 + $0x1a40] sm:$0xff]  ;;  %v992_v37 = vld [vmem:[%s7275_s26 + $0x1a48] sm:$0xff] }
  0xe5   : > { %v994_v38 = vld [vmem:[%s7275_s26 + $0x1a60] sm:$0xff]  ;;  %991 = vst [vmem:[%s7283_s27 + $0xd20] sm:$0xff] %v990_v36  ;;  %993 = vst [vmem:[%s7283_s27 + $0xd28] sm:$0xff] %v992_v37  ;;  %v996_v39 = vld [vmem:[%s7275_s26 + $0x1a68] sm:$0xff] }
  0xe6   : > { %995 = vst [vmem:[%s7283_s27 + $0xd30] sm:$0xff] %v994_v38  ;;  %v998_v40 = vld [vmem:[%s7275_s26 + $0x1a80] sm:$0xff]  ;;  %v1000_v41 = vld [vmem:[%s7275_s26 + $0x1a88] sm:$0xff]  ;;  %997 = vst [vmem:[%s7283_s27 + $0xd38] sm:$0xff] %v996_v39 }
  0xe7   : > { %999 = vst [vmem:[%s7283_s27 + $0xd40] sm:$0xff] %v998_v40  ;;  %1001 = vst [vmem:[%s7283_s27 + $0xd48] sm:$0xff] %v1000_v41  ;;  %v1002_v42 = vld [vmem:[%s7275_s26 + $0x1aa0] sm:$0xff]  ;;  %v1004_v43 = vld [vmem:[%s7275_s26 + $0x1aa8] sm:$0xff] }
  0xe8   : > { %v1006_v44 = vld [vmem:[%s7275_s26 + $0x1ac0] sm:$0xff]  ;;  %1003 = vst [vmem:[%s7283_s27 + $0xd50] sm:$0xff] %v1002_v42  ;;  %1005 = vst [vmem:[%s7283_s27 + $0xd58] sm:$0xff] %v1004_v43  ;;  %v1008_v45 = vld [vmem:[%s7275_s26 + $0x1ac8] sm:$0xff] }
  0xe9   : > { %1007 = vst [vmem:[%s7283_s27 + $0xd60] sm:$0xff] %v1006_v44  ;;  %v1010_v46 = vld [vmem:[%s7275_s26 + $0x1ae0] sm:$0xff]  ;;  %v1012_v47 = vld [vmem:[%s7275_s26 + $0x1ae8] sm:$0xff]  ;;  %1009 = vst [vmem:[%s7283_s27 + $0xd68] sm:$0xff] %v1008_v45 }
  0xea   : > { %1011 = vst [vmem:[%s7283_s27 + $0xd70] sm:$0xff] %v1010_v46  ;;  %1013 = vst [vmem:[%s7283_s27 + $0xd78] sm:$0xff] %v1012_v47 }
  0xeb PF: > { %p5704_p7 = scmp.ge.s32.totalorder %s7211_s14, 1  ;;  %p1018_p8 = scmp.lt.s32.totalorder %s7211_s14, 3 }
  0xed   : > { %p1019_p9 = pnand %p5704_p7, %p1018_p8 }
  0xef   : > { %1022 = sbr.rel (%p1019_p9) target bundleno = 972 (0x3cc), region = 51 }
  0xf4   : > { %s1025_s28 = sand.u32 1, %s7203_s12   ;;  %v6371_v48 = vld [vmem:[%s9757_s1 + $0x4] ss:$56 sps:$4 sm:$0xff]   ;;  %vm3974_vm0 = vcmask 523264  }
  0xf5   : > { %s6242_s29 = smul.u32 3456, %s1025_s28  ;;  %v6374_v49 = vld [vmem:[%s9757_s1 + $0xc] ss:$56 sps:$4 sm:$0xff]   ;;  %4019 = vmatprep.mubr.bf16.mxu0 %v6371_v48  ;;  %s5705_s8 = sshll.u32 %s1025_s28, 7 }
  0xf6   : > { %4092 = vmatprep.mubr.bf16.mxu1 %v6374_v49  ;;  %s9383_s12 = scalar_lea.vmem [#allocation3], %s5705_s8  ;;  %s6240_s28 = sshll.u32 (%p7265_p5), %s5698_s15, 4 }
  0xf7   : > { %s8154_s7 = scalar_lea.vmem [#allocation2], %s6242_s29  ;;  %s5594_s20 = scalar_lea.vmem (%p7265_p5), %s9759_s3, %s6240_s28 }
  0xf8   : > { %v6273_v50 = vld [vmem:[%s8154_s7 + $0xe4] ss:$16 sps:$4 sm:$0xff]   ;;  %v6277_v52 = vld [vmem:[%s8154_s7 + $0xe0] ss:$16 sps:$4 sm:$0xff]  }
  0xf9   : > { %v6275_v51 = vld [vmem:[%s8154_s7 + $0x2e4] ss:$16 sps:$4 sm:$0xff]   ;;  %3987 = vmatprep.subr.bf16.mxu0 %v6273_v50  ;;  %v6278_v53 = vld [vmem:[%s8154_s7 + $0x2e0] ss:$16 sps:$4 sm:$0xff]  }
  0xfa   : > { %4060 = vmatprep.subr.bf16.mxu1 %v6275_v51  ;;  %v6279_v54 = vld [vmem:[%s8154_s7 + $0xc4] ss:$16 sps:$4 sm:$0xff]   ;;  %3988 = vmatpush1.bf16.msra.mxu0 %v6277_v52  ;;  %v6283_v56 = vld [vmem:[%s8154_s7 + $0xc0] ss:$16 sps:$4 sm:$0xff]  }
  0xfb   : > { %4061 = vmatpush1.bf16.msra.mxu1 %v6278_v53  ;;  %v6281_v55 = vld [vmem:[%s8154_s7 + $0x2c4] ss:$16 sps:$4 sm:$0xff]   ;;  %3989 = vmatprep.subr.bf16.mxu0 %v6279_v54  ;;  %v6284_v57 = vld [vmem:[%s8154_s7 + $0x2c0] ss:$16 sps:$4 sm:$0xff]  }
  0xfc   : > { %4062 = vmatprep.subr.bf16.mxu1 %v6281_v55  ;;  %v6285_v58 = vld [vmem:[%s8154_s7 + $0xa4] ss:$16 sps:$4 sm:$0xff]   ;;  %v6289_v60 = vld [vmem:[%s8154_s7 + $0xa0] ss:$16 sps:$4 sm:$0xff]  }
  0xfd   : > { %v6287_v59 = vld [vmem:[%s8154_s7 + $0x2a4] ss:$16 sps:$4 sm:$0xff]   ;;  %v6290_v61 = vld [vmem:[%s8154_s7 + $0x2a0] ss:$16 sps:$4 sm:$0xff]  }
  0xfe   : > { %3990 = vmatpush1.bf16.msra.mxu0 %v6283_v56  ;;  %v6291_v62 = vld [vmem:[%s8154_s7 + $0x84] ss:$16 sps:$4 sm:$0xff]   ;;  %v6295_v0 = vld [vmem:[%s8154_s7 + $0x80] ss:$16 sps:$4 sm:$0xff]  }
  0xff   : > { %4063 = vmatpush1.bf16.msra.mxu1 %v6284_v57  ;;  %3991 = vmatprep.subr.bf16.mxu0 %v6285_v58  ;;  %v6293_v63 = vld [vmem:[%s8154_s7 + $0x284] ss:$16 sps:$4 sm:$0xff]   ;;  %v6296_v1 = vld [vmem:[%s8154_s7 + $0x280] ss:$16 sps:$4 sm:$0xff]  }
 0x100   : > { %4064 = vmatprep.subr.bf16.mxu1 %v6287_v59  ;;  %v6297_v2 = vld [vmem:[%s8154_s7 + $0x64] ss:$16 sps:$4 sm:$0xff]   ;;  %v6301_v4 = vld [vmem:[%s8154_s7 + $0x60] ss:$16 sps:$4 sm:$0xff]  }
 0x101   : > { %v6299_v3 = vld [vmem:[%s8154_s7 + $0x264] ss:$16 sps:$4 sm:$0xff]   ;;  %v6302_v5 = vld [vmem:[%s8154_s7 + $0x260] ss:$16 sps:$4 sm:$0xff]  }
 0x102   : > { %3992 = vmatpush1.bf16.msra.mxu0 %v6289_v60  ;;  %v6303_v6 = vld [vmem:[%s8154_s7 + $0x44] ss:$16 sps:$4 sm:$0xff]   ;;  %v6307_v8 = vld [vmem:[%s8154_s7 + $0x40] ss:$16 sps:$4 sm:$0xff]  }
 0x103   : > { %4065 = vmatpush1.bf16.msra.mxu1 %v6290_v61  ;;  %3993 = vmatprep.subr.bf16.mxu0 %v6291_v62  ;;  %v6305_v7 = vld [vmem:[%s8154_s7 + $0x244] ss:$16 sps:$4 sm:$0xff]   ;;  %v6308_v9 = vld [vmem:[%s8154_s7 + $0x240] ss:$16 sps:$4 sm:$0xff]  }
 0x104   : > { %4066 = vmatprep.subr.bf16.mxu1 %v6293_v63  ;;  %v6309_v10 = vld [vmem:[%s8154_s7 + $0x24] ss:$16 sps:$4 sm:$0xff]   ;;  %v6313_v12 = vld [vmem:[%s8154_s7 + $0x20] ss:$16 sps:$4 sm:$0xff]  }
 0x105   : > { %v6311_v11 = vld [vmem:[%s8154_s7 + $0x224] ss:$16 sps:$4 sm:$0xff]   ;;  %v6314_v13 = vld [vmem:[%s8154_s7 + $0x220] ss:$16 sps:$4 sm:$0xff]  }
 0x106   : > { %3994 = vmatpush1.bf16.msra.mxu0 %v6295_v0  ;;  %v6315_v14 = vld [vmem:[%s8154_s7 + $0x4] ss:$16 sps:$4 sm:$0xff]   ;;  %v6319_v16 = vld [vmem:[%s8154_s7] ss:$16 sps:$4 sm:$0xff]  }
 0x107   : > { %4067 = vmatpush1.bf16.msra.mxu1 %v6296_v1  ;;  %3995 = vmatprep.subr.bf16.mxu0 %v6297_v2  ;;  %v6317_v15 = vld [vmem:[%s8154_s7 + $0x204] ss:$16 sps:$4 sm:$0xff]   ;;  %v6320_v17 = vld [vmem:[%s8154_s7 + $0x200] ss:$16 sps:$4 sm:$0xff]  }
 0x108   : > { %4068 = vmatprep.subr.bf16.mxu1 %v6299_v3  ;;  %v6321_v18 = vld [vmem:[%s8154_s7 + $0x1e4] ss:$16 sps:$4 sm:$0xff]   ;;  %v6325_v20 = vld [vmem:[%s8154_s7 + $0x1e0] ss:$16 sps:$4 sm:$0xff]  }
 0x109   : > { %v6323_v19 = vld [vmem:[%s8154_s7 + $0x3e4] ss:$16 sps:$4 sm:$0xff]   ;;  %v6326_v21 = vld [vmem:[%s8154_s7 + $0x3e0] ss:$16 sps:$4 sm:$0xff]  }
 0x10a   : > { %3996 = vmatpush1.bf16.msra.mxu0 %v6301_v4  ;;  %v6327_v22 = vld [vmem:[%s8154_s7 + $0x1c4] ss:$16 sps:$4 sm:$0xff]   ;;  %v6331_v24 = vld [vmem:[%s8154_s7 + $0x1c0] ss:$16 sps:$4 sm:$0xff]  }
 0x10b   : > { %4069 = vmatpush1.bf16.msra.mxu1 %v6302_v5  ;;  %3997 = vmatprep.subr.bf16.mxu0 %v6303_v6  ;;  %v6329_v23 = vld [vmem:[%s8154_s7 + $0x3c4] ss:$16 sps:$4 sm:$0xff]   ;;  %v6332_v25 = vld [vmem:[%s8154_s7 + $0x3c0] ss:$16 sps:$4 sm:$0xff]  }
 0x10c   : > { %4070 = vmatprep.subr.bf16.mxu1 %v6305_v7  ;;  %v6333_v26 = vld [vmem:[%s8154_s7 + $0x1a4] ss:$16 sps:$4 sm:$0xff]   ;;  %v6337_v28 = vld [vmem:[%s8154_s7 + $0x1a0] ss:$16 sps:$4 sm:$0xff]  }
 0x10d   : > { %v6335_v27 = vld [vmem:[%s8154_s7 + $0x3a4] ss:$16 sps:$4 sm:$0xff]   ;;  %v6338_v29 = vld [vmem:[%s8154_s7 + $0x3a0] ss:$16 sps:$4 sm:$0xff]  }
 0x10e   : > { %3998 = vmatpush1.bf16.msra.mxu0 %v6307_v8  ;;  %v6339_v30 = vld [vmem:[%s8154_s7 + $0x184] ss:$16 sps:$4 sm:$0xff]   ;;  %v6343_v32 = vld [vmem:[%s8154_s7 + $0x180] ss:$16 sps:$4 sm:$0xff]  }
 0x10f   : > { %4071 = vmatpush1.bf16.msra.mxu1 %v6308_v9  ;;  %3999 = vmatprep.subr.bf16.mxu0 %v6309_v10  ;;  %v6341_v31 = vld [vmem:[%s8154_s7 + $0x384] ss:$16 sps:$4 sm:$0xff]   ;;  %v6344_v33 = vld [vmem:[%s8154_s7 + $0x380] ss:$16 sps:$4 sm:$0xff]  }
 0x110   : > { %4072 = vmatprep.subr.bf16.mxu1 %v6311_v11  ;;  %v6345_v34 = vld [vmem:[%s8154_s7 + $0x164] ss:$16 sps:$4 sm:$0xff]   ;;  %v6349_v36 = vld [vmem:[%s8154_s7 + $0x160] ss:$16 sps:$4 sm:$0xff]  }
 0x111   : > { %v6347_v35 = vld [vmem:[%s8154_s7 + $0x364] ss:$16 sps:$4 sm:$0xff]   ;;  %v6350_v37 = vld [vmem:[%s8154_s7 + $0x360] ss:$16 sps:$4 sm:$0xff]  }
 0x112   : > { %4000 = vmatpush1.bf16.msra.mxu0 %v6313_v12  ;;  %v6351_v38 = vld [vmem:[%s8154_s7 + $0x144] ss:$16 sps:$4 sm:$0xff]   ;;  %v6355_v40 = vld [vmem:[%s8154_s7 + $0x140] ss:$16 sps:$4 sm:$0xff]  }
 0x113   : > { %4073 = vmatpush1.bf16.msra.mxu1 %v6314_v13  ;;  %4001 = vmatprep.subr.bf16.mxu0 %v6315_v14  ;;  %v6353_v39 = vld [vmem:[%s8154_s7 + $0x344] ss:$16 sps:$4 sm:$0xff]   ;;  %v6356_v41 = vld [vmem:[%s8154_s7 + $0x340] ss:$16 sps:$4 sm:$0xff]  }
 0x114   : > { %4074 = vmatprep.subr.bf16.mxu1 %v6317_v15  ;;  %v6357_v42 = vld [vmem:[%s8154_s7 + $0x124] ss:$16 sps:$4 sm:$0xff]   ;;  %v6361_v44 = vld [vmem:[%s8154_s7 + $0x120] ss:$16 sps:$4 sm:$0xff]  }
 0x115   : > { %v6359_v43 = vld [vmem:[%s8154_s7 + $0x324] ss:$16 sps:$4 sm:$0xff]   ;;  %v6362_v45 = vld [vmem:[%s8154_s7 + $0x320] ss:$16 sps:$4 sm:$0xff]  }
 0x116   : > { %4002 = vmatpush1.bf16.msra.mxu0 %v6319_v16  ;;  %v6363_v46 = vld [vmem:[%s8154_s7 + $0x104] ss:$16 sps:$4 sm:$0xff]   ;;  %v6367_v48 = vld [vmem:[%s8154_s7 + $0x100] ss:$16 sps:$4 sm:$0xff]  }
 0x117   : > { %4075 = vmatpush1.bf16.msra.mxu1 %v6320_v17  ;;  %4003 = vmatprep.subr.bf16.mxu0 %v6321_v18  ;;  %v6365_v47 = vld [vmem:[%s8154_s7 + $0x304] ss:$16 sps:$4 sm:$0xff]   ;;  %v6368_v49 = vld [vmem:[%s8154_s7 + $0x300] ss:$16 sps:$4 sm:$0xff]  }
 0x118   : > { %4076 = vmatprep.subr.bf16.mxu1 %v6323_v19  ;;  %v6377_v50 = vld [vmem:[%s8154_s7 + $0x4e4] ss:$16 sps:$4 sm:$0xff]   ;;  %v6369_v52 = vld [vmem:[%s9757_s1] ss:$56 sps:$4 sm:$0xff]   ;;  %v6433_v2 = vld [vmem:[%s9757_s1 + $0x70] ss:$56 sps:$4 sm:$0xff]  }
 0x119   : > { %v6380_v51 = vld [vmem:[%s8154_s7 + $0x6e4] ss:$16 sps:$4 sm:$0xff]   ;;  %v6372_v53 = vld [vmem:[%s9757_s1 + $0x8] ss:$56 sps:$4 sm:$0xff]   ;;  %v6434_v3 = vld [vmem:[%s9757_s1 + $0x78] ss:$56 sps:$4 sm:$0xff]  }
 0x11a   : > { %4004 = vmatpush2.bf16.msra.mxu0 %v6325_v20  ;;  %v6375_v54 = vld [vmem:[%s8154_s7 + $0x4e0] ss:$16 sps:$4 sm:$0xff]   ;;  %v6383_v56 = vld [vmem:[%s8154_s7 + $0x4c4] ss:$16 sps:$4 sm:$0xff]  }
 0x11b   : > { %4077 = vmatpush2.bf16.msra.mxu1 %v6326_v21  ;;  %4005 = vmatprep.subr.bf16.mxu0 %v6327_v22  ;;  %v6378_v55 = vld [vmem:[%s8154_s7 + $0x6e0] ss:$16 sps:$4 sm:$0xff]   ;;  %v6386_v57 = vld [vmem:[%s8154_s7 + $0x6c4] ss:$16 sps:$4 sm:$0xff]  }
 0x11c   : > { %4078 = vmatprep.subr.bf16.mxu1 %v6329_v23  ;;  %v6429_v58 = vld [vmem:[%s9757_s1 + $0x74] ss:$56 sps:$4 sm:$0xff]   ;;  %v6381_v59 = vld [vmem:[%s8154_s7 + $0x4c0] ss:$16 sps:$4 sm:$0xff]   ;;  %v6447_v6 = vld [vmem:[%s9757_s1 + $0xe4] ss:$56 sps:$4 sm:$0xff]  }
 0x11d   : > { %v6384_v60 = vld [vmem:[%s8154_s7 + $0x6c0] ss:$16 sps:$4 sm:$0xff]   ;;  %v6431_v61 = vld [vmem:[%s9757_s1 + $0x7c] ss:$56 sps:$4 sm:$0xff]   ;;  %v6449_v9 = vld [vmem:[%s9757_s1 + $0xec] ss:$56 sps:$4 sm:$0xff]  }
 0x11e   : > { %4006 = vmatpush2.bf16.msra.mxu0 %v6331_v24  ;;  %v6389_v62 = vld [vmem:[%s8154_s7 + $0x4a4] ss:$16 sps:$4 sm:$0xff]   ;;  %v6387_v0 = vld [vmem:[%s8154_s7 + $0x4a0] ss:$16 sps:$4 sm:$0xff]  }
 0x11f   : > { %4079 = vmatpush2.bf16.msra.mxu1 %v6332_v25  ;;  %4007 = vmatprep.subr.bf16.mxu0 %v6333_v26  ;;  %v6392_v63 = vld [vmem:[%s8154_s7 + $0x6a4] ss:$16 sps:$4 sm:$0xff]   ;;  %v6390_v1 = vld [vmem:[%s8154_s7 + $0x6a0] ss:$16 sps:$4 sm:$0xff]  }
 0x120   : > { %4080 = vmatprep.subr.bf16.mxu1 %v6335_v27  ;;  %v6395_v4 = vld [vmem:[%s8154_s7 + $0x484] ss:$16 sps:$4 sm:$0xff]   ;;  %v6393_v7 = vld [vmem:[%s8154_s7 + $0x480] ss:$16 sps:$4 sm:$0xff]  }
 0x121   : > { %v6398_v5 = vld [vmem:[%s8154_s7 + $0x684] ss:$16 sps:$4 sm:$0xff]   ;;  %v6396_v8 = vld [vmem:[%s8154_s7 + $0x680] ss:$16 sps:$4 sm:$0xff]  }
 0x122   : > { %4008 = vmatpush2.bf16.msra.mxu0 %v6337_v28  ;;  %v6401_v10 = vld [vmem:[%s8154_s7 + $0x464] ss:$16 sps:$4 sm:$0xff]   ;;  %v6399_v12 = vld [vmem:[%s8154_s7 + $0x460] ss:$16 sps:$4 sm:$0xff]  }
 0x123   : > { %4081 = vmatpush2.bf16.msra.mxu1 %v6338_v29  ;;  %4009 = vmatprep.subr.bf16.mxu0 %v6339_v30  ;;  %v6404_v11 = vld [vmem:[%s8154_s7 + $0x664] ss:$16 sps:$4 sm:$0xff]   ;;  %v6402_v13 = vld [vmem:[%s8154_s7 + $0x660] ss:$16 sps:$4 sm:$0xff]  }
 0x124   : > { %4082 = vmatprep.subr.bf16.mxu1 %v6341_v31  ;;  %v6451_v14 = vld [vmem:[%s9757_s1 + $0xe0] ss:$56 sps:$4 sm:$0xff]   ;;  %v6407_v16 = vld [vmem:[%s8154_s7 + $0x444] ss:$16 sps:$4 sm:$0xff]   ;;  %v6469_v26 = vld [vmem:[%s9757_s1 + $0x150] ss:$56 sps:$4 sm:$0xff]  }
 0x125   : > { %v6452_v15 = vld [vmem:[%s9757_s1 + $0xe8] ss:$56 sps:$4 sm:$0xff]   ;;  %v6410_v17 = vld [vmem:[%s8154_s7 + $0x644] ss:$16 sps:$4 sm:$0xff]   ;;  %v6470_v27 = vld [vmem:[%s9757_s1 + $0x158] ss:$56 sps:$4 sm:$0xff]  }
 0x126   : > { %4010 = vmatpush2.bf16.msra.mxu0 %v6343_v32  ;;  %v6465_v18 = vld [vmem:[%s9757_s1 + $0x154] ss:$56 sps:$4 sm:$0xff]   ;;  %v6405_v19 = vld [vmem:[%s8154_s7 + $0x440] ss:$16 sps:$4 sm:$0xff]  }
 0x127   : > { %4083 = vmatpush2.bf16.msra.mxu1 %v6344_v33  ;;  %4011 = vmatprep.subr.bf16.mxu0 %v6345_v34  ;;  %v6408_v20 = vld [vmem:[%s8154_s7 + $0x640] ss:$16 sps:$4 sm:$0xff]   ;;  %v6467_v21 = vld [vmem:[%s9757_s1 + $0x15c] ss:$56 sps:$4 sm:$0xff]  }
 0x128   : > { %4084 = vmatprep.subr.bf16.mxu1 %v6347_v35  ;;  %v6413_v22 = vld [vmem:[%s8154_s7 + $0x424] ss:$16 sps:$4 sm:$0xff]   ;;  %v6411_v24 = vld [vmem:[%s8154_s7 + $0x420] ss:$16 sps:$4 sm:$0xff]  }
 0x129   : > { %v6416_v23 = vld [vmem:[%s8154_s7 + $0x624] ss:$16 sps:$4 sm:$0xff]   ;;  %v6414_v25 = vld [vmem:[%s8154_s7 + $0x620] ss:$16 sps:$4 sm:$0xff]  }
 0x12a   : > { %4012 = vmatpush2.bf16.msra.mxu0 %v6349_v36  ;;  %v6419_v28 = vld [vmem:[%s8154_s7 + $0x404] ss:$16 sps:$4 sm:$0xff]   ;;  %v6417_v30 = vld [vmem:[%s8154_s7 + $0x400] ss:$16 sps:$4 sm:$0xff]  }
 0x12b   : > { %4085 = vmatpush2.bf16.msra.mxu1 %v6350_v37  ;;  %4013 = vmatprep.subr.bf16.mxu0 %v6351_v38  ;;  %v6422_v29 = vld [vmem:[%s8154_s7 + $0x604] ss:$16 sps:$4 sm:$0xff]   ;;  %v6420_v31 = vld [vmem:[%s8154_s7 + $0x600] ss:$16 sps:$4 sm:$0xff]  }
 0x12c   : > { %4086 = vmatprep.subr.bf16.mxu1 %v6353_v39  ;;  %v6425_v32 = vld [vmem:[%s8154_s7 + $0x5e4] ss:$16 sps:$4 sm:$0xff]   ;;  %v6423_v36 = vld [vmem:[%s8154_s7 + $0x5e0] ss:$16 sps:$4 sm:$0xff]  }
 0x12d   : > { %v6428_v33 = vld [vmem:[%s8154_s7 + $0x7e4] ss:$16 sps:$4 sm:$0xff]   ;;  %v6426_v37 = vld [vmem:[%s8154_s7 + $0x7e0] ss:$16 sps:$4 sm:$0xff]  }
 0x12e   : > { %4014 = vmatpush2.bf16.msra.mxu0 %v6355_v40  ;;  %v6491_v34 = vld [vmem:[%s9757_s1 + $0x14] ss:$56 sps:$4 sm:$0xff]   ;;  %v6435_v40 = vld [vmem:[%s8154_s7 + $0x5c0] ss:$16 sps:$4 sm:$0xff]  }
 0x12f   : > { %4087 = vmatpush2.bf16.msra.mxu1 %v6356_v41  ;;  %4015 = vmatprep.subr.bf16.mxu0 %v6357_v42  ;;  %v6494_v35 = vld [vmem:[%s9757_s1 + $0x1c] ss:$56 sps:$4 sm:$0xff]   ;;  %v6438_v41 = vld [vmem:[%s8154_s7 + $0x7c0] ss:$16 sps:$4 sm:$0xff]  }
 0x130   : > { %4088 = vmatprep.subr.bf16.mxu1 %v6359_v43  ;;  %v6437_v38 = vld [vmem:[%s8154_s7 + $0x5c4] ss:$16 sps:$4 sm:$0xff]  }
 0x131   : > { %v6440_v39 = vld [vmem:[%s8154_s7 + $0x7c4] ss:$16 sps:$4 sm:$0xff]  }
 0x132   : > { %4016 = vmatpush2.bf16.msra.mxu0 %v6361_v44  ;;  %v6443_v42 = vld [vmem:[%s8154_s7 + $0x5a4] ss:$16 sps:$4 sm:$0xff]   ;;  %v6441_v44 = vld [vmem:[%s8154_s7 + $0x5a0] ss:$16 sps:$4 sm:$0xff]  }
 0x133   : > { %4089 = vmatpush2.bf16.msra.mxu1 %v6362_v45  ;;  %4017 = vmatprep.subr.bf16.mxu0 %v6363_v46  ;;  %v6446_v43 = vld [vmem:[%s8154_s7 + $0x7a4] ss:$16 sps:$4 sm:$0xff]   ;;  %v6444_v45 = vld [vmem:[%s8154_s7 + $0x7a0] ss:$16 sps:$4 sm:$0xff]  }
 0x134   : > { %4090 = vmatprep.subr.bf16.mxu1 %v6365_v47  ;;  %v6455_v46 = vld [vmem:[%s8154_s7 + $0x584] ss:$16 sps:$4 sm:$0xff]  }
 0x135   : > { %v6458_v47 = vld [vmem:[%s8154_s7 + $0x784] ss:$16 sps:$4 sm:$0xff]  }
 0x136   : > { %4018 = vmatpush2.bf16.msra.mxu0 %v6367_v48  ;;  %v6453_v48 = vld [vmem:[%s8154_s7 + $0x580] ss:$16 sps:$4 sm:$0xff]  }
 0x137   : > { %4091 = vmatpush2.bf16.msra.mxu1 %v6368_v49  ;;  %4133 = vmatprep.subr.bf16.mxu0 %v6377_v50  ;;  %v6456_v49 = vld [vmem:[%s8154_s7 + $0x780] ss:$16 sps:$4 sm:$0xff]   ;;  %v6461_v50 = vld [vmem:[%s8154_s7 + $0x564] ss:$16 sps:$4 sm:$0xff]  }
 0x138   : > { %4206 = vmatprep.subr.bf16.mxu1 %v6380_v51  ;;  %v6464_v51 = vld [vmem:[%s8154_s7 + $0x764] ss:$16 sps:$4 sm:$0xff]  }
 0x139   : > { %4020 = vmatmul.mubr.bf16.vlgmr.msra.gmra.mxu0 %v6369_v52  ;;  %v6459_v52 = vld [vmem:[%s8154_s7 + $0x560] ss:$16 sps:$4 sm:$0xff]  }
 0x13a   : > { %4093 = vmatmul.mubr.bf16.vlgmr.msra.gmra.mxu1 %v6372_v53  ;;  %4134 = vmatpush1.bf16.msra.mxu0 %v6375_v54  ;;  %v6462_v53 = vld [vmem:[%s8154_s7 + $0x760] ss:$16 sps:$4 sm:$0xff]   ;;  %v6473_v54 = vld [vmem:[%s8154_s7 + $0x544] ss:$16 sps:$4 sm:$0xff]  }
 0x13b   : > { %4207 = vmatpush1.bf16.msra.mxu1 %v6378_v55  ;;  %4135 = vmatprep.subr.bf16.mxu0 %v6383_v56  ;;  %v6476_v55 = vld [vmem:[%s8154_s7 + $0x744] ss:$16 sps:$4 sm:$0xff]   ;;  %v6471_v56 = vld [vmem:[%s8154_s7 + $0x540] ss:$16 sps:$4 sm:$0xff]  }
 0x13c   : > { %4208 = vmatprep.subr.bf16.mxu1 %v6386_v57  ;;  %4029 = vmatprep.mubr.bf16.mxu0 %v6429_v58  ;;  %v6474_v57 = vld [vmem:[%s8154_s7 + $0x740] ss:$16 sps:$4 sm:$0xff]   ;;  %v6479_v58 = vld [vmem:[%s8154_s7 + $0x524] ss:$16 sps:$4 sm:$0xff]  }
 0x13d   : > { %4102 = vmatprep.mubr.bf16.mxu1 %v6431_v61  ;;  %v6480_v61 = vld [vmem:[%s8154_s7 + $0x720] ss:$16 sps:$4 sm:$0xff]  }
 0x13e   : > { %4136 = vmatpush1.bf16.msra.mxu0 %v6381_v59  ;;  %v6482_v59 = vld [vmem:[%s8154_s7 + $0x724] ss:$16 sps:$4 sm:$0xff]  }
 0x13f   : > { %4209 = vmatpush1.bf16.msra.mxu1 %v6384_v60  ;;  %4137 = vmatprep.subr.bf16.mxu0 %v6389_v62  ;;  %v6477_v60 = vld [vmem:[%s8154_s7 + $0x520] ss:$16 sps:$4 sm:$0xff]   ;;  %v6485_v62 = vld [vmem:[%s8154_s7 + $0x504] ss:$16 sps:$4 sm:$0xff]  }
 0x140   : > { %4210 = vmatprep.subr.bf16.mxu1 %v6392_v63  ;;  %v6488_v63 = vld [vmem:[%s8154_s7 + $0x704] ss:$16 sps:$4 sm:$0xff]  }
 0x141   : > { %4030 = vmatmul.mubr.bf16.gmra.mxu0 %v6433_v2  ;;  %v6497_v2 = vld [vmem:[%s8154_s7 + $0x8e4] ss:$16 sps:$4 sm:$0xff]  }
 0x142   : > { %4103 = vmatmul.mubr.bf16.gmra.mxu1 %v6434_v3  ;;  %4138 = vmatpush1.bf16.msra.mxu0 %v6387_v0  ;;  %v6483_v0 = vld [vmem:[%s8154_s7 + $0x500] ss:$16 sps:$4 sm:$0xff]   ;;  %v6500_v3 = vld [vmem:[%s8154_s7 + $0xae4] ss:$16 sps:$4 sm:$0xff]  }
 0x143   : > { %4211 = vmatpush1.bf16.msra.mxu1 %v6390_v1  ;;  %4139 = vmatprep.subr.bf16.mxu0 %v6395_v4  ;;  %v6486_v1 = vld [vmem:[%s8154_s7 + $0x700] ss:$16 sps:$4 sm:$0xff]  }
 0x144   : > { %4212 = vmatprep.subr.bf16.mxu1 %v6398_v5  ;;  %4039 = vmatprep.mubr.bf16.mxu0 %v6447_v6  ;;  %v6489_v4 = vld [vmem:[%s9757_s1 + $0x10] ss:$56 sps:$4 sm:$0xff]  }
 0x145   : > { %4112 = vmatprep.mubr.bf16.mxu1 %v6449_v9  ;;  %v6492_v5 = vld [vmem:[%s9757_s1 + $0x18] ss:$56 sps:$4 sm:$0xff]   ;;  %v6506_v9 = vld [vmem:[%s8154_s7 + $0xac4] ss:$16 sps:$4 sm:$0xff]  }
 0x146   : > { %4140 = vmatpush1.bf16.msra.mxu0 %v6393_v7  ;;  %v6495_v6 = vld [vmem:[%s8154_s7 + $0x8e0] ss:$16 sps:$4 sm:$0xff]  }
 0x147   : > { %4213 = vmatpush1.bf16.msra.mxu1 %v6396_v8  ;;  %4141 = vmatprep.subr.bf16.mxu0 %v6401_v10  ;;  %v6498_v7 = vld [vmem:[%s8154_s7 + $0xae0] ss:$16 sps:$4 sm:$0xff]   ;;  %v6503_v8 = vld [vmem:[%s8154_s7 + $0x8c4] ss:$16 sps:$4 sm:$0xff]  }
 0x148   : > { %4214 = vmatprep.subr.bf16.mxu1 %v6404_v11  ;;  %v6507_v10 = vld [vmem:[%s9757_s1 + $0x84] ss:$56 sps:$4 sm:$0xff]  }
 0x149   : > { %4040 = vmatmul.mubr.bf16.gmra.mxu0 %v6451_v14  ;;  %v6516_v11 = vld [vmem:[%s9757_s1 + $0x8c] ss:$56 sps:$4 sm:$0xff]  }
 0x14a   : > { %4113 = vmatmul.mubr.bf16.gmra.mxu1 %v6452_v15  ;;  %4142 = vmatpush1.bf16.msra.mxu0 %v6399_v12  ;;  %v6501_v12 = vld [vmem:[%s8154_s7 + $0x8c0] ss:$16 sps:$4 sm:$0xff]   ;;  %v6512_v14 = vld [vmem:[%s8154_s7 + $0x8a4] ss:$16 sps:$4 sm:$0xff]  }
 0x14b   : > { %4215 = vmatpush1.bf16.msra.mxu1 %v6402_v13  ;;  %4143 = vmatprep.subr.bf16.mxu0 %v6407_v16  ;;  %v6504_v13 = vld [vmem:[%s8154_s7 + $0xac0] ss:$16 sps:$4 sm:$0xff]   ;;  %v6515_v15 = vld [vmem:[%s8154_s7 + $0xaa4] ss:$16 sps:$4 sm:$0xff]  }
 0x14c   : > { %4216 = vmatprep.subr.bf16.mxu1 %v6410_v17  ;;  %4049 = vmatprep.mubr.bf16.mxu0 %v6465_v18  ;;  %v6509_v16 = vld [vmem:[%s9757_s1 + $0x80] ss:$56 sps:$4 sm:$0xff]  }
 0x14d   : > { %4122 = vmatprep.mubr.bf16.mxu1 %v6467_v21  ;;  %v6510_v17 = vld [vmem:[%s8154_s7 + $0x8a0] ss:$16 sps:$4 sm:$0xff]   ;;  %v6524_v21 = vld [vmem:[%s8154_s7 + $0xa84] ss:$16 sps:$4 sm:$0xff]  }
 0x14e   : > { %4144 = vmatpush1.bf16.msra.mxu0 %v6405_v19  ;;  %v6513_v18 = vld [vmem:[%s8154_s7 + $0xaa0] ss:$16 sps:$4 sm:$0xff]  }
 0x14f   : > { %4217 = vmatpush1.bf16.msra.mxu1 %v6408_v20  ;;  %4145 = vmatprep.subr.bf16.mxu0 %v6413_v22  ;;  %v6518_v19 = vld [vmem:[%s9757_s1 + $0x88] ss:$56 sps:$4 sm:$0xff]   ;;  %v6521_v20 = vld [vmem:[%s8154_s7 + $0x884] ss:$16 sps:$4 sm:$0xff]  }
 0x150   : > { %4218 = vmatprep.subr.bf16.mxu1 %v6416_v23  ;;  %v6525_v22 = vld [vmem:[%s9757_s1 + $0xf4] ss:$56 sps:$4 sm:$0xff]  }
 0x151   : > { %4050 = vmatmul.mubr.bf16.gmra.mxu0 %v6469_v26  ;;  %v6534_v23 = vld [vmem:[%s9757_s1 + $0xfc] ss:$56 sps:$4 sm:$0xff]  }
 0x152   : > { %4123 = vmatmul.mubr.bf16.gmra.mxu1 %v6470_v27  ;;  %4146 = vmatpush1.bf16.msra.mxu0 %v6411_v24  ;;  %v6519_v24 = vld [vmem:[%s8154_s7 + $0x880] ss:$16 sps:$4 sm:$0xff]   ;;  %v6530_v26 = vld [vmem:[%s8154_s7 + $0x864] ss:$16 sps:$4 sm:$0xff]  }
 0x153   : > { %4219 = vmatpush1.bf16.msra.mxu1 %v6414_v25  ;;  %4147 = vmatprep.subr.bf16.mxu0 %v6419_v28  ;;  %v6522_v25 = vld [vmem:[%s8154_s7 + $0xa80] ss:$16 sps:$4 sm:$0xff]   ;;  %v6533_v27 = vld [vmem:[%s8154_s7 + $0xa64] ss:$16 sps:$4 sm:$0xff]  }
 0x154   : > { %4220 = vmatprep.subr.bf16.mxu1 %v6422_v29  ;;  %4165 = vmatprep.mubr.bf16.mxu0 %v6491_v34  ;;  %v6527_v28 = vld [vmem:[%s9757_s1 + $0xf0] ss:$56 sps:$4 sm:$0xff]   ;;  %v6543_v34 = vld [vmem:[%s9757_s1 + $0x164] ss:$56 sps:$4 sm:$0xff]  }
 0x155   : > { %4238 = vmatprep.mubr.bf16.mxu1 %v6494_v35  ;;  %v6528_v29 = vld [vmem:[%s8154_s7 + $0x860] ss:$16 sps:$4 sm:$0xff]   ;;  %v6552_v35 = vld [vmem:[%s9757_s1 + $0x16c] ss:$56 sps:$4 sm:$0xff]  }
 0x156   : > { %4148 = vmatpush1.bf16.msra.mxu0 %v6417_v30  ;;  %v6531_v30 = vld [vmem:[%s8154_s7 + $0xa60] ss:$16 sps:$4 sm:$0xff]  }
 0x157   : > { %4221 = vmatpush1.bf16.msra.mxu1 %v6420_v31  ;;  %4149 = vmatprep.subr.bf16.mxu0 %v6425_v32  ;;  %v6536_v31 = vld [vmem:[%s9757_s1 + $0xf8] ss:$56 sps:$4 sm:$0xff]   ;;  %v6539_v32 = vld [vmem:[%s8154_s7 + $0x844] ss:$16 sps:$4 sm:$0xff]  }
 0x158   : > { %4222 = vmatprep.subr.bf16.mxu1 %v6428_v33  ;;  %v6542_v33 = vld [vmem:[%s8154_s7 + $0xa44] ss:$16 sps:$4 sm:$0xff]  }
 0x15a   : > { %4150 = vmatpush2.bf16.msra.mxu0 %v6423_v36  ;;  %v6537_v36 = vld [vmem:[%s8154_s7 + $0x840] ss:$16 sps:$4 sm:$0xff]  }
 0x15b   : > { %4223 = vmatpush2.bf16.msra.mxu1 %v6426_v37  ;;  %4151 = vmatprep.subr.bf16.mxu0 %v6437_v38  ;;  %v6540_v37 = vld [vmem:[%s8154_s7 + $0xa40] ss:$16 sps:$4 sm:$0xff]   ;;  %v6548_v38 = vld [vmem:[%s8154_s7 + $0x824] ss:$16 sps:$4 sm:$0xff]  }
 0x15c   : > { %4224 = vmatprep.subr.bf16.mxu1 %v6440_v39  ;;  %v6551_v39 = vld [vmem:[%s8154_s7 + $0xa24] ss:$16 sps:$4 sm:$0xff]  }
 0x15e   : > { %4152 = vmatpush2.bf16.msra.mxu0 %v6435_v40  ;;  %v6545_v40 = vld [vmem:[%s9757_s1 + $0x160] ss:$56 sps:$4 sm:$0xff]  }
 0x15f   : > { %4225 = vmatpush2.bf16.msra.mxu1 %v6438_v41  ;;  %4153 = vmatprep.subr.bf16.mxu0 %v6443_v42  ;;  %v6546_v41 = vld [vmem:[%s8154_s7 + $0x820] ss:$16 sps:$4 sm:$0xff]  }
 0x160   : > { %4226 = vmatprep.subr.bf16.mxu1 %v6446_v43  ;;  %v6549_v42 = vld [vmem:[%s8154_s7 + $0xa20] ss:$16 sps:$4 sm:$0xff]  }
 0x161   : > { %v6554_v43 = vld [vmem:[%s9757_s1 + $0x168] ss:$56 sps:$4 sm:$0xff]  }
 0x162   : > { %4154 = vmatpush2.bf16.msra.mxu0 %v6441_v44  ;;  %v6557_v44 = vld [vmem:[%s8154_s7 + $0x804] ss:$16 sps:$4 sm:$0xff]  }
 0x163   : > { %4227 = vmatpush2.bf16.msra.mxu1 %v6444_v45  ;;  %4155 = vmatprep.subr.bf16.mxu0 %v6455_v46  ;;  %v6560_v45 = vld [vmem:[%s8154_s7 + $0xa04] ss:$16 sps:$4 sm:$0xff]  }
 0x164   : > { %4228 = vmatprep.subr.bf16.mxu1 %v6458_v47  ;;  %v6611_v46 = vld [vmem:[%s9757_s1 + $0x24] ss:$56 sps:$4 sm:$0xff]  }
 0x165   : > { %v6614_v47 = vld [vmem:[%s9757_s1 + $0x2c] ss:$56 sps:$4 sm:$0xff]  }
 0x166   : > { %4156 = vmatpush2.bf16.msra.mxu0 %v6453_v48  ;;  %v6555_v48 = vld [vmem:[%s8154_s7 + $0x800] ss:$16 sps:$4 sm:$0xff]  }
 0x167   : > { %4229 = vmatpush2.bf16.msra.mxu1 %v6456_v49  ;;  %4157 = vmatprep.subr.bf16.mxu0 %v6461_v50  ;;  %v6558_v49 = vld [vmem:[%s8154_s7 + $0xa00] ss:$16 sps:$4 sm:$0xff]   ;;  %v6563_v50 = vld [vmem:[%s8154_s7 + $0x9e4] ss:$16 sps:$4 sm:$0xff]  }
 0x168   : > { %4230 = vmatprep.subr.bf16.mxu1 %v6464_v51  ;;  %v6566_v51 = vld [vmem:[%s8154_s7 + $0xbe4] ss:$16 sps:$4 sm:$0xff]  }
 0x16a   : > { %4158 = vmatpush2.bf16.msra.mxu0 %v6459_v52  ;;  %v6561_v52 = vld [vmem:[%s8154_s7 + $0x9e0] ss:$16 sps:$4 sm:$0xff]  }
 0x16b   : > { %4231 = vmatpush2.bf16.msra.mxu1 %v6462_v53  ;;  %4159 = vmatprep.subr.bf16.mxu0 %v6473_v54  ;;  %v6564_v53 = vld [vmem:[%s8154_s7 + $0xbe0] ss:$16 sps:$4 sm:$0xff]   ;;  %v6569_v54 = vld [vmem:[%s8154_s7 + $0x9c4] ss:$16 sps:$4 sm:$0xff]  }
 0x16c   : > { %4232 = vmatprep.subr.bf16.mxu1 %v6476_v55  ;;  %v6572_v55 = vld [vmem:[%s8154_s7 + $0xbc4] ss:$16 sps:$4 sm:$0xff]  }
 0x16e   : > { %4160 = vmatpush2.bf16.msra.mxu0 %v6471_v56  ;;  %v6567_v56 = vld [vmem:[%s8154_s7 + $0x9c0] ss:$16 sps:$4 sm:$0xff]  }
 0x16f   : > { %4233 = vmatpush2.bf16.msra.mxu1 %v6474_v57  ;;  %4161 = vmatprep.subr.bf16.mxu0 %v6479_v58  ;;  %v6570_v57 = vld [vmem:[%s8154_s7 + $0xbc0] ss:$16 sps:$4 sm:$0xff]   ;;  %v6575_v58 = vld [vmem:[%s8154_s7 + $0x9a4] ss:$16 sps:$4 sm:$0xff]  }
 0x170   : > { %4234 = vmatprep.subr.bf16.mxu1 %v6482_v59  ;;  %v6578_v59 = vld [vmem:[%s8154_s7 + $0xba4] ss:$16 sps:$4 sm:$0xff]  }
 0x172   : > { %4162 = vmatpush2.bf16.msra.mxu0 %v6477_v60  ;;  %v6573_v60 = vld [vmem:[%s8154_s7 + $0x9a0] ss:$16 sps:$4 sm:$0xff]  }
 0x173   : > { %4235 = vmatpush2.bf16.msra.mxu1 %v6480_v61  ;;  %4163 = vmatprep.subr.bf16.mxu0 %v6485_v62  ;;  %v6576_v61 = vld [vmem:[%s8154_s7 + $0xba0] ss:$16 sps:$4 sm:$0xff]   ;;  %v6581_v62 = vld [vmem:[%s8154_s7 + $0x984] ss:$16 sps:$4 sm:$0xff]  }
 0x174   : > { %4236 = vmatprep.subr.bf16.mxu1 %v6488_v63  ;;  %v6584_v63 = vld [vmem:[%s8154_s7 + $0xb84] ss:$16 sps:$4 sm:$0xff]  }
 0x176   : > { %4164 = vmatpush2.bf16.msra.mxu0 %v6483_v0  ;;  %v6579_v0 = vld [vmem:[%s8154_s7 + $0x980] ss:$16 sps:$4 sm:$0xff]  }
 0x177   : > { %4237 = vmatpush2.bf16.msra.mxu1 %v6486_v1  ;;  %4279 = vmatprep.subr.bf16.mxu0 %v6497_v2  ;;  %v6582_v1 = vld [vmem:[%s8154_s7 + $0xb80] ss:$16 sps:$4 sm:$0xff]   ;;  %v6587_v2 = vld [vmem:[%s8154_s7 + $0x964] ss:$16 sps:$4 sm:$0xff]  }
 0x178   : > { %4352 = vmatprep.subr.bf16.mxu1 %v6500_v3  ;;  %v6590_v3 = vld [vmem:[%s8154_s7 + $0xb64] ss:$16 sps:$4 sm:$0xff]  }
 0x179   : > { %4166 = vmatmul.mubr.bf16.vlgmr.msra.gmra.mxu0 %v6489_v4  ;;  %v6585_v4 = vld [vmem:[%s8154_s7 + $0x960] ss:$16 sps:$4 sm:$0xff]  }
 0x17a   : > { %4239 = vmatmul.mubr.bf16.vlgmr.msra.gmra.mxu1 %v6492_v5  ;;  %4280 = vmatpush1.bf16.msra.mxu0 %v6495_v6  ;;  %v6588_v5 = vld [vmem:[%s8154_s7 + $0xb60] ss:$16 sps:$4 sm:$0xff]   ;;  %v6593_v6 = vld [vmem:[%s8154_s7 + $0x944] ss:$16 sps:$4 sm:$0xff]  }
 0x17b   : > { %4353 = vmatpush1.bf16.msra.mxu1 %v6498_v7  ;;  %4281 = vmatprep.subr.bf16.mxu0 %v6503_v8  ;;  %v6596_v7 = vld [vmem:[%s8154_s7 + $0xb44] ss:$16 sps:$4 sm:$0xff]   ;;  %v6591_v8 = vld [vmem:[%s8154_s7 + $0x940] ss:$16 sps:$4 sm:$0xff]  }
 0x17c   : > { %4354 = vmatprep.subr.bf16.mxu1 %v6506_v9  ;;  %4175 = vmatprep.mubr.bf16.mxu0 %v6507_v10  ;;  %v6594_v9 = vld [vmem:[%s8154_s7 + $0xb40] ss:$16 sps:$4 sm:$0xff]   ;;  %v6599_v10 = vld [vmem:[%s8154_s7 + $0x924] ss:$16 sps:$4 sm:$0xff]  }
 0x17d   : > { %4248 = vmatprep.mubr.bf16.mxu1 %v6516_v11  ;;  %v6602_v11 = vld [vmem:[%s8154_s7 + $0xb24] ss:$16 sps:$4 sm:$0xff]  }
 0x17e   : > { %4282 = vmatpush1.bf16.msra.mxu0 %v6501_v12  ;;  %v6597_v12 = vld [vmem:[%s8154_s7 + $0x920] ss:$16 sps:$4 sm:$0xff]  }
 0x17f   : > { %4355 = vmatpush1.bf16.msra.mxu1 %v6504_v13  ;;  %4283 = vmatprep.subr.bf16.mxu0 %v6512_v14  ;;  %v6600_v13 = vld [vmem:[%s8154_s7 + $0xb20] ss:$16 sps:$4 sm:$0xff]   ;;  %v6605_v14 = vld [vmem:[%s8154_s7 + $0x904] ss:$16 sps:$4 sm:$0xff]  }
 0x180   : > { %4356 = vmatprep.subr.bf16.mxu1 %v6515_v15  ;;  %v6608_v15 = vld [vmem:[%s8154_s7 + $0xb04] ss:$16 sps:$4 sm:$0xff]  }
 0x181   : > { %4176 = vmatmul.mubr.bf16.gmra.mxu0 %v6509_v16  ;;  %v6603_v16 = vld [vmem:[%s8154_s7 + $0x900] ss:$16 sps:$4 sm:$0xff]  }
 0x182   : > { %4249 = vmatmul.mubr.bf16.gmra.mxu1 %v6518_v19  ;;  %4284 = vmatpush1.bf16.msra.mxu0 %v6510_v17  ;;  %v6606_v17 = vld [vmem:[%s8154_s7 + $0xb00] ss:$16 sps:$4 sm:$0xff]   ;;  %v6620_v19 = vld [vmem:[%s8154_s7 + $0xec] ss:$16 sps:$4 sm:$0xff]  }
 0x183   : > { %4357 = vmatpush1.bf16.msra.mxu1 %v6513_v18  ;;  %4285 = vmatprep.subr.bf16.mxu0 %v6521_v20  ;;  %v6617_v18 = vld [vmem:[%s8154_s7 + $0xce4] ss:$16 sps:$4 sm:$0xff]   ;;  %v6609_v20 = vld [vmem:[%s9757_s1 + $0x20] ss:$56 sps:$4 sm:$0xff]  }
 0x184   : > { %4358 = vmatprep.subr.bf16.mxu1 %v6524_v21  ;;  %4185 = vmatprep.mubr.bf16.mxu0 %v6525_v22  ;;  %v6612_v21 = vld [vmem:[%s9757_s1 + $0x28] ss:$56 sps:$4 sm:$0xff]  }
 0x185   : > { %4258 = vmatprep.mubr.bf16.mxu1 %v6534_v23  ;;  %v6615_v22 = vld [vmem:[%s8154_s7 + $0xce0] ss:$16 sps:$4 sm:$0xff]   ;;  %v6618_v23 = vld [vmem:[%s8154_s7 + $0xe8] ss:$16 sps:$4 sm:$0xff]  }
 0x186   : > { %4286 = vmatpush1.bf16.msra.mxu0 %v6519_v24  ;;  %v6623_v24 = vld [vmem:[%s8154_s7 + $0xcc4] ss:$16 sps:$4 sm:$0xff]  }
 0x187   : > { %4359 = vmatpush1.bf16.msra.mxu1 %v6522_v25  ;;  %4287 = vmatprep.subr.bf16.mxu0 %v6530_v26  ;;  %v6626_v25 = vld [vmem:[%s8154_s7 + $0xcc] ss:$16 sps:$4 sm:$0xff]  }
 0x188   : > { %4360 = vmatprep.subr.bf16.mxu1 %v6533_v27  ;;  %v6627_v26 = vld [vmem:[%s9757_s1 + $0x94] ss:$56 sps:$4 sm:$0xff]  }
 0x189   : > { %4186 = vmatmul.mubr.bf16.gmra.mxu0 %v6527_v28  ;;  %v6636_v27 = vld [vmem:[%s9757_s1 + $0x9c] ss:$56 sps:$4 sm:$0xff]   ;;  %v6621_v28 = vld [vmem:[%s8154_s7 + $0xcc0] ss:$16 sps:$4 sm:$0xff]  }
 0x18a   : > { %4259 = vmatmul.mubr.bf16.gmra.mxu1 %v6536_v31  ;;  %4288 = vmatpush1.bf16.msra.mxu0 %v6528_v29  ;;  %v6624_v29 = vld [vmem:[%s8154_s7 + $0xc8] ss:$16 sps:$4 sm:$0xff]   ;;  %v6635_v31 = vld [vmem:[%s8154_s7 + $0xac] ss:$16 sps:$4 sm:$0xff]  }
 0x18b   : > { %4361 = vmatpush1.bf16.msra.mxu1 %v6531_v30  ;;  %4289 = vmatprep.subr.bf16.mxu0 %v6539_v32  ;;  %v6632_v30 = vld [vmem:[%s8154_s7 + $0xca4] ss:$16 sps:$4 sm:$0xff]   ;;  %v6629_v32 = vld [vmem:[%s9757_s1 + $0x90] ss:$56 sps:$4 sm:$0xff]  }
 0x18c   : > { %4362 = vmatprep.subr.bf16.mxu1 %v6542_v33  ;;  %4195 = vmatprep.mubr.bf16.mxu0 %v6543_v34  ;;  %v6630_v33 = vld [vmem:[%s8154_s7 + $0xca0] ss:$16 sps:$4 sm:$0xff]   ;;  %v6633_v34 = vld [vmem:[%s8154_s7 + $0xa8] ss:$16 sps:$4 sm:$0xff]  }
 0x18d   : > { %4268 = vmatprep.mubr.bf16.mxu1 %v6552_v35  ;;  %v6638_v35 = vld [vmem:[%s9757_s1 + $0x98] ss:$56 sps:$4 sm:$0xff]  }
 0x18e   : > { %4290 = vmatpush1.bf16.msra.mxu0 %v6537_v36  ;;  %v6641_v36 = vld [vmem:[%s8154_s7 + $0xc84] ss:$16 sps:$4 sm:$0xff]  }
 0x18f   : > { %4363 = vmatpush1.bf16.msra.mxu1 %v6540_v37  ;;  %4291 = vmatprep.subr.bf16.mxu0 %v6548_v38  ;;  %v6644_v37 = vld [vmem:[%s8154_s7 + $0x8c] ss:$16 sps:$4 sm:$0xff]  }
 0x190   : > { %4364 = vmatprep.subr.bf16.mxu1 %v6551_v39  ;;  %v6645_v38 = vld [vmem:[%s9757_s1 + $0x104] ss:$56 sps:$4 sm:$0xff]  }
 0x191   : > { %4196 = vmatmul.mubr.bf16.gmra.mxu0 %v6545_v40  ;;  %v6654_v39 = vld [vmem:[%s9757_s1 + $0x10c] ss:$56 sps:$4 sm:$0xff]   ;;  %v6639_v40 = vld [vmem:[%s8154_s7 + $0xc80] ss:$16 sps:$4 sm:$0xff]  }
 0x192   : > { %4269 = vmatmul.mubr.bf16.gmra.mxu1 %v6554_v43  ;;  %4292 = vmatpush1.bf16.msra.mxu0 %v6546_v41  ;;  %v6642_v41 = vld [vmem:[%s8154_s7 + $0x88] ss:$16 sps:$4 sm:$0xff]   ;;  %v6653_v43 = vld [vmem:[%s8154_s7 + $0x6c] ss:$16 sps:$4 sm:$0xff]  }
 0x193   : > { %4365 = vmatpush1.bf16.msra.mxu1 %v6549_v42  ;;  %4293 = vmatprep.subr.bf16.mxu0 %v6557_v44  ;;  %v6650_v42 = vld [vmem:[%s8154_s7 + $0xc64] ss:$16 sps:$4 sm:$0xff]   ;;  %v6647_v44 = vld [vmem:[%s9757_s1 + $0x100] ss:$56 sps:$4 sm:$0xff]  }
 0x194   : > { %4366 = vmatprep.subr.bf16.mxu1 %v6560_v45  ;;  %4311 = vmatprep.mubr.bf16.mxu0 %v6611_v46  ;;  %v6648_v45 = vld [vmem:[%s8154_s7 + $0xc60] ss:$16 sps:$4 sm:$0xff]   ;;  %v6651_v46 = vld [vmem:[%s8154_s7 + $0x68] ss:$16 sps:$4 sm:$0xff]  }
 0x195   : > { %4384 = vmatprep.mubr.bf16.mxu1 %v6614_v47  ;;  %v6656_v47 = vld [vmem:[%s9757_s1 + $0x108] ss:$56 sps:$4 sm:$0xff]  }
 0x196   : > { %4294 = vmatpush1.bf16.msra.mxu0 %v6555_v48  ;;  %v6659_v48 = vld [vmem:[%s8154_s7 + $0xc44] ss:$16 sps:$4 sm:$0xff]  }
 0x197   : > { %4367 = vmatpush1.bf16.msra.mxu1 %v6558_v49  ;;  %4295 = vmatprep.subr.bf16.mxu0 %v6563_v50  ;;  %v6662_v49 = vld [vmem:[%s8154_s7 + $0x4c] ss:$16 sps:$4 sm:$0xff]  }
 0x198   : > { %4368 = vmatprep.subr.bf16.mxu1 %v6566_v51  ;;  %v6663_v50 = vld [vmem:[%s9757_s1 + $0x174] ss:$56 sps:$4 sm:$0xff]  }
 0x199   : > { %v6672_v51 = vld [vmem:[%s9757_s1 + $0x17c] ss:$56 sps:$4 sm:$0xff]  }
 0x19a   : > { %4296 = vmatpush2.bf16.msra.mxu0 %v6561_v52  ;;  %v6657_v52 = vld [vmem:[%s8154_s7 + $0xc40] ss:$16 sps:$4 sm:$0xff]  }
 0x19b   : > { %4369 = vmatpush2.bf16.msra.mxu1 %v6564_v53  ;;  %4297 = vmatprep.subr.bf16.mxu0 %v6569_v54  ;;  %v6660_v53 = vld [vmem:[%s8154_s7 + $0x48] ss:$16 sps:$4 sm:$0xff]   ;;  %v6668_v54 = vld [vmem:[%s8154_s7 + $0xc24] ss:$16 sps:$4 sm:$0xff]  }
 0x19c   : > { %4370 = vmatprep.subr.bf16.mxu1 %v6572_v55  ;;  %v6671_v55 = vld [vmem:[%s8154_s7 + $0x2c] ss:$16 sps:$4 sm:$0xff]  }
 0x19e   : > { %4298 = vmatpush2.bf16.msra.mxu0 %v6567_v56  ;;  %v6665_v56 = vld [vmem:[%s9757_s1 + $0x170] ss:$56 sps:$4 sm:$0xff]  }
 0x19f   : > { %4371 = vmatpush2.bf16.msra.mxu1 %v6570_v57  ;;  %4299 = vmatprep.subr.bf16.mxu0 %v6575_v58  ;;  %v6666_v57 = vld [vmem:[%s8154_s7 + $0xc20] ss:$16 sps:$4 sm:$0xff]   ;;  %v6669_v58 = vld [vmem:[%s8154_s7 + $0x28] ss:$16 sps:$4 sm:$0xff]  }
 0x1a0   : > { %4372 = vmatprep.subr.bf16.mxu1 %v6578_v59  ;;  %v6674_v59 = vld [vmem:[%s9757_s1 + $0x178] ss:$56 sps:$4 sm:$0xff]  }
 0x1a2   : > { %4300 = vmatpush2.bf16.msra.mxu0 %v6573_v60  ;;  %v7213_v60 = vmov 0  }
 0x1a3   : > { %4373 = vmatpush2.bf16.msra.mxu1 %v6576_v61  ;;  %4301 = vmatprep.subr.bf16.mxu0 %v6581_v62  ;;  %v6677_v61 = vld [vmem:[%s8154_s7 + $0xc04] ss:$16 sps:$4 sm:$0xff]   ;;  %v6680_v62 = vld [vmem:[%s8154_s7 + $0xc] ss:$16 sps:$4 sm:$0xff]  }
 0x1a4   : > { %4374 = vmatprep.subr.bf16.mxu1 %v6584_v63  ;;  %6269 = vset.pattern.permute.xlu0 %v7213_v60  ;;  %v6707_v63 = vld [vmem:[%s9757_s1 + $0x34] ss:$56 sps:$4 sm:$0xff]  }
 0x1a5   : > { %6270 = vset.pattern.permute.xlu1 %v7213_v60  ;;  %v6764_v60 = vld [vmem:[%s8154_s7 + $0x48c] ss:$16 sps:$4 sm:$0xff]  }
 0x1a6   : > { %4302 = vmatpush2.bf16.msra.mxu0 %v6579_v0  ;;  %v6675_v0 = vld [vmem:[%s8154_s7 + $0xc00] ss:$16 sps:$4 sm:$0xff]  }
 0x1a7   : > { %4375 = vmatpush2.bf16.msra.mxu1 %v6582_v1  ;;  %4303 = vmatprep.subr.bf16.mxu0 %v6587_v2  ;;  %v6678_v1 = vld [vmem:[%s8154_s7 + $0x8] ss:$16 sps:$4 sm:$0xff]   ;;  %v6683_v2 = vld [vmem:[%s8154_s7 + $0xd64] ss:$16 sps:$4 sm:$0xff]  }
 0x1a8   : > { %4376 = vmatprep.subr.bf16.mxu1 %v6590_v3  ;;  %v6686_v3 = vld [vmem:[%s8154_s7 + $0x1ec] ss:$16 sps:$4 sm:$0xff]  }
 0x1aa   : > { %4304 = vmatpush2.bf16.msra.mxu0 %v6585_v4  ;;  %v7133_v4 = vld [vmem:[%s9757_s1 + $0x4] ss:$56 sps:$4 sm:$0xff]  }
 0x1ab   : > { %4377 = vmatpush2.bf16.msra.mxu1 %v6588_v5  ;;  %4305 = vmatprep.subr.bf16.mxu0 %v6593_v6  ;;  %v6681_v5 = vld [vmem:[%s8154_s7 + $0xd60] ss:$16 sps:$4 sm:$0xff]   ;;  %v6684_v6 = vld [vmem:[%s8154_s7 + $0x1e8] ss:$16 sps:$4 sm:$0xff]  }
 0x1ac   : > { %4378 = vmatprep.subr.bf16.mxu1 %v6596_v7  ;;  %v6689_v7 = vld [vmem:[%s8154_s7 + $0xd44] ss:$16 sps:$4 sm:$0xff]  }
 0x1ae   : > { %4306 = vmatpush2.bf16.msra.mxu0 %v6591_v8  ;;  %v6692_v8 = vld [vmem:[%s8154_s7 + $0x1cc] ss:$16 sps:$4 sm:$0xff]  }
 0x1af   : > { %4379 = vmatpush2.bf16.msra.mxu1 %v6594_v9  ;;  %4307 = vmatprep.subr.bf16.mxu0 %v6599_v10  ;;  %v6687_v9 = vld [vmem:[%s8154_s7 + $0xd40] ss:$16 sps:$4 sm:$0xff]   ;;  %v6690_v10 = vld [vmem:[%s8154_s7 + $0x1c8] ss:$16 sps:$4 sm:$0xff]  }
 0x1b0   : > { %4380 = vmatprep.subr.bf16.mxu1 %v6602_v11  ;;  %v6695_v11 = vld [vmem:[%s8154_s7 + $0xd24] ss:$16 sps:$4 sm:$0xff]  }
 0x1b2   : > { %4308 = vmatpush2.bf16.msra.mxu0 %v6597_v12  ;;  %v6698_v12 = vld [vmem:[%s8154_s7 + $0x1ac] ss:$16 sps:$4 sm:$0xff]  }
 0x1b3   : > { %4381 = vmatpush2.bf16.msra.mxu1 %v6600_v13  ;;  %4309 = vmatprep.subr.bf16.mxu0 %v6605_v14  ;;  %v6693_v13 = vld [vmem:[%s8154_s7 + $0xd20] ss:$16 sps:$4 sm:$0xff]   ;;  %v6696_v14 = vld [vmem:[%s8154_s7 + $0x1a8] ss:$16 sps:$4 sm:$0xff]  }
 0x1b4   : > { %4382 = vmatprep.subr.bf16.mxu1 %v6608_v15  ;;  %v6701_v15 = vld [vmem:[%s8154_s7 + $0xd04] ss:$16 sps:$4 sm:$0xff]  }
 0x1b6   : > { %4310 = vmatpush2.bf16.msra.mxu0 %v6603_v16  ;;  %v6704_v16 = vld [vmem:[%s8154_s7 + $0x18c] ss:$16 sps:$4 sm:$0xff]  }
 0x1b7   : > { %4383 = vmatpush2.bf16.msra.mxu1 %v6606_v17  ;;  %4425 = vmatprep.subr.bf16.mxu0 %v6617_v18  ;;  %v6699_v17 = vld [vmem:[%s8154_s7 + $0xd00] ss:$16 sps:$4 sm:$0xff]   ;;  %v6702_v18 = vld [vmem:[%s8154_s7 + $0x188] ss:$16 sps:$4 sm:$0xff]  }
 0x1b8   : > { %4498 = vmatprep.subr.bf16.mxu1 %v6620_v19  ;;  %v6710_v19 = vld [vmem:[%s8154_s7 + $0x16c] ss:$16 sps:$4 sm:$0xff]  }
 0x1b9   : > { %4312 = vmatmul.mubr.bf16.vlgmr.msra.gmra.mxu0 %v6609_v20  ;;  %v6713_v20 = vld [vmem:[%s8154_s7 + $0x2ec] ss:$16 sps:$4 sm:$0xff]  }
 0x1ba   : > { %4385 = vmatmul.mubr.bf16.vlgmr.msra.gmra.mxu1 %v6612_v21  ;;  %4426 = vmatpush1.bf16.msra.mxu0 %v6615_v22  ;;  %v6705_v21 = vld [vmem:[%s9757_s1 + $0x30] ss:$56 sps:$4 sm:$0xff]  }
 0x1bb   : > { %4499 = vmatpush1.bf16.msra.mxu1 %v6618_v23  ;;  %4427 = vmatprep.subr.bf16.mxu0 %v6623_v24  ;;  %v6708_v22 = vld [vmem:[%s8154_s7 + $0x168] ss:$16 sps:$4 sm:$0xff]   ;;  %v6716_v24 = vld [vmem:[%s8154_s7 + $0x14c] ss:$16 sps:$4 sm:$0xff]  }
 0x1bc   : > { %4500 = vmatprep.subr.bf16.mxu1 %v6626_v25  ;;  %4321 = vmatprep.mubr.bf16.mxu0 %v6627_v26  ;;  %v6711_v23 = vld [vmem:[%s8154_s7 + $0x2e8] ss:$16 sps:$4 sm:$0xff]   ;;  %v6719_v25 = vld [vmem:[%s8154_s7 + $0x2cc] ss:$16 sps:$4 sm:$0xff]  }
 0x1bd   : > { %4394 = vmatprep.mubr.bf16.mxu1 %v6636_v27  ;;  %v6720_v26 = vld [vmem:[%s9757_s1 + $0xa4] ss:$56 sps:$4 sm:$0xff]   ;;  %v6714_v27 = vld [vmem:[%s8154_s7 + $0x148] ss:$16 sps:$4 sm:$0xff]  }
 0x1be   : > { %4428 = vmatpush1.bf16.msra.mxu0 %v6621_v28  ;;  %v6717_v28 = vld [vmem:[%s8154_s7 + $0x2c8] ss:$16 sps:$4 sm:$0xff]  }
 0x1bf   : > { %4501 = vmatpush1.bf16.msra.mxu1 %v6624_v29  ;;  %4429 = vmatprep.subr.bf16.mxu0 %v6632_v30  ;;  %v6725_v29 = vld [vmem:[%s8154_s7 + $0x12c] ss:$16 sps:$4 sm:$0xff]  }
 0x1c0   : > { %4502 = vmatprep.subr.bf16.mxu1 %v6635_v31  ;;  %v6728_v30 = vld [vmem:[%s8154_s7 + $0x2ac] ss:$16 sps:$4 sm:$0xff]   ;;  %v6722_v31 = vld [vmem:[%s9757_s1 + $0xa0] ss:$56 sps:$4 sm:$0xff]  }
 0x1c1   : > { %4322 = vmatmul.mubr.bf16.gmra.mxu0 %v6629_v32  ;;  %v6723_v32 = vld [vmem:[%s8154_s7 + $0x128] ss:$16 sps:$4 sm:$0xff]  }
 0x1c2   : > { %4395 = vmatmul.mubr.bf16.gmra.mxu1 %v6638_v35  ;;  %4430 = vmatpush1.bf16.msra.mxu0 %v6630_v33  ;;  %v6726_v33 = vld [vmem:[%s8154_s7 + $0x2a8] ss:$16 sps:$4 sm:$0xff]   ;;  %v6734_v35 = vld [vmem:[%s8154_s7 + $0x28c] ss:$16 sps:$4 sm:$0xff]  }
 0x1c3   : > { %4503 = vmatpush1.bf16.msra.mxu1 %v6633_v34  ;;  %4431 = vmatprep.subr.bf16.mxu0 %v6641_v36  ;;  %v6731_v34 = vld [vmem:[%s8154_s7 + $0x10c] ss:$16 sps:$4 sm:$0xff]  }
 0x1c4   : > { %4504 = vmatprep.subr.bf16.mxu1 %v6644_v37  ;;  %4331 = vmatprep.mubr.bf16.mxu0 %v6645_v38  ;;  %v6735_v36 = vld [vmem:[%s9757_s1 + $0x114] ss:$56 sps:$4 sm:$0xff]   ;;  %v6729_v37 = vld [vmem:[%s8154_s7 + $0x108] ss:$16 sps:$4 sm:$0xff]  }
 0x1c5   : > { %4404 = vmatprep.mubr.bf16.mxu1 %v6654_v39  ;;  %v6732_v38 = vld [vmem:[%s8154_s7 + $0x288] ss:$16 sps:$4 sm:$0xff]   ;;  %v6740_v39 = vld [vmem:[%s8154_s7 + $0x26c] ss:$16 sps:$4 sm:$0xff]  }
 0x1c6   : > { %4432 = vmatpush1.bf16.msra.mxu0 %v6639_v40  ;;  %v6743_v40 = vld [vmem:[%s8154_s7 + $0x4ec] ss:$16 sps:$4 sm:$0xff]  }
 0x1c7   : > { %4505 = vmatpush1.bf16.msra.mxu1 %v6642_v41  ;;  %4433 = vmatprep.subr.bf16.mxu0 %v6650_v42  ;;  %v6737_v41 = vld [vmem:[%s9757_s1 + $0x110] ss:$56 sps:$4 sm:$0xff]  }
 0x1c8   : > { %4506 = vmatprep.subr.bf16.mxu1 %v6653_v43  ;;  %v6738_v42 = vld [vmem:[%s8154_s7 + $0x268] ss:$16 sps:$4 sm:$0xff]  }
 0x1c9   : > { %4332 = vmatmul.mubr.bf16.gmra.mxu0 %v6647_v44  ;;  %v6741_v43 = vld [vmem:[%s8154_s7 + $0x4e8] ss:$16 sps:$4 sm:$0xff]   ;;  %v6746_v44 = vld [vmem:[%s8154_s7 + $0x24c] ss:$16 sps:$4 sm:$0xff]  }
 0x1ca   : > { %4405 = vmatmul.mubr.bf16.gmra.mxu1 %v6656_v47  ;;  %4434 = vmatpush1.bf16.msra.mxu0 %v6648_v45  ;;  %v6749_v45 = vld [vmem:[%s8154_s7 + $0x4cc] ss:$16 sps:$4 sm:$0xff]   ;;  %v7134_v47 = vld [vmem:[%s9757_s1] ss:$56 sps:$4 sm:$0xff]  }
 0x1cb   : > { %4507 = vmatpush1.bf16.msra.mxu1 %v6651_v46  ;;  %4435 = vmatprep.subr.bf16.mxu0 %v6659_v48  ;;  %v6750_v46 = vld [vmem:[%s9757_s1 + $0x184] ss:$56 sps:$4 sm:$0xff]   ;;  %v6744_v48 = vld [vmem:[%s8154_s7 + $0x248] ss:$16 sps:$4 sm:$0xff]  }
 0x1cc   : > { %4508 = vmatprep.subr.bf16.mxu1 %v6662_v49  ;;  %4341 = vmatprep.mubr.bf16.mxu0 %v6663_v50  ;;  %v6747_v49 = vld [vmem:[%s8154_s7 + $0x4c8] ss:$16 sps:$4 sm:$0xff]   ;;  %v8591_v50 = vld [vmem:[%s9758_s2] sm:$0xff] }
 0x1cd   : > { %4414 = vmatprep.mubr.bf16.mxu1 %v6672_v51  ;;  %v6755_v51 = vld [vmem:[%s8154_s7 + $0x22c] ss:$16 sps:$4 sm:$0xff]   ;;  %5339 = vperm.xlu0 %6269, %v8591_v50  }
 0x1ce   : > { %4436 = vmatpush1.bf16.msra.mxu0 %v6657_v52  ;;  %v6758_v52 = vld [vmem:[%s8154_s7 + $0x4ac] ss:$16 sps:$4 sm:$0xff]  }
 0x1cf   : > { %4509 = vmatpush1.bf16.msra.mxu1 %v6660_v53  ;;  %4437 = vmatprep.subr.bf16.mxu0 %v6668_v54  ;;  %v6752_v53 = vld [vmem:[%s9757_s1 + $0x180] ss:$56 sps:$4 sm:$0xff]   ;;  %v7135_v54 = vld [vmem:[%s9757_s1 + $0x74] ss:$56 sps:$4 sm:$0xff]  }
 0x1d0   : > { %4510 = vmatprep.subr.bf16.mxu1 %v6671_v55  ;;  %v6753_v55 = vld [vmem:[%s8154_s7 + $0x228] ss:$16 sps:$4 sm:$0xff]  }
 0x1d1   : > { %4342 = vmatmul.mubr.bf16.gmra.mxu0 %v6665_v56  ;;  %v8607_v56 = vld [vmem:[%s9758_s2 + $0x10] sm:$0xff] }
 0x1d2   : > { %4415 = vmatmul.mubr.bf16.gmra.mxu1 %v6674_v59  ;;  %4438 = vmatpush1.bf16.msra.mxu0 %v6666_v57  ;;  %v6756_v57 = vld [vmem:[%s8154_s7 + $0x4a8] ss:$16 sps:$4 sm:$0xff]  }
 0x1d3   : > { %4511 = vmatpush1.bf16.msra.mxu1 %v6669_v58  ;;  %4439 = vmatprep.subr.bf16.mxu0 %v6677_v61  ;;  %v6761_v58 = vld [vmem:[%s8154_s7 + $0x20c] ss:$16 sps:$4 sm:$0xff]   ;;  %v6759_v61 = vld [vmem:[%s8154_s7 + $0x208] ss:$16 sps:$4 sm:$0xff]  }
 0x1d4   : > { %4512 = vmatprep.subr.bf16.mxu1 %v6680_v62  ;;  %6194 = vmatprep.mubr.msk.bf16.mxu0 %vm3974_vm0, %v6707_v63  ;;  %v6762_v62 = vld [vmem:[%s8154_s7 + $0x488] ss:$16 sps:$4 sm:$0xff]  }
 0x1d5   : > { %4530 = vmatprep.mubr.bf16.mxu1 %v7133_v4  ;;  %5349 = vperm.xlu1 %6270, %v8607_v56   ;;  %v7136_v63 = vld [vmem:[%s9757_s1 + $0x70] ss:$56 sps:$4 sm:$0xff]   ;;  %v6770_v4 = vld [vmem:[%s8154_s7 + $0x46c] ss:$16 sps:$4 sm:$0xff]  }
 0x1d6   : > { %4440 = vmatpush1.bf16.msra.mxu0 %v6675_v0  ;;  %v8623_v0 = vld [vmem:[%s9758_s2 + $0x8] sm:$0xff] }
 0x1d7   : > { %4513 = vmatpush1.bf16.msra.mxu1 %v6678_v1  ;;  %4449 = vmatprep.subr.bf16.mxu0 %v6683_v2  ;;  %v8628_v1 = vld [vmem:[%s9758_s2 + $0x18] sm:$0xff] }
 0x1d8   : > { %4514 = vmatprep.subr.bf16.mxu1 %v6686_v3  ;;  %v6767_v3 = vld [vmem:[%s8154_s7 + $0x3ec] ss:$16 sps:$4 sm:$0xff]   ;;  %5344 = vperm.xlu0 %6269, %v8623_v0  }
 0x1d9   : > { %5354 = vperm.xlu1 %6270, %v8628_v1  }
 0x1da   : > { %4450 = vmatpush2.bf16.msra.mxu0 %v6681_v5  ;;  %v7137_v5 = vld [vmem:[%s9757_s1 + $0xe4] ss:$56 sps:$4 sm:$0xff]  }
 0x1db   : > { %4515 = vmatpush2.bf16.msra.mxu1 %v6684_v6  ;;  %4451 = vmatprep.subr.bf16.mxu0 %v6689_v7  ;;  %v7138_v6 = vld [vmem:[%s9757_s1 + $0xc] ss:$56 sps:$4 sm:$0xff]   ;;  %v6765_v7 = vld [vmem:[%s8154_s7 + $0x3e8] ss:$16 sps:$4 sm:$0xff]  }
 0x1dc   : > { %4516 = vmatprep.subr.bf16.mxu1 %v6692_v8  ;;  %v6768_v8 = vld [vmem:[%s8154_s7 + $0x468] ss:$16 sps:$4 sm:$0xff]  }
 0x1de   : > { %4452 = vmatpush2.bf16.msra.mxu0 %v6687_v9  ;;  %v6773_v9 = vld [vmem:[%s8154_s7 + $0x3cc] ss:$16 sps:$4 sm:$0xff]  }
 0x1df   : > { %4517 = vmatpush2.bf16.msra.mxu1 %v6690_v10  ;;  %4453 = vmatprep.subr.bf16.mxu0 %v6695_v11  ;;  %v8648_v10 = vld [vmem:[%s9758_s2 + $0x20] sm:$0xff] }
 0x1e0   : > { %4518 = vmatprep.subr.bf16.mxu1 %v6698_v12  ;;  %v6776_v12 = vld [vmem:[%s8154_s7 + $0x44c] ss:$16 sps:$4 sm:$0xff]   ;;  %5359 = vperm.xlu0 %6269, %v8648_v10  }
 0x1e2   : > { %4454 = vmatpush2.bf16.msra.mxu0 %v6693_v13  ;;  %v6771_v13 = vld [vmem:[%s8154_s7 + $0x3c8] ss:$16 sps:$4 sm:$0xff]  }
 0x1e3   : > { %4519 = vmatpush2.bf16.msra.mxu1 %v6696_v14  ;;  %4455 = vmatprep.subr.bf16.mxu0 %v6701_v15  ;;  %v6774_v14 = vld [vmem:[%s8154_s7 + $0x448] ss:$16 sps:$4 sm:$0xff]   ;;  %v6779_v15 = vld [vmem:[%s8154_s7 + $0x3ac] ss:$16 sps:$4 sm:$0xff]  }
 0x1e4   : > { %4520 = vmatprep.subr.bf16.mxu1 %v6704_v16  ;;  %v7139_v16 = vld [vmem:[%s9757_s1 + $0xe0] ss:$56 sps:$4 sm:$0xff]  }
 0x1e6   : > { %4456 = vmatpush2.bf16.msra.mxu0 %v6699_v17  ;;  %v8663_v17 = vld [vmem:[%s9758_s2 + $0x28] sm:$0xff] }
 0x1e7   : > { %4521 = vmatpush2.bf16.msra.mxu1 %v6702_v18  ;;  %4571 = vmatprep.subr.bf16.mxu0 %v6713_v20  ;;  %v8668_v18 = vld [vmem:[%s9758_s2 + $0x30] sm:$0xff] }
 0x1e8   : > { %4522 = vmatprep.subr.bf16.mxu1 %v6710_v19  ;;  %5364 = vperm.xlu1 %6270, %v8663_v17  }
 0x1e9   : > { %4458 = vmatmul.mubr.bf16.vlgmr.msra.gmra.mxu0 %v6705_v21  ;;  %v6782_v21 = vld [vmem:[%s8154_s7 + $0x42c] ss:$16 sps:$4 sm:$0xff]   ;;  %5369 = vperm.xlu0 %6269, %v8668_v18  }
 0x1ea   : > { %4572 = vmatpush1.bf16.msra.mxu0 %v6711_v23  ;;  %6195 = vmatprep.mubr.msk.bf16.mxu0 %vm3974_vm0, %v6720_v26  ;;  %v7140_v23 = vld [vmem:[%s9757_s1 + $0x154] ss:$56 sps:$4 sm:$0xff]   ;;  %v5336_v26 = vld [vmem:[%s9758_s2 + $0x38] sm:$0xff] }
 0x1eb   : > { %4523 = vmatpush2.bf16.msra.mxu1 %v6708_v22  ;;  %4573 = vmatprep.subr.bf16.mxu0 %v6719_v25  ;;  %v6777_v22 = vld [vmem:[%s8154_s7 + $0x3a8] ss:$16 sps:$4 sm:$0xff]  }
 0x1ec   : > { %4524 = vmatprep.subr.bf16.mxu1 %v6716_v24  ;;  %v6780_v24 = vld [vmem:[%s8154_s7 + $0x428] ss:$16 sps:$4 sm:$0xff]   ;;  %5374 = vperm.xlu1 %6270, %v5336_v26  }
 0x1ee   : > { %4574 = vmatpush1.bf16.msra.mxu0 %v6717_v28 }
 0x1ef   : > { %4525 = vmatpush2.bf16.msra.mxu1 %v6714_v27  ;;  %4575 = vmatprep.subr.bf16.mxu0 %v6728_v30  ;;  %v6785_v27 = vld [vmem:[%s8154_s7 + $0x38c] ss:$16 sps:$4 sm:$0xff]   ;;  %v6783_v30 = vld [vmem:[%s8154_s7 + $0x388] ss:$16 sps:$4 sm:$0xff]  }
 0x1f0   : > { %4526 = vmatprep.subr.bf16.mxu1 %v6725_v29  ;;  %v6788_v29 = vld [vmem:[%s8154_s7 + $0x40c] ss:$16 sps:$4 sm:$0xff]  }
 0x1f1   : > { %4468 = vmatmul.mubr.bf16.gmra.mxu0 %v6722_v31  ;;  %v6786_v31 = vld [vmem:[%s8154_s7 + $0x408] ss:$16 sps:$4 sm:$0xff]  }
 0x1f2   : > { %4576 = vmatpush1.bf16.msra.mxu0 %v6726_v33  ;;  %6196 = vmatprep.mubr.msk.bf16.mxu0 %vm3974_vm0, %v6735_v36  ;;  %v7141_v33 = vld [vmem:[%s9757_s1 + $0x150] ss:$56 sps:$4 sm:$0xff]  }
 0x1f3   : > { %4527 = vmatpush2.bf16.msra.mxu1 %v6723_v32  ;;  %4577 = vmatprep.subr.bf16.mxu0 %v6734_v35  ;;  %v6791_v35 = vld [vmem:[%s8154_s7 + $0x36c] ss:$16 sps:$4 sm:$0xff]  }
 0x1f4   : > { %4528 = vmatprep.subr.bf16.mxu1 %v6731_v34  ;;  %v7214_v34 = vmov 1  }
 0x1f5   : > { %6271 = vset.pattern.permute.xlu0 %v7214_v34  ;;  %6272 = vset.pattern.permute.xlu1 %v7214_v34  ;;  %v7146_v34 = vld [vmem:[%s9757_s1 + $0xec] ss:$56 sps:$4 sm:$0xff]  }
 0x1f6   : > { %4578 = vmatpush1.bf16.msra.mxu0 %v6732_v38  ;;  %v7142_v38 = vld [vmem:[%s9757_s1 + $0x14] ss:$56 sps:$4 sm:$0xff]   ;;  %5410 = vperm.xlu0 %6271, %v8591_v50  }
 0x1f7   : > { %4529 = vmatpush2.bf16.msra.mxu1 %v6729_v37  ;;  %4579 = vmatprep.subr.bf16.mxu0 %v6740_v39  ;;  %v6794_v37 = vld [vmem:[%s8154_s7 + $0x5ec] ss:$16 sps:$4 sm:$0xff]   ;;  %v6789_v39 = vld [vmem:[%s8154_s7 + $0x368] ss:$16 sps:$4 sm:$0xff]  }
 0x1f8   : > { %4644 = vmatprep.subr.bf16.mxu1 %v6743_v40  ;;  %v6792_v40 = vld [vmem:[%s8154_s7 + $0x5e8] ss:$16 sps:$4 sm:$0xff]   ;;  %5414 = vperm.xlu1 %6272, %v8623_v0   ;;  %v6806_v50 = vld [vmem:[%s8154_s7 + $0x5ac] ss:$16 sps:$4 sm:$0xff]  }
 0x1f9   : > { %4478 = vmatmul.mubr.bf16.gmra.mxu0 %v6737_v41  ;;  %v8611_v59 = vpop.f32.mrf.mxu0 }
 0x1fa   : > { %4531 = vmatmul.mubr.bf16.vlgmr.msra.gmra.mxu1 %v7134_v47  ;;  %4580 = vmatpush1.bf16.msra.mxu0 %v6738_v42  ;;  %v8670_v19 = vpop.f32.mrf.mxu1  ;;  %v6797_v42 = vld [vmem:[%s8154_s7 + $0x34c] ss:$16 sps:$4 sm:$0xff]   ;;  %v6798_v47 = vld [vmem:[%s8154_s7 + $0x5c8] ss:$16 sps:$4 sm:$0xff]  }
 0x1fb   : > { %4645 = vmatpush1.bf16.msra.mxu1 %v6741_v43  ;;  %4581 = vmatprep.subr.bf16.mxu0 %v6746_v44  ;;  %v8630_v2 = vpop.f32.mrf.mxu0  ;;  %v6800_v44 = vld [vmem:[%s8154_s7 + $0x5cc] ss:$16 sps:$4 sm:$0xff]  }
 0x1fc   : > { %4646 = vmatprep.subr.bf16.mxu1 %v6749_v45  ;;  %6197 = vmatprep.mubr.msk.bf16.mxu0 %vm3974_vm0, %v6750_v46  ;;  %v8688_v28 = vpop.f32.mrf.mxu1  ;;  %v6795_v46 = vld [vmem:[%s8154_s7 + $0x348] ss:$16 sps:$4 sm:$0xff]  }
 0x1fd   : > { %4540 = vmatprep.mubr.bf16.mxu1 %v7135_v54  ;;  %v8650_v11 = vpop.f32.mrf.mxu0  ;;  %5422 = vperm.xlu0 %6271, %v8628_v1  }
 0x1fe   : > { %4582 = vmatpush1.bf16.msra.mxu0 %v6744_v48  ;;  %v8699_v36 = vpop.f32.mrf.mxu1  ;;  %5418 = vperm.xlu1 %6272, %v8607_v56  }
 0x1ff   : > { %4647 = vmatpush1.bf16.msra.mxu1 %v6747_v49  ;;  %4583 = vmatprep.subr.bf16.mxu0 %v6755_v51  ;;  %v8672_v20 = vpop.f32.mrf.mxu0  ;;  %v6803_v49 = vld [vmem:[%s8154_s7 + $0x32c] ss:$16 sps:$4 sm:$0xff]  }
 0x200   : > { %4648 = vmatprep.subr.bf16.mxu1 %v6758_v52  ;;  %v8711_v43 = vpop.f32.mrf.mxu1  ;;  %v6801_v52 = vld [vmem:[%s8154_s7 + $0x328] ss:$16 sps:$4 sm:$0xff]  }
 0x201   : > { %4488 = vmatmul.mubr.bf16.gmra.mxu0 %v6752_v53  ;;  %v8681_v25 = vpop.f32.mrf.mxu0  ;;  %5430 = vperm.xlu0 %6271, %v8663_v17   ;;  %v6804_v53 = vld [vmem:[%s8154_s7 + $0x5a8] ss:$16 sps:$4 sm:$0xff]  }
 0x202   : > { %4541 = vmatmul.mubr.bf16.gmra.mxu1 %v7136_v63  ;;  %4584 = vmatpush1.bf16.msra.mxu0 %v6753_v55  ;;  %v8716_v45 = vpop.f32.mrf.mxu1  ;;  %v6809_v55 = vld [vmem:[%s8154_s7 + $0x30c] ss:$16 sps:$4 sm:$0xff]  }
 0x203   : > { %4649 = vmatpush1.bf16.msra.mxu1 %v6756_v57  ;;  %4585 = vmatprep.subr.bf16.mxu0 %v6761_v58  ;;  %v8693_v32 = vpop.f32.mrf.mxu0  ;;  %v6812_v57 = vld [vmem:[%s8154_s7 + $0x58c] ss:$16 sps:$4 sm:$0xff]   ;;  %v6807_v58 = vld [vmem:[%s8154_s7 + $0x308] ss:$16 sps:$4 sm:$0xff]  }
 0x204   : > { %4650 = vmatprep.subr.bf16.mxu1 %v6764_v60  ;;  %4550 = vmatprep.mubr.bf16.mxu1 %v7137_v5  ;;  %v8726_v51 = vpop.f32.mrf.mxu1  ;;  %v6810_v60 = vld [vmem:[%s8154_s7 + $0x588] ss:$16 sps:$4 sm:$0xff]   ;;  %v6818_v63 = vld [vmem:[%s8154_s7 + $0x6ec] ss:$16 sps:$4 sm:$0xff]  }
 0x205   : > { %4603 = vmatprep.mubr.bf16.mxu0 %v7138_v6  ;;  %v8708_v41 = vpop.f32.mrf.mxu0  ;;  %5426 = vperm.xlu1 %6272, %v8648_v10   ;;  %v6821_v5 = vld [vmem:[%s8154_s7 + $0x54c] ss:$16 sps:$4 sm:$0xff]   ;;  %v6819_v10 = vld [vmem:[%s8154_s7 + $0x548] ss:$16 sps:$4 sm:$0xff]  }
 0x206   : > { %4586 = vmatpush1.bf16.msra.mxu0 %v6759_v61  ;;  %5438 = vperm.xlu0 %6271, %v5336_v26   ;;  %v8735_v56 = vpop.f32.mrf.mxu1  ;;  %v6824_v6 = vld [vmem:[%s8154_s7 + $0x6cc] ss:$16 sps:$4 sm:$0xff]  }
 0x207   : > { %4651 = vmatpush1.bf16.msra.mxu1 %v6762_v62  ;;  %4587 = vmatprep.subr.bf16.mxu0 %v6767_v3  ;;  %v8720_v48 = vpop.f32.mrf.mxu0  ;;  %v6815_v62 = vld [vmem:[%s8154_s7 + $0x56c] ss:$16 sps:$4 sm:$0xff]   ;;  %v6813_v3 = vld [vmem:[%s8154_s7 + $0x568] ss:$16 sps:$4 sm:$0xff]  }
 0x208   : > { %4652 = vmatprep.subr.bf16.mxu1 %v6770_v4  ;;  %v8744_v0 = vpop.f32.mrf.mxu1  ;;  %v6816_v4 = vld [vmem:[%s8154_s7 + $0x6e8] ss:$16 sps:$4 sm:$0xff]  }
 0x209   : > { %v8730_v54 = vpop.f32.mrf.mxu0  ;;  %5434 = vperm.xlu1 %6272, %v8668_v18   ;;  %v6825_v18 = vld [vmem:[%s8154_s7 + $0x528] ss:$16 sps:$4 sm:$0xff]  }
 0x20a   : > { %4551 = vmatmul.mubr.bf16.gmra.mxu1 %v7139_v16  ;;  %4588 = vmatpush2.bf16.msra.mxu0 %v6765_v7  ;;  %v8752_v7 = vpop.f32.mrf.mxu1 }
 0x20b   : > { %4653 = vmatpush1.bf16.msra.mxu1 %v6768_v8  ;;  %4589 = vmatprep.subr.bf16.mxu0 %v6773_v9  ;;  %v8739_v61 = vpop.f32.mrf.mxu0  ;;  %v7143_v8 = vld [vmem:[%s9757_s1 + $0x8] ss:$56 sps:$4 sm:$0xff]  }
 0x20c   : > { %4654 = vmatprep.subr.bf16.mxu1 %v6776_v12  ;;  %4560 = vmatprep.mubr.bf16.mxu1 %v7140_v23  ;;  %v6822_v12 = vld [vmem:[%s8154_s7 + $0x6c8] ss:$16 sps:$4 sm:$0xff]   ;;  %v8766_v16 = vpop.f32.mrf.mxu1  ;;  %v6836_v23 = vld [vmem:[%s8154_s7 + $0x68c] ss:$16 sps:$4 sm:$0xff]  }
 0x20d   : > { %v8746_v1 = vpop.f32.mrf.mxu0 }
 0x20e   : > { %4590 = vmatpush2.bf16.msra.mxu0 %v6771_v13  ;;  %v6827_v13 = vld [vmem:[%s8154_s7 + $0x52c] ss:$16 sps:$4 sm:$0xff]  }
 0x20f   : > { %4655 = vmatpush1.bf16.msra.mxu1 %v6774_v14  ;;  %4591 = vmatprep.subr.bf16.mxu0 %v6779_v15  ;;  %v8757_v9 = vpop.f32.mrf.mxu0  ;;  %v6830_v14 = vld [vmem:[%s8154_s7 + $0x6ac] ss:$16 sps:$4 sm:$0xff]  }
 0x210   : > { %4656 = vmatprep.subr.bf16.mxu1 %v6782_v21  ;;  %v7144_v15 = vld [vmem:[%s9757_s1 + $0x7c] ss:$56 sps:$4 sm:$0xff]   ;;  %v6828_v21 = vld [vmem:[%s8154_s7 + $0x6a8] ss:$16 sps:$4 sm:$0xff]  }
 0x211   : > { %v8768_v17 = vpop.f32.mrf.mxu0 }
 0x212   : > { %4561 = vmatmul.mubr.bf16.gmra.mxu1 %v7141_v33  ;;  %4592 = vmatpush2.bf16.msra.mxu0 %v6777_v22  ;;  %v6833_v22 = vld [vmem:[%s8154_s7 + $0x50c] ss:$16 sps:$4 sm:$0xff]  }
 0x213   : > { %4657 = vmatpush1.bf16.msra.mxu1 %v6780_v24  ;;  %4593 = vmatprep.subr.bf16.mxu0 %v6785_v27  ;;  %v8774_v24 = vpop.f32.mrf.mxu1  ;;  %v8776_v26 = vpop.f32.mrf.mxu0  ;;  %v7145_v27 = vld [vmem:[%s9757_s1 + $0x78] ss:$56 sps:$4 sm:$0xff]   ;;  %v6842_v33 = vld [vmem:[%s8154_s7 + $0x8ec] ss:$16 sps:$4 sm:$0xff]  }
 0x214   : > { %4658 = vmatprep.subr.bf16.mxu1 %v6788_v29  ;;  %4676 = vmatprep.mubr.bf16.mxu1 %v7142_v38  ;;  %v6831_v29 = vld [vmem:[%s8154_s7 + $0x508] ss:$16 sps:$4 sm:$0xff]  }
 0x215   : > { %v6837_v38 = vld [vmem:[%s8154_s7 + $0x668] ss:$16 sps:$4 sm:$0xff]  }
 0x216   : > { %4594 = vmatpush2.bf16.msra.mxu0 %v6783_v30  ;;  %v6834_v30 = vld [vmem:[%s8154_s7 + $0x688] ss:$16 sps:$4 sm:$0xff]  }
 0x217   : > { %4659 = vmatpush1.bf16.msra.mxu1 %v6786_v31  ;;  %4595 = vmatprep.subr.bf16.mxu0 %v6791_v35  ;;  %v6839_v31 = vld [vmem:[%s8154_s7 + $0x66c] ss:$16 sps:$4 sm:$0xff]   ;;  %v8788_v35 = vpop.f32.mrf.mxu1 }
 0x218   : > { %4660 = vmatprep.subr.bf16.mxu1 %v6794_v37  ;;  %v8790_v37 = vpop.f32.mrf.mxu0 }
 0x21a   : > { %4596 = vmatpush2.bf16.msra.mxu0 %v6789_v39  ;;  %v6840_v39 = vld [vmem:[%s8154_s7 + $0x8e8] ss:$16 sps:$4 sm:$0xff]  }
 0x21b   : > { %4661 = vmatpush2.bf16.msra.mxu1 %v6792_v40  ;;  %4597 = vmatprep.subr.bf16.mxu0 %v6797_v42  ;;  %v6845_v40 = vld [vmem:[%s8154_s7 + $0x64c] ss:$16 sps:$4 sm:$0xff]  }
 0x21c   : > { %4662 = vmatprep.subr.bf16.mxu1 %v6800_v44  ;;  %v6848_v42 = vld [vmem:[%s8154_s7 + $0x8cc] ss:$16 sps:$4 sm:$0xff]   ;;  %v8796_v44 = vpop.f32.mrf.mxu1 }
 0x21e   : > { %4598 = vmatpush2.bf16.msra.mxu0 %v6795_v46  ;;  %v8798_v46 = vpop.f32.mrf.mxu0 }
 0x21f   : > { %4663 = vmatpush2.bf16.msra.mxu1 %v6798_v47  ;;  %4599 = vmatprep.subr.bf16.mxu0 %v6803_v49  ;;  %9793 = vst [vmem:[#allocation4_spill] sm:$0xff] %v8798_v46  ;;  %v7147_v47 = vld [vmem:[%s9757_s1 + $0xe8] ss:$56 sps:$4 sm:$0xff]   ;;  %v7172_v46 = vld [vmem:[%s9757_s1 + $0x174] ss:$56 sps:$4 sm:$0xff]  }
 0x220   : > { %4664 = vmatprep.subr.bf16.mxu1 %v6806_v50  ;;  %v7148_v49 = vld [vmem:[%s9757_s1 + $0x10] ss:$56 sps:$4 sm:$0xff]  }
 0x221   : > { %v6843_v50 = vld [vmem:[%s8154_s7 + $0x648] ss:$16 sps:$4 sm:$0xff]  }
 0x222   : > { %4600 = vmatpush2.bf16.msra.mxu0 %v6801_v52  ;;  %v6846_v52 = vld [vmem:[%s8154_s7 + $0x8c8] ss:$16 sps:$4 sm:$0xff]  }
 0x223   : > { %4665 = vmatpush2.bf16.msra.mxu1 %v6804_v53  ;;  %4601 = vmatprep.subr.bf16.mxu0 %v6809_v55  ;;  %v6851_v55 = vld [vmem:[%s8154_s7 + $0x62c] ss:$16 sps:$4 sm:$0xff]  }
 0x224   : > { %4666 = vmatprep.subr.bf16.mxu1 %v6812_v57  ;;  %v6854_v57 = vld [vmem:[%s8154_s7 + $0x8ac] ss:$16 sps:$4 sm:$0xff]  }
 0x226   : > { %4602 = vmatpush2.bf16.msra.mxu0 %v6807_v58  ;;  %v7149_v58 = vld [vmem:[%s9757_s1 + $0x15c] ss:$56 sps:$4 sm:$0xff]  }
 0x227   : > { %4667 = vmatpush2.bf16.msra.mxu1 %v6810_v60  ;;  %4717 = vmatprep.subr.bf16.mxu0 %v6818_v63  ;;  %v7150_v60 = vld [vmem:[%s9757_s1 + $0x84] ss:$56 sps:$4 sm:$0xff]   ;;  %v6849_v63 = vld [vmem:[%s8154_s7 + $0x628] ss:$16 sps:$4 sm:$0xff]  }
 0x228   : > { %4668 = vmatprep.subr.bf16.mxu1 %v6815_v62  ;;  %v8818_v62 = vpop.f32.mrf.mxu1 }
 0x229   : > { %4604 = vmatmul.mubr.bf16.vlgmr.msra.gmra.mxu0 %v7143_v8 }
 0x22a   : > { %4718 = vmatpush1.bf16.msra.mxu0 %v6816_v4  ;;  %4613 = vmatprep.mubr.bf16.mxu0 %v7144_v15  ;;  %v8826_v8 = vpop.f32.mrf.mxu1 }
 0x22b   : > { %4669 = vmatpush2.bf16.msra.mxu1 %v6813_v3  ;;  %4719 = vmatprep.subr.bf16.mxu0 %v6824_v6  ;;  %v6852_v3 = vld [vmem:[%s8154_s7 + $0x8a8] ss:$16 sps:$4 sm:$0xff]   ;;  %v6860_v6 = vld [vmem:[%s8154_s7 + $0x88c] ss:$16 sps:$4 sm:$0xff]  }
 0x22c   : > { %4670 = vmatprep.subr.bf16.mxu1 %v6821_v5  ;;  %v6857_v5 = vld [vmem:[%s8154_s7 + $0x60c] ss:$16 sps:$4 sm:$0xff]  }
 0x22e   : > { %4720 = vmatpush1.bf16.msra.mxu0 %v6822_v12  ;;  %v7152_v12 = vld [vmem:[%s9757_s1 + $0x80] ss:$56 sps:$4 sm:$0xff]  }
 0x22f   : > { %4671 = vmatpush2.bf16.msra.mxu1 %v6819_v10  ;;  %4721 = vmatprep.subr.bf16.mxu0 %v6830_v14  ;;  %v7151_v10 = vld [vmem:[%s9757_s1 + $0x158] ss:$56 sps:$4 sm:$0xff]  }
 0x230   : > { %4672 = vmatprep.subr.bf16.mxu1 %v6827_v13  ;;  %v6855_v13 = vld [vmem:[%s8154_s7 + $0x608] ss:$16 sps:$4 sm:$0xff]  }
 0x231   : > { %4614 = vmatmul.mubr.bf16.gmra.mxu0 %v7145_v27  ;;  %v6858_v14 = vld [vmem:[%s8154_s7 + $0x888] ss:$16 sps:$4 sm:$0xff]   ;;  %v8846_v27 = vpop.f32.mrf.mxu1 }
 0x232   : > { %4722 = vmatpush1.bf16.msra.mxu0 %v6828_v21  ;;  %4623 = vmatprep.mubr.bf16.mxu0 %v7146_v34  ;;  %v6866_v21 = vld [vmem:[%s8154_s7 + $0x86c] ss:$16 sps:$4 sm:$0xff]   ;;  %9794 = vst [vmem:[#allocation5_spill] sm:$0xff] %v8846_v27 }
 0x233   : > { %4673 = vmatpush2.bf16.msra.mxu1 %v6825_v18  ;;  %4723 = vmatprep.subr.bf16.mxu0 %v6836_v23  ;;  %v6863_v18 = vld [vmem:[%s8154_s7 + $0x7ec] ss:$16 sps:$4 sm:$0xff]  }
 0x234   : > { %4674 = vmatprep.subr.bf16.mxu1 %v6833_v22  ;;  %v7153_v22 = vld [vmem:[%s9757_s1 + $0xf4] ss:$56 sps:$4 sm:$0xff]  }
 0x235   : > { %v7154_v23 = vld [vmem:[%s9757_s1 + $0x1c] ss:$56 sps:$4 sm:$0xff]  }
 0x236   : > { %4724 = vmatpush1.bf16.msra.mxu0 %v6834_v30  ;;  %v6864_v30 = vld [vmem:[%s8154_s7 + $0x868] ss:$16 sps:$4 sm:$0xff]   ;;  %v6869_v34 = vld [vmem:[%s8154_s7 + $0x7cc] ss:$16 sps:$4 sm:$0xff]  }
 0x237   : > { %4675 = vmatpush2.bf16.msra.mxu1 %v6831_v29  ;;  %4725 = vmatprep.subr.bf16.mxu0 %v6839_v31  ;;  %v6861_v29 = vld [vmem:[%s8154_s7 + $0x7e8] ss:$16 sps:$4 sm:$0xff]   ;;  %v6968_v27 = vld [vmem:[%s8154_s7 + $0xc4c] ss:$16 sps:$4 sm:$0xff]  }
 0x238   : > { %4790 = vmatprep.subr.bf16.mxu1 %v6842_v33 }
 0x239   : > { %4624 = vmatmul.mubr.bf16.gmra.mxu0 %v7147_v47  ;;  %v8808_v53 = vpop.f32.mrf.mxu0 }
 0x23a   : > { %4677 = vmatmul.mubr.bf16.vlgmr.msra.gmra.mxu1 %v7148_v49  ;;  %4726 = vmatpush1.bf16.msra.mxu0 %v6837_v38  ;;  %v8850_v31 = vpop.f32.mrf.mxu1  ;;  %v6872_v38 = vld [vmem:[%s8154_s7 + $0x84c] ss:$16 sps:$4 sm:$0xff]  }
 0x23b   : > { %4791 = vmatpush1.bf16.msra.mxu1 %v6840_v39  ;;  %4727 = vmatprep.subr.bf16.mxu0 %v6845_v40  ;;  %v8822_v4 = vpop.f32.mrf.mxu0  ;;  %v7155_v39 = vld [vmem:[%s9757_s1 + $0xf0] ss:$56 sps:$4 sm:$0xff]  }
 0x23c   : > { %4792 = vmatprep.subr.bf16.mxu1 %v6848_v42  ;;  %4633 = vmatprep.mubr.bf16.mxu0 %v7149_v58  ;;  %v6867_v40 = vld [vmem:[%s8154_s7 + $0x7c8] ss:$16 sps:$4 sm:$0xff]   ;;  %v8861_v47 = vpop.f32.mrf.mxu1 }
 0x23d   : > { %4686 = vmatprep.mubr.bf16.mxu1 %v7150_v60  ;;  %v8836_v15 = vpop.f32.mrf.mxu0  ;;  %v6870_v42 = vld [vmem:[%s8154_s7 + $0x848] ss:$16 sps:$4 sm:$0xff]  }
 0x23e   : > { %4728 = vmatpush1.bf16.msra.mxu0 %v6843_v50  ;;  %v6875_v50 = vld [vmem:[%s8154_s7 + $0x7ac] ss:$16 sps:$4 sm:$0xff]   ;;  %v6876_v58 = vld [vmem:[%s8154_s7 + $0x828] ss:$16 sps:$4 sm:$0xff]   ;;  %v8872_v60 = vpop.f32.mrf.mxu1 }
 0x23f   : > { %4793 = vmatpush1.bf16.msra.mxu1 %v6846_v52  ;;  %4729 = vmatprep.subr.bf16.mxu0 %v6851_v55  ;;  %v8852_v33 = vpop.f32.mrf.mxu0  ;;  %v6878_v52 = vld [vmem:[%s8154_s7 + $0x82c] ss:$16 sps:$4 sm:$0xff]  }
 0x240   : > { %4794 = vmatprep.subr.bf16.mxu1 %v6854_v57  ;;  %v7156_v55 = vld [vmem:[%s9757_s1 + $0x164] ss:$56 sps:$4 sm:$0xff]   ;;  %v6873_v57 = vld [vmem:[%s8154_s7 + $0x7a8] ss:$16 sps:$4 sm:$0xff]  }
 0x241   : > { %4634 = vmatmul.mubr.bf16.gmra.mxu0 %v7151_v10  ;;  %v8863_v49 = vpop.f32.mrf.mxu0  ;;  %v6879_v10 = vld [vmem:[%s8154_s7 + $0x788] ss:$16 sps:$4 sm:$0xff]  }
 0x242   : > { %4687 = vmatmul.mubr.bf16.gmra.mxu1 %v7152_v12  ;;  %4730 = vmatpush1.bf16.msra.mxu0 %v6849_v63  ;;  %v6882_v12 = vld [vmem:[%s8154_s7 + $0x808] ss:$16 sps:$4 sm:$0xff]  }
 0x243   : > { %4795 = vmatpush1.bf16.msra.mxu1 %v6852_v3  ;;  %4731 = vmatprep.subr.bf16.mxu0 %v6857_v5  ;;  %v8874_v63 = vpop.f32.mrf.mxu0  ;;  %v6881_v3 = vld [vmem:[%s8154_s7 + $0x78c] ss:$16 sps:$4 sm:$0xff]  }
 0x244   : > { %4796 = vmatprep.subr.bf16.mxu1 %v6860_v6  ;;  %4696 = vmatprep.mubr.bf16.mxu1 %v7153_v22  ;;  %v6884_v5 = vld [vmem:[%s8154_s7 + $0x80c] ss:$16 sps:$4 sm:$0xff]   ;;  %v7157_v6 = vld [vmem:[%s9757_s1 + $0x160] ss:$56 sps:$4 sm:$0xff]  }
 0x245   : > { %4749 = vmatprep.mubr.bf16.mxu0 %v7154_v23  ;;  %v7158_v22 = vld [vmem:[%s9757_s1 + $0x24] ss:$56 sps:$4 sm:$0xff]  }
 0x246   : > { %4732 = vmatpush1.bf16.msra.mxu0 %v6855_v13  ;;  %v8883_v13 = vpop.f32.mrf.mxu1 }
 0x247   : > { %4797 = vmatpush1.bf16.msra.mxu1 %v6858_v14  ;;  %4733 = vmatprep.subr.bf16.mxu0 %v6863_v18  ;;  %v8885_v14 = vpop.f32.mrf.mxu0  ;;  %v6887_v18 = vld [vmem:[%s8154_s7 + $0x76c] ss:$16 sps:$4 sm:$0xff]  }
 0x248   : > { %4798 = vmatprep.subr.bf16.mxu1 %v6866_v21  ;;  %v6890_v21 = vld [vmem:[%s8154_s7 + $0x9ec] ss:$16 sps:$4 sm:$0xff]   ;;  %v8892_v23 = vpop.f32.mrf.mxu1 }
 0x24a   : > { %4697 = vmatmul.mubr.bf16.gmra.mxu1 %v7155_v39  ;;  %4734 = vmatpush2.bf16.msra.mxu0 %v6861_v29  ;;  %v6885_v29 = vld [vmem:[%s8154_s7 + $0x768] ss:$16 sps:$4 sm:$0xff]   ;;  %v6896_v39 = vld [vmem:[%s8154_s7 + $0x9cc] ss:$16 sps:$4 sm:$0xff]  }
 0x24b   : > { %4799 = vmatpush1.bf16.msra.mxu1 %v6864_v30  ;;  %4735 = vmatprep.subr.bf16.mxu0 %v6869_v34  ;;  %v6888_v30 = vld [vmem:[%s8154_s7 + $0x9e8] ss:$16 sps:$4 sm:$0xff]   ;;  %v8896_v34 = vpop.f32.mrf.mxu0 }
 0x24c   : > { %4800 = vmatprep.subr.bf16.mxu1 %v6872_v38  ;;  %4706 = vmatprep.mubr.bf16.mxu1 %v7156_v55  ;;  %v6893_v38 = vld [vmem:[%s8154_s7 + $0x74c] ss:$16 sps:$4 sm:$0xff]  }
 0x24d   : > { %v6899_v55 = vld [vmem:[%s8154_s7 + $0x72c] ss:$16 sps:$4 sm:$0xff]  }
 0x24e   : > { %4736 = vmatpush2.bf16.msra.mxu0 %v6867_v40  ;;  %v8900_v40 = vpop.f32.mrf.mxu1 }
 0x24f   : > { %4801 = vmatpush1.bf16.msra.mxu1 %v6870_v42  ;;  %4737 = vmatprep.subr.bf16.mxu0 %v6875_v50  ;;  %v6891_v42 = vld [vmem:[%s8154_s7 + $0x748] ss:$16 sps:$4 sm:$0xff]  }
 0x250   : > { %4802 = vmatprep.subr.bf16.mxu1 %v6878_v52  ;;  %v6894_v50 = vld [vmem:[%s8154_s7 + $0x9c8] ss:$16 sps:$4 sm:$0xff]   ;;  %v8904_v52 = vpop.f32.mrf.mxu0 }
 0x252   : > { %4707 = vmatmul.mubr.bf16.gmra.mxu1 %v7157_v6  ;;  %4738 = vmatpush2.bf16.msra.mxu0 %v6873_v57  ;;  %v6902_v57 = vld [vmem:[%s8154_s7 + $0x9ac] ss:$16 sps:$4 sm:$0xff]   ;;  %v8912_v6 = vpop.f32.mrf.mxu0 }
 0x253   : > { %4803 = vmatpush1.bf16.msra.mxu1 %v6876_v58  ;;  %4739 = vmatprep.subr.bf16.mxu0 %v6881_v3  ;;  %v8908_v58 = vpop.f32.mrf.mxu1  ;;  %v6897_v3 = vld [vmem:[%s8154_s7 + $0x728] ss:$16 sps:$4 sm:$0xff]   ;;  %9796 = vst [vmem:[#allocation7_spill] sm:$0xff] %v8912_v6 }
 0x254   : > { %4804 = vmatprep.subr.bf16.mxu1 %v6884_v5  ;;  %4822 = vmatprep.mubr.bf16.mxu1 %v7158_v22  ;;  %9795 = vst [vmem:[#allocation6_spill] sm:$0xff] %v8908_v58  ;;  %v6900_v5 = vld [vmem:[%s8154_s7 + $0x9a8] ss:$16 sps:$4 sm:$0xff]  }
 0x255   : > { %v6906_v22 = vld [vmem:[%s8154_s7 + $0x988] ss:$16 sps:$4 sm:$0xff]  }
 0x256   : > { %4740 = vmatpush2.bf16.msra.mxu0 %v6879_v10  ;;  %v6905_v10 = vld [vmem:[%s8154_s7 + $0x70c] ss:$16 sps:$4 sm:$0xff]  }
 0x257   : > { %4805 = vmatpush1.bf16.msra.mxu1 %v6882_v12  ;;  %4741 = vmatprep.subr.bf16.mxu0 %v6887_v18  ;;  %v6908_v12 = vld [vmem:[%s8154_s7 + $0x98c] ss:$16 sps:$4 sm:$0xff]   ;;  %v8916_v18 = vpop.f32.mrf.mxu1 }
 0x258   : > { %4806 = vmatprep.subr.bf16.mxu1 %v6890_v21  ;;  %9797 = vst [vmem:[#allocation8_spill] sm:$0xff] %v8916_v18  ;;  %v6903_v21 = vld [vmem:[%s8154_s7 + $0x708] ss:$16 sps:$4 sm:$0xff]   ;;  %v6959_v18 = vld [vmem:[%s8154_s7 + $0xbec] ss:$16 sps:$4 sm:$0xff]  }
 0x25a   : > { %4742 = vmatpush2.bf16.msra.mxu0 %v6885_v29  ;;  %v8920_v29 = vpop.f32.mrf.mxu0 }
 0x25b   : > { %4807 = vmatpush2.bf16.msra.mxu1 %v6888_v30  ;;  %4743 = vmatprep.subr.bf16.mxu0 %v6893_v38  ;;  %9798 = vst [vmem:[#allocation9_spill] sm:$0xff] %v8920_v29  ;;  %v6911_v30 = vld [vmem:[%s8154_s7 + $0x96c] ss:$16 sps:$4 sm:$0xff]  }
 0x25c   : > { %4808 = vmatprep.subr.bf16.mxu1 %v6896_v39  ;;  %v6914_v38 = vld [vmem:[%s8154_s7 + $0xaec] ss:$16 sps:$4 sm:$0xff]   ;;  %v8924_v39 = vpop.f32.mrf.mxu1 }
 0x25d   : > { %9799 = vst [vmem:[#allocation10_spill] sm:$0xff] %v8924_v39  ;;  %v6956_v39 = vld [vmem:[%s8154_s7 + $0xc8c] ss:$16 sps:$4 sm:$0xff]  }
 0x25e   : > { %4744 = vmatpush2.bf16.msra.mxu0 %v6891_v42  ;;  %v6909_v42 = vld [vmem:[%s8154_s7 + $0x968] ss:$16 sps:$4 sm:$0xff]  }
 0x25f   : > { %4809 = vmatpush2.bf16.msra.mxu1 %v6894_v50  ;;  %4745 = vmatprep.subr.bf16.mxu0 %v6899_v55  ;;  %v6912_v50 = vld [vmem:[%s8154_s7 + $0xae8] ss:$16 sps:$4 sm:$0xff]   ;;  %v8928_v55 = vpop.f32.mrf.mxu0 }
 0x260   : > { %4810 = vmatprep.subr.bf16.mxu1 %v6902_v57  ;;  %9800 = vst [vmem:[#allocation11_spill] sm:$0xff] %v8928_v55  ;;  %v6917_v57 = vld [vmem:[%s8154_s7 + $0x94c] ss:$16 sps:$4 sm:$0xff]  }
 0x262   : > { %4746 = vmatpush2.bf16.msra.mxu0 %v6897_v3  ;;  %v6920_v3 = vld [vmem:[%s8154_s7 + $0xacc] ss:$16 sps:$4 sm:$0xff]  }
 0x263   : > { %4811 = vmatpush2.bf16.msra.mxu1 %v6900_v5  ;;  %4747 = vmatprep.subr.bf16.mxu0 %v6905_v10  ;;  %v8932_v5 = vpop.f32.mrf.mxu1  ;;  %v7159_v10 = vld [vmem:[%s9757_s1 + $0x18] ss:$56 sps:$4 sm:$0xff]  }
 0x264   : > { %4812 = vmatprep.subr.bf16.mxu1 %v6908_v12  ;;  %9801 = vst [vmem:[#allocation12_spill] sm:$0xff] %v8932_v5  ;;  %v6915_v12 = vld [vmem:[%s8154_s7 + $0x948] ss:$16 sps:$4 sm:$0xff]   ;;  %v7160_v5 = vld [vmem:[%s9757_s1 + $0x8c] ss:$56 sps:$4 sm:$0xff]  }
 0x266   : > { %4748 = vmatpush2.bf16.msra.mxu0 %v6903_v21  ;;  %v6918_v21 = vld [vmem:[%s8154_s7 + $0xac8] ss:$16 sps:$4 sm:$0xff]  }
 0x267   : > { %4813 = vmatpush2.bf16.msra.mxu1 %v6906_v22  ;;  %4863 = vmatprep.subr.bf16.mxu0 %v6914_v38  ;;  %v8939_v22 = vpop.f32.mrf.mxu0  ;;  %v6926_v38 = vld [vmem:[%s8154_s7 + $0xaac] ss:$16 sps:$4 sm:$0xff]  }
 0x268   : > { %4814 = vmatprep.subr.bf16.mxu1 %v6911_v30  ;;  %9802 = vst [vmem:[#allocation13_spill] sm:$0xff] %v8939_v22  ;;  %v6923_v30 = vld [vmem:[%s8154_s7 + $0x92c] ss:$16 sps:$4 sm:$0xff]  }
 0x269   : > { %4750 = vmatmul.mubr.bf16.vlgmr.msra.gmra.mxu0 %v7159_v10  ;;  %v8946_v10 = vpop.f32.mrf.mxu1  ;;  %v8950_v22 = vpop.f32.mrf.mxu0 }
 0x26a   : > { %4864 = vmatpush1.bf16.msra.mxu0 %v6912_v50  ;;  %4759 = vmatprep.mubr.bf16.mxu0 %v7160_v5  ;;  %9803 = vst [vmem:[#allocation14_spill] sm:$0xff] %v8946_v10  ;;  %v6924_v50 = vld [vmem:[%s8154_s7 + $0xaa8] ss:$16 sps:$4 sm:$0xff]   ;;  %9804 = vst [vmem:[#allocation15_spill] sm:$0xff] %v8950_v22 }
 0x26b   : > { %4815 = vmatpush2.bf16.msra.mxu1 %v6909_v42  ;;  %4865 = vmatprep.subr.bf16.mxu0 %v6920_v3  ;;  %v6921_v42 = vld [vmem:[%s8154_s7 + $0x928] ss:$16 sps:$4 sm:$0xff]   ;;  %v6932_v3 = vld [vmem:[%s8154_s7 + $0xa8c] ss:$16 sps:$4 sm:$0xff]   ;;  %v8954_v55 = vpop.f32.mrf.mxu1  ;;  %v8961_v22 = vpop.f32.mrf.mxu0 }
 0x26c   : > { %4816 = vmatprep.subr.bf16.mxu1 %v6917_v57  ;;  %v6929_v57 = vld [vmem:[%s8154_s7 + $0x90c] ss:$16 sps:$4 sm:$0xff]   ;;  %9805 = vst [vmem:[#allocation16_spill] sm:$0xff] %v8954_v55  ;;  %v7161_v5 = vld [vmem:[%s9757_s1 + $0x88] ss:$56 sps:$4 sm:$0xff]   ;;  %9806 = vst [vmem:[#allocation17_spill] sm:$0xff] %v8961_v22 }
 0x26d   : > { %v7162_v55 = vld [vmem:[%s9757_s1 + $0xfc] ss:$56 sps:$4 sm:$0xff]   ;;  %v8968_v10 = vpop.f32.mrf.mxu1 }
 0x26e   : > { %4866 = vmatpush1.bf16.msra.mxu0 %v6918_v21  ;;  %v6930_v21 = vld [vmem:[%s8154_s7 + $0xa88] ss:$16 sps:$4 sm:$0xff]   ;;  %9807 = vst [vmem:[#allocation18_spill] sm:$0xff] %v8968_v10 }
 0x26f   : > { %4817 = vmatpush2.bf16.msra.mxu1 %v6915_v12  ;;  %4867 = vmatprep.subr.bf16.mxu0 %v6926_v38  ;;  %v6927_v12 = vld [vmem:[%s8154_s7 + $0x908] ss:$16 sps:$4 sm:$0xff]   ;;  %v6938_v38 = vld [vmem:[%s8154_s7 + $0xcec] ss:$16 sps:$4 sm:$0xff]   ;;  %v8976_v22 = vpop.f32.mrf.mxu1 }
 0x270   : > { %4818 = vmatprep.subr.bf16.mxu1 %v6923_v30  ;;  %v6935_v30 = vld [vmem:[%s8154_s7 + $0xa6c] ss:$16 sps:$4 sm:$0xff]   ;;  %9809 = vst [vmem:[#allocation20_spill] sm:$0xff] %v8976_v22 }
 0x271   : > { %4760 = vmatmul.mubr.bf16.gmra.mxu0 %v7161_v5  ;;  %v8972_v5 = vpop.f32.mrf.mxu0  ;;  %v6947_v22 = vld [vmem:[%s8154_s7 + $0xa2c] ss:$16 sps:$4 sm:$0xff]  }
 0x272   : > { %4868 = vmatpush1.bf16.msra.mxu0 %v6924_v50  ;;  %4769 = vmatprep.mubr.bf16.mxu0 %v7162_v55  ;;  %v6936_v50 = vld [vmem:[%s8154_s7 + $0xce8] ss:$16 sps:$4 sm:$0xff]   ;;  %9808 = vst [vmem:[#allocation19_spill] sm:$0xff] %v8972_v5  ;;  %v6950_v5 = vld [vmem:[%s8154_s7 + $0xcac] ss:$16 sps:$4 sm:$0xff]  }
 0x273   : > { %4819 = vmatpush2.bf16.msra.mxu1 %v6921_v42  ;;  %4869 = vmatprep.subr.bf16.mxu0 %v6932_v3  ;;  %v6933_v42 = vld [vmem:[%s8154_s7 + $0xa68] ss:$16 sps:$4 sm:$0xff]   ;;  %v6944_v3 = vld [vmem:[%s8154_s7 + $0xccc] ss:$16 sps:$4 sm:$0xff]  }
 0x274   : > { %4820 = vmatprep.subr.bf16.mxu1 %v6929_v57  ;;  %v6941_v57 = vld [vmem:[%s8154_s7 + $0xa4c] ss:$16 sps:$4 sm:$0xff]   ;;  %v7163_v55 = vld [vmem:[%s9757_s1 + $0xf8] ss:$56 sps:$4 sm:$0xff]  }
 0x276   : > { %4870 = vmatpush1.bf16.msra.mxu0 %v6930_v21  ;;  %v6939_v21 = vld [vmem:[%s8154_s7 + $0xa48] ss:$16 sps:$4 sm:$0xff]  }
 0x277   : > { %4821 = vmatpush2.bf16.msra.mxu1 %v6927_v12  ;;  %4871 = vmatprep.subr.bf16.mxu0 %v6935_v30  ;;  %v7164_v12 = vld [vmem:[%s9757_s1 + $0x20] ss:$56 sps:$4 sm:$0xff]  }
 0x278   : > { %4936 = vmatprep.subr.bf16.mxu1 %v6938_v38  ;;  %v6942_v30 = vld [vmem:[%s8154_s7 + $0xcc8] ss:$16 sps:$4 sm:$0xff]  }
 0x279   : > { %v8978_v29 = vpop.f32.mrf.mxu0  ;;  %4770 = vmatmul.mubr.bf16.gmra.mxu0 %v7163_v55  ;;  %v7165_v55 = vld [vmem:[%s9757_s1 + $0x16c] ss:$56 sps:$4 sm:$0xff]  }
 0x27a   : > { %4823 = vmatmul.mubr.bf16.vlgmr.msra.gmra.mxu1 %v7164_v12  ;;  %4872 = vmatpush1.bf16.msra.mxu0 %v6933_v42  ;;  %v7166_v42 = vld [vmem:[%s9757_s1 + $0x94] ss:$56 sps:$4 sm:$0xff]  }
 0x27b   : > { %4937 = vmatpush1.bf16.msra.mxu1 %v6936_v50  ;;  %v8988_v38 = vpop.f32.mrf.mxu0  ;;  %4873 = vmatprep.subr.bf16.mxu0 %v6941_v57  ;;  %v8998_v50 = vpop.f32.mrf.mxu1  ;;  %v6945_v57 = vld [vmem:[%s8154_s7 + $0xa28] ss:$16 sps:$4 sm:$0xff]  }
 0x27c   : > { %4938 = vmatprep.subr.bf16.mxu1 %v6944_v3  ;;  %4779 = vmatprep.mubr.bf16.mxu0 %v7165_v55  ;;  %9810 = vst [vmem:[#allocation21_spill] sm:$0xff] %v8998_v50  ;;  %v6948_v3 = vld [vmem:[%s8154_s7 + $0xca8] ss:$16 sps:$4 sm:$0xff]   ;;  %v6953_v55 = vld [vmem:[%s8154_s7 + $0xa0c] ss:$16 sps:$4 sm:$0xff]  }
 0x27d   : > { %4832 = vmatprep.mubr.bf16.mxu1 %v7166_v42  ;;  %v9000_v12 = vpop.f32.mrf.mxu0  ;;  %v9008_v6 = vpop.f32.mrf.mxu1 }
 0x27e   : > { %4874 = vmatpush1.bf16.msra.mxu0 %v6939_v21  ;;  %9811 = vst [vmem:[#allocation22_spill] sm:$0xff] %v9008_v6  ;;  %v7167_v21 = vld [vmem:[%s9757_s1 + $0x168] ss:$56 sps:$4 sm:$0xff]  }
 0x27f   : > { %4939 = vmatpush1.bf16.msra.mxu1 %v6942_v30  ;;  %v9004_v10 = vpop.f32.mrf.mxu0  ;;  %4875 = vmatprep.subr.bf16.mxu0 %v6947_v22  ;;  %v7168_v30 = vld [vmem:[%s9757_s1 + $0x90] ss:$56 sps:$4 sm:$0xff]   ;;  %v9020_v50 = vpop.f32.mrf.mxu1 }
 0x280   : > { %4940 = vmatprep.subr.bf16.mxu1 %v6950_v5  ;;  %v6951_v22 = vld [vmem:[%s8154_s7 + $0xa08] ss:$16 sps:$4 sm:$0xff]  }
 0x281   : > { %v9010_v42 = vpop.f32.mrf.mxu0  ;;  %4780 = vmatmul.mubr.bf16.gmra.mxu0 %v7167_v21  ;;  %v6954_v5 = vld [vmem:[%s8154_s7 + $0xc88] ss:$16 sps:$4 sm:$0xff]   ;;  %v6962_v21 = vld [vmem:[%s8154_s7 + $0xc6c] ss:$16 sps:$4 sm:$0xff]  }
 0x282   : > { %9812 = vst [vmem:[#allocation23_spill] sm:$0xff] %v9010_v42  ;;  %4833 = vmatmul.mubr.bf16.gmra.mxu1 %v7168_v30  ;;  %4876 = vmatpush1.bf16.msra.mxu0 %v6945_v57  ;;  %v7169_v30 = vld [vmem:[%s9757_s1 + $0x104] ss:$56 sps:$4 sm:$0xff]  }
 0x283   : > { %4941 = vmatpush1.bf16.msra.mxu1 %v6948_v3  ;;  %v9022_v6 = vpop.f32.mrf.mxu0  ;;  %4877 = vmatprep.subr.bf16.mxu0 %v6953_v55  ;;  %v7170_v57 = vld [vmem:[%s9757_s1 + $0x2c] ss:$56 sps:$4 sm:$0xff]   ;;  %v6960_v55 = vld [vmem:[%s8154_s7 + $0xc68] ss:$16 sps:$4 sm:$0xff]  }
 0x284   : > { %9813 = vst [vmem:[#allocation24_spill] sm:$0xff] %v9022_v6  ;;  %4942 = vmatprep.subr.bf16.mxu1 %v6956_v39  ;;  %4842 = vmatprep.mubr.bf16.mxu1 %v7169_v30  ;;  %v6957_v39 = vld [vmem:[%s8154_s7 + $0xbe8] ss:$16 sps:$4 sm:$0xff]   ;;  %v9036_v6 = vpop.f32.mrf.mxu1  ;;  %v6965_v30 = vld [vmem:[%s8154_s7 + $0xbcc] ss:$16 sps:$4 sm:$0xff]  }
 0x285   : > { %4895 = vmatprep.mubr.bf16.mxu0 %v7170_v57  ;;  %v9032_v3 = vpop.f32.mrf.mxu0  ;;  %v7171_v57 = vld [vmem:[%s9757_s1 + $0x100] ss:$56 sps:$4 sm:$0xff]   ;;  %v7004_v42 = vld [vmem:[%s8154_s7 + $0xd0c] ss:$16 sps:$4 sm:$0xff]  }
 0x286   : > { %9814 = vst [vmem:[#allocation25_spill] sm:$0xff] %v9032_v3  ;;  %4878 = vmatpush1.bf16.msra.mxu0 %v6951_v22  ;;  %v6963_v22 = vld [vmem:[%s8154_s7 + $0xbc8] ss:$16 sps:$4 sm:$0xff]   ;;  %v9047_v3 = vpop.f32.mrf.mxu1 }
 0x287   : > { %4943 = vmatpush1.bf16.msra.mxu1 %v6954_v5  ;;  %v9038_v58 = vpop.f32.mrf.mxu0  ;;  %4879 = vmatprep.subr.bf16.mxu0 %v6959_v18  ;;  %v6966_v5 = vld [vmem:[%s8154_s7 + $0xc48] ss:$16 sps:$4 sm:$0xff]   ;;  %9816 = vst [vmem:[#allocation27_spill] sm:$0xff] %v9047_v3  ;;  %v6971_v18 = vld [vmem:[%s8154_s7 + $0xbac] ss:$16 sps:$4 sm:$0xff]  }
 0x288   : > { %9815 = vst [vmem:[#allocation26_spill] sm:$0xff] %v9038_v58  ;;  %4944 = vmatprep.subr.bf16.mxu1 %v6962_v21  ;;  %v6974_v21 = vld [vmem:[%s8154_s7 + $0xc2c] ss:$16 sps:$4 sm:$0xff]  }
 0x289   : > { %v9049_v58 = vpop.f32.mrf.mxu0 }
 0x28a   : > { %4843 = vmatmul.mubr.bf16.gmra.mxu1 %v7171_v57  ;;  %4880 = vmatpush2.bf16.msra.mxu0 %v6957_v39  ;;  %9817 = vst [vmem:[#allocation28_spill] sm:$0xff] %v9049_v58  ;;  %v6969_v39 = vld [vmem:[%s8154_s7 + $0xba8] ss:$16 sps:$4 sm:$0xff]   ;;  %v9058_v57 = vpop.f32.mrf.mxu1 }
 0x28b   : > { %4945 = vmatpush1.bf16.msra.mxu1 %v6960_v55  ;;  %4881 = vmatprep.subr.bf16.mxu0 %v6965_v30  ;;  %v6972_v55 = vld [vmem:[%s8154_s7 + $0xc28] ss:$16 sps:$4 sm:$0xff]   ;;  %9818 = vst [vmem:[#allocation29_spill] sm:$0xff] %v9058_v57  ;;  %v9060_v58 = vpop.f32.mrf.mxu0  ;;  %v6980_v30 = vld [vmem:[%s8154_s7 + $0xc0c] ss:$16 sps:$4 sm:$0xff]  }
 0x28c   : > { %4946 = vmatprep.subr.bf16.mxu1 %v6968_v27  ;;  %4852 = vmatprep.mubr.bf16.mxu1 %v7172_v46  ;;  %9819 = vst [vmem:[#allocation30_spill] sm:$0xff] %v9060_v58  ;;  %v6977_v27 = vld [vmem:[%s8154_s7 + $0xb8c] ss:$16 sps:$4 sm:$0xff]   ;;  %v9064_v3 = vpop.f32.mrf.mxu1  ;;  %v7173_v46 = vld [vmem:[%s9757_s1 + $0x170] ss:$56 sps:$4 sm:$0xff]  }
 0x28d   : > { %9820 = vst [vmem:[#allocation31_spill] sm:$0xff] %v9064_v3  ;;  %v9071_v58 = vpop.f32.mrf.mxu0  ;;  %v7174_v3 = vld [vmem:[%s9757_s1 + $0x34] ss:$56 sps:$4 sm:$0xff]  }
 0x28e   : > { %4882 = vmatpush2.bf16.msra.mxu0 %v6963_v22  ;;  %v6975_v22 = vld [vmem:[%s8154_s7 + $0xb88] ss:$16 sps:$4 sm:$0xff]   ;;  %9821 = vst [vmem:[#allocation32_spill] sm:$0xff] %v9071_v58  ;;  %v6992_v58 = vld [vmem:[%s8154_s7 + $0xd4c] ss:$16 sps:$4 sm:$0xff]  }
 0x28f   : > { %4947 = vmatpush1.bf16.msra.mxu1 %v6966_v5  ;;  %4883 = vmatprep.subr.bf16.mxu0 %v6971_v18  ;;  %v6978_v5 = vld [vmem:[%s8154_s7 + $0xc08] ss:$16 sps:$4 sm:$0xff]   ;;  %v6983_v18 = vld [vmem:[%s8154_s7 + $0xb6c] ss:$16 sps:$4 sm:$0xff]  }
 0x290   : > { %4948 = vmatprep.subr.bf16.mxu1 %v6974_v21  ;;  %v6986_v21 = vld [vmem:[%s8154_s7 + $0xd6c] ss:$16 sps:$4 sm:$0xff]  }
 0x292   : > { %4853 = vmatmul.mubr.bf16.gmra.mxu1 %v7173_v46  ;;  %4884 = vmatpush2.bf16.msra.mxu0 %v6969_v39  ;;  %v9079_v39 = vpop.f32.mrf.mxu1  ;;  %v6984_v46 = vld [vmem:[%s8154_s7 + $0xd68] ss:$16 sps:$4 sm:$0xff]  }
 0x293   : > { %4949 = vmatpush1.bf16.msra.mxu1 %v6972_v55  ;;  %4885 = vmatprep.subr.bf16.mxu0 %v6977_v27  ;;  %9822 = vst [vmem:[#allocation33_spill] sm:$0xff] %v9079_v39  ;;  %v6981_v55 = vld [vmem:[%s8154_s7 + $0xb68] ss:$16 sps:$4 sm:$0xff]   ;;  %v9083_v27 = vpop.f32.mrf.mxu0 }
 0x294   : > { %4950 = vmatprep.subr.bf16.mxu1 %v6980_v30  ;;  %6198 = vmatprep.mubr.msk.bf16.mxu1 %vm3974_vm0, %v7174_v3  ;;  %9823 = vst [vmem:[#allocation34_spill] sm:$0xff] %v9083_v27  ;;  %v6989_v30 = vld [vmem:[%s8154_s7 + $0xb4c] ss:$16 sps:$4 sm:$0xff]   ;;  %v9087_v57 = vpop.f32.mrf.mxu1  ;;  %v6987_v3 = vld [vmem:[%s8154_s7 + $0xb48] ss:$16 sps:$4 sm:$0xff]  }
 0x295   : > { %9824 = vst [vmem:[#allocation35_spill] sm:$0xff] %v9087_v57  ;;  %v6990_v39 = vld [vmem:[%s8154_s7 + $0xd48] ss:$16 sps:$4 sm:$0xff]   ;;  %v6998_v27 = vld [vmem:[%s8154_s7 + $0xd2c] ss:$16 sps:$4 sm:$0xff]  }
 0x296   : > { %4886 = vmatpush2.bf16.msra.mxu0 %v6975_v22  ;;  %v9091_v22 = vpop.f32.mrf.mxu0 }
 0x297   : > { %4951 = vmatpush1.bf16.msra.mxu1 %v6978_v5  ;;  %4887 = vmatprep.subr.bf16.mxu0 %v6983_v18  ;;  %9825 = vst [vmem:[#allocation36_spill] sm:$0xff] %v9091_v22  ;;  %v6995_v5 = vld [vmem:[%s8154_s7 + $0xb2c] ss:$16 sps:$4 sm:$0xff]   ;;  %v4095_v18 = vadd.f32 %v8670_v19, %v8611_v59  ;;  %v6993_v22 = vld [vmem:[%s8154_s7 + $0xb28] ss:$16 sps:$4 sm:$0xff]   ;;  %v4099_v59 = vadd.f32 %v8699_v36, %v8650_v11 }
 0x298   : > { %4960 = vmatprep.subr.bf16.mxu1 %v6986_v21  ;;  %v9097_v21 = vpop.f32.mrf.mxu1  ;;  %v9104_v57 = vpop.f32.mrf.mxu0  ;;  %v4107_v11 = vadd.f32 %v8726_v51, %v8693_v32  ;;  %v4117_v32 = vadd.f32 %v8766_v16, %v8739_v61  ;;  %v9154_v61 = vadd.f32 %v8818_v62, %v8776_v26  ;;  %v7175_v26 = vld [vmem:[%s9757_s1 + $0x28] ss:$56 sps:$4 sm:$0xff]  }
 0x299   : > { %v7176_v62 = vld [vmem:[%s9757_s1 + $0x30] ss:$56 sps:$4 sm:$0xff]  }
 0x29a   : > { %4888 = vmatpush2.bf16.msra.mxu0 %v6981_v55  ;;  %v4097_v55 = vadd.f32 %v8688_v28, %v8630_v2  ;;  %v9111_v2 = vpop.f32.mrf.mxu1  ;;  %v4101_v28 = vadd.f32 %v8711_v43, %v8672_v20 }
 0x29b   : > { %4961 = vmatpush2.bf16.msra.mxu1 %v6984_v46  ;;  %4889 = vmatprep.subr.bf16.mxu0 %v6989_v30  ;;  %v4168_v46 = vadd.f32 %v8808_v53, %v4095_v18  ;;  %v6996_v30 = vld [vmem:[%s8154_s7 + $0xd28] ss:$16 sps:$4 sm:$0xff]   ;;  %v9121_v18 = vpop.f32.mrf.mxu0 }
 0x29c   : > { %4962 = vmatprep.subr.bf16.mxu1 %v6992_v58  ;;  %v7001_v58 = vld [vmem:[%s8154_s7 + $0xb0c] ss:$16 sps:$4 sm:$0xff]   ;;  %v4170_v19 = vadd.f32 %v8822_v4, %v4097_v55  ;;  %v4174_v36 = vadd.f32 %v8852_v33, %v4101_v28  ;;  %v4109_v4 = vadd.f32 %v8735_v56, %v8708_v41  ;;  %v4119_v41 = vadd.f32 %v8774_v24, %v8746_v1 }
 0x29d   : > { %v4241_v53 = vadd.f32 %v8850_v31, %v4168_v46  ;;  %v9135_v31 = vpop.f32.mrf.mxu1  ;;  %v4180_v56 = vadd.f32 %v8874_v63, %v4107_v11  ;;  %v7177_v63 = vld [vmem:[%s9757_s1 + $0x9c] ss:$56 sps:$4 sm:$0xff]  }
 0x29e   : > { %4890 = vmatpush2.bf16.msra.mxu0 %v6987_v3  ;;  %v6999_v3 = vld [vmem:[%s8154_s7 + $0xb08] ss:$16 sps:$4 sm:$0xff]   ;;  %v4243_v20 = vadd.f32 %v8861_v47, %v4170_v19  ;;  %v4182_v24 = vadd.f32 %v8885_v14, %v4109_v4  ;;  %v9183_v14 = vadd.f32 %v8826_v8, %v8790_v37  ;;  %v9831_v8 = vld [vmem:[#allocation8_spill] sm:$0xff] }
 0x29f   : > { %4963 = vmatpush2.bf16.msra.mxu1 %v6990_v39  ;;  %4891 = vmatprep.subr.bf16.mxu0 %v6995_v5  ;;  %v4172_v39 = vadd.f32 %v8836_v15, %v4099_v59  ;;  %v4105_v5 = vadd.f32 %v8716_v45, %v8681_v25  ;;  %v4314_v43 = vadd.f32 %v8978_v29, %v4241_v53 }
 0x2a0   : > { %4964 = vmatprep.subr.bf16.mxu1 %v6998_v27  ;;  %v7002_v27 = vld [vmem:[%s8154_s7 + $0xd08] ss:$16 sps:$4 sm:$0xff]   ;;  %v4111_v15 = vadd.f32 %v8744_v0, %v8720_v48  ;;  %v4115_v25 = vadd.f32 %v8752_v7, %v8730_v54  ;;  %v4316_v33 = vadd.f32 %v8988_v38, %v4243_v20  ;;  %v4121_v48 = vadd.f32 %v8788_v35, %v8757_v9  ;;  %v9150_v0 = vpop.f32.mrf.mxu0  ;;  %v9162_v35 = vpop.f32.mrf.mxu1  ;;  %v9827_v38 = vld [vmem:[#allocation4_spill] sm:$0xff]  ;;  %v9835_v20 = vld [vmem:[#allocation10_spill] sm:$0xff] }
 0x2a1   : > { %v4178_v45 = vadd.f32 %v8863_v49, %v4105_v5  ;;  %v4245_v51 = vadd.f32 %v8872_v60, %v4172_v39  ;;  %v9147_v54 = vadd.f32 %v8796_v44, %v8768_v17  ;;  %v4247_v7 = vadd.f32 %v8883_v13, %v4174_v36  ;;  %v7178_v13 = vld [vmem:[%s9757_s1 + $0xa4] ss:$56 sps:$4 sm:$0xff]   ;;  %v9834_v39 = vld [vmem:[#allocation29_spill] sm:$0xff] }
 0x2a2   : > { %4892 = vmatpush2.bf16.msra.mxu0 %v6993_v22  ;;  %v4387_v16 = vadd.f32 %v9020_v50, %v4314_v43  ;;  %v4184_v17 = vadd.f32 %v8896_v34, %v4111_v15  ;;  %v4389_v47 = vadd.f32 %v9036_v6, %v4316_v33  ;;  %v4188_v34 = vadd.f32 %v8904_v52, %v4115_v25  ;;  %v9826_v6 = vld [vmem:[#allocation23_spill] sm:$0xff]  ;;  %v9828_v50 = vld [vmem:[#allocation5_spill] sm:$0xff]  ;;  %v9833_v52 = vld [vmem:[#allocation24_spill] sm:$0xff]  ;;  %v9200_v28 = vpop.f32.mrf.mxu1 }
 0x2a3   : > { %4965 = vmatpush2.bf16.msra.mxu1 %v6996_v30  ;;  %4893 = vmatprep.subr.bf16.mxu0 %v7001_v58  ;;  %v4318_v1 = vadd.f32 %v9000_v12, %v4245_v51  ;;  %v4251_v9 = vadd.f32 %v8892_v23, %v4178_v45  ;;  %v4320_v49 = vadd.f32 %v9004_v10, %v4247_v7  ;;  %v9830_v30 = vld [vmem:[#allocation6_spill] sm:$0xff]  ;;  %v9836_v43 = vld [vmem:[#allocation9_spill] sm:$0xff]  ;;  %v9837_v15 = vld [vmem:[#allocation31_spill] sm:$0xff] }
 0x2a4   : > { %4966 = vmatprep.subr.bf16.mxu1 %v7004_v42  ;;  %v4253_v23 = vadd.f32 %v8900_v40, %v4180_v56  ;;  %v9190_v12 = vadd.f32 %v9828_v50, %v9827_v38  ;;  %v9829_v42 = vld [vmem:[#allocation27_spill] sm:$0xff]  ;;  %v4255_v37 = vadd.f32 %v9830_v30, %v4182_v24  ;;  %v4257_v58 = vadd.f32 %v9831_v8, %v4184_v17  ;;  %v9838_v45 = vld [vmem:[#allocation25_spill] sm:$0xff]  ;;  %v9841_v17 = vld [vmem:[#allocation26_spill] sm:$0xff] }
 0x2a5   : > { %v4324_v29 = vadd.f32 %v9826_v6, %v4251_v9  ;;  %v4391_v22 = vadd.f32 %v9829_v42, %v4318_v1  ;;  %v9832_v40 = vld [vmem:[#allocation7_spill] sm:$0xff]  ;;  %v4261_v36 = vadd.f32 %v9835_v20, %v4188_v34  ;;  %v4192_v4 = vadd.f32 %v9836_v43, %v4119_v41  ;;  %v9840_v9 = vld [vmem:[#allocation33_spill] sm:$0xff]  ;;  %v9842_v34 = vld [vmem:[#allocation12_spill] sm:$0xff] }
 0x2a6   : > { %4894 = vmatpush2.bf16.msra.mxu0 %v6999_v3  ;;  %v4190_v59 = vadd.f32 %v9832_v40, %v4117_v32  ;;  %v4326_v19 = vadd.f32 %v9833_v52, %v4253_v23  ;;  %v4393_v3 = vadd.f32 %v9834_v39, %v4320_v49  ;;  %v4328_v32 = vadd.f32 %v9838_v45, %v4255_v37  ;;  %v7182_v23 = vld [vmem:[%s9757_s1 + $0x114] ss:$56 sps:$4 sm:$0xff]   ;;  %v9844_v38 = vld [vmem:[#allocation35_spill] sm:$0xff]  ;;  %v9845_v42 = vld [vmem:[#allocation28_spill] sm:$0xff] }
 0x2a7   : > { %4967 = vmatpush2.bf16.msra.mxu1 %v7002_v27  ;;  %v4397_v25 = vadd.f32 %v9837_v15, %v4324_v29  ;;  %v9843_v29 = vld [vmem:[#allocation13_spill] sm:$0xff]  ;;  %v9847_v52 = vld [vmem:[#allocation16_spill] sm:$0xff]  ;;  %v9850_v15 = vld [vmem:[#allocation18_spill] sm:$0xff] }
 0x2a8   : > { %v4399_v24 = vadd.f32 %v9840_v9, %v4326_v19  ;;  %v4263_v6 = vadd.f32 %v9842_v34, %v4190_v59  ;;  %v4401_v50 = vadd.f32 %v9844_v38, %v4328_v32  ;;  %v9853_v9 = vld [vmem:[#allocation32_spill] sm:$0xff]  ;;  %v9856_v34 = vld [vmem:[#allocation34_spill] sm:$0xff] }
 0x2a9   : > { %v4459_v44 = vpop.f32.mrf.mxu0  ;;  %4896 = vmatmul.mubr.bf16.vlgmr.msra.gmra.mxu0 %v7175_v26  ;;  %v9216_v26 = vpop.f32.mrf.mxu1 }
 0x2aa   : > { %4969 = vmatmul.mubr.bf16.vlgmr.msra.gmra.mxu1 %v7176_v62  ;;  %v9172_v60 = vadd.f32 %v4459_v44, %v4387_v16  ;;  %4905 = vmatprep.mubr.bf16.mxu0 %v7177_v63  ;;  %v9839_v16 = vld [vmem:[#allocation11_spill] sm:$0xff]  ;;  %v4330_v44 = vadd.f32 %v9841_v17, %v4257_v58  ;;  %v9846_v58 = vld [vmem:[#allocation14_spill] sm:$0xff] }
 0x2ab   : > { %6199 = vmatprep.mubr.msk.bf16.mxu1 %vm3974_vm0, %v7178_v13  ;;  %v4461_v10 = vpop.f32.mrf.mxu0  ;;  %v4194_v1 = vadd.f32 %v9839_v16, %v4121_v48  ;;  %v7179_v62 = vld [vmem:[%s9757_s1 + $0x98] ss:$56 sps:$4 sm:$0xff]   ;;  %v7181_v13 = vld [vmem:[%s9757_s1 + $0x10c] ss:$56 sps:$4 sm:$0xff]   ;;  %v4265_v40 = vadd.f32 %v9846_v58, %v4192_v4 }
 0x2ac   : > { %v5009_v55 = vmin.f32 %v9172_v60, 20.0  ;;  %v9194_v46 = vadd.f32 %v4461_v10, %v4389_v47  ;;  %v7180_v47 = vld [vmem:[%s9757_s1 + $0xa0] ss:$56 sps:$4 sm:$0xff]   ;;  %v4198_v10 = vadd.f32 %v9843_v29, %v9147_v54  ;;  %v4403_v59 = vadd.f32 %v9097_v21, %v4330_v44  ;;  %v9246_v54 = vpop.f32.mrf.mxu1 }
 0x2ad   : > { %v4463_v53 = vpop.f32.mrf.mxu0  ;;  %v4267_v19 = vadd.f32 %v9847_v52, %v4194_v1  ;;  %v9852_v16 = vld [vmem:[#allocation19_spill] sm:$0xff]  ;;  %v9857_v29 = vld [vmem:[#allocation36_spill] sm:$0xff] }
 0x2ae   : > { %v5041_v27 = vmul.f32 1.442695, %v5009_v55  ;;  %v5010_v5 = vmin.f32 %v9194_v46, 20.0  ;;  %v9204_v11 = vadd.f32 %v4463_v53, %v4391_v22  ;;  %v4334_v22 = vadd.f32 %v9845_v42, %v4261_v36  ;;  %v9848_v53 = vld [vmem:[#allocation30_spill] sm:$0xff]  ;;  %v9849_v36 = vld [vmem:[#allocation15_spill] sm:$0xff]  ;;  %v4420_v17 = vpop.f32.mrf.mxu1 }
 0x2af   : > { %v4465_v51 = vpop.f32.mrf.mxu0  ;;  %v4336_v39 = vadd.f32 %v9848_v53, %v4263_v6  ;;  %v4200_v43 = vadd.f32 %v9849_v36, %v9154_v61  ;;  %v4271_v4 = vadd.f32 %v9850_v15, %v4198_v10  ;;  %v4204_v1 = vadd.f32 %v9852_v16, %v9190_v12 }
 0x2b0   : > { %7005 = vpow2.f32 %v5041_v27  ;;  %v5043_v33 = vmul.f32 1.442695, %v5010_v5  ;;  %v5013_v56 = vmin.f32 %v9204_v11, 20.0  ;;  %v9211_v7 = vadd.f32 %v4465_v51, %v4393_v3 }
 0x2b1   : > { %v4469_v41 = vpop.f32.mrf.mxu0  ;;  %4906 = vmatmul.mubr.bf16.gmra.mxu0 %v7179_v62  ;;  %v4407_v21 = vadd.f32 %v9111_v2, %v4334_v22  ;;  %v4409_v61 = vadd.f32 %v9135_v31, %v4336_v39  ;;  %v7183_v2 = vld [vmem:[%s9757_s1 + $0x108] ss:$56 sps:$4 sm:$0xff]   ;;  %v7185_v31 = vld [vmem:[%s9757_s1 + $0x17c] ss:$56 sps:$4 sm:$0xff]   ;;  %v4340_v6 = vadd.f32 %v9856_v34, %v4267_v19  ;;  %v4344_v10 = vadd.f32 %v9857_v29, %v4271_v4 }
 0x2b2   : > { %4979 = vmatmul.mubr.bf16.gmra.mxu1 %v7180_v47  ;;  %7007 = vpow2.f32 %v5043_v33  ;;  %v5049_v49 = vmul.f32 1.442695, %v5013_v56  ;;  %v5014_v48 = vmin.f32 %v9211_v7, 20.0  ;;  %v9225_v63 = vadd.f32 %v4469_v41, %v4397_v25  ;;  %4915 = vmatprep.mubr.bf16.mxu0 %v7181_v13  ;;  %v9851_v25 = vld [vmem:[#allocation17_spill] sm:$0xff]  ;;  %v7186_v47 = vld [vmem:[%s9757_s1 + $0x184] ss:$56 sps:$4 sm:$0xff]  }
 0x2b3   : > { %6200 = vmatprep.mubr.msk.bf16.mxu1 %vm3974_vm0, %v7182_v23  ;;  %v4471_v55 = vpop.f32.mrf.mxu0  ;;  %v4202_v45 = vadd.f32 %v9851_v25, %v9183_v14  ;;  %v7184_v14 = vld [vmem:[%s9757_s1 + $0x110] ss:$56 sps:$4 sm:$0xff]   ;;  %v4417_v36 = vadd.f32 %v9216_v26, %v4344_v10 }
 0x2b4   : > { %7009 = vpow2.f32 %v5049_v49  ;;  %v5051_v30 = vmul.f32 1.442695, %v5014_v48  ;;  %v5017_v37 = vmin.f32 %v9225_v63, 20.0  ;;  %v9240_v8 = vadd.f32 %v4471_v55, %v4399_v24  ;;  %v9854_v49 = vld [vmem:[#allocation20_spill] sm:$0xff]  ;;  %v9855_v13 = vld [vmem:[#allocation21_spill] sm:$0xff] }
 0x2b5   : > { %v4473_v3 = vpop.f32.mrf.mxu0  ;;  %v4338_v24 = vadd.f32 %v9853_v9, %v4265_v40  ;;  %v4273_v48 = vadd.f32 %v9854_v49, %v4200_v43  ;;  %v4275_v23 = vadd.f32 %v9855_v13, %v4202_v45 }
 0x2b6   : > { %7011 = vpow2.f32 %v5051_v30  ;;  %v5057_v27 = vmul.f32 1.442695, %v5017_v37  ;;  %v5018_v5 = vmin.f32 %v9240_v8, 20.0  ;;  %v9249_v20 = vadd.f32 %v4473_v3, %v4401_v50  ;;  %v9858_v30 = vld [vmem:[#allocation22_spill] sm:$0xff] }
 0x2b7   : > { %v4475_v32 = vpop.f32.mrf.mxu0  ;;  %v4277_v37 = vadd.f32 %v9858_v30, %v4204_v1  ;;  %v4411_v58 = vadd.f32 %v9162_v35, %v4338_v24  ;;  %v4346_v40 = vadd.f32 %v9104_v57, %v4273_v48  ;;  %v4348_v52 = vadd.f32 %v9121_v18, %v4275_v23 }
 0x2b8   : > { %7013 = vpow2.f32 %v5057_v27  ;;  %v5059_v51 = vmul.f32 1.442695, %v5018_v5  ;;  %v5021_v33 = vmin.f32 %v9249_v20, 20.0  ;;  %v9258_v56 = vadd.f32 %v4475_v32, %v4403_v59  ;;  %v4422_v59 = vpop.f32.mrf.mxu1 }
 0x2b9   : > { %v4479_v44 = vpop.f32.mrf.mxu0  ;;  %4916 = vmatmul.mubr.bf16.gmra.mxu0 %v7183_v2  ;;  %v4413_v5 = vadd.f32 %v9200_v28, %v4340_v6  ;;  %v4350_v43 = vadd.f32 %v9150_v0, %v4277_v37  ;;  %v4421_v32 = vadd.f32 %v4420_v17, %v4348_v52  ;;  %v7187_v0 = vld [vmem:[%s9757_s1 + $0x178] ss:$56 sps:$4 sm:$0xff]   ;;  %v9319_v6 = vpop.permute.xlu0 %5339 }
 0x2ba   : > { %4989 = vmatmul.mubr.bf16.gmra.mxu1 %v7184_v14  ;;  %7015 = vpow2.f32 %v5059_v51  ;;  %v5065_v41 = vmul.f32 1.442695, %v5021_v33  ;;  %v5022_v12 = vmin.f32 %v9258_v56, 20.0  ;;  %v9271_v62 = vadd.f32 %v4479_v44, %v4407_v21  ;;  %4925 = vmatprep.mubr.bf16.mxu0 %v7185_v31  ;;  %v9295_v15 = vpop.f32.mrf.mxu1  ;;  %v7188_v33 = vld [vmem:[%s9757_s1 + $0x180] ss:$56 sps:$4 sm:$0xff]   ;;  %9860 = vst [vmem:[#allocation4_spill] sm:$0xff] %v9319_v6 }
 0x2bb   : > { %6201 = vmatprep.mubr.msk.bf16.mxu1 %vm3974_vm0, %v7186_v47  ;;  %v4481_v38 = vpop.f32.mrf.mxu0  ;;  %v4419_v21 = vadd.f32 %v9246_v54, %v4346_v40  ;;  %v4423_v24 = vadd.f32 %v4422_v59, %v4350_v43  ;;  %v9314_v47 = vpop.permute.xlu1 %5349 }
 0x2bc   : > { %7017 = vpow2.f32 %v5065_v41  ;;  %v5067_v50 = vmul.f32 1.442695, %v5022_v12  ;;  %v5025_v42 = vmin.f32 %v9271_v62, 20.0  ;;  %v9285_v22 = vadd.f32 %v4481_v38, %v4409_v61  ;;  %v9309_v61 = vpop.f32.mrf.mxu1  ;;  %9859 = vst [vmem:[#allocation23_spill] sm:$0xff] %v9314_v47 }
 0x2bd   : > { %v7006_v55 = vpop.eup %7005  ;;  %v4483_v19 = vpop.f32.mrf.mxu0 }
 0x2be   : > { %v5105_v53 = vadd.f32 1.0, %v7006_v55  ;;  %7019 = vpow2.f32 %v5067_v50  ;;  %v5073_v39 = vmul.f32 1.442695, %v5025_v42  ;;  %v5026_v3 = vmin.f32 %v9285_v22, 20.0  ;;  %v9321_v42 = vpop.f32.mrf.mxu1 }
 0x2bf   : > { %v7008_v27 = vpop.eup %7007  ;;  %v9297_v35 = vadd.f32 %v4483_v19, %v4411_v58  ;;  %v4485_v57 = vpop.f32.mrf.mxu0 }
 0x2c0   : > { %v5137_v18 = vmul.f32 %v5105_v53, %v5105_v53  ;;  %v5106_v4 = vadd.f32 1.0, %v7008_v27  ;;  %7021 = vpow2.f32 %v5073_v39  ;;  %v5075_v25 = vmul.f32 1.442695, %v5026_v3  ;;  %v9329_v43 = vpop.permute.xlu1 %5354 }
 0x2c1   : > { %v7010_v45 = vpop.eup %7009  ;;  %v5029_v51 = vmin.f32 %v9297_v35, 20.0  ;;  %v9301_v28 = vadd.f32 %v4485_v57, %v4413_v5  ;;  %v4489_v26 = vpop.f32.mrf.mxu0  ;;  %4926 = vmatmul.mubr.bf16.gmra.mxu0 %v7187_v0  ;;  %9861 = vst [vmem:[#allocation5_spill] sm:$0xff] %v9329_v43 }
 0x2c2   : > { %4999 = vmatmul.mubr.bf16.gmra.mxu1 %v7188_v33  ;;  %v5169_v16 = vadd.f32 1.0, %v5137_v18  ;;  %v5138_v1 = vmul.f32 %v5106_v4, %v5106_v4  ;;  %v5109_v9 = vadd.f32 1.0, %v7010_v45  ;;  %7023 = vpow2.f32 %v5075_v25  ;;  %v9331_v18 = vpop.f32.mrf.mxu1  ;;  %v9334_v45 = vpop.permute.xlu0 %5344 }
 0x2c3   : > { %v7012_v54 = vpop.eup %7011  ;;  %v5081_v17 = vmul.f32 1.442695, %v5029_v51  ;;  %v5030_v44 = vmin.f32 %v9301_v28, 20.0  ;;  %v9312_v2 = vadd.f32 %v4489_v26, %v4417_v36  ;;  %v4491_v14 = vpop.f32.mrf.mxu0  ;;  %9862 = vst [vmem:[#allocation27_spill] sm:$0xff] %v9334_v45 }
 0x2c4   : > { %7025 = vrcp.f32 %v5169_v16  ;;  %v5170_v41 = vadd.f32 1.0, %v5138_v1  ;;  %v5141_v12 = vmul.f32 %v5109_v9, %v5109_v9  ;;  %v5110_v31 = vadd.f32 1.0, %v7012_v54  ;;  %v9336_v33 = vpop.f32.mrf.mxu1 }
 0x2c5   : > { %v7014_v49 = vpop.eup %7013  ;;  %7027 = vpow2.f32 %v5081_v17  ;;  %v5083_v48 = vmul.f32 1.442695, %v5030_v44  ;;  %v5033_v13 = vmin.f32 %v9312_v2, 20.0  ;;  %v9317_v23 = vadd.f32 %v4491_v14, %v4419_v21  ;;  %v4493_v34 = vpop.f32.mrf.mxu0 }
 0x2c6   : > { %7029 = vrcp.f32 %v5170_v41  ;;  %v5173_v29 = vadd.f32 1.0, %v5141_v12  ;;  %v5142_v10 = vmul.f32 %v5110_v31, %v5110_v31  ;;  %v5113_v38 = vadd.f32 1.0, %v7014_v49  ;;  %v9338_v14 = vpop.permute.xlu1 %5364  ;;  %v9340_v12 = vpop.permute.xlu0 %5359 }
 0x2c7   : > { %v7016_v50 = vpop.eup %7015  ;;  %7031 = vpow2.f32 %v5083_v48  ;;  %v5089_v55 = vmul.f32 1.442695, %v5033_v13  ;;  %v5034_v30 = vmin.f32 %v9317_v23, 20.0  ;;  %v9324_v37 = vadd.f32 %v4493_v34, %v4421_v32  ;;  %v4495_v58 = vpop.f32.mrf.mxu0  ;;  %9863 = vst [vmem:[#allocation6_spill] sm:$0xff] %v9338_v14  ;;  %9864 = vst [vmem:[#allocation8_spill] sm:$0xff] %v9340_v12 }
 0x2c8   : > { %7033 = vrcp.f32 %v5173_v29  ;;  %v5174_v40 = vadd.f32 1.0, %v5142_v10  ;;  %v5145_v52 = vmul.f32 %v5113_v38, %v5113_v38  ;;  %v5114_v59 = vadd.f32 1.0, %v7016_v50  ;;  %v9342_v31 = vpop.f32.mrf.mxu1 }
 0x2c9   : > { %v7018_v19 = vpop.eup %7017  ;;  %7035 = vpow2.f32 %v5089_v55  ;;  %v5091_v53 = vmul.f32 1.442695, %v5034_v30  ;;  %v5037_v39 = vmin.f32 %v9324_v37, 20.0  ;;  %v9327_v3 = vadd.f32 %v4495_v58, %v4423_v24 }
 0x2ca   : > { %7037 = vrcp.f32 %v5174_v40  ;;  %v5177_v27 = vadd.f32 1.0, %v5145_v52  ;;  %v5146_v5 = vmul.f32 %v5114_v59, %v5114_v59  ;;  %v5117_v36 = vadd.f32 1.0, %v7018_v19  ;;  %v9344_v59 = vpop.f32.mrf.mxu1 }
 0x2cb   : > { %v7020_v57 = vpop.eup %7019  ;;  %7039 = vpow2.f32 %v5091_v53  ;;  %v5097_v4 = vmul.f32 1.442695, %v5037_v39  ;;  %v5038_v25 = vmin.f32 %v9327_v3, 20.0 }
 0x2cc   : > { %7041 = vrcp.f32 %v5177_v27  ;;  %v5178_v21 = vadd.f32 1.0, %v5146_v5  ;;  %v5149_v32 = vmul.f32 %v5117_v36, %v5117_v36  ;;  %v5118_v51 = vadd.f32 1.0, %v7020_v57  ;;  %v9347_v5 = vpop.permute.xlu1 %5374 }
 0x2cd   : > { %v7022_v26 = vpop.eup %7021  ;;  %7043 = vpow2.f32 %v5097_v4  ;;  %v5099_v0 = vmul.f32 1.442695, %v5038_v25  ;;  %9865 = vst [vmem:[#allocation7_spill] sm:$0xff] %v9347_v5 }
 0x2ce   : > { %7045 = vrcp.f32 %v5178_v21  ;;  %v5181_v16 = vadd.f32 1.0, %v5149_v32  ;;  %v5150_v1 = vmul.f32 %v5118_v51, %v5118_v51  ;;  %v5121_v9 = vadd.f32 1.0, %v7022_v26  ;;  %v9349_v21 = vpop.permute.xlu0 %5369 }
 0x2cf   : > { %v7024_v54 = vpop.eup %7023  ;;  %7047 = vpow2.f32 %v5099_v0  ;;  %9866 = vst [vmem:[#allocation24_spill] sm:$0xff] %v9349_v21 }
 0x2d0   : > { %7049 = vrcp.f32 %v5181_v16  ;;  %v5182_v24 = vadd.f32 1.0, %v5150_v1  ;;  %v5153_v17 = vmul.f32 %v5121_v9, %v5121_v9  ;;  %v5122_v44 = vadd.f32 1.0, %v7024_v54  ;;  %v9352_v54 = vpop.f32.mrf.mxu1 }
 0x2d1   : > { %v7026_v41 = vpop.eup %7025 }
 0x2d2   : > { %v7028_v49 = vpop.eup %7027  ;;  %v5233_v48 = vmul.f32 2.0, %v7026_v41  ;;  %7051 = vrcp.f32 %v5182_v24  ;;  %v5185_v13 = vadd.f32 1.0, %v5153_v17  ;;  %v5154_v34 = vmul.f32 %v5122_v44, %v5122_v44 }
 0x2d3   : > { %v7030_v29 = vpop.eup %7029  ;;  %v5125_v10 = vadd.f32 1.0, %v7028_v49 }
 0x2d4   : > { %v7032_v38 = vpop.eup %7031  ;;  %v5265_v50 = vsub.f32 1.0, %v5233_v48  ;;  %v5234_v55 = vmul.f32 2.0, %v7030_v29  ;;  %7053 = vrcp.f32 %v5185_v13  ;;  %v5186_v30 = vadd.f32 1.0, %v5154_v34 }
 0x2d5   : > { %v7034_v58 = vpop.eup %7033  ;;  %v5157_v40 = vmul.f32 %v5125_v10, %v5125_v10  ;;  %v5126_v52 = vadd.f32 1.0, %v7032_v38 }
 0x2d6   : > { %v7036_v19 = vpop.eup %7035  ;;  %v5297_v53 = vmul.f32 %v5265_v50, %v9172_v60  ;;  %v5266_v39 = vsub.f32 1.0, %v5234_v55  ;;  %v5237_v27 = vmul.f32 2.0, %v7034_v58  ;;  %7055 = vrcp.f32 %v5186_v30  ;;  %v9358_v30 = vpop.permute.xlu1 %5414 }
 0x2d7   : > { %v7038_v36 = vpop.eup %7037  ;;  %v5189_v57 = vadd.f32 1.0, %v5157_v40  ;;  %v5158_v4 = vmul.f32 %v5126_v52, %v5126_v52  ;;  %v5129_v25 = vadd.f32 1.0, %v7036_v19  ;;  %9867 = vst [vmem:[#allocation29_spill] sm:$0xff] %v9358_v30  ;;  %v9360_v19 = vpop.permute.xlu0 %5410 }
 0x2d8   : > { %v7040_v32 = vpop.eup %7039  ;;  %v5298_v51 = vmul.f32 %v5266_v39, %v9194_v46  ;;  %v5269_v26 = vsub.f32 1.0, %v5237_v27  ;;  %v5238_v0 = vmul.f32 2.0, %v7038_v36  ;;  %v5377_v49 = vmul.f32 %v9319_v6, %v5297_v53  ;;  %9868 = vst [vmem:[#allocation10_spill] sm:$0xff] %v9360_v19  ;;  %v9362_v53 = vpop.f32.mrf.mxu1 }
 0x2d9   : > { %v7042_v16 = vpop.eup %7041  ;;  %7057 = vrcp.f32 %v5189_v57  ;;  %v5190_v1 = vadd.f32 1.0, %v5158_v4  ;;  %v5161_v60 = vmul.f32 %v5129_v25, %v5129_v25  ;;  %v5130_v9 = vadd.f32 1.0, %v7040_v32 }
 0x2da   : > { %v7044_v24 = vpop.eup %7043  ;;  %v5301_v17 = vmul.f32 %v5269_v26, %v9204_v11  ;;  %v5270_v44 = vsub.f32 1.0, %v5238_v0  ;;  %v5241_v41 = vmul.f32 2.0, %v7042_v16  ;;  %v5378_v55 = vmul.f32 %v9319_v6, %v5298_v51 }
 0x2db   : > { %v7046_v48 = vpop.eup %7045  ;;  %7059 = vrcp.f32 %v5190_v1  ;;  %v5193_v13 = vadd.f32 1.0, %v5161_v60  ;;  %v5162_v46 = vmul.f32 %v5130_v9, %v5130_v9  ;;  %v5133_v34 = vadd.f32 1.0, %v7044_v24  ;;  %v9373_v24 = vpop.f32.mrf.mxu1 }
 0x2dc   : > { %v7048_v29 = vpop.eup %7047  ;;  %v5302_v10 = vmul.f32 %v5270_v44, %v9211_v7  ;;  %v5273_v38 = vsub.f32 1.0, %v5241_v41  ;;  %v5242_v50 = vmul.f32 2.0, %v7046_v48  ;;  %v5381_v36 = vmul.f32 %v9334_v45, %v5301_v17 }
 0x2dd   : > { %v7050_v58 = vpop.eup %7049  ;;  %7061 = vrcp.f32 %v5193_v13  ;;  %v5194_v11 = vadd.f32 1.0, %v5162_v46  ;;  %v5165_v40 = vmul.f32 %v5133_v34, %v5133_v34  ;;  %v5134_v52 = vadd.f32 1.0, %v7048_v29 }
 0x2de   : > { %v5305_v39 = vmul.f32 %v5273_v38, %v9225_v63  ;;  %v5274_v27 = vsub.f32 1.0, %v5242_v50  ;;  %v5245_v7 = vmul.f32 2.0, %v7050_v58  ;;  %v5382_v32 = vmul.f32 %v9334_v45, %v5302_v10 }
 0x2df   : > { %v7052_v57 = vpop.eup %7051  ;;  %7063 = vrcp.f32 %v5194_v11  ;;  %v5197_v4 = vadd.f32 1.0, %v5165_v40  ;;  %v5166_v25 = vmul.f32 %v5134_v52, %v5134_v52  ;;  %v5441_v16 = vadd.f32 %v9360_v19, %v5377_v49  ;;  %v9388_v11 = vpop.permute.xlu0 %5422 }
 0x2e0   : > { %v5306_v51 = vmul.f32 %v5274_v27, %v9240_v8  ;;  %v5277_v26 = vsub.f32 1.0, %v5245_v7  ;;  %v5246_v0 = vmul.f32 2.0, %v7052_v57  ;;  %v5385_v60 = vmul.f32 %v9314_v47, %v5305_v39  ;;  %v9377_v8 = vpop.permute.xlu1 %5418  ;;  %9870 = vst [vmem:[#allocation31_spill] sm:$0xff] %v9388_v11  ;;  %v9390_v40 = vpop.f32.mrf.mxu1 }
 0x2e1   : > { %v7054_v1 = vpop.eup %7053  ;;  %7065 = vrcp.f32 %v5197_v4  ;;  %v5198_v63 = vadd.f32 1.0, %v5166_v25  ;;  %v5442_v9 = vadd.f32 %v9360_v19, %v5378_v55  ;;  %9869 = vst [vmem:[#allocation9_spill] sm:$0xff] %v9377_v8  ;;  %v5445_v46 = vadd.f32 %v9358_v30, %v5381_v36 }
 0x2e2   : > { %v5309_v17 = vmul.f32 %v5277_v26, %v9249_v20  ;;  %v5278_v44 = vsub.f32 1.0, %v5246_v0  ;;  %v5249_v41 = vmul.f32 2.0, %v7054_v1  ;;  %v5386_v48 = vmul.f32 %v9314_v47, %v5306_v51 }
 0x2e3   : > { %v7056_v13 = vpop.eup %7055  ;;  %7067 = vrcp.f32 %v5198_v63  ;;  %v6224_v49 = vpack.c.bf16 %v5442_v9, %v5441_v16  ;;  %v5446_v34 = vadd.f32 %v9358_v30, %v5382_v32  ;;  %v5449_v55 = vadd.f32 %v9377_v8, %v5385_v60  ;;  %v9402_v16 = vpop.f32.mrf.mxu1 }
 0x2e4   : > { %v5310_v29 = vmul.f32 %v5278_v44, %v9258_v56  ;;  %v5281_v10 = vsub.f32 1.0, %v5249_v41  ;;  %v5250_v38 = vmul.f32 2.0, %v7056_v13  ;;  %v5389_v50 = vmul.f32 %v9329_v43, %v5309_v17  ;;  %v9409_v13 = vpop.permute.xlu0 %5430 }
 0x2e5   : > { %5569 = vst [vmem:[%s9383_s12] sm:$0xff] %v6224_v49  ;;  %v6226_v20 = vpack.c.bf16 %v5446_v34, %v5445_v46  ;;  %v5450_v58 = vadd.f32 %v9377_v8, %v5386_v48  ;;  %9872 = vst [vmem:[#allocation11_spill] sm:$0xff] %v9409_v13 }
 0x2e6   : > { %v7058_v56 = vpop.eup %7057  ;;  %v5313_v52 = vmul.f32 %v5281_v10, %v9271_v62  ;;  %v5282_v39 = vsub.f32 1.0, %v5250_v38  ;;  %v5390_v27 = vmul.f32 %v9329_v43, %v5310_v29  ;;  %v5453_v32 = vadd.f32 %v9388_v11, %v5389_v50  ;;  %v9400_v62 = vpop.permute.xlu1 %5426 }
 0x2e7   : > { %v5253_v7 = vmul.f32 2.0, %v7058_v56  ;;  %5571 = vst [vmem:[%s9383_s12 + $0x10] sm:$0xff] %v6226_v20  ;;  %v6228_v36 = vpack.c.bf16 %v5450_v58, %v5449_v55  ;;  %9871 = vst [vmem:[#allocation25_spill] sm:$0xff] %v9400_v62 }
 0x2e8   : > { %v7060_v57 = vpop.eup %7059  ;;  %v5314_v4 = vmul.f32 %v5282_v39, %v9285_v22  ;;  %v5393_v25 = vmul.f32 %v9340_v12, %v5313_v52  ;;  %v5454_v51 = vadd.f32 %v9388_v11, %v5390_v27 }
 0x2e9   : > { %v5285_v26 = vsub.f32 1.0, %v5253_v7  ;;  %v5254_v0 = vmul.f32 2.0, %v7060_v57  ;;  %5573 = vst [vmem:[%s9383_s12 + $0x20] sm:$0xff] %v6228_v36  ;;  %v9413_v10 = vpop.f32.mrf.mxu0 }
 0x2ea   : > { %v7062_v1 = vpop.eup %7061  ;;  %v5394_v63 = vmul.f32 %v9340_v12, %v5314_v4  ;;  %v6230_v60 = vpack.c.bf16 %v5454_v51, %v5453_v32  ;;  %v5457_v41 = vadd.f32 %v9400_v62, %v5393_v25 }
 0x2eb   : > { %v5317_v22 = vmul.f32 %v5285_v26, %v9297_v35  ;;  %v5286_v9 = vsub.f32 1.0, %v5254_v0  ;;  %v5257_v17 = vmul.f32 2.0, %v7062_v1  ;;  %v9415_v35 = vpop.f32.mrf.mxu1  ;;  %v9422_v36 = vpop.f32.mrf.mxu0 }
 0x2ec   : > { %v7064_v44 = vpop.eup %7063  ;;  %5575 = vst [vmem:[%s9383_s12 + $0x30] sm:$0xff] %v6230_v60  ;;  %v5458_v48 = vadd.f32 %v9400_v62, %v5394_v63 }
 0x2ed   : > { %v5318_v49 = vmul.f32 %v5286_v9, %v9301_v28  ;;  %v5289_v46 = vsub.f32 1.0, %v5257_v17  ;;  %v5258_v34 = vmul.f32 2.0, %v7064_v44  ;;  %v5397_v29 = vmul.f32 %v9338_v14, %v5317_v22  ;;  %v9425_v4 = vpop.f32.mrf.mxu1  ;;  %v9434_v1 = vpop.f32.mrf.mxu0 }
 0x2ee   : > { %v7066_v38 = vpop.eup %7065  ;;  %v6232_v50 = vpack.c.bf16 %v5458_v48, %v5457_v41  ;;  %v9441_v17 = vpop.permute.xlu0 %5438 }
 0x2ef   : > { %v5321_v20 = vmul.f32 %v5289_v46, %v9312_v2  ;;  %v5290_v55 = vsub.f32 1.0, %v5258_v34  ;;  %v5261_v58 = vmul.f32 2.0, %v7066_v38  ;;  %v5398_v56 = vmul.f32 %v9338_v14, %v5318_v49  ;;  %v9427_v2 = vpop.permute.xlu1 %5434  ;;  %v9438_v22 = vpop.f32.mrf.mxu1  ;;  %9874 = vst [vmem:[#allocation26_spill] sm:$0xff] %v9441_v17 }
 0x2f0   : > { %v7068_v52 = vpop.eup %7067  ;;  %5577 = vst [vmem:[%s9383_s12 + $0x40] sm:$0xff] %v6232_v50  ;;  %v5461_v28 = vadd.f32 %v9409_v13, %v5397_v29  ;;  %9873 = vst [vmem:[#allocation33_spill] sm:$0xff] %v9427_v2  ;;  %v9444_v41 = vpop.f32.mrf.mxu0 }
 0x2f1   : > { %v5322_v39 = vmul.f32 %v5290_v55, %v9317_v23  ;;  %v5293_v27 = vsub.f32 1.0, %v5261_v58  ;;  %v5262_v7 = vmul.f32 2.0, %v7068_v52  ;;  %v5462_v57 = vadd.f32 %v9409_v13, %v5398_v56 }
 0x2f2   : > { %v5401_v25 = vmul.f32 %v9349_v21, %v5321_v20  ;;  %v9451_v29 = vpop.f32.mrf.mxu0 }
 0x2f3   : > { %v5325_v32 = vmul.f32 %v5293_v27, %v9324_v37  ;;  %v5294_v51 = vsub.f32 1.0, %v5262_v7  ;;  %v6234_v26 = vpack.c.bf16 %v5462_v57, %v5461_v28  ;;  %v5402_v0 = vmul.f32 %v9349_v21, %v5322_v39 }
 0x2f4   : > { %v5465_v63 = vadd.f32 %v9427_v2, %v5401_v25  ;;  %v9454_v50 = vpop.f32.mrf.mxu0 }
 0x2f5   : > { %v5326_v23 = vmul.f32 %v5294_v51, %v9327_v3  ;;  %5579 = vst [vmem:[%s9383_s12 + $0x50] sm:$0xff] %v6234_v26  ;;  %v5466_v60 = vadd.f32 %v9427_v2, %v5402_v0  ;;  %v5405_v9 = vmul.f32 %v9347_v5, %v5325_v32  ;;  %v9447_v3 = vpop.f32.mrf.mxu1 }
 0x2f6   : > { %v4619_v55 = vpop.f32.mrf.mxu0 }
 0x2f7   : > { %v6236_v37 = vpack.c.bf16 %v5466_v60, %v5465_v63  ;;  %v5406_v44 = vmul.f32 %v9347_v5, %v5326_v23  ;;  %v5469_v48 = vadd.f32 %v9441_v17, %v5405_v9 }
 0x2f8   : > { %v9460_v56 = vpop.f32.mrf.mxu0 }
 0x2f9   : > { %5581 = vst [vmem:[%s9383_s12 + $0x60] sm:$0xff] %v6236_v37  ;;  %v5470_v49 = vadd.f32 %v9441_v17, %v5406_v44 }
 0x2fa   : > { %v4678_v34 = vpop.f32.mrf.mxu1  ;;  %v9464_v28 = vpop.f32.mrf.mxu0 }
 0x2fb   : > { %v6238_v46 = vpack.c.bf16 %v5470_v49, %v5469_v48 }
 0x2fc   : > { %v4680_v38 = vpop.f32.mrf.mxu1  ;;  %v9468_v27 = vpop.f32.mrf.mxu0 }
 0x2fd   : > { %5583 = vst [vmem:[%s9383_s12 + $0x70] sm:$0xff] %v6238_v46 }
 0x2fe   : > { %v9456_v20 = vpop.f32.mrf.mxu1  ;;  %v9472_v57 = vpop.f32.mrf.mxu0 }
 0x300   : > { %v9458_v58 = vpop.f32.mrf.mxu1  ;;  %v4631_v32 = vpop.f32.mrf.mxu0 }
 0x302   : > { %v9462_v52 = vpop.f32.mrf.mxu1  ;;  %v9478_v26 = vpop.f32.mrf.mxu0 }
 0x304   : > { %v9466_v39 = vpop.f32.mrf.mxu1  ;;  %v9482_v23 = vpop.f32.mrf.mxu0 }
 0x306   : > { %v9470_v7 = vpop.f32.mrf.mxu1  ;;  %v9486_v60 = vpop.f32.mrf.mxu0 }
 0x308   : > { %v9474_v25 = vpop.f32.mrf.mxu1  ;;  %v9490_v37 = vpop.f32.mrf.mxu0 }
 0x30a   : > { %v9476_v51 = vpop.f32.mrf.mxu1 }
 0x30c   : > { %v9480_v0 = vpop.f32.mrf.mxu1 }
 0x30e   : > { %v9484_v63 = vpop.f32.mrf.mxu1 }
 0x310   : > { %v9488_v9 = vpop.f32.mrf.mxu1 }
 0x311   : > { %9875 = vst [vmem:[#allocation12_spill] sm:$0xff] %v9488_v9 }
 0x312   : > { %v9492_v44 = vpop.f32.mrf.mxu1 }
 0x313   : > { %9876 = vst [vmem:[#allocation13_spill] sm:$0xff] %v9492_v44 }
 0x314   : > { %v9494_v49 = vpop.f32.mrf.mxu1 }
 0x315   : > { %9877 = vst [vmem:[#allocation35_spill] sm:$0xff] %v9494_v49 }
 0x316   : > { %v9496_v17 = vpop.f32.mrf.mxu1 }
 0x317   : > { %9878 = vst [vmem:[#allocation28_spill] sm:$0xff] %v9496_v17 }
 0x318   : > { %v9498_v2 = vpop.f32.mrf.mxu1 }
 0x319   : > { %9879 = vst [vmem:[#allocation14_spill] sm:$0xff] %v9498_v2 }
 0x329   : > { %v4751_v48 = vpop.f32.mrf.mxu0 }
 0x32b   : > { %v4753_v46 = vpop.f32.mrf.mxu0 }
 0x32d   : > { %v4755_v5 = vpop.f32.mrf.mxu0 }
 0x32f   : > { %v4757_v21 = vpop.f32.mrf.mxu0 }
 0x331   : > { %v9500_v14 = vpop.f32.mrf.mxu0 }
 0x333   : > { %v9502_v11 = vpop.f32.mrf.mxu0 }
 0x335   : > { %v9508_v47 = vpop.f32.mrf.mxu0 }
 0x336   : > { %9881 = vst [vmem:[#allocation30_spill] sm:$0xff] %v9508_v47 }
 0x337   : > { %v9514_v19 = vpop.f32.mrf.mxu0 }
 0x338   : > { %9884 = vst [vmem:[#allocation17_spill] sm:$0xff] %v9514_v19 }
 0x339   : > { %v9518_v2 = vpop.f32.mrf.mxu0 }
 0x33a   : > { %v4824_v13 = vpop.f32.mrf.mxu1  ;;  %9886 = vst [vmem:[#allocation32_spill] sm:$0xff] %v9518_v2 }
 0x33b   : > { %v9522_v49 = vpop.f32.mrf.mxu0 }
 0x33c   : > { %v4826_v62 = vpop.f32.mrf.mxu1  ;;  %9887 = vst [vmem:[#allocation20_spill] sm:$0xff] %v9522_v49  ;;  %v4606_v49 = vadd.f32 %v9413_v10, %v9295_v15  ;;  %v4618_v15 = vadd.f32 %v9454_v50, %v9342_v31  ;;  %v4620_v10 = vadd.f32 %v4619_v55, %v9344_v59  ;;  %v4630_v31 = vadd.f32 %v9472_v57, %v9390_v40 }
 0x33d   : > { %v9526_v9 = vpop.f32.mrf.mxu0  ;;  %v4632_v59 = vadd.f32 %v4631_v32, %v9402_v16  ;;  %v9898_v32 = vld [vmem:[#allocation30_spill] sm:$0xff] }
 0x33e   : > { %v4828_v12 = vpop.f32.mrf.mxu1  ;;  %9889 = vst [vmem:[#allocation34_spill] sm:$0xff] %v9526_v9 }
 0x33f   : > { %v9530_v47 = vpop.f32.mrf.mxu0 }
 0x340   : > { %v9504_v43 = vpop.f32.mrf.mxu1  ;;  %9891 = vst [vmem:[#allocation22_spill] sm:$0xff] %v9530_v47  ;;  %v4679_v47 = vadd.f32 %v4678_v34, %v4606_v49 }
 0x342   : > { %v9506_v8 = vpop.f32.mrf.mxu1 }
 0x343   : > { %9880 = vst [vmem:[#allocation16_spill] sm:$0xff] %v9506_v8 }
 0x344   : > { %v9510_v30 = vpop.f32.mrf.mxu1 }
 0x345   : > { %9882 = vst [vmem:[#allocation15_spill] sm:$0xff] %v9510_v30 }
 0x346   : > { %v9512_v45 = vpop.f32.mrf.mxu1 }
 0x347   : > { %9883 = vst [vmem:[#allocation18_spill] sm:$0xff] %v9512_v45  ;;  %v9534_v45 = vpop.f32.mrf.mxu0 }
 0x348   : > { %v9516_v6 = vpop.f32.mrf.mxu1  ;;  %9893 = vst [vmem:[#allocation38_spill] sm:$0xff] %v9534_v45 }
 0x349   : > { %9885 = vst [vmem:[#allocation19_spill] sm:$0xff] %v9516_v6  ;;  %v9538_v6 = vpop.f32.mrf.mxu0 }
 0x34a   : > { %v9520_v17 = vpop.f32.mrf.mxu1  ;;  %9895 = vst [vmem:[#allocation40_spill] sm:$0xff] %v9538_v6  ;;  %v4612_v6 = vadd.f32 %v9444_v41, %v9331_v18  ;;  %v4626_v18 = vadd.f32 %v9464_v28, %v9362_v53  ;;  %v4638_v53 = vadd.f32 %v9482_v23, %v9425_v4  ;;  %v9899_v23 = vld [vmem:[#allocation16_spill] sm:$0xff] }
 0x34c   : > { %v9524_v44 = vpop.f32.mrf.mxu1  ;;  %v4685_v34 = vadd.f32 %v9458_v58, %v4612_v6 }
 0x34d   : > { %9888 = vst [vmem:[#allocation21_spill] sm:$0xff] %v9524_v44  ;;  %v9544_v44 = vpop.f32.mrf.mxu0 }
 0x34e   : > { %v9528_v8 = vpop.f32.mrf.mxu1  ;;  %v4758_v16 = vadd.f32 %v4757_v21, %v4685_v34 }
 0x34f   : > { %9890 = vst [vmem:[#allocation36_spill] sm:$0xff] %v9528_v8  ;;  %v4608_v8 = vadd.f32 %v9422_v36, %v9309_v61 }
 0x350   : > { %v9532_v30 = vpop.f32.mrf.mxu1  ;;  %v4831_v55 = vadd.f32 %v9504_v43, %v4758_v16 }
 0x351   : > { %9892 = vst [vmem:[#allocation37_spill] sm:$0xff] %v9532_v30  ;;  %v4610_v30 = vadd.f32 %v9434_v1, %v9321_v42  ;;  %v4681_v45 = vadd.f32 %v4680_v38, %v4608_v8  ;;  %v4622_v42 = vadd.f32 %v9460_v56, %v9352_v54  ;;  %v4699_v56 = vadd.f32 %v9476_v51, %v4626_v18 }
 0x352   : > { %v9536_v19 = vpop.f32.mrf.mxu1 }
 0x353   : > { %9894 = vst [vmem:[#allocation39_spill] sm:$0xff] %v9536_v19  ;;  %v4752_v19 = vadd.f32 %v4751_v48, %v4679_v47  ;;  %v4683_v47 = vadd.f32 %v9456_v20, %v4610_v30  ;;  %v4754_v8 = vadd.f32 %v4753_v46, %v4681_v45  ;;  %v4636_v45 = vadd.f32 %v9478_v26, %v9415_v35  ;;  %v9901_v46 = vld [vmem:[#allocation12_spill] sm:$0xff] }
 0x354   : > { %v9540_v2 = vpop.f32.mrf.mxu1  ;;  %v4642_v35 = vadd.f32 %v9490_v37, %v9447_v3 }
 0x355   : > { %9896 = vst [vmem:[#allocation41_spill] sm:$0xff] %v9540_v2  ;;  %v4616_v2 = vadd.f32 %v9451_v29, %v9336_v33  ;;  %v4825_v36 = vadd.f32 %v4824_v13, %v4752_v19  ;;  %v4628_v33 = vadd.f32 %v9468_v27, %v9373_v24  ;;  %v4756_v54 = vadd.f32 %v4755_v5, %v4683_v47  ;;  %v9903_v47 = vld [vmem:[#allocation18_spill] sm:$0xff] }
 0x356   : > { %v9546_v9 = vpop.f32.mrf.mxu1  ;;  %v4827_v29 = vadd.f32 %v4826_v62, %v4754_v8  ;;  %v4691_v24 = vadd.f32 %v9466_v39, %v4618_v15  ;;  %v4640_v5 = vadd.f32 %v9486_v60, %v9438_v22  ;;  %v4693_v62 = vadd.f32 %v9470_v7, %v4620_v10  ;;  %v9900_v60 = vld [vmem:[#allocation15_spill] sm:$0xff]  ;;  %v9902_v10 = vld [vmem:[#allocation17_spill] sm:$0xff] }
 0x357   : > { %9897 = vst [vmem:[#allocation42_spill] sm:$0xff] %v9546_v9  ;;  %v9559_v9 = vpop.f32.mrf.mxu0  ;;  %v4689_v19 = vadd.f32 %v9462_v52, %v4616_v2  ;;  %v4829_v38 = vadd.f32 %v4828_v12, %v4756_v54  ;;  %v4695_v2 = vadd.f32 %v9474_v25, %v4622_v42  ;;  %v4701_v22 = vadd.f32 %v9480_v0, %v4628_v33  ;;  %v9905_v54 = vld [vmem:[#allocation32_spill] sm:$0xff] }
 0x358   : > { %v9561_v61 = vpop.f32.mrf.mxu1  ;;  %v4764_v28 = vadd.f32 %v9502_v11, %v4691_v24  ;;  %v4703_v25 = vadd.f32 %v9484_v63, %v4630_v31  ;;  %v4766_v26 = vadd.f32 %v9898_v32, %v4693_v62  ;;  %v4705_v15 = vadd.f32 %v9901_v46, %v4632_v59 }
 0x359   : > { %v4762_v52 = vadd.f32 %v9500_v14, %v4689_v19  ;;  %v4768_v42 = vadd.f32 %v9902_v10, %v4695_v2  ;;  %v9908_v2 = vld [vmem:[#allocation28_spill] sm:$0xff] }
 0x35a   : > { %v4837_v0 = vadd.f32 %v9900_v60, %v4764_v28  ;;  %v4839_v63 = vadd.f32 %v9903_v47, %v4766_v26  ;;  %v9909_v28 = vld [vmem:[#allocation14_spill] sm:$0xff] }
 0x35b   : > { %v4835_v51 = vadd.f32 %v9899_v23, %v4762_v52  ;;  %v9912_v60 = vld [vmem:[#allocation22_spill] sm:$0xff] }
 0x369   : > { %v4897_v1 = vpop.f32.mrf.mxu0 }
 0x36a   : > { %v4970_v41 = vpop.f32.mrf.mxu1  ;;  %v4898_v30 = vadd.f32 %v4897_v1, %v4825_v36 }
 0x36b   : > { %v4899_v40 = vpop.f32.mrf.mxu0 }
 0x36c   : > { %v4972_v13 = vpop.f32.mrf.mxu1  ;;  %v9580_v50 = vadd.f32 %v4970_v41, %v4898_v30  ;;  %v4900_v6 = vadd.f32 %v4899_v40, %v4827_v29  ;;  %v9904_v41 = vld [vmem:[#allocation13_spill] sm:$0xff]  ;;  %v4772_v29 = vadd.f32 %v9905_v54, %v4699_v56  ;;  %v9906_v30 = vld [vmem:[#allocation19_spill] sm:$0xff] }
 0x36d   : > { %v4901_v4 = vpop.f32.mrf.mxu0  ;;  %v4709_v34 = vadd.f32 %v9904_v41, %v4636_v45  ;;  %v4841_v19 = vadd.f32 %v9906_v30, %v4768_v42  ;;  %v9915_v42 = vld [vmem:[#allocation38_spill] sm:$0xff]  ;;  %v9917_v30 = vld [vmem:[#allocation37_spill] sm:$0xff] }
 0x36e   : > { %v4974_v20 = vpop.f32.mrf.mxu1  ;;  %v5011_v21 = vmin.f32 %v9580_v50, 20.0  ;;  %v9590_v12 = vadd.f32 %v4972_v13, %v4900_v6  ;;  %v4902_v58 = vadd.f32 %v4901_v4, %v4829_v38  ;;  %v9907_v6 = vld [vmem:[#allocation35_spill] sm:$0xff]  ;;  %v4713_v4 = vadd.f32 %v9908_v2, %v4640_v5 }
 0x36f   : > { %v4903_v3 = vpop.f32.mrf.mxu0  ;;  %v4711_v62 = vadd.f32 %v9907_v6, %v4638_v53  ;;  %v4782_v47 = vadd.f32 %v9915_v42, %v4709_v34 }
 0x370   : > { %v4976_v39 = vpop.f32.mrf.mxu1  ;;  %v5045_v27 = vmul.f32 1.442695, %v5011_v21  ;;  %v5012_v7 = vmin.f32 %v9590_v12, 20.0  ;;  %v9597_v57 = vadd.f32 %v4974_v20, %v4902_v58  ;;  %v4904_v43 = vadd.f32 %v4903_v3, %v4831_v55 }
 0x371   : > { %v4907_v37 = vpop.f32.mrf.mxu0  ;;  %v4845_v20 = vadd.f32 %v9520_v17, %v4772_v29  ;;  %v4715_v3 = vadd.f32 %v9909_v28, %v4642_v35 }
 0x372   : > { %v4980_v14 = vpop.f32.mrf.mxu1  ;;  %7069 = vpow2.f32 %v5045_v27  ;;  %v5047_v11 = vmul.f32 1.442695, %v5012_v7  ;;  %v5015_v48 = vmin.f32 %v9597_v57, 20.0  ;;  %v9604_v49 = vadd.f32 %v4976_v39, %v4904_v43  ;;  %v9910_v39 = vld [vmem:[#allocation20_spill] sm:$0xff]  ;;  %v9911_v7 = vld [vmem:[#allocation34_spill] sm:$0xff] }
 0x373   : > { %v4908_v8 = vadd.f32 %v4907_v37, %v4835_v51  ;;  %v4909_v36 = vpop.f32.mrf.mxu0  ;;  %v4774_v27 = vadd.f32 %v9910_v39, %v4701_v22  ;;  %v4776_v53 = vadd.f32 %v9911_v7, %v4703_v25  ;;  %v9913_v37 = vld [vmem:[#allocation21_spill] sm:$0xff]  ;;  %v4788_v29 = vadd.f32 %v9559_v9, %v4715_v3 }
 0x374   : > { %v4982_v18 = vpop.f32.mrf.mxu1  ;;  %7071 = vpow2.f32 %v5047_v11  ;;  %v5053_v33 = vmul.f32 1.442695, %v5015_v48  ;;  %v5016_v31 = vmin.f32 %v9604_v49, 20.0  ;;  %v4910_v1 = vadd.f32 %v4909_v36, %v4837_v0  ;;  %v9914_v11 = vld [vmem:[#allocation36_spill] sm:$0xff] }
 0x375   : > { %v9613_v24 = vadd.f32 %v4980_v14, %v4908_v8  ;;  %v4911_v59 = vpop.f32.mrf.mxu0  ;;  %v4778_v0 = vadd.f32 %v9912_v60, %v4705_v15  ;;  %v4847_v14 = vadd.f32 %v9913_v37, %v4774_v27  ;;  %v4849_v48 = vadd.f32 %v9914_v11, %v4776_v53 }
 0x376   : > { %v4984_v40 = vpop.f32.mrf.mxu1  ;;  %7073 = vpow2.f32 %v5053_v33  ;;  %v5055_v13 = vmul.f32 1.442695, %v5016_v31  ;;  %v9615_v16 = vadd.f32 %v4982_v18, %v4910_v1  ;;  %v4912_v38 = vadd.f32 %v4911_v59, %v4839_v63  ;;  %v9916_v63 = vld [vmem:[#allocation40_spill] sm:$0xff]  ;;  %v9918_v59 = vld [vmem:[#allocation39_spill] sm:$0xff] }
 0x377   : > { %v5019_v45 = vmin.f32 %v9613_v24, 20.0  ;;  %v4913_v55 = vpop.f32.mrf.mxu0  ;;  %v4784_v8 = vadd.f32 %v9916_v63, %v4711_v62  ;;  %v4786_v36 = vadd.f32 %v9544_v44, %v4713_v4  ;;  %v9919_v4 = vld [vmem:[#allocation41_spill] sm:$0xff]  ;;  %v4861_v7 = vadd.f32 %v9561_v61, %v4788_v29 }
 0x378   : > { %v4986_v21 = vpop.f32.mrf.mxu1  ;;  %7075 = vpow2.f32 %v5055_v13  ;;  %v5020_v58 = vmin.f32 %v9615_v16, 20.0  ;;  %v9622_v56 = vadd.f32 %v4984_v40, %v4912_v38  ;;  %v4914_v52 = vadd.f32 %v4913_v55, %v4841_v19 }
 0x379   : > { %v5061_v43 = vmul.f32 1.442695, %v5019_v45  ;;  %v4917_v5 = vpop.f32.mrf.mxu0  ;;  %v4851_v19 = vadd.f32 %v9917_v30, %v4778_v0  ;;  %v4855_v40 = vadd.f32 %v9918_v59, %v4782_v47  ;;  %v9920_v45 = vld [vmem:[#allocation42_spill] sm:$0xff] }
 0x37a   : > { %v4990_v32 = vpop.f32.mrf.mxu1  ;;  %v5063_v17 = vmul.f32 1.442695, %v5020_v58  ;;  %v5023_v26 = vmin.f32 %v9622_v56, 20.0  ;;  %v9628_v23 = vadd.f32 %v4986_v21, %v4914_v52  ;;  %v4918_v51 = vadd.f32 %v4917_v5, %v4845_v20 }
 0x37b   : > { %7077 = vpow2.f32 %v5061_v43  ;;  %v4919_v35 = vpop.f32.mrf.mxu0  ;;  %v4857_v20 = vadd.f32 %v9919_v4, %v4784_v8  ;;  %v4859_v55 = vadd.f32 %v9920_v45, %v4786_v36 }
 0x37c   : > { %v4992_v22 = vpop.f32.mrf.mxu1  ;;  %7079 = vpow2.f32 %v5063_v17  ;;  %v5069_v25 = vmul.f32 1.442695, %v5023_v26  ;;  %v5024_v46 = vmin.f32 %v9628_v23, 20.0  ;;  %v9634_v10 = vadd.f32 %v4990_v32, %v4918_v51 }
 0x37d   : > { %v4920_v15 = vadd.f32 %v4919_v35, %v4847_v14  ;;  %v4921_v18 = vpop.f32.mrf.mxu0 }
 0x37e   : > { %v4994_v33 = vpop.f32.mrf.mxu1  ;;  %7081 = vpow2.f32 %v5069_v25  ;;  %v5071_v31 = vmul.f32 1.442695, %v5024_v46  ;;  %v5027_v1 = vmin.f32 %v9634_v10, 20.0  ;;  %v4922_v41 = vadd.f32 %v4921_v18, %v4849_v48 }
 0x37f   : > { %v7070_v54 = vpop.eup %7069  ;;  %v9643_v34 = vadd.f32 %v4992_v22, %v4920_v15  ;;  %v4923_v13 = vpop.f32.mrf.mxu0 }
 0x380   : > { %v4996_v38 = vpop.f32.mrf.mxu1  ;;  %v5107_v44 = vadd.f32 1.0, %v7070_v54  ;;  %7083 = vpow2.f32 %v5071_v31  ;;  %v5077_v6 = vmul.f32 1.442695, %v5027_v1  ;;  %v9645_v62 = vadd.f32 %v4994_v33, %v4922_v41 }
 0x381   : > { %v7072_v2 = vpop.eup %7071  ;;  %v5028_v9 = vmin.f32 %v9643_v34, 20.0  ;;  %v4924_v21 = vadd.f32 %v4923_v13, %v4851_v19  ;;  %v4927_v58 = vpop.f32.mrf.mxu0 }
 0x382   : > { %v5000_v52 = vpop.f32.mrf.mxu1  ;;  %v5139_v28 = vmul.f32 %v5107_v44, %v5107_v44  ;;  %v5108_v3 = vadd.f32 1.0, %v7072_v2  ;;  %7085 = vpow2.f32 %v5077_v6  ;;  %v5031_v39 = vmin.f32 %v9645_v62, 20.0 }
 0x383   : > { %v7074_v27 = vpop.eup %7073  ;;  %v5079_v53 = vmul.f32 1.442695, %v5028_v9  ;;  %v9652_v43 = vadd.f32 %v4996_v38, %v4924_v21  ;;  %v4928_v5 = vadd.f32 %v4927_v58, %v4855_v40  ;;  %v4929_v32 = vpop.f32.mrf.mxu0 }
 0x384   : > { %v5171_v17 = vadd.f32 1.0, %v5139_v28  ;;  %v5140_v26 = vmul.f32 %v5108_v3, %v5108_v3  ;;  %v5111_v51 = vadd.f32 1.0, %v7074_v27  ;;  %v5085_v60 = vmul.f32 1.442695, %v5031_v39  ;;  %v5002_v0 = vpop.f32.mrf.mxu1 }
 0x385   : > { %v7076_v37 = vpop.eup %7075  ;;  %7087 = vpow2.f32 %v5079_v53  ;;  %v5032_v14 = vmin.f32 %v9652_v43, 20.0  ;;  %v9655_v11 = vadd.f32 %v5000_v52, %v4928_v5  ;;  %v4930_v48 = vadd.f32 %v4929_v32, %v4857_v20  ;;  %v4931_v35 = vpop.f32.mrf.mxu0 }
 0x386   : > { %7089 = vrcp.f32 %v5171_v17  ;;  %v5172_v61 = vadd.f32 1.0, %v5140_v26  ;;  %v5143_v22 = vmul.f32 %v5111_v51, %v5111_v51  ;;  %v5112_v25 = vadd.f32 1.0, %v7076_v37  ;;  %v5004_v18 = vpop.f32.mrf.mxu1 }
 0x387   : > { %7091 = vpow2.f32 %v5085_v60  ;;  %v5087_v46 = vmul.f32 1.442695, %v5032_v14  ;;  %v5035_v42 = vmin.f32 %v9655_v11, 20.0  ;;  %v9658_v47 = vadd.f32 %v5002_v0, %v4930_v48  ;;  %v4933_v33 = vpop.f32.mrf.mxu0 }
 0x388   : > { %v7078_v63 = vpop.eup %7077  ;;  %7093 = vrcp.f32 %v5172_v61  ;;  %v5175_v8 = vadd.f32 1.0, %v5143_v22  ;;  %v5144_v36 = vmul.f32 %v5112_v25, %v5112_v25  ;;  %v4932_v15 = vadd.f32 %v4931_v35, %v4859_v55  ;;  %v5006_v4 = vpop.f32.mrf.mxu1 }
 0x389   : > { %v7080_v31 = vpop.eup %7079  ;;  %v5115_v1 = vadd.f32 1.0, %v7078_v63  ;;  %7095 = vpow2.f32 %v5087_v46  ;;  %v5093_v41 = vmul.f32 1.442695, %v5035_v42  ;;  %v5036_v54 = vmin.f32 %v9658_v47, 20.0 }
 0x38a   : > { %7097 = vrcp.f32 %v5175_v8  ;;  %v5176_v29 = vadd.f32 1.0, %v5144_v36  ;;  %v5116_v30 = vadd.f32 1.0, %v7080_v31  ;;  %v9661_v19 = vadd.f32 %v5004_v18, %v4932_v15 }
 0x38b   : > { %v7082_v59 = vpop.eup %7081  ;;  %v5147_v40 = vmul.f32 %v5115_v1, %v5115_v1  ;;  %7099 = vpow2.f32 %v5093_v41  ;;  %v5095_v13 = vmul.f32 1.442695, %v5036_v54  ;;  %v4934_v38 = vadd.f32 %v4933_v33, %v4861_v7 }
 0x38c   : > { %7101 = vrcp.f32 %v5176_v29  ;;  %v5148_v44 = vmul.f32 %v5116_v30, %v5116_v30  ;;  %v5119_v6 = vadd.f32 1.0, %v7082_v59  ;;  %v5039_v2 = vmin.f32 %v9661_v19, 20.0  ;;  %v9921_v30 = vld [vmem:[#allocation4_spill] sm:$0xff] }
 0x38d   : > { %v7084_v20 = vpop.eup %7083  ;;  %v5179_v45 = vadd.f32 1.0, %v5147_v40  ;;  %7103 = vpow2.f32 %v5095_v13  ;;  %v9664_v55 = vadd.f32 %v5006_v4, %v4934_v38 }
 0x38e   : > { %v5180_v9 = vadd.f32 1.0, %v5148_v44  ;;  %v5151_v21 = vmul.f32 %v5119_v6, %v5119_v6  ;;  %v5120_v58 = vadd.f32 1.0, %v7084_v20  ;;  %v5101_v52 = vmul.f32 1.442695, %v5039_v2 }
 0x38f   : > { %v7086_v28 = vpop.eup %7085  ;;  %7105 = vrcp.f32 %v5179_v45  ;;  %v5040_v3 = vmin.f32 %v9664_v55, 20.0 }
 0x390   : > { %7107 = vrcp.f32 %v5180_v9  ;;  %v5183_v39 = vadd.f32 1.0, %v5151_v21  ;;  %v5152_v27 = vmul.f32 %v5120_v58, %v5120_v58  ;;  %v5123_v7 = vadd.f32 1.0, %v7086_v28 }
 0x391   : > { %7109 = vpow2.f32 %v5101_v52  ;;  %v5103_v53 = vmul.f32 1.442695, %v5040_v3 }
 0x392   : > { %v7088_v5 = vpop.eup %7087  ;;  %7111 = vrcp.f32 %v5183_v39  ;;  %v5184_v32 = vadd.f32 1.0, %v5152_v27  ;;  %v5155_v17 = vmul.f32 %v5123_v7, %v5123_v7  ;;  %v9923_v27 = vld [vmem:[#allocation27_spill] sm:$0xff] }
 0x393   : > { %v7090_v26 = vpop.eup %7089  ;;  %v5124_v51 = vadd.f32 1.0, %v7088_v5  ;;  %7113 = vpow2.f32 %v5103_v53 }
 0x394   : > { %v7092_v60 = vpop.eup %7091  ;;  %v5235_v0 = vmul.f32 2.0, %v7090_v26  ;;  %7115 = vrcp.f32 %v5184_v32  ;;  %v5187_v37 = vadd.f32 1.0, %v5155_v17 }
 0x395   : > { %v7094_v14 = vpop.eup %7093  ;;  %v5156_v48 = vmul.f32 %v5124_v51, %v5124_v51  ;;  %v5127_v35 = vadd.f32 1.0, %v7092_v60 }
 0x396   : > { %v7096_v61 = vpop.eup %7095  ;;  %v5267_v22 = vsub.f32 1.0, %v5235_v0  ;;  %v5236_v25 = vmul.f32 2.0, %v7094_v14  ;;  %7117 = vrcp.f32 %v5187_v37  ;;  %v9924_v0 = vld [vmem:[#allocation29_spill] sm:$0xff] }
 0x397   : > { %v7098_v46 = vpop.eup %7097  ;;  %v5188_v42 = vadd.f32 1.0, %v5156_v48  ;;  %v5159_v63 = vmul.f32 %v5127_v35, %v5127_v35  ;;  %v5128_v8 = vadd.f32 1.0, %v7096_v61 }
 0x398   : > { %v7100_v36 = vpop.eup %7099  ;;  %v5299_v15 = vmul.f32 %v5267_v22, %v9580_v50  ;;  %v5268_v18 = vsub.f32 1.0, %v5236_v25  ;;  %v5239_v33 = vmul.f32 2.0, %v7098_v46  ;;  %v9922_v50 = vld [vmem:[#allocation10_spill] sm:$0xff] }
 0x399   : > { %v7102_v31 = vpop.eup %7101  ;;  %7119 = vrcp.f32 %v5188_v42  ;;  %v5191_v1 = vadd.f32 1.0, %v5159_v63  ;;  %v5160_v41 = vmul.f32 %v5128_v8, %v5128_v8  ;;  %v5131_v54 = vadd.f32 1.0, %v7100_v36  ;;  %v9925_v36 = vld [vmem:[#allocation23_spill] sm:$0xff] }
 0x39a   : > { %v7104_v29 = vpop.eup %7103  ;;  %v5379_v59 = vmul.f32 %v9921_v30, %v5299_v15  ;;  %v5300_v40 = vmul.f32 %v5268_v18, %v9590_v12  ;;  %v5271_v13 = vsub.f32 1.0, %v5239_v33  ;;  %v5240_v38 = vmul.f32 2.0, %v7102_v31 }
 0x39b   : > { %7121 = vrcp.f32 %v5191_v1  ;;  %v5192_v44 = vadd.f32 1.0, %v5160_v41  ;;  %v5163_v6 = vmul.f32 %v5131_v54, %v5131_v54  ;;  %v5132_v2 = vadd.f32 1.0, %v7104_v29 }
 0x39c   : > { %v7106_v4 = vpop.eup %7105  ;;  %v5443_v20 = vadd.f32 %v9922_v50, %v5379_v59  ;;  %v5380_v45 = vmul.f32 %v9921_v30, %v5300_v40  ;;  %v5303_v9 = vmul.f32 %v5271_v13, %v9597_v57  ;;  %v5272_v21 = vsub.f32 1.0, %v5240_v38  ;;  %v9926_v59 = vld [vmem:[#allocation9_spill] sm:$0xff] }
 0x39d   : > { %v7108_v58 = vpop.eup %7107  ;;  %v5243_v52 = vmul.f32 2.0, %v7106_v4  ;;  %7123 = vrcp.f32 %v5192_v44  ;;  %v5195_v28 = vadd.f32 1.0, %v5163_v6  ;;  %v5164_v3 = vmul.f32 %v5132_v2, %v5132_v2  ;;  %v9927_v44 = vld [vmem:[#allocation5_spill] sm:$0xff] }
 0x39e   : > { %v7110_v12 = vpop.eup %7109  ;;  %v5444_v39 = vadd.f32 %v9922_v50, %v5380_v45  ;;  %v5383_v7 = vmul.f32 %v9923_v27, %v5303_v9  ;;  %v5304_v53 = vmul.f32 %v5272_v21, %v9604_v49  ;;  %v5244_v5 = vmul.f32 2.0, %v7108_v58 }
 0x39f   : > { %v7112_v32 = vpop.eup %7111  ;;  %v5275_v17 = vsub.f32 1.0, %v5243_v52  ;;  %7125 = vrcp.f32 %v5195_v28  ;;  %v5196_v26 = vadd.f32 1.0, %v5164_v3  ;;  %v5135_v57 = vadd.f32 1.0, %v7110_v12  ;;  %v9928_v52 = vld [vmem:[#allocation31_spill] sm:$0xff]  ;;  %v9929_v3 = vld [vmem:[#allocation8_spill] sm:$0xff] }
 0x3a0   : > { %v7114_v51 = vpop.eup %7113  ;;  %v6225_v60 = vpack.c.bf16 %v5444_v39, %v5443_v20  ;;  %v5447_v37 = vadd.f32 %v9924_v0, %v5383_v7  ;;  %v5384_v14 = vmul.f32 %v9923_v27, %v5304_v53  ;;  %v5276_v48 = vsub.f32 1.0, %v5244_v5 }
 0x3a1   : > { %v7116_v35 = vpop.eup %7115  ;;  %v5307_v61 = vmul.f32 %v5275_v17, %v9613_v24  ;;  %v5247_v22 = vmul.f32 2.0, %v7112_v32  ;;  %7127 = vrcp.f32 %v5196_v26  ;;  %v5167_v49 = vmul.f32 %v5135_v57, %v5135_v57 }
 0x3a2   : > { %5570 = vst [vmem:[%s9383_s12 + $0x8] sm:$0xff] %v6225_v60  ;;  %v5448_v25 = vadd.f32 %v9924_v0, %v5384_v14  ;;  %v5308_v46 = vmul.f32 %v5276_v48, %v9615_v16  ;;  %v5248_v42 = vmul.f32 2.0, %v7116_v35  ;;  %v5136_v63 = vadd.f32 1.0, %v7114_v51  ;;  %v9930_v51 = vld [vmem:[#allocation25_spill] sm:$0xff] }
 0x3a3   : > { %v7118_v8 = vpop.eup %7117  ;;  %v5387_v15 = vmul.f32 %v9925_v36, %v5307_v61  ;;  %v5279_v18 = vsub.f32 1.0, %v5247_v22  ;;  %v5199_v33 = vadd.f32 1.0, %v5167_v49 }
 0x3a4   : > { %v6227_v31 = vpack.c.bf16 %v5448_v25, %v5447_v37  ;;  %v5388_v1 = vmul.f32 %v9925_v36, %v5308_v46  ;;  %v5280_v24 = vsub.f32 1.0, %v5248_v42  ;;  %v5251_v41 = vmul.f32 2.0, %v7118_v8  ;;  %v9931_v37 = vld [vmem:[#allocation6_spill] sm:$0xff]  ;;  %v9932_v46 = vld [vmem:[#allocation11_spill] sm:$0xff]  ;;  %v9933_v36 = vld [vmem:[#allocation24_spill] sm:$0xff] }
 0x3a5   : > { %v5311_v54 = vmul.f32 %v5279_v18, %v9622_v56  ;;  %7129 = vrcp.f32 %v5199_v33  ;;  %v5168_v29 = vmul.f32 %v5136_v63, %v5136_v63  ;;  %v5451_v16 = vadd.f32 %v9926_v59, %v5387_v15 }
 0x3a6   : > { %v7120_v30 = vpop.eup %7119  ;;  %5572 = vst [vmem:[%s9383_s12 + $0x18] sm:$0xff] %v6227_v31  ;;  %v5452_v40 = vadd.f32 %v9926_v59, %v5388_v1  ;;  %v5312_v13 = vmul.f32 %v5280_v24, %v9628_v23  ;;  %v5283_v38 = vsub.f32 1.0, %v5251_v41  ;;  %v9934_v41 = vld [vmem:[#allocation33_spill] sm:$0xff] }
 0x3a7   : > { %v5391_v6 = vmul.f32 %v9927_v44, %v5311_v54  ;;  %v5252_v2 = vmul.f32 2.0, %v7120_v30  ;;  %v5200_v4 = vadd.f32 1.0, %v5168_v29 }
 0x3a8   : > { %v7122_v50 = vpop.eup %7121  ;;  %v6229_v20 = vpack.c.bf16 %v5452_v40, %v5451_v16  ;;  %v5392_v56 = vmul.f32 %v9927_v44, %v5312_v13  ;;  %v5315_v45 = vmul.f32 %v5283_v38, %v9634_v10  ;;  %v9935_v16 = vld [vmem:[#allocation7_spill] sm:$0xff]  ;;  %v9936_v38 = vld [vmem:[#allocation26_spill] sm:$0xff] }
 0x3a9   : > { %v5284_v9 = vsub.f32 1.0, %v5252_v2  ;;  %v5255_v21 = vmul.f32 2.0, %v7122_v50  ;;  %7131 = vrcp.f32 %v5200_v4  ;;  %v5455_v28 = vadd.f32 %v9928_v52, %v5391_v6  ;;  %v5611_v4 = vld [vmem:[%s9383_s12 + $0x10] sm:$0xff] (%p7265_p5) }
 0x3aa   : > { %v7124_v58 = vpop.eup %7123  ;;  %5574 = vst [vmem:[%s9383_s12 + $0x28] sm:$0xff] %v6229_v20  ;;  %v5456_v23 = vadd.f32 %v9928_v52, %v5392_v56  ;;  %v5395_v12 = vmul.f32 %v9929_v3, %v5315_v45  ;;  %v5615_v20 = vld [vmem:[%s9383_s12 + $0x20] sm:$0xff] (%p7265_p5)  ;;  %5612 = vst [vmem:[%s5594_s20 + $0x20] sm:$0xff] (%p7265_p5), %v5611_v4  ;;  %v5619_v45 = vld [vmem:[%s9383_s12 + $0x30] sm:$0xff] (%p7265_p5) }
 0x3ab   : > { %v5316_v39 = vmul.f32 %v5284_v9, %v9643_v34  ;;  %v5287_v27 = vsub.f32 1.0, %v5255_v21  ;;  %v5256_v7 = vmul.f32 2.0, %v7124_v58  ;;  %5616 = vst [vmem:[%s5594_s20 + $0x40] sm:$0xff] (%p7265_p5), %v5615_v20  ;;  %v5623_v21 = vld [vmem:[%s9383_s12 + $0x40] sm:$0xff] (%p7265_p5)  ;;  %5620 = vst [vmem:[%s5594_s20 + $0x60] sm:$0xff] (%p7265_p5), %v5619_v45  ;;  %v5627_v52 = vld [vmem:[%s9383_s12 + $0x50] sm:$0xff] (%p7265_p5) }
 0x3ac   : > { %v7126_v53 = vpop.eup %7125  ;;  %v6231_v5 = vpack.c.bf16 %v5456_v23, %v5455_v28  ;;  %v5459_v60 = vadd.f32 %v9930_v51, %v5395_v12  ;;  %5624 = vst [vmem:[%s5594_s20 + $0x80] sm:$0xff] (%p7265_p5), %v5623_v21  ;;  %5628 = vst [vmem:[%s5594_s20 + $0xa0] sm:$0xff] (%p7265_p5), %v5627_v52  ;;  %v5631_v23 = vld [vmem:[%s9383_s12 + $0x60] sm:$0xff] (%p7265_p5)  ;;  %v5635_v12 = vld [vmem:[%s9383_s12 + $0x70] sm:$0xff] (%p7265_p5) }
 0x3ad   : > { %v5396_v10 = vmul.f32 %v9929_v3, %v5316_v39  ;;  %v5319_v32 = vmul.f32 %v5287_v27, %v9645_v62  ;;  %v5288_v17 = vsub.f32 1.0, %v5256_v7  ;;  %v5259_v26 = vmul.f32 2.0, %v7126_v53  ;;  %v5613_v50 = vld [vmem:[%s9383_s12 + $0x18] sm:$0xff] (%p7265_p5)  ;;  %5632 = vst [vmem:[%s5594_s20 + $0xc0] sm:$0xff] (%p7265_p5), %v5631_v23  ;;  %5636 = vst [vmem:[%s5594_s20 + $0xe0] sm:$0xff] (%p7265_p5), %v5635_v12 }
 0x3ae   : > { %v7128_v57 = vpop.eup %7127  ;;  %5576 = vst [vmem:[%s9383_s12 + $0x38] sm:$0xff] %v6231_v5  ;;  %5614 = vst [vmem:[%s5594_s20 + $0x28] sm:$0xff] (%p7265_p5), %v5613_v50 }
 0x3af   : > { %v5460_v0 = vadd.f32 %v9930_v51, %v5396_v10  ;;  %v5399_v14 = vmul.f32 %v9931_v37, %v5319_v32  ;;  %v5320_v34 = vmul.f32 %v5288_v17, %v9652_v43  ;;  %v5291_v48 = vsub.f32 1.0, %v5259_v26 }
 0x3b0   : > { %v5260_v35 = vmul.f32 2.0, %v7128_v57 }
 0x3b1   : > { %v6233_v61 = vpack.c.bf16 %v5460_v0, %v5459_v60  ;;  %v5400_v22 = vmul.f32 %v9931_v37, %v5320_v34  ;;  %v5323_v62 = vmul.f32 %v5291_v48, %v9655_v11  ;;  %v5463_v42 = vadd.f32 %v9932_v46, %v5399_v14  ;;  %v5617_v56 = vld [vmem:[%s9383_s12 + $0x28] sm:$0xff] (%p7265_p5) }
 0x3b2   : > { %v7130_v49 = vpop.eup %7129  ;;  %v5292_v25 = vsub.f32 1.0, %v5260_v35  ;;  %5618 = vst [vmem:[%s5594_s20 + $0x48] sm:$0xff] (%p7265_p5), %v5617_v56 }
 0x3b3   : > { %5578 = vst [vmem:[%s9383_s12 + $0x48] sm:$0xff] %v6233_v61  ;;  %v5464_v63 = vadd.f32 %v9932_v46, %v5400_v22  ;;  %v5263_v8 = vmul.f32 2.0, %v7130_v49  ;;  %v5403_v15 = vmul.f32 %v9933_v36, %v5323_v62 }
 0x3b4   : > { %v5324_v43 = vmul.f32 %v5292_v25, %v9658_v47 }
 0x3b5   : > { %v6235_v18 = vpack.c.bf16 %v5464_v63, %v5463_v42  ;;  %v5295_v33 = vsub.f32 1.0, %v5263_v8  ;;  %v5467_v54 = vadd.f32 %v9934_v41, %v5403_v15  ;;  %v5621_v9 = vld [vmem:[%s9383_s12 + $0x38] sm:$0xff] (%p7265_p5) }
 0x3b6   : > { %v7132_v31 = vpop.eup %7131  ;;  %v5404_v1 = vmul.f32 %v9933_v36, %v5324_v43  ;;  %5622 = vst [vmem:[%s5594_s20 + $0x68] sm:$0xff] (%p7265_p5), %v5621_v9 }
 0x3b7   : > { %5580 = vst [vmem:[%s9383_s12 + $0x58] sm:$0xff] %v6235_v18  ;;  %v5327_v11 = vmul.f32 %v5295_v33, %v9661_v19  ;;  %v5264_v24 = vmul.f32 2.0, %v7132_v31  ;;  %v5607_v19 = vld [vmem:[%s9383_s12] sm:$0xff] (%p7265_p5) }
 0x3b8   : > { %v5468_v29 = vadd.f32 %v9934_v41, %v5404_v1  ;;  %5608 = vst [vmem:[%s5594_s20] sm:$0xff] (%p7265_p5), %v5607_v19 }
 0x3b9   : > { %v5296_v30 = vsub.f32 1.0, %v5264_v24  ;;  %v5407_v40 = vmul.f32 %v9935_v16, %v5327_v11 }
 0x3ba   : > { %v6237_v59 = vpack.c.bf16 %v5468_v29, %v5467_v54  ;;  %v5625_v58 = vld [vmem:[%s9383_s12 + $0x48] sm:$0xff] (%p7265_p5) }
 0x3bb   : > { %v5328_v47 = vmul.f32 %v5296_v30, %v9664_v55  ;;  %v5471_v44 = vadd.f32 %v9936_v38, %v5407_v40  ;;  %v5609_v55 = vld [vmem:[%s9383_s12 + $0x8] sm:$0xff] (%p7265_p5)  ;;  %5626 = vst [vmem:[%s5594_s20 + $0x88] sm:$0xff] (%p7265_p5), %v5625_v58 }
 0x3bc   : > { %5582 = vst [vmem:[%s9383_s12 + $0x68] sm:$0xff] %v6237_v59  ;;  %5610 = vst [vmem:[%s5594_s20 + $0x8] sm:$0xff] (%p7265_p5), %v5609_v55 }
 0x3bd   : > { %v5408_v13 = vmul.f32 %v9935_v16, %v5328_v47 }
 0x3be   : > { %v5629_v28 = vld [vmem:[%s9383_s12 + $0x58] sm:$0xff] (%p7265_p5) }
 0x3bf   : > { %v5472_v6 = vadd.f32 %v9936_v38, %v5408_v13  ;;  %5591 = sbr.rel (!%p7265_p5) target bundleno = 972 (0x3cc), region = 59  ;;  %5630 = vst [vmem:[%s5594_s20 + $0xa8] sm:$0xff] (%p7265_p5), %v5629_v28 }
 0x3c1   : > { %v6239_v2 = vpack.c.bf16 %v5472_v6, %v5471_v44 }
 0x3c3   : > { %5584 = vst [vmem:[%s9383_s12 + $0x78] sm:$0xff] %v6239_v2  ;;  %v5633_v3 = vld [vmem:[%s9383_s12 + $0x68] sm:$0xff] (%p7265_p5) }
 0x3c4   : > { %5634 = vst [vmem:[%s5594_s20 + $0xc8] sm:$0xff] %v5633_v3 }
 0x3ca   : > { %v5637_v39 = vld [vmem:[%s9383_s12 + $0x78] sm:$0xff] }
 0x3cb   : > { %5638 = vst [vmem:[%s5594_s20 + $0xe8] sm:$0xff] %v5637_v39 }
 0x3cc PF: > { %p10_p10 = scmp.ge.s32.totalorder %s7252_s16, 4   ;;  %s9937_s12 = smov %s7207_s13 }
 0x3cd   : > { %s9938_s13 = smov %s7263_s19  ;;  %s9939_s14 = smov %s7252_s16 }
 0x3ce   :  { %12 = sbr.rel (!%p10_p10) target bundleno = 2 (0x2), region = 113 }

// kernel: res2net3d_forward.15
= control target key start
LH: loop header
LB: loop body
LE: loop exit
PB: predicated region body
PF: predicated region fallthrough
CT: control target
= control target key end

     0   :  { %s732_s0 = inlined_call_operand.vmem [shape: bf16[8,224], index: 0, kind: input, shape index: {}]   ;;  %s733_s1 = inlined_call_operand.vmem [shape: f32[8,3], index: 1, kind: input, shape index: {}]   ;;  %s734_s2 = inlined_call_operand.vmem [shape: bf16[216,128], index: 2, kind: input, shape index: {}]   ;;  %s735_s3 = inlined_call_operand.<no memory space> [shape: bf16[], index: 3, kind: input, shape index: {}]   ;;  %s736_s4 = inlined_call_operand.vmem [shape: f32[1,128], index: 4, kind: output, shape index: {}]  }
   0x1   :  { %v9_v0 = vstv %s735_s3 }
   0x2   :  { %v10_v1 = vunpack.i.l.bf16 %v9_v0 }
   0x3   :  { %v603_v2 = vld [vmem:[%s734_s2 + $0x38] sm:$0xff]   ;;  %v635_v3 = vmov 0   ;;  %v605_v4 = vld [vmem:[%s734_s2 + $0x30] sm:$0xff]   ;;  %v607_v5 = vld [vmem:[%s734_s2 + $0x28] sm:$0xff]   ;;  %v636_v8 = vmov 2   ;;  %vm401_vm0 = vcmask 785408  }
   0x4   :  { %405 = vmatprep.subr.bf16.mxu0 %v635_v3  ;;  %599 = vset.pattern.permute.xlu0 %v635_v3  ;;  %553 = vst [vmem:[#allocation7 + $0x38] sm:$0xff] %v603_v2   ;;  %548 = vst [vmem:[#allocation7 + $0x30] sm:$0xff] %v605_v4   ;;  %v609_v6 = vld [vmem:[%s734_s2 + $0x20] sm:$0xff]   ;;  %v611_v7 = vld [vmem:[%s734_s2 + $0x18] sm:$0xff]   ;;  %v637_v29 = vmov 1  }
   0x5   :  { %543 = vst [vmem:[#allocation7 + $0x28] sm:$0xff] %v607_v5   ;;  %601 = vset.pattern.permute.xlu1 %v636_v8  ;;  %538 = vst [vmem:[#allocation7 + $0x20] sm:$0xff] %v609_v6   ;;  %v613_v9 = vld [vmem:[%s734_s2 + $0x10] sm:$0xff]   ;;  %v615_v10 = vld [vmem:[%s734_s2 + $0x8] sm:$0xff]  }
   0x6   :  { %533 = vst [vmem:[#allocation7 + $0x18] sm:$0xff] %v611_v7   ;;  %528 = vst [vmem:[#allocation7 + $0x10] sm:$0xff] %v613_v9   ;;  %v20_v11 = vld [vmem:[%s734_s2] sm:$0xff]   ;;  %v501_v12 = vld [vmem:[%s734_s2 + $0x68] sm:$0xf] }
   0x7   :  { %523 = vst [vmem:[#allocation7 + $0x8] sm:$0xff] %v615_v10   ;;  %26 = vst [vmem:[#allocation7] sm:$0xff] %v20_v11   ;;  %v580_v13 = vunpack.c.l.bf16 %v501_v12  ;;  %v619_v14 = vld [vmem:[%s734_s2 + $0x60] sm:$0xff]   ;;  %v621_v19 = vld [vmem:[%s734_s2 + $0x58] sm:$0xff]  }
   0x8   :  { %578 = vst [vmem:[#allocation7 + $0x60] sm:$0xff] %v619_v14   ;;  %573 = vst [vmem:[#allocation7 + $0x58] sm:$0xff] %v621_v19   ;;  %v623_v21 = vld [vmem:[%s734_s2 + $0x50] sm:$0xff]   ;;  %v625_v22 = vld [vmem:[%s734_s2 + $0x48] sm:$0xff]  }
   0x9   :  { %v582_v16 = vpack.c.bf16 %v10_v1, %v580_v13  ;;  %568 = vst [vmem:[#allocation7 + $0x50] sm:$0xff] %v623_v21   ;;  %v627_v23 = vld [vmem:[%s734_s2 + $0x40] sm:$0xff]   ;;  %563 = vst [vmem:[#allocation7 + $0x48] sm:$0xff] %v625_v22  }
   0xa   :  { %v276_v24 = vld [vmem:[%s732_s0] sm:$0xff]  ;;  %558 = vst [vmem:[#allocation7 + $0x40] sm:$0xff] %v627_v23  }
   0xb   :  { %v604_v15 = vld [vmem:[#allocation7 + $0x38] sm:$0xff]   ;;  %v606_v17 = vld [vmem:[#allocation7 + $0x30] sm:$0xff]   ;;  %583 = vst [vmem:[#allocation7 + $0x68] sm:$0xff] %v582_v16   ;;  %v503_v26 = vcombine.high %v276_v24, %v276_v24  ;;  %v305_v27 = vld [vmem:[%s733_s1] sm:$0xff]  ;;  %v502_v38 = vcombine.low %v276_v24, %v276_v24 }
   0xc   :  { %406 = vmatpush1.bf16.msra.mxu0 %v604_v15  ;;  %v608_v18 = vld [vmem:[#allocation7 + $0x28] sm:$0xff]   ;;  %v610_v20 = vld [vmem:[#allocation7 + $0x20] sm:$0xff]   ;;  %308 = vperm.xlu0 %599, %v305_v27  }
   0xd   :  { %407 = vmatprep.subr.bf16.mxu0 %v635_v3  ;;  %v612_v25 = vld [vmem:[#allocation7 + $0x18] sm:$0xff]   ;;  %518 = vmatprep.mubr.msk.bf16.mxu0 %vm401_vm0, %v503_v26  ;;  %v614_v28 = vld [vmem:[#allocation7 + $0x10] sm:$0xff]  }
   0xe   :  { %461 = vperm.xlu1 %601, %v305_v27   ;;  %v616_v30 = vld [vmem:[#allocation7 + $0x8] sm:$0xff]   ;;  %v617_v31 = vld [vmem:[#allocation7] sm:$0xff]  }
   0xf   :  { %v620_v33 = vld [vmem:[#allocation7 + $0x60] sm:$0xff]   ;;  %v622_v34 = vld [vmem:[#allocation7 + $0x58] sm:$0xff]  }
  0x10   :  { %408 = vmatpush1.bf16.msra.mxu0 %v606_v17  ;;  %600 = vset.pattern.permute.xlu0 %v637_v29  ;;  %v624_v35 = vld [vmem:[#allocation7 + $0x50] sm:$0xff]   ;;  %v626_v36 = vld [vmem:[#allocation7 + $0x48] sm:$0xff]  }
  0x11   :  { %409 = vmatprep.subr.bf16.mxu0 %v635_v3  ;;  %456 = vperm.xlu0 %600, %v305_v27   ;;  %v628_v37 = vld [vmem:[#allocation7 + $0x40] sm:$0xff]  }
  0x12   :  { %v618_v32 = vld [vmem:[#allocation7 + $0x68] sm:$0xff]  }
  0x14   :  { %410 = vmatpush1.bf16.msra.mxu0 %v608_v18 }
  0x15   :  { %411 = vmatprep.subr.bf16.mxu0 %v635_v3  ;;  %602 = vset.pattern.permute.xlu0 %v636_v8 }
  0x18   :  { %412 = vmatpush1.bf16.msra.mxu0 %v610_v20 }
  0x19   :  { %413 = vmatprep.subr.bf16.mxu0 %v635_v3 }
  0x1c   :  { %414 = vmatpush1.bf16.msra.mxu0 %v612_v25 }
  0x1d   :  { %415 = vmatprep.subr.bf16.mxu0 %v635_v3 }
  0x20   :  { %416 = vmatpush1.bf16.msra.mxu0 %v614_v28 }
  0x21   :  { %417 = vmatprep.subr.bf16.mxu0 %v635_v3 }
  0x24   :  { %418 = vmatpush1.bf16.msra.mxu0 %v616_v30 }
  0x25   :  { %419 = vmatprep.subr.bf16.mxu0 %v635_v3 }
  0x28   :  { %420 = vmatpush1.bf16.msra.mxu0 %v617_v31 }
  0x29   :  { %425 = vmatprep.subr.bf16.mxu0 %v635_v3 }
  0x2c   :  { %426 = vmatpush2.bf16.msra.mxu0 %v618_v32 }
  0x2d   :  { %427 = vmatprep.subr.bf16.mxu0 %v635_v3 }
  0x30   :  { %428 = vmatpush2.bf16.msra.mxu0 %v620_v33 }
  0x31   :  { %429 = vmatprep.subr.bf16.mxu0 %v635_v3 }
  0x34   :  { %430 = vmatpush2.bf16.msra.mxu0 %v622_v34 }
  0x35   :  { %431 = vmatprep.subr.bf16.mxu0 %v635_v3 }
  0x38   :  { %432 = vmatpush2.bf16.msra.mxu0 %v624_v35 }
  0x39   :  { %433 = vmatprep.subr.bf16.mxu0 %v635_v3 }
  0x3c   :  { %434 = vmatpush2.bf16.msra.mxu0 %v626_v36 }
  0x3d   :  { %435 = vmatprep.subr.bf16.mxu0 %v635_v3 }
  0x40   :  { %436 = vmatpush2.bf16.msra.mxu0 %v628_v37 }
  0x43   :  { %438 = vmatmul.mubr.bf16.vlgmr.msra.gmra.mxu0 %v502_v38 }
  0x87   :  { %v309_v39 = vpop.permute.xlu0 %308 }
  0x89   :  { %v462_v56 = vpop.permute.xlu1 %461 }
  0x8c   :  { %v457_v54 = vpop.permute.xlu0 %456 }
 0x103   :  { %v439_v40 = vpop.f32.mrf.mxu0 }
 0x104   :  { %v440_v41 = vadd.f32 %v439_v40, %v309_v39 }
 0x105   :  { %v441_v42 = vpop.f32.mrf.mxu0 }
 0x106   :  { %v445_v43 = vmin.f32 %v440_v41, 20.0 }
 0x107   :  { %v442_v44 = vpop.f32.mrf.mxu0 }
 0x108   :  { %v446_v45 = vmul.f32 1.442695, %v445_v43 }
 0x109   :  { %v443_v46 = vpop.f32.mrf.mxu0 }
 0x10a   :  { %631 = vpow2.f32 %v446_v45 }
 0x117   :  { %v632_v47 = vpop.eup %631 }
 0x118   :  { %v448_v48 = vadd.f32 1.0, %v632_v47 }
 0x11a   :  { %v449_v49 = vmul.f32 %v448_v48, %v448_v48 }
 0x11c   :  { %v450_v50 = vadd.f32 1.0, %v449_v49 }
 0x11e   :  { %633 = vrcp.f32 %v450_v50 }
 0x12b   :  { %v634_v51 = vpop.eup %633 }
 0x12c   :  { %v452_v52 = vmul.f32 2.0, %v634_v51 }
 0x12e   :  { %v453_v53 = vsub.f32 1.0, %v452_v52 }
 0x130   :  { %v454_v55 = vmul.f32 %v453_v53, %v440_v41 }
 0x132   :  { %v459_v57 = vmul.f32 %v457_v54, %v454_v55 }
 0x134   :  { %v464_v58 = vadd.f32 %v462_v56, %v459_v57 }
 0x136   :  { %v465_v59 = vrot.slane %v464_v58, 4 }
 0x138   :  { %v466_v60 = vadd.f32 %v465_v59, %v464_v58 }
 0x13a   :  { %v467_v61 = vrot.slane %v466_v60, 2 }
 0x13c   :  { %v468_v62 = vadd.f32 %v467_v61, %v466_v60 }
 0x13e   :  { %v469_v63 = vrot.slane %v468_v62, 1 }
 0x140   :  { %v470_v0 = vadd.f32 %v469_v63, %v468_v62 }
 0x142   :  { %471 = vst [vmem:[%s736_s4] sm:$0x1] %v470_v0 }

</bundles_post_ra>
